<compile_context>
chip_gen: v6e
topology: v6e:2x2x1
jax: 0.10.0
libtpu: 0.0.40
codegen_flags: <defaults>
</compile_context>

<pallas_src>
import functools

import jax
import jax.numpy as jnp
from jax.experimental import pallas as pl
from jax.experimental.pallas import tpu as pltpu


def sakt_kernel(q_ids_ref, i_ids_ref,
                w_qe_ref, w_ie_ref, pos_ref,
                wq_ref, bq_ref, wk_ref, bk_ref, wv_ref, bv_ref, wo_ref, bo_ref,
                g1_ref, be1_ref,
                w1_ref, bf1_ref, w2_ref, bf2_ref,
                g2_ref, be2_ref,
                ww_ref, bw_ref,
                out_ref,
                *, n_heads, seq_len):
    eps = 1e-5
    N = q_ids_ref.shape[0]                # rows in this slab = B_blk * L
    L = seq_len
    B_blk = N // L
    Q = w_qe_ref.shape[0]
    two_q = w_ie_ref.shape[0]
    D = w_qe_ref.shape[1]
    d_k = D // n_heads

    # ---------------- Embedding (index lookup, no one-hot in HBM) ----------------
    q_ids = q_ids_ref[...]                                   # [N, 1] int32
    i_ids = i_ids_ref[...]                                   # [N, 1] int32
    lane_q = jax.lax.broadcasted_iota(jnp.int32, (N, Q), 1)
    lane_i = jax.lax.broadcasted_iota(jnp.int32, (N, two_q), 1)
    q_onehot = jnp.where(lane_q == q_ids, 1.0, 0.0).astype(jnp.bfloat16)
    i_onehot = jnp.where(lane_i == i_ids, 1.0, 0.0).astype(jnp.bfloat16)
    # TODO(synk): at production n_question (~13k) keep w_qe / w_ie / ww in HBM
    # (memory_space=pl.ANY), row-gather with make_async_copy and tile the head
    # matmul over n_question, instead of VMEM-resident tables + one-hot matmul.
    x = jnp.dot(q_onehot, w_qe_ref[...],
                preferred_element_type=jnp.float32)          # [N, D] f32 (exact gather)
    yemb = jnp.dot(i_onehot, w_ie_ref[...],
                   preferred_element_type=jnp.float32) + pos_ref[...]

    # ---------------- Attention projections: bf16 MXU, f32 accumulation ----------
    x_bf = x.astype(jnp.bfloat16)
    y_bf = yemb.astype(jnp.bfloat16)
    qm = jnp.dot(x_bf, wq_ref[...], preferred_element_type=jnp.float32) + bq_ref[...]
    km = jnp.dot(y_bf, wk_ref[...], preferred_element_type=jnp.float32) + bk_ref[...]
    vm = jnp.dot(y_bf, wv_ref[...], preferred_element_type=jnp.float32) + bv_ref[...]

    # Causal attention is per sequence: view the slab as [B_blk, L, D].
    q3 = qm.reshape(B_blk, L, D).astype(jnp.bfloat16)
    k3 = km.reshape(B_blk, L, D).astype(jnp.bfloat16)
    v3 = vm.reshape(B_blk, L, D).astype(jnp.bfloat16)

    row = jax.lax.broadcasted_iota(jnp.int32, (L, L), 0)
    col = jax.lax.broadcasted_iota(jnp.int32, (L, L), 1)
    causal = (col <= row)[None, :, :]                        # hoisted, reused by all heads
    scale = d_k ** -0.5

    ctx_parts = []
    for h in range(n_heads):                                 # d_k is a 128-multiple: aligned slices
        sl = slice(h * d_k, (h + 1) * d_k)
        s = jnp.einsum("bqd,bkd->bqk", q3[:, :, sl], k3[:, :, sl],
                       preferred_element_type=jnp.float32) * scale
        s = jnp.where(causal, s, -1e9)
        s = s - jnp.max(s, axis=-1, keepdims=True)
        p = jnp.exp(s)
        p = p * pl.reciprocal(jnp.sum(p, axis=-1, keepdims=True), approx=True)
        ctx_parts.append(jnp.einsum("bqk,bkd->bqd", p.astype(jnp.bfloat16),
                                    v3[:, :, sl],
                                    preferred_element_type=jnp.float32))
    ctx = jnp.concatenate(ctx_parts, axis=-1).reshape(N, D)  # [N, D] f32
    attn = jnp.dot(ctx.astype(jnp.bfloat16), wo_ref[...],
                   preferred_element_type=jnp.float32) + bo_ref[...]

    # TODO(synk): dropout layers are identity in eval mode; not implemented.

    # residual + LayerNorm 1 (f32 stats)
    z = attn + x
    mu = jnp.mean(z, axis=-1, keepdims=True)
    var = jnp.mean((z - mu) ** 2, axis=-1, keepdims=True)
    z = (z - mu) * jax.lax.rsqrt(var + eps) * g1_ref[...] + be1_ref[...]

    # ---------------- Feed-forward ----------------
    f = jnp.dot(z.astype(jnp.bfloat16), w1_ref[...],
                preferred_element_type=jnp.float32) + bf1_ref[...]
    f = jnp.maximum(f, 0.0)
    f = jnp.dot(f.astype(jnp.bfloat16), w2_ref[...],
                preferred_element_type=jnp.float32) + bf2_ref[...]

    # residual + LayerNorm 2 (f32 stats)
    z2 = f + z
    mu2 = jnp.mean(z2, axis=-1, keepdims=True)
    var2 = jnp.mean((z2 - mu2) ** 2, axis=-1, keepdims=True)
    enc = (z2 - mu2) * jax.lax.rsqrt(var2 + eps) * g2_ref[...] + be2_ref[...]

    # ---------------- Prediction head (lane-dense [N, Q] store) ----------------
    logits = jnp.dot(enc.astype(jnp.bfloat16), ww_ref[...],
                     preferred_element_type=jnp.float32) + bw_ref[...]
    out_ref[...] = pl.reciprocal(1.0 + jnp.exp(-logits), approx=True).astype(out_ref.dtype)


def sakt_forward(q_ids, inter_ids, params, *, n_heads, rows_per_step):
    B, L = q_ids.shape
    Q, D = params["w_qe"].shape
    N_total = B * L
    assert rows_per_step % L == 0 and N_total % rows_per_step == 0
    b_blk = rows_per_step // L

    # Positional embedding tiled once to match a slab of b_blk stacked sequences.
    pos_tiled = jnp.tile(params["pos"], (b_blk, 1))          # [rows_per_step, D] f32

    q_flat = q_ids.reshape(N_total, 1).astype(jnp.int32)
    i_flat = inter_ids.reshape(N_total, 1).astype(jnp.int32)

    weights = [params["w_qe"], params["w_ie"], pos_tiled,
               params["wq"], params["bq"], params["wk"], params["bk"],
               params["wv"], params["bv"], params["wo"], params["bo"],
               params["g1"], params["be1"],
               params["w1"], params["bf1"], params["w2"], params["bf2"],
               params["g2"], params["be2"],
               params["ww"], params["bw"]]

    def full_spec(arr):
        # Grid-invariant block (constant index map) -> fetched once, stays in VMEM.
        return pl.BlockSpec(arr.shape, lambda g: (0,) * arr.ndim)

    in_specs = [pl.BlockSpec((rows_per_step, 1), lambda g: (g, 0)),
                pl.BlockSpec((rows_per_step, 1), lambda g: (g, 0))]
    in_specs += [full_spec(w) for w in weights]

    out_spec = pl.BlockSpec((rows_per_step, Q), lambda g: (g, 0))

    kernel = functools.partial(sakt_kernel, n_heads=n_heads, seq_len=L)
    out_flat = pl.pallas_call(
        kernel,
        out_shape=jax.ShapeDtypeStruct((N_total, Q), jnp.float32),
        grid=(N_total // rows_per_step,),
        in_specs=in_specs,
        out_specs=out_spec,
        compiler_params=pltpu.CompilerParams(
            dimension_semantics=("parallel",)),
    )(q_flat, i_flat, *weights)
    return out_flat.reshape(B, L, Q)


def sakt_reference(q_ids, inter_ids, params, *, n_heads):
    """Pure-JAX f32 reference (same bf16-stored weights) for correctness checking."""
    eps = 1e-5
    f32 = jnp.float32
    w_qe = params["w_qe"].astype(f32)
    w_ie = params["w_ie"].astype(f32)
    x = w_qe[q_ids]                                          # [B, L, D]
    yemb = w_ie[inter_ids] + params["pos"][None]
    B, L, D = x.shape
    d_k = D // n_heads

    qm = x @ params["wq"].astype(f32) + params["bq"]
    km = yemb @ params["wk"].astype(f32) + params["bk"]
    vm = yemb @ params["wv"].astype(f32) + params["bv"]
    causal = jnp.tril(jnp.ones((L, L), dtype=bool))
    ctxs = []
    for h in range(n_heads):
        qh = qm[..., h * d_k:(h + 1) * d_k]
        kh = km[..., h * d_k:(h + 1) * d_k]
        vh = vm[..., h * d_k:(h + 1) * d_k]
        s = jnp.einsum("bqd,bkd->bqk", qh, kh) / jnp.sqrt(f32(d_k))
        s = jnp.where(causal[None], s, -1e9)
        p = jax.nn.softmax(s, axis=-1)
        ctxs.append(jnp.einsum("bqk,bkd->bqd", p, vh))
    ctx = jnp.concatenate(ctxs, axis=-1)
    attn = ctx @ params["wo"].astype(f32) + params["bo"]

    def ln(v, g, b):
        mu = jnp.mean(v, axis=-1, keepdims=True)
        var = jnp.mean((v - mu) ** 2, axis=-1, keepdims=True)
        return (v - mu) / jnp.sqrt(var + eps) * g + b

    z = ln(attn + x, params["g1"], params["be1"])
    f = jnp.maximum(z @ params["w1"].astype(f32) + params["bf1"], 0.0)
    f = f @ params["w2"].astype(f32) + params["bf2"]
    enc = ln(f + z, params["g2"], params["be2"])
    return jax.nn.sigmoid(enc @ params["ww"].astype(f32) + params["bw"])


def init_params(key, *, n_question, length, d_model):
    Q, L, D = n_question, length, d_model
    d_ff = D
    keys = jax.random.split(key, 16)

    def w(k, shape, scale=0.05):
        return (scale * jax.random.normal(k, shape)).astype(jnp.float32)

    p = {
        "w_qe": w(keys[0], (Q, D)),
        "w_ie": w(keys[1], (2 * Q, D)),
        "pos":  w(keys[2], (L, D)),
        "wq": w(keys[3], (D, D)), "bq": w(keys[4], (1, D), 0.01),
        "wk": w(keys[5], (D, D)), "bk": w(keys[6], (1, D), 0.01),
        "wv": w(keys[7], (D, D)), "bv": w(keys[8], (1, D), 0.01),
        "wo": w(keys[9], (D, D)), "bo": w(keys[10], (1, D), 0.01),
        "g1": jnp.ones((1, D), jnp.float32), "be1": jnp.zeros((1, D), jnp.float32),
        "w1": w(keys[11], (D, d_ff)), "bf1": w(keys[12], (1, d_ff), 0.01),
        "w2": w(keys[13], (d_ff, D)), "bf2": w(keys[14], (1, D), 0.01),
        "g2": jnp.ones((1, D), jnp.float32), "be2": jnp.zeros((1, D), jnp.float32),
        "ww": w(keys[15], (D, Q)), "bw": jnp.zeros((1, Q), jnp.float32),
    }
    # bf16 weights for all MXU matmuls (biases / LN / pos stay f32).
    for name in ("w_qe", "w_ie", "wq", "wk", "wv", "wo", "w1", "w2", "ww"):
        p[name] = p[name].astype(jnp.bfloat16)
    return p


if __name__ == "__main__":
    # batch, length, n_question, d_model, heads — 128-multiple lane dims,
    # d_k = 128 so head slices are vreg-aligned.
    B, L, Q, D, H = 8, 64, 128, 256, 2
    ROWS = 256                              # 4 sequences * L rows per grid step -> grid=(2,)

    key = jax.random.PRNGKey(0)
    k_param, k_q, k_c = jax.random.split(key, 3)
    params = init_params(k_param, n_question=Q, length=L, d_model=D)

    # Deterministic synthetic interaction stream: question id + correctness,
    # encoded as index q if wrong, Q + q if correct.
    q_ids = jax.random.randint(k_q, (B, L), 0, Q)
    correct = jax.random.randint(k_c, (B, L), 0, 2)
    inter_ids = q_ids + correct * Q

    out = sakt_forward(q_ids, inter_ids, params, n_heads=H, rows_per_step=ROWS)
    out = jax.block_until_ready(out)

    ref = sakt_reference(q_ids, inter_ids, params, n_heads=H)
    assert out.shape == (B, L, Q)
    max_err = float(jnp.max(jnp.abs(out - ref)))
    # bf16 activations + approx reciprocal -> loosened tolerance vs f32 reference.
    assert max_err < 3e-2, f"mismatch vs JAX reference: max abs err {max_err}"

    print("KERNEL_OK")
</pallas_src>

<mosaic_0001>
module attributes {stable_mosaic.version = 11 : i64} {
  func.func @sakt_kernel(%arg0: i32, %arg1: memref<256x1xi32, #tpu.memory_space<vmem>>, %arg2: memref<256x1xi32, #tpu.memory_space<vmem>>, %arg3: memref<128x256xbf16, #tpu.memory_space<vmem>>, %arg4: memref<256x256xbf16, #tpu.memory_space<vmem>>, %arg5: memref<256x256xf32, #tpu.memory_space<vmem>>, %arg6: memref<256x256xbf16, #tpu.memory_space<vmem>>, %arg7: memref<1x256xf32, #tpu.memory_space<vmem>>, %arg8: memref<256x256xbf16, #tpu.memory_space<vmem>>, %arg9: memref<1x256xf32, #tpu.memory_space<vmem>>, %arg10: memref<256x256xbf16, #tpu.memory_space<vmem>>, %arg11: memref<1x256xf32, #tpu.memory_space<vmem>>, %arg12: memref<256x256xbf16, #tpu.memory_space<vmem>>, %arg13: memref<1x256xf32, #tpu.memory_space<vmem>>, %arg14: memref<1x256xf32, #tpu.memory_space<vmem>>, %arg15: memref<1x256xf32, #tpu.memory_space<vmem>>, %arg16: memref<256x256xbf16, #tpu.memory_space<vmem>>, %arg17: memref<1x256xf32, #tpu.memory_space<vmem>>, %arg18: memref<256x256xbf16, #tpu.memory_space<vmem>>, %arg19: memref<1x256xf32, #tpu.memory_space<vmem>>, %arg20: memref<1x256xf32, #tpu.memory_space<vmem>>, %arg21: memref<1x256xf32, #tpu.memory_space<vmem>>, %arg22: memref<256x128xbf16, #tpu.memory_space<vmem>>, %arg23: memref<1x128xf32, #tpu.memory_space<vmem>>, %arg24: memref<256x128xf32, #tpu.memory_space<vmem>>) attributes {dimension_semantics = [#tpu.dimension_semantics<parallel>], iteration_bounds = array<i64: 2>, scalar_prefetch = 0 : i64, scratch_operands = 0 : i64, tpu.core_type = #tpu.core_type<tc>, window_params = [{transform_indices = @transform_0, window_bounds = array<i64: 256, 1>}, {transform_indices = @transform_1, window_bounds = array<i64: 256, 1>}, {pipeline_mode = #tpu.pipeline_mode<synchronous>, transform_indices = @transform_2, window_bounds = array<i64: 128, 256>}, {pipeline_mode = #tpu.pipeline_mode<synchronous>, transform_indices = @transform_3, window_bounds = array<i64: 256, 256>}, {pipeline_mode = #tpu.pipeline_mode<synchronous>, transform_indices = @transform_4, window_bounds = array<i64: 256, 256>}, {pipeline_mode = #tpu.pipeline_mode<synchronous>, transform_indices = @transform_5, window_bounds = array<i64: 256, 256>}, {pipeline_mode = #tpu.pipeline_mode<synchronous>, transform_indices = @transform_6, window_bounds = array<i64: 1, 256>}, {pipeline_mode = #tpu.pipeline_mode<synchronous>, transform_indices = @transform_7, window_bounds = array<i64: 256, 256>}, {pipeline_mode = #tpu.pipeline_mode<synchronous>, transform_indices = @transform_8, window_bounds = array<i64: 1, 256>}, {pipeline_mode = #tpu.pipeline_mode<synchronous>, transform_indices = @transform_9, window_bounds = array<i64: 256, 256>}, {pipeline_mode = #tpu.pipeline_mode<synchronous>, transform_indices = @transform_10, window_bounds = array<i64: 1, 256>}, {pipeline_mode = #tpu.pipeline_mode<synchronous>, transform_indices = @transform_11, window_bounds = array<i64: 256, 256>}, {pipeline_mode = #tpu.pipeline_mode<synchronous>, transform_indices = @transform_12, window_bounds = array<i64: 1, 256>}, {pipeline_mode = #tpu.pipeline_mode<synchronous>, transform_indices = @transform_13, window_bounds = array<i64: 1, 256>}, {pipeline_mode = #tpu.pipeline_mode<synchronous>, transform_indices = @transform_14, window_bounds = array<i64: 1, 256>}, {pipeline_mode = #tpu.pipeline_mode<synchronous>, transform_indices = @transform_15, window_bounds = array<i64: 256, 256>}, {pipeline_mode = #tpu.pipeline_mode<synchronous>, transform_indices = @transform_16, window_bounds = array<i64: 1, 256>}, {pipeline_mode = #tpu.pipeline_mode<synchronous>, transform_indices = @transform_17, window_bounds = array<i64: 256, 256>}, {pipeline_mode = #tpu.pipeline_mode<synchronous>, transform_indices = @transform_18, window_bounds = array<i64: 1, 256>}, {pipeline_mode = #tpu.pipeline_mode<synchronous>, transform_indices = @transform_19, window_bounds = array<i64: 1, 256>}, {pipeline_mode = #tpu.pipeline_mode<synchronous>, transform_indices = @transform_20, window_bounds = array<i64: 1, 256>}, {pipeline_mode = #tpu.pipeline_mode<synchronous>, transform_indices = @transform_21, window_bounds = array<i64: 256, 128>}, {pipeline_mode = #tpu.pipeline_mode<synchronous>, transform_indices = @transform_22, window_bounds = array<i64: 1, 128>}, {transform_indices = @transform_23, window_bounds = array<i64: 256, 128>}]} {
    %c0 = arith.constant 0 : index
    %c0_0 = arith.constant 0 : index
    %0 = vector.load %arg1[%c0, %c0_0] : memref<256x1xi32, #tpu.memory_space<vmem>>, vector<256x1xi32>
    %c0_1 = arith.constant 0 : index
    %c0_2 = arith.constant 0 : index
    %1 = vector.load %arg2[%c0_1, %c0_2] : memref<256x1xi32, #tpu.memory_space<vmem>>, vector<256x1xi32>
    %2 = tpu.iota {dimensions = array<i32: 1>} : vector<256x128xi32>
    %3 = tpu.iota {dimensions = array<i32: 1>} : vector<256x256xi32>
    %4 = vector.broadcast %0 : vector<256x1xi32> to vector<256x128xi32>
    %5 = arith.cmpi eq, %2, %4 : vector<256x128xi32>
    %cst = arith.constant 1.000000e+00 : f32
    %cst_3 = arith.constant 0.000000e+00 : f32
    %6 = vector.broadcast %cst : f32 to vector<256x128xf32>
    %7 = vector.broadcast %cst_3 : f32 to vector<256x128xf32>
    %8 = arith.select %5, %6, %7 : vector<256x128xi1>, vector<256x128xf32>
    %9 = arith.truncf %8 : vector<256x128xf32> to vector<256x128xbf16>
    %10 = vector.broadcast %1 : vector<256x1xi32> to vector<256x256xi32>
    %11 = arith.cmpi eq, %3, %10 : vector<256x256xi32>
    %cst_4 = arith.constant 1.000000e+00 : f32
    %cst_5 = arith.constant 0.000000e+00 : f32
    %12 = vector.broadcast %cst_4 : f32 to vector<256x256xf32>
    %13 = vector.broadcast %cst_5 : f32 to vector<256x256xf32>
    %14 = arith.select %11, %12, %13 : vector<256x256xi1>, vector<256x256xf32>
    %15 = arith.truncf %14 : vector<256x256xf32> to vector<256x256xbf16>
    %c0_6 = arith.constant 0 : index
    %c0_7 = arith.constant 0 : index
    %16 = vector.load %arg3[%c0_6, %c0_7] : memref<128x256xbf16, #tpu.memory_space<vmem>>, vector<128x256xbf16>
    %cst_8 = arith.constant dense<0.000000e+00> : vector<256x256xf32>
    %17 = tpu.matmul %9, %16, %cst_8 {dimension_numbers = #tpu.dot_dimension_numbers<[1], [0], [0], [1], [0, 0, 1, 1], [], []>} : vector<256x128xbf16>, vector<128x256xbf16>, vector<256x256xf32> -> vector<256x256xf32>
    %c0_9 = arith.constant 0 : index
    %c0_10 = arith.constant 0 : index
    %18 = vector.load %arg4[%c0_9, %c0_10] : memref<256x256xbf16, #tpu.memory_space<vmem>>, vector<256x256xbf16>
    %cst_11 = arith.constant dense<0.000000e+00> : vector<256x256xf32>
    %19 = tpu.matmul %15, %18, %cst_11 {dimension_numbers = #tpu.dot_dimension_numbers<[1], [0], [0], [1], [0, 0, 1, 1], [], []>} : vector<256x256xbf16>, vector<256x256xbf16>, vector<256x256xf32> -> vector<256x256xf32>
    %c0_12 = arith.constant 0 : index
    %c0_13 = arith.constant 0 : index
    %20 = vector.load %arg5[%c0_12, %c0_13] : memref<256x256xf32, #tpu.memory_space<vmem>>, vector<256x256xf32>
    %21 = arith.addf %19, %20 : vector<256x256xf32>
    %22 = arith.truncf %17 : vector<256x256xf32> to vector<256x256xbf16>
    %23 = arith.truncf %21 : vector<256x256xf32> to vector<256x256xbf16>
    %c0_14 = arith.constant 0 : index
    %c0_15 = arith.constant 0 : index
    %24 = vector.load %arg6[%c0_14, %c0_15] : memref<256x256xbf16, #tpu.memory_space<vmem>>, vector<256x256xbf16>
    %cst_16 = arith.constant dense<0.000000e+00> : vector<256x256xf32>
    %25 = tpu.matmul %22, %24, %cst_16 {dimension_numbers = #tpu.dot_dimension_numbers<[1], [0], [0], [1], [0, 0, 1, 1], [], []>} : vector<256x256xbf16>, vector<256x256xbf16>, vector<256x256xf32> -> vector<256x256xf32>
    %c0_17 = arith.constant 0 : index
    %c0_18 = arith.constant 0 : index
    %26 = vector.load %arg7[%c0_17, %c0_18] : memref<1x256xf32, #tpu.memory_space<vmem>>, vector<1x256xf32>
    %27 = vector.broadcast %26 : vector<1x256xf32> to vector<256x256xf32>
    %28 = arith.addf %25, %27 : vector<256x256xf32>
    %c0_19 = arith.constant 0 : index
    %c0_20 = arith.constant 0 : index
    %29 = vector.load %arg8[%c0_19, %c0_20] : memref<256x256xbf16, #tpu.memory_space<vmem>>, vector<256x256xbf16>
    %cst_21 = arith.constant dense<0.000000e+00> : vector<256x256xf32>
    %30 = tpu.matmul %23, %29, %cst_21 {dimension_numbers = #tpu.dot_dimension_numbers<[1], [0], [0], [1], [0, 0, 1, 1], [], []>} : vector<256x256xbf16>, vector<256x256xbf16>, vector<256x256xf32> -> vector<256x256xf32>
    %c0_22 = arith.constant 0 : index
    %c0_23 = arith.constant 0 : index
    %31 = vector.load %arg9[%c0_22, %c0_23] : memref<1x256xf32, #tpu.memory_space<vmem>>, vector<1x256xf32>
    %32 = vector.broadcast %31 : vector<1x256xf32> to vector<256x256xf32>
    %33 = arith.addf %30, %32 : vector<256x256xf32>
    %c0_24 = arith.constant 0 : index
    %c0_25 = arith.constant 0 : index
    %34 = vector.load %arg10[%c0_24, %c0_25] : memref<256x256xbf16, #tpu.memory_space<vmem>>, vector<256x256xbf16>
    %cst_26 = arith.constant dense<0.000000e+00> : vector<256x256xf32>
    %35 = tpu.matmul %23, %34, %cst_26 {dimension_numbers = #tpu.dot_dimension_numbers<[1], [0], [0], [1], [0, 0, 1, 1], [], []>} : vector<256x256xbf16>, vector<256x256xbf16>, vector<256x256xf32> -> vector<256x256xf32>
    %c0_27 = arith.constant 0 : index
    %c0_28 = arith.constant 0 : index
    %36 = vector.load %arg11[%c0_27, %c0_28] : memref<1x256xf32, #tpu.memory_space<vmem>>, vector<1x256xf32>
    %37 = vector.broadcast %36 : vector<1x256xf32> to vector<256x256xf32>
    %38 = arith.addf %35, %37 : vector<256x256xf32>
    %39 = vector.shape_cast %28 : vector<256x256xf32> to vector<4x64x256xf32>
    %40 = arith.truncf %39 : vector<4x64x256xf32> to vector<4x64x256xbf16>
    %41 = vector.shape_cast %33 : vector<256x256xf32> to vector<4x64x256xf32>
    %42 = arith.truncf %41 : vector<4x64x256xf32> to vector<4x64x256xbf16>
    %43 = vector.shape_cast %38 : vector<256x256xf32> to vector<4x64x256xf32>
    %44 = arith.truncf %43 : vector<4x64x256xf32> to vector<4x64x256xbf16>
    %45 = tpu.iota {dimensions = array<i32: 0>} : vector<64x64xi32>
    %46 = tpu.iota {dimensions = array<i32: 1>} : vector<64x64xi32>
    %47 = arith.cmpi sle, %46, %45 : vector<64x64xi32>
    %48 = vector.shape_cast %47 : vector<64x64xi1> to vector<1x64x64xi1>
    %49 = vector.extract_strided_slice %40 {offsets = [0, 0, 0], sizes = [4, 64, 128], strides = [1, 1, 1]} : vector<4x64x256xbf16> to vector<4x64x128xbf16>
    %50 = vector.extract_strided_slice %42 {offsets = [0, 0, 0], sizes = [4, 64, 128], strides = [1, 1, 1]} : vector<4x64x256xbf16> to vector<4x64x128xbf16>
    "tpu.trace_start"() <{level = 10 : i32, message = "bqd,bkd->bqk"}> : () -> ()
    %cst_29 = arith.constant dense<0.000000e+00> : vector<4x64x64xf32>
    %51 = tpu.matmul %49, %50, %cst_29 {dimension_numbers = #tpu.dot_dimension_numbers<[2], [2], [1], [1], [0, 0, 0, 1, 1, 1], [0], [0]>} : vector<4x64x128xbf16>, vector<4x64x128xbf16>, vector<4x64x64xf32> -> vector<4x64x64xf32>
    "tpu.trace_stop"() : () -> ()
    %cst_30 = arith.constant 0.0883883461 : f32
    %52 = vector.broadcast %cst_30 : f32 to vector<4x64x64xf32>
    %53 = arith.mulf %51, %52 : vector<4x64x64xf32>
    %cst_31 = arith.constant -1.000000e+09 : f32
    %54 = vector.shape_cast %48 : vector<1x64x64xi1> to vector<1x64x64xi1>
    %55 = vector.broadcast %54 : vector<1x64x64xi1> to vector<4x64x64xi1>
    %56 = vector.broadcast %cst_31 : f32 to vector<4x64x64xf32>
    %57 = arith.select %55, %53, %56 : vector<4x64x64xi1>, vector<4x64x64xf32>
    %cst_32 = arith.constant dense<0xFF800000> : vector<4x64xf32>
    %58 = vector.multi_reduction <maximumf>, %57, %cst_32 [2] : vector<4x64x64xf32> to vector<4x64xf32>
    %59 = vector.shape_cast %58 : vector<4x64xf32> to vector<4x64x1xf32>
    %60 = vector.broadcast %59 : vector<4x64x1xf32> to vector<4x64x64xf32>
    %61 = arith.subf %57, %60 : vector<4x64x64xf32>
    %62 = math.exp %61 : vector<4x64x64xf32>
    %cst_33 = arith.constant dense<0.000000e+00> : vector<4x64xf32>
    %63 = vector.multi_reduction <add>, %62, %cst_33 [2] : vector<4x64x64xf32> to vector<4x64xf32>
    %64 = vector.shape_cast %63 : vector<4x64xf32> to vector<4x64x1xf32>
    %65 = tpu.reciprocal %64 {approx = true} : vector<4x64x1xf32> -> vector<4x64x1xf32>
    %66 = vector.broadcast %65 : vector<4x64x1xf32> to vector<4x64x64xf32>
    %67 = arith.mulf %62, %66 : vector<4x64x64xf32>
    %68 = arith.truncf %67 : vector<4x64x64xf32> to vector<4x64x64xbf16>
    %69 = vector.extract_strided_slice %44 {offsets = [0, 0, 0], sizes = [4, 64, 128], strides = [1, 1, 1]} : vector<4x64x256xbf16> to vector<4x64x128xbf16>
    "tpu.trace_start"() <{level = 10 : i32, message = "bqk,bkd->bqd"}> : () -> ()
    %cst_34 = arith.constant dense<0.000000e+00> : vector<4x64x128xf32>
    %70 = tpu.matmul %68, %69, %cst_34 {dimension_numbers = #tpu.dot_dimension_numbers<[2], [1], [1], [2], [0, 0, 0, 1, 1, 2], [0], [0]>} : vector<4x64x64xbf16>, vector<4x64x128xbf16>, vector<4x64x128xf32> -> vector<4x64x128xf32>
    "tpu.trace_stop"() : () -> ()
    %71 = vector.extract_strided_slice %40 {offsets = [0, 0, 128], sizes = [4, 64, 128], strides = [1, 1, 1]} : vector<4x64x256xbf16> to vector<4x64x128xbf16>
    %72 = vector.extract_strided_slice %42 {offsets = [0, 0, 128], sizes = [4, 64, 128], strides = [1, 1, 1]} : vector<4x64x256xbf16> to vector<4x64x128xbf16>
    "tpu.trace_start"() <{level = 10 : i32, message = "bqd,bkd->bqk"}> : () -> ()
    %cst_35 = arith.constant dense<0.000000e+00> : vector<4x64x64xf32>
    %73 = tpu.matmul %71, %72, %cst_35 {dimension_numbers = #tpu.dot_dimension_numbers<[2], [2], [1], [1], [0, 0, 0, 1, 1, 1], [0], [0]>} : vector<4x64x128xbf16>, vector<4x64x128xbf16>, vector<4x64x64xf32> -> vector<4x64x64xf32>
    "tpu.trace_stop"() : () -> ()
    %cst_36 = arith.constant 0.0883883461 : f32
    %74 = vector.broadcast %cst_36 : f32 to vector<4x64x64xf32>
    %75 = arith.mulf %73, %74 : vector<4x64x64xf32>
    %cst_37 = arith.constant -1.000000e+09 : f32
    %76 = vector.shape_cast %48 : vector<1x64x64xi1> to vector<1x64x64xi1>
    %77 = vector.broadcast %76 : vector<1x64x64xi1> to vector<4x64x64xi1>
    %78 = vector.broadcast %cst_37 : f32 to vector<4x64x64xf32>
    %79 = arith.select %77, %75, %78 : vector<4x64x64xi1>, vector<4x64x64xf32>
    %cst_38 = arith.constant dense<0xFF800000> : vector<4x64xf32>
    %80 = vector.multi_reduction <maximumf>, %79, %cst_38 [2] : vector<4x64x64xf32> to vector<4x64xf32>
    %81 = vector.shape_cast %80 : vector<4x64xf32> to vector<4x64x1xf32>
    %82 = vector.broadcast %81 : vector<4x64x1xf32> to vector<4x64x64xf32>
    %83 = arith.subf %79, %82 : vector<4x64x64xf32>
    %84 = math.exp %83 : vector<4x64x64xf32>
    %cst_39 = arith.constant dense<0.000000e+00> : vector<4x64xf32>
    %85 = vector.multi_reduction <add>, %84, %cst_39 [2] : vector<4x64x64xf32> to vector<4x64xf32>
    %86 = vector.shape_cast %85 : vector<4x64xf32> to vector<4x64x1xf32>
    %87 = tpu.reciprocal %86 {approx = true} : vector<4x64x1xf32> -> vector<4x64x1xf32>
    %88 = vector.broadcast %87 : vector<4x64x1xf32> to vector<4x64x64xf32>
    %89 = arith.mulf %84, %88 : vector<4x64x64xf32>
    %90 = arith.truncf %89 : vector<4x64x64xf32> to vector<4x64x64xbf16>
    %91 = vector.extract_strided_slice %44 {offsets = [0, 0, 128], sizes = [4, 64, 128], strides = [1, 1, 1]} : vector<4x64x256xbf16> to vector<4x64x128xbf16>
    "tpu.trace_start"() <{level = 10 : i32, message = "bqk,bkd->bqd"}> : () -> ()
    %cst_40 = arith.constant dense<0.000000e+00> : vector<4x64x128xf32>
    %92 = tpu.matmul %90, %91, %cst_40 {dimension_numbers = #tpu.dot_dimension_numbers<[2], [1], [1], [2], [0, 0, 0, 1, 1, 2], [0], [0]>} : vector<4x64x64xbf16>, vector<4x64x128xbf16>, vector<4x64x128xf32> -> vector<4x64x128xf32>
    "tpu.trace_stop"() : () -> ()
    %93 = tpu.concatenate %70, %92 in 2 : vector<4x64x128xf32>, vector<4x64x128xf32> -> vector<4x64x256xf32>
    %94 = vector.shape_cast %93 : vector<4x64x256xf32> to vector<256x256xf32>
    %95 = arith.truncf %94 : vector<256x256xf32> to vector<256x256xbf16>
    %c0_41 = arith.constant 0 : index
    %c0_42 = arith.constant 0 : index
    %96 = vector.load %arg12[%c0_41, %c0_42] : memref<256x256xbf16, #tpu.memory_space<vmem>>, vector<256x256xbf16>
    %cst_43 = arith.constant dense<0.000000e+00> : vector<256x256xf32>
    %97 = tpu.matmul %95, %96, %cst_43 {dimension_numbers = #tpu.dot_dimension_numbers<[1], [0], [0], [1], [0, 0, 1, 1], [], []>} : vector<256x256xbf16>, vector<256x256xbf16>, vector<256x256xf32> -> vector<256x256xf32>
    %c0_44 = arith.constant 0 : index
    %c0_45 = arith.constant 0 : index
    %98 = vector.load %arg13[%c0_44, %c0_45] : memref<1x256xf32, #tpu.memory_space<vmem>>, vector<1x256xf32>
    %99 = vector.broadcast %98 : vector<1x256xf32> to vector<256x256xf32>
    %100 = arith.addf %97, %99 : vector<256x256xf32>
    %101 = arith.addf %100, %17 : vector<256x256xf32>
    %cst_46 = arith.constant dense<0.000000e+00> : vector<256xf32>
    %102 = vector.multi_reduction <add>, %101, %cst_46 [1] : vector<256x256xf32> to vector<256xf32>
    %103 = vector.shape_cast %102 : vector<256xf32> to vector<256x1xf32>
    %cst_47 = arith.constant 2.560000e+02 : f32
    %104 = vector.broadcast %cst_47 : f32 to vector<256x1xf32>
    %105 = arith.divf %103, %104 : vector<256x1xf32>
    %106 = vector.broadcast %105 : vector<256x1xf32> to vector<256x256xf32>
    %107 = arith.subf %101, %106 : vector<256x256xf32>
    %108 = arith.mulf %107, %107 : vector<256x256xf32>
    %cst_48 = arith.constant dense<0.000000e+00> : vector<256xf32>
    %109 = vector.multi_reduction <add>, %108, %cst_48 [1] : vector<256x256xf32> to vector<256xf32>
    %110 = vector.shape_cast %109 : vector<256xf32> to vector<256x1xf32>
    %cst_49 = arith.constant 2.560000e+02 : f32
    %111 = vector.broadcast %cst_49 : f32 to vector<256x1xf32>
    %112 = arith.divf %110, %111 : vector<256x1xf32>
    %113 = vector.broadcast %105 : vector<256x1xf32> to vector<256x256xf32>
    %114 = arith.subf %101, %113 : vector<256x256xf32>
    %cst_50 = arith.constant 9.99999974E-6 : f32
    %115 = vector.broadcast %cst_50 : f32 to vector<256x1xf32>
    %116 = arith.addf %112, %115 : vector<256x1xf32>
    %117 = math.rsqrt %116 : vector<256x1xf32>
    %118 = vector.broadcast %117 : vector<256x1xf32> to vector<256x256xf32>
    %119 = arith.mulf %114, %118 : vector<256x256xf32>
    %c0_51 = arith.constant 0 : index
    %c0_52 = arith.constant 0 : index
    %120 = vector.load %arg14[%c0_51, %c0_52] : memref<1x256xf32, #tpu.memory_space<vmem>>, vector<1x256xf32>
    %121 = vector.broadcast %120 : vector<1x256xf32> to vector<256x256xf32>
    %122 = arith.mulf %119, %121 : vector<256x256xf32>
    %c0_53 = arith.constant 0 : index
    %c0_54 = arith.constant 0 : index
    %123 = vector.load %arg15[%c0_53, %c0_54] : memref<1x256xf32, #tpu.memory_space<vmem>>, vector<1x256xf32>
    %124 = vector.broadcast %123 : vector<1x256xf32> to vector<256x256xf32>
    %125 = arith.addf %122, %124 : vector<256x256xf32>
    %126 = arith.truncf %125 : vector<256x256xf32> to vector<256x256xbf16>
    %c0_55 = arith.constant 0 : index
    %c0_56 = arith.constant 0 : index
    %127 = vector.load %arg16[%c0_55, %c0_56] : memref<256x256xbf16, #tpu.memory_space<vmem>>, vector<256x256xbf16>
    %cst_57 = arith.constant dense<0.000000e+00> : vector<256x256xf32>
    %128 = tpu.matmul %126, %127, %cst_57 {dimension_numbers = #tpu.dot_dimension_numbers<[1], [0], [0], [1], [0, 0, 1, 1], [], []>} : vector<256x256xbf16>, vector<256x256xbf16>, vector<256x256xf32> -> vector<256x256xf32>
    %c0_58 = arith.constant 0 : index
    %c0_59 = arith.constant 0 : index
    %129 = vector.load %arg17[%c0_58, %c0_59] : memref<1x256xf32, #tpu.memory_space<vmem>>, vector<1x256xf32>
    %130 = vector.broadcast %129 : vector<1x256xf32> to vector<256x256xf32>
    %131 = arith.addf %128, %130 : vector<256x256xf32>
    %cst_60 = arith.constant 0.000000e+00 : f32
    %132 = vector.broadcast %cst_60 : f32 to vector<256x256xf32>
    %133 = arith.maximumf %131, %132 : vector<256x256xf32>
    %134 = arith.truncf %133 : vector<256x256xf32> to vector<256x256xbf16>
    %c0_61 = arith.constant 0 : index
    %c0_62 = arith.constant 0 : index
    %135 = vector.load %arg18[%c0_61, %c0_62] : memref<256x256xbf16, #tpu.memory_space<vmem>>, vector<256x256xbf16>
    %cst_63 = arith.constant dense<0.000000e+00> : vector<256x256xf32>
    %136 = tpu.matmul %134, %135, %cst_63 {dimension_numbers = #tpu.dot_dimension_numbers<[1], [0], [0], [1], [0, 0, 1, 1], [], []>} : vector<256x256xbf16>, vector<256x256xbf16>, vector<256x256xf32> -> vector<256x256xf32>
    %c0_64 = arith.constant 0 : index
    %c0_65 = arith.constant 0 : index
    %137 = vector.load %arg19[%c0_64, %c0_65] : memref<1x256xf32, #tpu.memory_space<vmem>>, vector<1x256xf32>
    %138 = vector.broadcast %137 : vector<1x256xf32> to vector<256x256xf32>
    %139 = arith.addf %136, %138 : vector<256x256xf32>
    %140 = arith.addf %139, %125 : vector<256x256xf32>
    %cst_66 = arith.constant dense<0.000000e+00> : vector<256xf32>
    %141 = vector.multi_reduction <add>, %140, %cst_66 [1] : vector<256x256xf32> to vector<256xf32>
    %142 = vector.shape_cast %141 : vector<256xf32> to vector<256x1xf32>
    %cst_67 = arith.constant 2.560000e+02 : f32
    %143 = vector.broadcast %cst_67 : f32 to vector<256x1xf32>
    %144 = arith.divf %142, %143 : vector<256x1xf32>
    %145 = vector.broadcast %144 : vector<256x1xf32> to vector<256x256xf32>
    %146 = arith.subf %140, %145 : vector<256x256xf32>
    %147 = arith.mulf %146, %146 : vector<256x256xf32>
    %cst_68 = arith.constant dense<0.000000e+00> : vector<256xf32>
    %148 = vector.multi_reduction <add>, %147, %cst_68 [1] : vector<256x256xf32> to vector<256xf32>
    %149 = vector.shape_cast %148 : vector<256xf32> to vector<256x1xf32>
    %cst_69 = arith.constant 2.560000e+02 : f32
    %150 = vector.broadcast %cst_69 : f32 to vector<256x1xf32>
    %151 = arith.divf %149, %150 : vector<256x1xf32>
    %152 = vector.broadcast %144 : vector<256x1xf32> to vector<256x256xf32>
    %153 = arith.subf %140, %152 : vector<256x256xf32>
    %cst_70 = arith.constant 9.99999974E-6 : f32
    %154 = vector.broadcast %cst_70 : f32 to vector<256x1xf32>
    %155 = arith.addf %151, %154 : vector<256x1xf32>
    %156 = math.rsqrt %155 : vector<256x1xf32>
    %157 = vector.broadcast %156 : vector<256x1xf32> to vector<256x256xf32>
    %158 = arith.mulf %153, %157 : vector<256x256xf32>
    %c0_71 = arith.constant 0 : index
    %c0_72 = arith.constant 0 : index
    %159 = vector.load %arg20[%c0_71, %c0_72] : memref<1x256xf32, #tpu.memory_space<vmem>>, vector<1x256xf32>
    %160 = vector.broadcast %159 : vector<1x256xf32> to vector<256x256xf32>
    %161 = arith.mulf %158, %160 : vector<256x256xf32>
    %c0_73 = arith.constant 0 : index
    %c0_74 = arith.constant 0 : index
    %162 = vector.load %arg21[%c0_73, %c0_74] : memref<1x256xf32, #tpu.memory_space<vmem>>, vector<1x256xf32>
    %163 = vector.broadcast %162 : vector<1x256xf32> to vector<256x256xf32>
    %164 = arith.addf %161, %163 : vector<256x256xf32>
    %165 = arith.truncf %164 : vector<256x256xf32> to vector<256x256xbf16>
    %c0_75 = arith.constant 0 : index
    %c0_76 = arith.constant 0 : index
    %166 = vector.load %arg22[%c0_75, %c0_76] : memref<256x128xbf16, #tpu.memory_space<vmem>>, vector<256x128xbf16>
    %cst_77 = arith.constant dense<0.000000e+00> : vector<256x128xf32>
    %167 = tpu.matmul %165, %166, %cst_77 {dimension_numbers = #tpu.dot_dimension_numbers<[1], [0], [0], [1], [0, 0, 1, 1], [], []>} : vector<256x256xbf16>, vector<256x128xbf16>, vector<256x128xf32> -> vector<256x128xf32>
    %c0_78 = arith.constant 0 : index
    %c0_79 = arith.constant 0 : index
    %168 = vector.load %arg23[%c0_78, %c0_79] : memref<1x128xf32, #tpu.memory_space<vmem>>, vector<1x128xf32>
    %169 = vector.broadcast %168 : vector<1x128xf32> to vector<256x128xf32>
    %170 = arith.addf %167, %169 : vector<256x128xf32>
    %cst_80 = arith.constant 0.000000e+00 : f32
    %171 = vector.broadcast %cst_80 : f32 to vector<256x128xf32>
    %172 = arith.subf %171, %170 : vector<256x128xf32>
    %173 = math.exp %172 : vector<256x128xf32>
    %cst_81 = arith.constant 1.000000e+00 : f32
    %174 = vector.broadcast %cst_81 : f32 to vector<256x128xf32>
    %175 = arith.addf %174, %173 : vector<256x128xf32>
    %176 = tpu.reciprocal %175 {approx = true} : vector<256x128xf32> -> vector<256x128xf32>
    %c0_82 = arith.constant 0 : index
    %c0_83 = arith.constant 0 : index
    %177 = vector.load %arg24[%c0_82, %c0_83] : memref<256x128xf32, #tpu.memory_space<vmem>>, vector<256x128xf32>
    tpu.vector_store %arg24[%c0_82, %c0_83], %176 {strides = array<i32>} : memref<256x128xf32, #tpu.memory_space<vmem>>, vector<256x128xf32>,
    return
  }
  func.func @transform_0(%arg0: i32) -> (i32, i32) {
    %c0_i32 = arith.constant 0 : i32
    %c0_i32_0 = arith.constant 0 : i32
    return %arg0, %c0_i32 : i32, i32
  }
  func.func @transform_1(%arg0: i32) -> (i32, i32) {
    %c0_i32 = arith.constant 0 : i32
    %c0_i32_0 = arith.constant 0 : i32
    return %arg0, %c0_i32 : i32, i32
  }
  func.func @transform_2(%arg0: i32) -> (i32, i32) {
    %c0_i32 = arith.constant 0 : i32
    %c0_i32_0 = arith.constant 0 : i32
    %c0_i32_1 = arith.constant 0 : i32
    return %c0_i32, %c0_i32_0 : i32, i32
  }
  func.func @transform_3(%arg0: i32) -> (i32, i32) {
    %c0_i32 = arith.constant 0 : i32
    %c0_i32_0 = arith.constant 0 : i32
    %c0_i32_1 = arith.constant 0 : i32
    return %c0_i32, %c0_i32_0 : i32, i32
  }
  func.func @transform_4(%arg0: i32) -> (i32, i32) {
    %c0_i32 = arith.constant 0 : i32
    %c0_i32_0 = arith.constant 0 : i32
    %c0_i32_1 = arith.constant 0 : i32
    return %c0_i32, %c0_i32_0 : i32, i32
  }
  func.func @transform_5(%arg0: i32) -> (i32, i32) {
    %c0_i32 = arith.constant 0 : i32
    %c0_i32_0 = arith.constant 0 : i32
    %c0_i32_1 = arith.constant 0 : i32
    return %c0_i32, %c0_i32_0 : i32, i32
  }
  func.func @transform_6(%arg0: i32) -> (i32, i32) {
    %c0_i32 = arith.constant 0 : i32
    %c0_i32_0 = arith.constant 0 : i32
    %c0_i32_1 = arith.constant 0 : i32
    return %c0_i32, %c0_i32_0 : i32, i32
  }
  func.func @transform_7(%arg0: i32) -> (i32, i32) {
    %c0_i32 = arith.constant 0 : i32
    %c0_i32_0 = arith.constant 0 : i32
    %c0_i32_1 = arith.constant 0 : i32
    return %c0_i32, %c0_i32_0 : i32, i32
  }
  func.func @transform_8(%arg0: i32) -> (i32, i32) {
    %c0_i32 = arith.constant 0 : i32
    %c0_i32_0 = arith.constant 0 : i32
    %c0_i32_1 = arith.constant 0 : i32
    return %c0_i32, %c0_i32_0 : i32, i32
  }
  func.func @transform_9(%arg0: i32) -> (i32, i32) {
    %c0_i32 = arith.constant 0 : i32
    %c0_i32_0 = arith.constant 0 : i32
    %c0_i32_1 = arith.constant 0 : i32
    return %c0_i32, %c0_i32_0 : i32, i32
  }
  func.func @transform_10(%arg0: i32) -> (i32, i32) {
    %c0_i32 = arith.constant 0 : i32
    %c0_i32_0 = arith.constant 0 : i32
    %c0_i32_1 = arith.constant 0 : i32
    return %c0_i32, %c0_i32_0 : i32, i32
  }
  func.func @transform_11(%arg0: i32) -> (i32, i32) {
    %c0_i32 = arith.constant 0 : i32
    %c0_i32_0 = arith.constant 0 : i32
    %c0_i32_1 = arith.constant 0 : i32
    return %c0_i32, %c0_i32_0 : i32, i32
  }
  func.func @transform_12(%arg0: i32) -> (i32, i32) {
    %c0_i32 = arith.constant 0 : i32
    %c0_i32_0 = arith.constant 0 : i32
    %c0_i32_1 = arith.constant 0 : i32
    return %c0_i32, %c0_i32_0 : i32, i32
  }
  func.func @transform_13(%arg0: i32) -> (i32, i32) {
    %c0_i32 = arith.constant 0 : i32
    %c0_i32_0 = arith.constant 0 : i32
    %c0_i32_1 = arith.constant 0 : i32
    return %c0_i32, %c0_i32_0 : i32, i32
  }
  func.func @transform_14(%arg0: i32) -> (i32, i32) {
    %c0_i32 = arith.constant 0 : i32
    %c0_i32_0 = arith.constant 0 : i32
    %c0_i32_1 = arith.constant 0 : i32
    return %c0_i32, %c0_i32_0 : i32, i32
  }
  func.func @transform_15(%arg0: i32) -> (i32, i32) {
    %c0_i32 = arith.constant 0 : i32
    %c0_i32_0 = arith.constant 0 : i32
    %c0_i32_1 = arith.constant 0 : i32
    return %c0_i32, %c0_i32_0 : i32, i32
  }
  func.func @transform_16(%arg0: i32) -> (i32, i32) {
    %c0_i32 = arith.constant 0 : i32
    %c0_i32_0 = arith.constant 0 : i32
    %c0_i32_1 = arith.constant 0 : i32
    return %c0_i32, %c0_i32_0 : i32, i32
  }
  func.func @transform_17(%arg0: i32) -> (i32, i32) {
    %c0_i32 = arith.constant 0 : i32
    %c0_i32_0 = arith.constant 0 : i32
    %c0_i32_1 = arith.constant 0 : i32
    return %c0_i32, %c0_i32_0 : i32, i32
  }
  func.func @transform_18(%arg0: i32) -> (i32, i32) {
    %c0_i32 = arith.constant 0 : i32
    %c0_i32_0 = arith.constant 0 : i32
    %c0_i32_1 = arith.constant 0 : i32
    return %c0_i32, %c0_i32_0 : i32, i32
  }
  func.func @transform_19(%arg0: i32) -> (i32, i32) {
    %c0_i32 = arith.constant 0 : i32
    %c0_i32_0 = arith.constant 0 : i32
    %c0_i32_1 = arith.constant 0 : i32
    return %c0_i32, %c0_i32_0 : i32, i32
  }
  func.func @transform_20(%arg0: i32) -> (i32, i32) {
    %c0_i32 = arith.constant 0 : i32
    %c0_i32_0 = arith.constant 0 : i32
    %c0_i32_1 = arith.constant 0 : i32
    return %c0_i32, %c0_i32_0 : i32, i32
  }
  func.func @transform_21(%arg0: i32) -> (i32, i32) {
    %c0_i32 = arith.constant 0 : i32
    %c0_i32_0 = arith.constant 0 : i32
    %c0_i32_1 = arith.constant 0 : i32
    return %c0_i32, %c0_i32_0 : i32, i32
  }
  func.func @transform_22(%arg0: i32) -> (i32, i32) {
    %c0_i32 = arith.constant 0 : i32
    %c0_i32_0 = arith.constant 0 : i32
    %c0_i32_1 = arith.constant 0 : i32
    return %c0_i32, %c0_i32_0 : i32, i32
  }
  func.func @transform_23(%arg0: i32) -> (i32, i32) {
    %c0_i32 = arith.constant 0 : i32
    %c0_i32_0 = arith.constant 0 : i32
    return %arg0, %c0_i32 : i32, i32
  }
}

</mosaic_0001>

<bundles_post_ra>
// kernel: tpu_custom_call.1
= control target key start
LH: loop header
LB: loop body
LE: loop exit
PB: predicated region body
PF: predicated region fallthrough
CT: control target
= control target key end

     0   :  { %s16190_s0 = inlined_call_operand.vmem [shape: s32[512,1], index: 0, kind: input, shape index: {}]   ;;  %s16191_s1 = inlined_call_operand.vmem [shape: s32[512,1], index: 1, kind: input, shape index: {}]   ;;  %s16192_s2 = inlined_call_operand.hbm [shape: bf16[128,256], index: 2, kind: input, shape index: {}]   ;;  %s16193_s3 = inlined_call_operand.vmem [shape: bf16[256,256], index: 3, kind: input, shape index: {}]   ;;  %s16194_s4 = inlined_call_operand.vmem [shape: f32[256,256], index: 4, kind: input, shape index: {}]   ;;  %s16195_s5 = inlined_call_operand.vmem [shape: bf16[256,256], index: 5, kind: input, shape index: {}]   ;;  %s16196_s6 = inlined_call_operand.vmem [shape: f32[1,256], index: 6, kind: input, shape index: {}]   ;;  %s16197_s7 = inlined_call_operand.hbm [shape: bf16[256,256], index: 7, kind: input, shape index: {}]   ;;  %s16198_s8 = inlined_call_operand.vmem [shape: f32[1,256], index: 8, kind: input, shape index: {}]   ;;  %s16199_s9 = inlined_call_operand.hbm [shape: bf16[256,256], index: 9, kind: input, shape index: {}]   ;;  %s16200_s10 = inlined_call_operand.vmem [shape: f32[1,256], index: 10, kind: input, shape index: {}]   ;;  %s16201_s11 = inlined_call_operand.hbm [shape: bf16[256,256], index: 11, kind: input, shape index: {}]   ;;  %s16202_s12 = inlined_call_operand.vmem [shape: f32[1,256], index: 12, kind: input, shape index: {}]   ;;  %s16203_s13 = inlined_call_operand.vmem [shape: f32[1,256], index: 13, kind: input, shape index: {}]   ;;  %s16204_s14 = inlined_call_operand.vmem [shape: f32[1,256], index: 14, kind: input, shape index: {}]   ;;  %s16205_s15 = inlined_call_operand.hbm [shape: bf16[256,256], index: 15, kind: input, shape index: {}]   ;;  %s16206_s16 = inlined_call_operand.vmem [shape: f32[1,256], index: 16, kind: input, shape index: {}]   ;;  %s16207_s17 = inlined_call_operand.hbm [shape: bf16[256,256], index: 17, kind: input, shape index: {}]   ;;  %s16208_s18 = inlined_call_operand.vmem [shape: f32[1,256], index: 18, kind: input, shape index: {}]   ;;  %s16209_s19 = inlined_call_operand.vmem [shape: f32[1,256], index: 19, kind: input, shape index: {}]   ;;  %s16210_s20 = inlined_call_operand.vmem [shape: f32[1,256], index: 20, kind: input, shape index: {}]   ;;  %s16211_s21 = inlined_call_operand.hbm [shape: bf16[256,128], index: 21, kind: input, shape index: {}]   ;;  %s16212_s22 = inlined_call_operand.vmem [shape: f32[1,128], index: 22, kind: input, shape index: {}]   ;;  %s16213_s23 = inlined_call_operand.hbm [shape: f32[512,128], index: 23, kind: output, shape index: {}]  }
   0x1   :  { %16421 = sst [smem:[#allocation189_spill]] %s16190_s0 }
   0x2   :  { %16422 = sst [smem:[#allocation190_spill]] %s16191_s1 }
   0x3   :  { %16423 = sst [smem:[#allocation191_spill]] %s16192_s2 }
   0x4   :  { %16424 = sst [smem:[#allocation192_spill]] %s16193_s3 }
   0x5   :  { %16425 = sst [smem:[#allocation193_spill]] %s16194_s4 }
   0x6   :  { %16426 = sst [smem:[#allocation194_spill]] %s16195_s5 }
   0x7   :  { %16427 = sst [smem:[#allocation195_spill]] %s16196_s6 }
   0x8   :  { %16428 = sst [smem:[#allocation196_spill]] %s16197_s7 }
   0x9   :  { %16429 = sst [smem:[#allocation197_spill]] %s16198_s8 }
   0xa   :  { %16430 = sst [smem:[#allocation198_spill]] %s16213_s23 }
   0xb   :  { %28 = vsyncpa [#allocation3], 0 }
   0xc   :  { %29 = vsyncpa [#allocation6], 0 }
   0xd   :  { %30 = vsyncpa [#allocation9], 0 }
   0xe   :  { %31 = vsyncpa [#allocation12], 0 }
   0xf   :  { %32 = vsyncpa [#allocation4], 0 }
  0x10   :  { %34 = vsyncpa [#allocation4 + $0x1], 0  ;;  %s11259_s4 = smov 0   ;;  %s11261_s30 = smov 0  }
  0x11   :  { %s11263_s24 = smov 0   ;;  %s11265_s25 = smov 0  }
  0x12 LB: > { %16431 = sst [smem:[#allocation20_spill]] %s11109_s4  ;;  %s11280_s5 = sadd.s32 4294967295, %s11121_s25   ;;  %s11121_s25 = sphi %s11265_s25, %s17026_s25   ;;  %s11117_s24 = sphi %s11263_s24, %s17031_s24   ;;  %s11113_s30 = sphi %s11261_s30, %s17030_s30   ;;  %s11109_s4 = sphi %s11259_s4, %s17029_s4  }
  0x13   : > { %16432 = sst [smem:[#allocation21_spill]] %s11117_s24  ;;  %s8944_s1 = sadd.s32 4294967294, %s11121_s25  }
  0x14   : > { %16433 = sst [smem:[#allocation22_spill]] %s11121_s25  ;;  %s11284_s26 = sadd.s32 1, %s11121_s25  }
  0x15   : > { %16434 = sst [smem:[#allocation23_spill]] %s11284_s26  ;;  %s540_s2 = sadd.s32 1, %s11117_s24 }
  0x16   : > { %s537_s6 = ssub.s32 %s11121_s25, %s11284_s26  ;;  %p550_p0 = scmp.ne.s32.totalorder %s11117_s24, %s11113_s30 }
  0x17   : > { %p538_p1 = scmp.eq.s32.totalorder %s537_s6, 0  ;;  %p551_p2 = scmp.eq.s32.totalorder %s11280_s5, 1 }
  0x18   : > { %p556_p3 = scmp.ne.s32.totalorder %s11113_s30, %s11109_s4  ;;  %p557_p4 = scmp.eq.s32.totalorder %s8944_s1, 1 }
  0x19   : > { %s11295_s27 = scalar_select %p538_p1, %s11117_s24, %s540_s2  }
  0x1a   : > { %p11297_p5 = por %p551_p2, %p550_p0  ;;  %p11301_p6 = por %p557_p4, %p556_p3 }
  0x1b   : > { %16435 = sst [smem:[#allocation24_spill]] %s11295_s27  ;;  %p8945_p7 = scmp.ge.s32.totalorder %s11121_s25, 1 }
  0x1c   : > { %s16436_s7 = scalar_select %p11297_p5, 1, 0 }
  0x1d   : > { %s16438_s28 = scalar_select %p11301_p6, 1, 0 }
  0x1e   : > { %16437 = sst [smem:[#allocation25_spill]] %s16436_s7  ;;  %p564_p8 = scmp.lt.s32.totalorder %s11121_s25, 3 }
  0x1f   : > { %16439 = sst [smem:[#allocation26_spill]] %s16438_s28  ;;  %p16226_p9 = scmp.eq.s32.totalorder %s11280_s5, 0 }
  0x20   : > { %p11308_p10 = pnand %p8945_p7, %p564_p8  ;;  %s11123_s3 = smov [#allocation5]  }
  0x21   : > { %s601_s0 = sshll.u32 %s11123_s3, 4  ;;  %s11124_s2 = smov [#allocation8]   ;;  %s602_s0 = int_to_ptr.vmem [resolvable:$true] %s601_s0 }
  0x22   : > { %p9884_p11 = pneg %p11308_p10  ;;  %s633_s6 = sshll.u32 %s11124_s2, 4  ;;  %s634_s6 = int_to_ptr.vmem [resolvable:$true] %s633_s6 }
  0x23   : > { %s11125_s27 = smov [#allocation11]   ;;  %s10874_s28 = scalar_lea.vmem %s602_s0, 4096 }
  0x24   : > { %p11316_p12 = pnand %p16226_p9, %p9884_p11  ;;  %s671_s24 = sshll.u32 %s11125_s27, 4  ;;  %s672_s24 = int_to_ptr.vmem [resolvable:$true] %s671_s24 }
  0x25   : > { %p10875_p0 = scmp.ne.s32.totalorder %s602_s0, %s10874_s28  ;;  %p10882_p3 = scmp.lt.s32.totalorder %s602_s0, %s602_s0 }
  0x26   : > { %p11322_p13 = pneg %p11316_p12  ;;  %p10883_p4 = scmp.lt.s32.totalorder %s10874_s28, %s10874_s28 }
  0x28   : > { %p10877_p1 = pnand %p10875_p0, %p11322_p13  ;;  %p10884_p7 = por %p10883_p4, %p10882_p3 }
  0x2a   : > { %p10878_p2 = pneg %p10877_p1 }
  0x2c   : > { %p10885_p8 = pnand %p10884_p7, %p10878_p2 }
  0x2e   : > { %10888 = shalt.err (!%p10885_p8)
}
  0x2f   : > { %s11126_s3 = smov 128   ;;  %s11127_s27 = smov 8  }
  0x30   : > { %s16443_s25 = sld [smem:[#allocation196_spill]]  ;;  %s10900_s23 = scalar_lea.vmem %s634_s6, 4096 }
  0x31   : > { %p10901_p11 = scmp.ne.s32.totalorder %s634_s6, %s10900_s23  ;;  %p10908_p3 = scmp.lt.s32.totalorder %s634_s6, %s634_s6 }
  0x32   : > { %p10909_p2 = scmp.lt.s32.totalorder %s10900_s23, %s10900_s23 }
  0x33   : > { %p10903_p0 = pnand %p10901_p11, %p11322_p13 }
  0x34   : > { %p10910_p4 = por %p10909_p2, %p10908_p3 }
  0x35   : > { %p10904_p1 = pneg %p10903_p0 }
  0x36   : > { %9890 = dma.hbm_to_vmem [thread:$0]  (!%p11316_p12), %s16443_s25, 4096, %s602_s0, [#allocation6], %s11126_s3, %s11126_s3, %s11127_s27  }
  0x37   : > { %p10911_p7 = pnand %p10910_p4, %p10904_p1 }
  0x39   : > { %10914 = shalt.err (!%p10911_p7)
}
  0x3a   : > { %9896 = dma.hbm_to_vmem [thread:$0]  (!%p11316_p12), %s16201_s11, 4096, %s634_s6, [#allocation9], %s11126_s3, %s11126_s3, %s11127_s27  }
  0x3b   : > { %s10926_s4 = scalar_lea.vmem %s672_s24, 4096  ;;  %p10934_p9 = scmp.lt.s32.totalorder %s672_s24, %s672_s24 }
  0x3c   : > { %p10927_p8 = scmp.ne.s32.totalorder %s672_s24, %s10926_s4  ;;  %p10935_p3 = scmp.lt.s32.totalorder %s10926_s4, %s10926_s4 }
  0x3e   : > { %p10929_p11 = pnand %p10927_p8, %p11322_p13  ;;  %p10936_p1 = por %p10935_p3, %p10934_p9 }
  0x40   : > { %p10930_p0 = pneg %p10929_p11 }
  0x42   : > { %p10937_p2 = pnand %p10936_p1, %p10930_p0 }
  0x44   : > { %10940 = shalt.err (!%p10937_p2)
}
  0x45   : > { %9902 = dma.hbm_to_vmem [thread:$0]  (!%p11316_p12), %s16207_s17, 4096, %s672_s24, [#allocation12], %s11126_s3, %s11126_s3, %s11127_s27  }
  0x46   : > { %s11128_s7 = smov [#allocation2]   ;;  %s11129_s6 = smov [#allocation7]  }
  0x47   : > { %s576_s0 = sshll.u32 %s11128_s7, 4  ;;  %s617_s2 = sshll.u32 %s11129_s6, 4  ;;  %s577_s0 = int_to_ptr.vmem [resolvable:$true] %s576_s0  ;;  %s618_s2 = int_to_ptr.vmem [resolvable:$true] %s617_s2 }
  0x48   : > { %s10952_s28 = scalar_lea.vmem %s577_s0, 2048  ;;  %p10960_p8 = scmp.lt.s32.totalorder %s577_s0, %s577_s0 }
  0x49   : > { %p10953_p4 = scmp.ne.s32.totalorder %s577_s0, %s10952_s28  ;;  %p10961_p11 = scmp.lt.s32.totalorder %s10952_s28, %s10952_s28 }
  0x4b   : > { %p10955_p9 = pnand %p10953_p4, %p11322_p13  ;;  %p10962_p0 = por %p10961_p11, %p10960_p8 }
  0x4d   : > { %p10956_p7 = pneg %p10955_p9 }
  0x4f   : > { %p10963_p3 = pnand %p10962_p0, %p10956_p7 }
  0x51   : > { %10966 = shalt.err (!%p10963_p3)
}
  0x52   : > { %s16444_s23 = sld [smem:[#allocation191_spill]]  ;;  %s10978_s25 = scalar_lea.vmem %s618_s2, 4096 }
  0x53   : > { %p10979_p1 = scmp.ne.s32.totalorder %s618_s2, %s10978_s25  ;;  %p10986_p9 = scmp.lt.s32.totalorder %s618_s2, %s618_s2 }
  0x54   : > { %p10987_p8 = scmp.lt.s32.totalorder %s10978_s25, %s10978_s25 }
  0x55   : > { %p10981_p2 = pnand %p10979_p1, %p11322_p13 }
  0x56   : > { %p10988_p7 = por %p10987_p8, %p10986_p9 }
  0x57   : > { %p10982_p4 = pneg %p10981_p2 }
  0x58   : > { %9887 = dma.hbm_to_vmem [thread:$0]  (!%p11316_p12), %s16444_s23, 2048, %s577_s0, [#allocation3], %s11126_s3, %s11126_s3, %s11127_s27  }
  0x59   : > { %p10989_p11 = pnand %p10988_p7, %p10982_p4 }
  0x5b   : > { %10992 = shalt.err (!%p10989_p11)
}
  0x5c   : > { %9893 = dma.hbm_to_vmem [thread:$0]  (!%p11316_p12), %s16199_s9, 4096, %s618_s2, [#allocation6], %s11126_s3, %s11126_s3, %s11127_s27  }
  0x5d   : > { %s11130_s0 = smov [#allocation10]   ;;  %s11131_s24 = smov [#allocation13]  }
  0x5e   : > { %s655_s28 = sshll.u32 %s11130_s0, 4  ;;  %s693_s4 = sshll.u32 %s11131_s24, 4  ;;  %s656_s28 = int_to_ptr.vmem [resolvable:$true] %s655_s28  ;;  %s694_s4 = int_to_ptr.vmem [resolvable:$true] %s693_s4 }
  0x5f   : > { %s11004_s23 = scalar_lea.vmem %s656_s28, 4096  ;;  %p11012_p2 = scmp.lt.s32.totalorder %s656_s28, %s656_s28 }
  0x60   : > { %p11005_p0 = scmp.ne.s32.totalorder %s656_s28, %s11004_s23  ;;  %p11013_p4 = scmp.lt.s32.totalorder %s11004_s23, %s11004_s23 }
  0x62   : > { %p11007_p3 = pnand %p11005_p0, %p11322_p13  ;;  %p11014_p9 = por %p11013_p4, %p11012_p2 }
  0x64   : > { %p11008_p1 = pneg %p11007_p3 }
  0x66   : > { %p11015_p8 = pnand %p11014_p9, %p11008_p1 }
  0x68   : > { %11018 = shalt.err (!%p11015_p8)
}
  0x69   : > { %9899 = dma.hbm_to_vmem [thread:$0]  (!%p11316_p12), %s16205_s15, 4096, %s656_s28, [#allocation9], %s11126_s3, %s11126_s3, %s11127_s27  }
  0x6a   : > { %s11030_s7 = scalar_lea.vmem %s694_s4, 2048  ;;  %p11038_p3 = scmp.lt.s32.totalorder %s694_s4, %s694_s4 }
  0x6b   : > { %p11031_p7 = scmp.ne.s32.totalorder %s694_s4, %s11030_s7  ;;  %p11039_p2 = scmp.lt.s32.totalorder %s11030_s7, %s11030_s7 }
  0x6d   : > { %p11033_p11 = pnand %p11031_p7, %p11322_p13  ;;  %p11040_p1 = por %p11039_p2, %p11038_p3 }
  0x6f   : > { %p11034_p0 = pneg %p11033_p11 }
  0x71   : > { %p11041_p4 = pnand %p11040_p1, %p11034_p0 }
  0x73   : > { %11044 = shalt.err (!%p11041_p4)
}
  0x74   : > { %s11132_s6 = smov 64   ;;  %s11133_s0 = smov 4  }
  0x75   : > { %9905 = dma.hbm_to_vmem [thread:$0]  (!%p11316_p12), %s16211_s21, 2048, %s694_s4, [#allocation12], %s11132_s6, %s11132_s6, %s11133_s0  }
  0x76   : > { %730 = sbr.rel (%p11308_p10) target bundleno = 3762 (0xeb2), region = 112 }
  0x7b   : > { %p16445_p9 = scmp.eq.s32.totalorder %s11280_s5, 0 }
  0x7d   : > { %11088 = dma.done.wait (%p16445_p9), [#allocation3], 2048   ;;  %p16446_p13 = pmov %p16445_p9 }
  0x7e   : > { %p16447_p8 = pmov %p16445_p9 }
  0x7f   : > { %11090 = vsyncadd (%p16446_p13), [#allocation3], 4294965248 }
  0x80   : > { %11092 = dma.done.wait (%p16447_p8), [#allocation6], 8192   ;;  %p16448_p7 = pmov %p16447_p8 }
  0x82   : > { %11094 = vsyncadd (%p16448_p7), [#allocation6], 4294959104  ;;  %p16449_p11 = pmov %p16448_p7 }
  0x83   : > { %p16450_p12 = pmov %p16448_p7 }
  0x84   : > { %11096 = dma.done.wait (%p16449_p11), [#allocation9], 8192  }
  0x85   : > { %11098 = vsyncadd (%p16450_p12), [#allocation9], 4294959104  ;;  %p16451_p10 = pmov %p16448_p7 }
  0x86   : > { %p16452_p0 = pmov %p16448_p7 }
  0x87   : > { %11100 = dma.done.wait (%p16451_p10), [#allocation12], 6144  }
  0x88   : > { %11102 = vsyncadd (%p16452_p0), [#allocation12], 4294961152  ;;  %s8963_s26 = sshll.u32 %s11280_s5, 5  ;;  %v11134_v0 = vmov 0   ;;  %s16453_s27 = sld [smem:[#allocation190_spill]] }
  0x89   : > { %9973 = vset.pattern.permute.xlu1 %v11134_v0  ;;  %9972 = vset.pattern.permute.xlu0 %v11134_v0  ;;  %p824_p3 = scmp.lt.s32.totalorder %s8963_s26, 63  ;;  %s16454_s25 = sld [smem:[#allocation192_spill]]  ;;  %v10016_v40 = vld [vmem:[#allocation2 + $0x74] ss:$8 sps:$4 sm:$0xff]   ;;  %v10018_v41 = vld [vmem:[#allocation2 + $0x70] ss:$8 sps:$4 sm:$0xff]  }
  0x8a   : > { %1464 = vmatprep.mubr.bf16.mxu0 %v11134_v0  ;;  %s16456_s1 = sld [smem:[#allocation189_spill]]  ;;  %1432 = vmatprep.subr.bf16.mxu0 %v10016_v40  ;;  %v10022_v45 = vld [vmem:[#allocation2 + $0x64] ss:$8 sps:$4 sm:$0xff]   ;;  %v10024_v46 = vld [vmem:[#allocation2 + $0x60] ss:$8 sps:$4 sm:$0xff]   ;;  %s820_s24 = sand.u32 1, %s11113_s30  }
  0x8b   : > { %s17033_s26 = smov (!%p824_p3, %s8963_s26), 63  ;;  %1433 = vmatpush1.bf16.msra.mxu0 %v10018_v41  ;;  %v10028_v51 = vld [vmem:[#allocation2 + $0x54] ss:$8 sps:$4 sm:$0xff]   ;;  %v10030_v53 = vld [vmem:[#allocation2 + $0x50] ss:$8 sps:$4 sm:$0xff]   ;;  %s16457_s6 = sld [smem:[#allocation194_spill]] }
  0x8c   : > { %s8964_s29 = sshll.u32 %s17033_s26, 3  ;;  %1434 = vmatprep.subr.bf16.mxu0 %v10022_v45  ;;  %v10031_v54 = vld [vmem:[#allocation2 + $0x44] ss:$8 sps:$4 sm:$0xff]   ;;  %v10033_v59 = vld [vmem:[#allocation2 + $0x40] ss:$8 sps:$4 sm:$0xff]   ;;  %s16524_s0 = sld [smem:[#allocation195_spill]] }
  0x8d   : > { %v10034_v62 = vld [vmem:[#allocation2 + $0x34] ss:$8 sps:$4 sm:$0xff]   ;;  %s16527_s8 = sld [smem:[#allocation197_spill]]  ;;  %s8962_s23 = sshll.u32 %s820_s24, 8 }
  0x8e   : > { %s11423_s28 = scalar_lea.vmem %s16453_s27, %s8964_s29  ;;  %s16458_s27 = sld [smem:[#allocation193_spill]] }
  0x8f   : > { %v871_v1 = vld [vmem:[%s11423_s28 + $0x10] sm:$0xff]  ;;  %v869_v2 = vld [vmem:[%s11423_s28] sm:$0xff]  ;;  %v872_v3 = vld [vmem:[%s11423_s28 + $0x18] sm:$0xff]  ;;  %s16455_s7 = smov %s16454_s25  ;;  %1435 = vmatpush1.bf16.msra.mxu0 %v10024_v46  ;;  %s9357_s2 = sshll.u32 %s11280_s5, 12 }
  0x90   : > { %1087 = vperm.xlu1 %9973, %v871_v1   ;;  %1081 = vperm.xlu0 %9972, %v869_v2   ;;  %v870_v4 = vld [vmem:[%s11423_s28 + $0x8] sm:$0xff]  ;;  %v873_v6 = vld [vmem:[%s11423_s28 + $0x20] sm:$0xff]  ;;  %v876_v7 = vld [vmem:[%s11423_s28 + $0x38] sm:$0xff]  ;;  %s11465_s3 = scalar_lea.vmem %s16456_s1, %s8964_s29  ;;  %s16082_s1 = scalar_lea.vmem [#allocation14], %s8962_s23 }
  0x91   : > { %v874_v5 = vld [vmem:[%s11423_s28 + $0x28] sm:$0xff]  ;;  %v875_v8 = vld [vmem:[%s11423_s28 + $0x30] sm:$0xff]  ;;  %v877_v12 = vld [vmem:[%s11423_s28 + $0x40] sm:$0xff]  ;;  %1436 = vmatprep.subr.bf16.mxu0 %v10028_v51  ;;  %s11136_s5 = smov [#allocation14]  }
  0x92   : > { %v9974_v9 = vld [vmem:[%s16454_s25 + $0x74] ss:$8 sps:$4 sm:$0xff]   ;;  %v9976_v10 = vld [vmem:[%s16455_s7 + $0x70] ss:$8 sps:$4 sm:$0xff]   ;;  %v878_v11 = vld [vmem:[%s11423_s28 + $0x48] sm:$0xff]  ;;  %s8801_s25 = sshll.u32 %s16082_s1, 4  ;;  %s16145_s25 = int_to_ptr.vmem [resolvable:$true] %s8801_s25 }
  0x93   : > { %1881 = vmatprep.subr.bf16.mxu1 %v9974_v9  ;;  %v9977_v13 = vld [vmem:[%s16455_s7 + $0x64] ss:$8 sps:$4 sm:$0xff]   ;;  %v9979_v14 = vld [vmem:[%s16455_s7 + $0x60] ss:$8 sps:$4 sm:$0xff]   ;;  %v9980_v15 = vld [vmem:[%s16455_s7 + $0x54] ss:$8 sps:$4 sm:$0xff]   ;;  %1437 = vmatpush1.bf16.msra.mxu0 %v10030_v53 }
  0x94   : > { %1090 = vperm.xlu1 %9973, %v872_v3   ;;  %1084 = vperm.xlu0 %9972, %v870_v4   ;;  %v880_v16 = vld [vmem:[%s11423_s28 + $0x58] sm:$0xff]  ;;  %v879_v17 = vld [vmem:[%s11423_s28 + $0x50] sm:$0xff]  ;;  %v9983_v19 = vld [vmem:[%s16455_s7 + $0x44] ss:$8 sps:$4 sm:$0xff]   ;;  %s11045_s23 = scalar_lea.vmem %s16145_s25, 4096 }
  0x95   : > { %1882 = vmatpush1.bf16.msra.mxu1 %v9976_v10  ;;  %v9982_v18 = vld [vmem:[%s16455_s7 + $0x50] ss:$8 sps:$4 sm:$0xff]   ;;  %v882_v20 = vld [vmem:[%s11423_s28 + $0x68] sm:$0xff]  ;;  %v881_v21 = vld [vmem:[%s11423_s28 + $0x60] sm:$0xff]  ;;  %1438 = vmatprep.subr.bf16.mxu0 %v10031_v54  ;;  %p11046_p2 = scmp.ne.s32.totalorder %s16145_s25, %s11045_s23 }
  0x96   : > { %1883 = vmatprep.subr.bf16.mxu1 %v9977_v13  ;;  %v9985_v22 = vld [vmem:[%s16455_s7 + $0x40] ss:$8 sps:$4 sm:$0xff]   ;;  %v9986_v23 = vld [vmem:[%s16455_s7 + $0x34] ss:$8 sps:$4 sm:$0xff]   ;;  %v9988_v26 = vld [vmem:[%s16455_s7 + $0x30] ss:$8 sps:$4 sm:$0xff]  }
  0x97   : > { %v838_v24 = vld [vmem:[%s11465_s3 + $0x8] sm:$0xff]  ;;  %v837_v25 = vld [vmem:[%s11465_s3] sm:$0xff]  ;;  %v884_v28 = vld [vmem:[%s11423_s28 + $0x78] sm:$0xff]  ;;  %1439 = vmatpush1.bf16.msra.mxu0 %v10033_v59  ;;  %p11047_p1 = pnand %p11046_p2, %p11297_p5 }
  0x98   : > { %1096 = vperm.xlu1 %9973, %v874_v5   ;;  %1093 = vperm.xlu0 %9972, %v873_v6   ;;  %v9989_v27 = vld [vmem:[%s16455_s7 + $0x24] ss:$8 sps:$4 sm:$0xff]   ;;  %v883_v29 = vld [vmem:[%s11423_s28 + $0x70] sm:$0xff]  ;;  %v9991_v30 = vld [vmem:[%s16455_s7 + $0x20] ss:$8 sps:$4 sm:$0xff]  }
  0x99   : > { %1884 = vmatpush1.bf16.msra.mxu1 %v9979_v14  ;;  %v9992_v31 = vld [vmem:[%s16455_s7 + $0x14] ss:$8 sps:$4 sm:$0xff]   ;;  %v9994_v34 = vld [vmem:[%s16455_s7 + $0x10] ss:$8 sps:$4 sm:$0xff]   ;;  %v9995_v35 = vld [vmem:[%s16455_s7 + $0x4] ss:$8 sps:$4 sm:$0xff]   ;;  %1440 = vmatprep.subr.bf16.mxu0 %v10034_v62  ;;  %p11048_p4 = pneg %p11047_p1 }
  0x9a   : > { %1885 = vmatprep.subr.bf16.mxu1 %v9980_v15  ;;  %v840_v32 = vld [vmem:[%s11465_s3 + $0x18] sm:$0xff]  ;;  %v839_v33 = vld [vmem:[%s11465_s3 + $0x10] sm:$0xff]  ;;  %v886_v36 = vld [vmem:[%s11423_s28 + $0x88] sm:$0xff] }
  0x9b   : > { %v885_v37 = vld [vmem:[%s11423_s28 + $0x80] sm:$0xff]  ;;  %v9998_v39 = vld [vmem:[%s16455_s7 + $0xf4] ss:$8 sps:$4 sm:$0xff]   ;;  %v842_v42 = vld [vmem:[%s11465_s3 + $0x28] sm:$0xff] }
  0x9c   : > { %1102 = vperm.xlu1 %9973, %v876_v7   ;;  %1099 = vperm.xlu0 %9972, %v875_v8   ;;  %v9997_v38 = vld [vmem:[%s16455_s7] ss:$8 sps:$4 sm:$0xff]   ;;  %v10000_v44 = vld [vmem:[%s16455_s7 + $0xf0] ss:$8 sps:$4 sm:$0xff]   ;;  %v10001_v48 = vld [vmem:[%s16455_s7 + $0xe4] ss:$8 sps:$4 sm:$0xff]  }
  0x9d   : > { %1886 = vmatpush1.bf16.msra.mxu1 %v9982_v18  ;;  %v841_v43 = vld [vmem:[%s11465_s3 + $0x20] sm:$0xff]  ;;  %v888_v47 = vld [vmem:[%s11423_s28 + $0x98] sm:$0xff]  ;;  %v887_v49 = vld [vmem:[%s11423_s28 + $0x90] sm:$0xff] }
  0x9e   : > { %1887 = vmatprep.subr.bf16.mxu1 %v9983_v19  ;;  %v10003_v50 = vld [vmem:[%s16455_s7 + $0xe0] ss:$8 sps:$4 sm:$0xff]   ;;  %v10004_v52 = vld [vmem:[%s16455_s7 + $0xd4] ss:$8 sps:$4 sm:$0xff]   ;;  %v10006_v57 = vld [vmem:[%s16455_s7 + $0xd0] ss:$8 sps:$4 sm:$0xff]  }
  0x9f   : > { %v844_v55 = vld [vmem:[%s11465_s3 + $0x38] sm:$0xff]  ;;  %v843_v56 = vld [vmem:[%s11465_s3 + $0x30] sm:$0xff]  ;;  %v10007_v58 = vld [vmem:[%s16455_s7 + $0xc4] ss:$8 sps:$4 sm:$0xff]  }
  0xa0   : > { %1108 = vperm.xlu1 %9973, %v878_v11   ;;  %1105 = vperm.xlu0 %9972, %v877_v12   ;;  %v890_v60 = vld [vmem:[%s11423_s28 + $0xa8] sm:$0xff]  ;;  %v889_v61 = vld [vmem:[%s11423_s28 + $0xa0] sm:$0xff]  ;;  %v10036_v1 = vld [vmem:[#allocation2 + $0x30] ss:$8 sps:$4 sm:$0xff]  }
  0xa1   : > { %1888 = vmatpush1.bf16.msra.mxu1 %v9985_v22  ;;  %v10009_v63 = vld [vmem:[%s16455_s7 + $0xc0] ss:$8 sps:$4 sm:$0xff]   ;;  %v10010_v2 = vld [vmem:[%s16455_s7 + $0xb4] ss:$8 sps:$4 sm:$0xff]   ;;  %v10037_v3 = vld [vmem:[#allocation2 + $0x24] ss:$8 sps:$4 sm:$0xff]   ;;  %1441 = vmatpush1.bf16.msra.mxu0 %v10036_v1 }
  0xa2   : > { %1889 = vmatprep.subr.bf16.mxu1 %v9986_v23  ;;  %v846_v4 = vld [vmem:[%s11465_s3 + $0x48] sm:$0xff]  ;;  %v845_v5 = vld [vmem:[%s11465_s3 + $0x40] sm:$0xff]  ;;  %v10012_v6 = vld [vmem:[%s16455_s7 + $0xb0] ss:$8 sps:$4 sm:$0xff]   ;;  %1442 = vmatprep.subr.bf16.mxu0 %v10037_v3 }
  0xa3   : > { %v10039_v7 = vld [vmem:[#allocation2 + $0x20] ss:$8 sps:$4 sm:$0xff]   ;;  %v10013_v8 = vld [vmem:[%s16455_s7 + $0xa4] ss:$8 sps:$4 sm:$0xff]   ;;  %v10040_v9 = vld [vmem:[#allocation2 + $0x14] ss:$8 sps:$4 sm:$0xff]  }
  0xa4   : > { %1114 = vperm.xlu1 %9973, %v880_v16   ;;  %1111 = vperm.xlu0 %9972, %v879_v17   ;;  %v892_v10 = vld [vmem:[%s11423_s28 + $0xb8] sm:$0xff]  ;;  %v891_v11 = vld [vmem:[%s11423_s28 + $0xb0] sm:$0xff]  ;;  %v10015_v12 = vld [vmem:[%s16455_s7 + $0xa0] ss:$8 sps:$4 sm:$0xff]  }
  0xa5   : > { %1890 = vmatpush1.bf16.msra.mxu1 %v9988_v26  ;;  %v10042_v13 = vld [vmem:[#allocation2 + $0x10] ss:$8 sps:$4 sm:$0xff]   ;;  %v10019_v14 = vld [vmem:[%s16455_s7 + $0x94] ss:$8 sps:$4 sm:$0xff]   ;;  %v10043_v15 = vld [vmem:[#allocation2 + $0x4] ss:$8 sps:$4 sm:$0xff]   ;;  %1443 = vmatpush1.bf16.msra.mxu0 %v10039_v7 }
  0xa6   : > { %1891 = vmatprep.subr.bf16.mxu1 %v9989_v27  ;;  %v848_v16 = vld [vmem:[%s11465_s3 + $0x58] sm:$0xff]  ;;  %v847_v17 = vld [vmem:[%s11465_s3 + $0x50] sm:$0xff]  ;;  %1444 = vmatprep.subr.bf16.mxu0 %v10040_v9  ;;  %v10045_v19 = vld [vmem:[#allocation2] ss:$8 sps:$4 sm:$0xff]  }
  0xa7   : > { %v10021_v18 = vld [vmem:[%s16455_s7 + $0x90] ss:$8 sps:$4 sm:$0xff]   ;;  %v893_v22 = vld [vmem:[%s11423_s28 + $0xc0] sm:$0xff]  ;;  %v10054_v9 = vld [vmem:[#allocation5 + $0x54] ss:$8 sps:$4 sm:$0xff]  }
  0xa8   : > { %1120 = vperm.xlu1 %9973, %v882_v20   ;;  %1117 = vperm.xlu0 %9972, %v881_v21   ;;  %v10025_v20 = vld [vmem:[%s16455_s7 + $0x84] ss:$8 sps:$4 sm:$0xff]   ;;  %v10027_v23 = vld [vmem:[%s16455_s7 + $0x80] ss:$8 sps:$4 sm:$0xff]   ;;  %v896_v26 = vld [vmem:[%s11423_s28 + $0xd8] sm:$0xff] }
  0xa9   : > { %1892 = vmatpush1.bf16.msra.mxu1 %v9991_v30  ;;  %1445 = vmatpush1.bf16.msra.mxu0 %v10042_v13  ;;  %v894_v21 = vld [vmem:[%s11423_s28 + $0xc8] sm:$0xff]  ;;  %v895_v27 = vld [vmem:[%s11423_s28 + $0xd0] sm:$0xff]  ;;  %v860_v40 = vld [vmem:[%s11465_s3 + $0xb8] sm:$0xff] }
  0xaa   : > { %1893 = vmatprep.subr.bf16.mxu1 %v9992_v31  ;;  %1446 = vmatprep.subr.bf16.mxu0 %v10043_v15  ;;  %v898_v30 = vld [vmem:[%s11423_s28 + $0xe8] sm:$0xff]  ;;  %v897_v31 = vld [vmem:[%s11423_s28 + $0xe0] sm:$0xff]  ;;  %v859_v41 = vld [vmem:[%s11465_s3 + $0xb0] sm:$0xff] }
  0xab   : > { %v864_v45 = vld [vmem:[%s11465_s3 + $0xd8] sm:$0xff]  ;;  %v863_v46 = vld [vmem:[%s11465_s3 + $0xd0] sm:$0xff] }
  0xac   : > { %908 = vperm.xlu1 %9973, %v838_v24   ;;  %905 = vperm.xlu0 %9972, %v837_v25   ;;  %v850_v24 = vld [vmem:[%s11465_s3 + $0x68] sm:$0xff]  ;;  %v849_v25 = vld [vmem:[%s11465_s3 + $0x60] sm:$0xff]  ;;  %v868_v51 = vld [vmem:[%s11465_s3 + $0xf8] sm:$0xff] }
  0xad   : > { %1894 = vmatpush1.bf16.msra.mxu1 %v9994_v34  ;;  %1447 = vmatpush1.bf16.msra.mxu0 %v10045_v19  ;;  %v900_v34 = vld [vmem:[%s11423_s28 + $0xf8] sm:$0xff] }
  0xae   : > { %1895 = vmatprep.subr.bf16.mxu1 %v9995_v35  ;;  %v899_v35 = vld [vmem:[%s11423_s28 + $0xf0] sm:$0xff]  ;;  %s17022_s28 = sld [smem:[#allocation198_spill]] }
  0xaf   : > { %v10046_v62 = vld [vmem:[#allocation5 + $0x70] ss:$8 sps:$4 sm:$0xff]  }
  0xb0   : > { %1126 = vperm.xlu1 %9973, %v884_v28   ;;  %1123 = vperm.xlu0 %9972, %v883_v29   ;;  %v852_v28 = vld [vmem:[%s11465_s3 + $0x78] sm:$0xff]  ;;  %v851_v29 = vld [vmem:[%s11465_s3 + $0x70] sm:$0xff] }
  0xb1   : > { %1896 = vmatpush1.bf16.msra.mxu1 %v9997_v38  ;;  %v858_v38 = vld [vmem:[%s11465_s3 + $0xa8] sm:$0xff]  ;;  %v10064_v15 = vld [vmem:[%s16457_s6 + $0x70] ss:$8 sps:$4 sm:$0xff]  }
  0xb2   : > { %1897 = vmatprep.subr.bf16.mxu1 %v9998_v39  ;;  %v857_v39 = vld [vmem:[%s11465_s3 + $0xa0] sm:$0xff] }
  0xb4   : > { %914 = vperm.xlu1 %9973, %v840_v32   ;;  %911 = vperm.xlu0 %9972, %v839_v33   ;;  %v854_v32 = vld [vmem:[%s11465_s3 + $0x88] sm:$0xff]  ;;  %v853_v33 = vld [vmem:[%s11465_s3 + $0x80] sm:$0xff] }
  0xb5   : > { %1898 = vmatpush2.bf16.msra.mxu1 %v10000_v44  ;;  %v16227_v44 = vlaneseq }
  0xb6   : > { %1899 = vmatprep.subr.bf16.mxu1 %v10001_v48  ;;  %v866_v48 = vld [vmem:[%s11465_s3 + $0xe8] sm:$0xff] }
  0xb8   : > { %1132 = vperm.xlu1 %9973, %v886_v36   ;;  %1129 = vperm.xlu0 %9972, %v885_v37   ;;  %v856_v36 = vld [vmem:[%s11465_s3 + $0x98] sm:$0xff]  ;;  %v855_v37 = vld [vmem:[%s11465_s3 + $0x90] sm:$0xff] }
  0xb9   : > { %1900 = vmatpush2.bf16.msra.mxu1 %v10003_v50 }
  0xba   : > { %1901 = vmatprep.subr.bf16.mxu1 %v10004_v52  ;;  %v867_v52 = vld [vmem:[%s11465_s3 + $0xf0] sm:$0xff] }
  0xbc   : > { %920 = vperm.xlu1 %9973, %v842_v42   ;;  %917 = vperm.xlu0 %9972, %v841_v43   ;;  %v862_v42 = vld [vmem:[%s11465_s3 + $0xc8] sm:$0xff]  ;;  %v861_v43 = vld [vmem:[%s11465_s3 + $0xc0] sm:$0xff] }
  0xbd   : > { %1902 = vmatpush2.bf16.msra.mxu1 %v10006_v57  ;;  %v11135_v57 = vmov 1.0|1.0  }
  0xbe   : > { %1903 = vmatprep.subr.bf16.mxu1 %v10007_v58 }
  0xc0   : > { %1138 = vperm.xlu1 %9973, %v888_v47   ;;  %1135 = vperm.xlu0 %9972, %v887_v49   ;;  %v11589_v47 = vand.u32 127, %v16227_v44  ;;  %v865_v49 = vld [vmem:[%s11465_s3 + $0xe0] sm:$0xff]  ;;  %s16143_s3 = scalar_lea.hbm %s17022_s28, %s9357_s2 }
  0xc1   : > { %1904 = vmatpush2.bf16.msra.mxu1 %v10009_v63  ;;  %v10048_v63 = vld [vmem:[#allocation5 + $0x74] ss:$8 sps:$4 sm:$0xff]  }
  0xc2   : > { %1905 = vmatprep.subr.bf16.mxu1 %v10010_v2  ;;  %v11594_v50 = vadd.s32 128, %v11589_v47 }
  0xc4   : > { %926 = vperm.xlu1 %9973, %v844_v55   ;;  %923 = vperm.xlu0 %9972, %v843_v56  }
  0xc5   : > { %1906 = vmatpush2.bf16.msra.mxu1 %v10012_v6  ;;  %v10051_v6 = vld [vmem:[#allocation5 + $0x64] ss:$8 sps:$4 sm:$0xff]  }
  0xc6   : > { %1907 = vmatprep.subr.bf16.mxu1 %v10013_v8 }
  0xc8   : > { %1144 = vperm.xlu1 %9973, %v890_v60   ;;  %1141 = vperm.xlu0 %9972, %v889_v61  }
  0xc9   : > { %1908 = vmatpush2.bf16.msra.mxu1 %v10015_v12 }
  0xca   : > { %1909 = vmatprep.subr.bf16.mxu1 %v10019_v14  ;;  %v10057_v14 = vld [vmem:[#allocation5 + $0x44] ss:$8 sps:$4 sm:$0xff]  }
  0xcc   : > { %932 = vperm.xlu1 %9973, %v846_v4   ;;  %929 = vperm.xlu0 %9972, %v845_v5   ;;  %v10049_v5 = vld [vmem:[#allocation5 + $0x60] ss:$8 sps:$4 sm:$0xff]  }
  0xcd   : > { %1910 = vmatpush2.bf16.msra.mxu1 %v10021_v18 }
  0xce   : > { %1911 = vmatprep.subr.bf16.mxu1 %v10025_v20  ;;  %v10060_v20 = vld [vmem:[#allocation5 + $0x34] ss:$8 sps:$4 sm:$0xff]  }
  0xd0   : > { %1150 = vperm.xlu1 %9973, %v892_v10   ;;  %1147 = vperm.xlu0 %9972, %v891_v11   ;;  %v10052_v10 = vld [vmem:[#allocation5 + $0x50] ss:$8 sps:$4 sm:$0xff]   ;;  %v10066_v11 = vld [vmem:[%s16457_s6 + $0x74] ss:$8 sps:$4 sm:$0xff]  }
  0xd1   : > { %1912 = vmatpush2.bf16.msra.mxu1 %v10027_v23  ;;  %2342 = vmatprep.subr.bf16.mxu0 %v10066_v11 }
  0xd2   : > { %2739 = vmatprep.subr.bf16.mxu1 %v10048_v63  ;;  %v10100_v63 = vld [vmem:[%s16457_s6 + $0x10] ss:$8 sps:$4 sm:$0xff]  }
  0xd4   : > { %938 = vperm.xlu1 %9973, %v848_v16   ;;  %935 = vperm.xlu0 %9972, %v847_v17   ;;  %v10055_v16 = vld [vmem:[#allocation5 + $0x40] ss:$8 sps:$4 sm:$0xff]   ;;  %v10072_v17 = vld [vmem:[%s16457_s6 + $0x64] ss:$8 sps:$4 sm:$0xff]  }
  0xd8   : > { %1156 = vperm.xlu1 %9973, %v894_v21   ;;  %1153 = vperm.xlu0 %9972, %v893_v22   ;;  %v10070_v21 = vld [vmem:[%s16457_s6 + $0x60] ss:$8 sps:$4 sm:$0xff]   ;;  %v10058_v22 = vld [vmem:[#allocation5 + $0x30] ss:$8 sps:$4 sm:$0xff]  }
  0xdc   : > { %944 = vperm.xlu1 %9973, %v850_v24   ;;  %941 = vperm.xlu0 %9972, %v849_v25   ;;  %v10063_v25 = vld [vmem:[#allocation5 + $0x24] ss:$8 sps:$4 sm:$0xff]  }
  0xe0   : > { %1162 = vperm.xlu1 %9973, %v896_v26   ;;  %1159 = vperm.xlu0 %9972, %v895_v27   ;;  %v10078_v26 = vld [vmem:[%s16457_s6 + $0x54] ss:$8 sps:$4 sm:$0xff]   ;;  %v10061_v27 = vld [vmem:[#allocation5 + $0x20] ss:$8 sps:$4 sm:$0xff]  }
  0xe4   : > { %950 = vperm.xlu1 %9973, %v852_v28   ;;  %947 = vperm.xlu0 %9972, %v851_v29   ;;  %v10076_v28 = vld [vmem:[%s16457_s6 + $0x50] ss:$8 sps:$4 sm:$0xff]  }
  0xe8   : > { %1168 = vperm.xlu1 %9973, %v898_v30   ;;  %1165 = vperm.xlu0 %9972, %v897_v31   ;;  %v10069_v31 = vld [vmem:[#allocation5 + $0x14] ss:$8 sps:$4 sm:$0xff]  }
  0xec   : > { %956 = vperm.xlu1 %9973, %v854_v32   ;;  %953 = vperm.xlu0 %9972, %v853_v33   ;;  %v10084_v32 = vld [vmem:[%s16457_s6 + $0x44] ss:$8 sps:$4 sm:$0xff]   ;;  %v10067_v33 = vld [vmem:[#allocation5 + $0x10] ss:$8 sps:$4 sm:$0xff]  }
  0xf0   : > { %1174 = vperm.xlu1 %9973, %v900_v34   ;;  %1171 = vperm.xlu0 %9972, %v899_v35  }
  0xf4   : > { %962 = vperm.xlu1 %9973, %v856_v36   ;;  %959 = vperm.xlu0 %9972, %v855_v37   ;;  %v10075_v36 = vld [vmem:[#allocation5 + $0x4] ss:$8 sps:$4 sm:$0xff]   ;;  %v10082_v37 = vld [vmem:[%s16457_s6 + $0x40] ss:$8 sps:$4 sm:$0xff]  }
  0xf8   : > { %968 = vperm.xlu1 %9973, %v858_v38   ;;  %965 = vperm.xlu0 %9972, %v857_v39   ;;  %v10073_v38 = vld [vmem:[#allocation5] ss:$8 sps:$4 sm:$0xff]   ;;  %v10090_v39 = vld [vmem:[%s16457_s6 + $0x34] ss:$8 sps:$4 sm:$0xff]  }
  0xfc   : > { %974 = vperm.xlu1 %9973, %v860_v40   ;;  %971 = vperm.xlu0 %9972, %v859_v41  }
 0x100   : > { %980 = vperm.xlu1 %9973, %v862_v42   ;;  %977 = vperm.xlu0 %9972, %v861_v43   ;;  %v10081_v42 = vld [vmem:[#allocation5 + $0xf4] ss:$8 sps:$4 sm:$0xff]   ;;  %v10088_v43 = vld [vmem:[%s16457_s6 + $0x30] ss:$8 sps:$4 sm:$0xff]  }
 0x104   : > { %986 = vperm.xlu1 %9973, %v864_v45   ;;  %983 = vperm.xlu0 %9972, %v863_v46   ;;  %v10079_v45 = vld [vmem:[#allocation5 + $0xf0] ss:$8 sps:$4 sm:$0xff]  }
 0x108   : > { %992 = vperm.xlu1 %9973, %v866_v48   ;;  %989 = vperm.xlu0 %9972, %v865_v49   ;;  %v10087_v49 = vld [vmem:[#allocation5 + $0xe4] ss:$8 sps:$4 sm:$0xff]  }
 0x10b   : > { %v1088_v53 = vpop.permute.xlu1 %1087  ;;  %v1082_v54 = vpop.permute.xlu0 %1081 }
 0x10c   : > { %998 = vperm.xlu1 %9973, %v868_v51   ;;  %995 = vperm.xlu0 %9972, %v867_v52   ;;  %vm1181_vm0 = vcmp.eq.s32.totalorder %v11594_v50, %v1088_v53  ;;  %vm1177_vm3 = vcmp.eq.s32.totalorder %v11594_v50, %v1082_v54  ;;  %vm1176_vm5 = vcmp.eq.s32.totalorder %v11589_v47, %v1082_v54  ;;  %v10096_v51 = vld [vmem:[%s16457_s6 + $0x24] ss:$8 sps:$4 sm:$0xff]   ;;  %v10085_v52 = vld [vmem:[#allocation5 + $0xe0] ss:$8 sps:$4 sm:$0xff]  }
 0x10d   : > { %vm1180_vm9 = vcmp.eq.s32.totalorder %v11589_v47, %v1088_v53  ;;  %v10094_v53 = vld [vmem:[%s16457_s6 + $0x20] ss:$8 sps:$4 sm:$0xff]  }
 0x10f   : > { %v1091_v55 = vpop.permute.xlu1 %1090  ;;  %v1085_v56 = vpop.permute.xlu0 %1084 }
 0x110   : > { %vm1183_vm1 = vcmp.eq.s32.totalorder %v11594_v50, %v1091_v55  ;;  %vm1178_vm2 = vcmp.eq.s32.totalorder %v11589_v47, %v1085_v56  ;;  %vm1179_vm4 = vcmp.eq.s32.totalorder %v11594_v50, %v1085_v56  ;;  %vm1182_vm10 = vcmp.eq.s32.totalorder %v11589_v47, %v1091_v55  ;;  %v10093_v56 = vld [vmem:[#allocation5 + $0xd4] ss:$8 sps:$4 sm:$0xff]  }
 0x111   : > { %vm9047_vm6 = vmpackc.low %vm1179_vm4, %vm1177_vm3 }
 0x112   : > { %9048 = vmatprep.mubr.msk.bf16.mxu1 %vm9047_vm6, %v11135_v57  ;;  %vm9049_vm7 = vmpackc.low %vm1178_vm2, %vm1176_vm5 }
 0x113   : > { %v1097_v58 = vpop.permute.xlu1 %1096  ;;  %9050 = vmatmul.mubr.msk.bf16.vlgmr.msra.gmra.mxu1 %vm9049_vm7, %v11135_v57  ;;  %v1094_v59 = vpop.permute.xlu0 %1093  ;;  %vm9051_vm8 = vmpackc.low %vm1183_vm1, %vm1181_vm0 }
 0x114   : > { %9052 = vmatprep.mubr.msk.bf16.mxu1 %vm9051_vm8, %v11135_v57  ;;  %vm1187_vm11 = vcmp.eq.s32.totalorder %v11594_v50, %v1097_v58  ;;  %vm1185_vm12 = vcmp.eq.s32.totalorder %v11594_v50, %v1094_v59  ;;  %vm9053_vm13 = vmpackc.low %vm1182_vm10, %vm1180_vm9  ;;  %2740 = vmatpush1.bf16.msra.mxu1 %v10046_v62  ;;  %vm1186_vm15 = vcmp.eq.s32.totalorder %v11589_v47, %v1097_v58  ;;  %v10102_v58 = vld [vmem:[%s16457_s6 + $0x14] ss:$8 sps:$4 sm:$0xff]   ;;  %v10099_v62 = vld [vmem:[#allocation5 + $0xc4] ss:$8 sps:$4 sm:$0xff]  }
 0x115   : > { %vm9055_vm14 = vmpackc.low %vm1187_vm11, %vm1185_vm12  ;;  %vm1184_vm0 = vcmp.eq.s32.totalorder %v11589_v47, %v1094_v59  ;;  %2741 = vmatprep.subr.bf16.mxu1 %v10051_v6  ;;  %v10091_v59 = vld [vmem:[#allocation5 + $0xd0] ss:$8 sps:$4 sm:$0xff]   ;;  %v10106_v6 = vld [vmem:[%s16457_s6] ss:$8 sps:$4 sm:$0xff]  }
 0x116   : > { %vm9057_vm3 = vmpackc.low %vm1186_vm15, %vm1184_vm0 }
 0x117   : > { %v1103_v60 = vpop.permute.xlu1 %1102  ;;  %v1100_v61 = vpop.permute.xlu0 %1099 }
 0x118   : > { %vm1191_vm1 = vcmp.eq.s32.totalorder %v11594_v50, %v1103_v60  ;;  %vm1189_vm2 = vcmp.eq.s32.totalorder %v11594_v50, %v1100_v61  ;;  %2742 = vmatpush1.bf16.msra.mxu1 %v10049_v5  ;;  %vm1190_vm5 = vcmp.eq.s32.totalorder %v11589_v47, %v1103_v60  ;;  %vm1188_vm6 = vcmp.eq.s32.totalorder %v11589_v47, %v1100_v61  ;;  %v10105_v5 = vld [vmem:[#allocation5 + $0xb4] ss:$8 sps:$4 sm:$0xff]  }
 0x119   : > { %vm9059_vm4 = vmpackc.low %vm1191_vm1, %vm1189_vm2  ;;  %2743 = vmatprep.subr.bf16.mxu1 %v10054_v9 }
 0x11a   : > { %vm9061_vm12 = vmpackc.low %vm1190_vm5, %vm1188_vm6 }
 0x11b   : > { %v11613_v1 = vpop.permute.xlu1 %1108  ;;  %9054 = vmatmul.mubr.msk.bf16.gmra.mxu1 %vm9053_vm13, %v11135_v57  ;;  %v11616_v2 = vpop.permute.xlu0 %1105 }
 0x11c   : > { %9056 = vmatprep.mubr.msk.bf16.mxu1 %vm9055_vm14, %v11135_v57  ;;  %vm1195_vm7 = vcmp.eq.s32.totalorder %v11594_v50, %v11613_v1  ;;  %vm1193_vm8 = vcmp.eq.s32.totalorder %v11594_v50, %v11616_v2  ;;  %2744 = vmatpush1.bf16.msra.mxu1 %v10052_v10  ;;  %vm1194_vm14 = vcmp.eq.s32.totalorder %v11589_v47, %v11613_v1  ;;  %v10097_v1 = vld [vmem:[#allocation5 + $0xc0] ss:$8 sps:$4 sm:$0xff]   ;;  %v10111_v10 = vld [vmem:[#allocation5 + $0xa4] ss:$8 sps:$4 sm:$0xff]  }
 0x11d   : > { %vm9063_vm13 = vmpackc.low %vm1195_vm7, %vm1193_vm8  ;;  %2745 = vmatprep.subr.bf16.mxu1 %v10057_v14  ;;  %vm1192_vm15 = vcmp.eq.s32.totalorder %v11589_v47, %v11616_v2  ;;  %v10108_v2 = vld [vmem:[%s16457_s6 + $0x4] ss:$8 sps:$4 sm:$0xff]   ;;  %v10114_v14 = vld [vmem:[%s16457_s6 + $0xf4] ss:$8 sps:$4 sm:$0xff]  }
 0x11e   : > { %vm9065_vm5 = vmpackc.low %vm1194_vm14, %vm1192_vm15 }
 0x11f   : > { %v11621_v3 = vpop.permute.xlu1 %1114  ;;  %v11623_v4 = vpop.permute.xlu0 %1111 }
 0x120   : > { %2746 = vmatpush1.bf16.msra.mxu1 %v10055_v16  ;;  %vm1199_vm0 = vcmp.eq.s32.totalorder %v11594_v50, %v11621_v3  ;;  %vm1197_vm1 = vcmp.eq.s32.totalorder %v11594_v50, %v11623_v4  ;;  %vm1198_vm7 = vcmp.eq.s32.totalorder %v11589_v47, %v11621_v3  ;;  %vm1196_vm8 = vcmp.eq.s32.totalorder %v11589_v47, %v11623_v4  ;;  %v10117_v16 = vld [vmem:[#allocation5 + $0x94] ss:$8 sps:$4 sm:$0xff]  }
 0x121   : > { %2747 = vmatprep.subr.bf16.mxu1 %v10060_v20  ;;  %vm9067_vm6 = vmpackc.low %vm1199_vm0, %vm1197_vm1  ;;  %v10120_v20 = vld [vmem:[%s16457_s6 + $0xe4] ss:$8 sps:$4 sm:$0xff]  }
 0x122   : > { %vm9069_vm14 = vmpackc.low %vm1198_vm7, %vm1196_vm8 }
 0x123   : > { %v11627_v7 = vpop.permute.xlu1 %1120  ;;  %9058 = vmatmul.mubr.msk.bf16.gmra.mxu1 %vm9057_vm3, %v11135_v57  ;;  %v11630_v8 = vpop.permute.xlu0 %1117 }
 0x124   : > { %9060 = vmatprep.mubr.msk.bf16.mxu1 %vm9059_vm4, %v11135_v57  ;;  %2748 = vmatpush1.bf16.msra.mxu1 %v10058_v22  ;;  %vm1202_vm0 = vcmp.eq.s32.totalorder %v11589_v47, %v11627_v7  ;;  %vm1200_vm1 = vcmp.eq.s32.totalorder %v11589_v47, %v11630_v8  ;;  %v10123_v22 = vld [vmem:[#allocation5 + $0x84] ss:$8 sps:$4 sm:$0xff]  }
 0x125   : > { %2749 = vmatprep.subr.bf16.mxu1 %v10063_v25  ;;  %vm9073_vm7 = vmpackc.low %vm1202_vm0, %vm1200_vm1  ;;  %v10121_v25 = vld [vmem:[#allocation5 + $0x80] ss:$8 sps:$4 sm:$0xff]  }
 0x127   : > { %v909_v12 = vpop.permute.xlu1 %908  ;;  %v906_v13 = vpop.permute.xlu0 %905 }
 0x128   : > { %vm1001_vm9 = vcmp.eq.s32.totalorder %v11589_v47, %v909_v12  ;;  %vm1000_vm10 = vcmp.eq.s32.totalorder %v11589_v47, %v906_v13  ;;  %2750 = vmatpush1.bf16.msra.mxu1 %v10061_v27  ;;  %v10109_v13 = vld [vmem:[#allocation5 + $0xa0] ss:$8 sps:$4 sm:$0xff]   ;;  %v10124_v27 = vld [vmem:[%s16457_s6 + $0xd0] ss:$8 sps:$4 sm:$0xff]  }
 0x129   : > { %vm8983_vm11 = vmpackc.low %vm1001_vm9, %vm1000_vm10  ;;  %2751 = vmatprep.subr.bf16.mxu1 %v10069_v31  ;;  %vm1203_vm9 = vcmp.eq.s32.totalorder %v11594_v50, %v11627_v7  ;;  %vm1201_vm10 = vcmp.eq.s32.totalorder %v11594_v50, %v11630_v8  ;;  %v10103_v7 = vld [vmem:[#allocation5 + $0xb0] ss:$8 sps:$4 sm:$0xff]   ;;  %v10127_v31 = vld [vmem:[%s16457_s6 + $0xc0] ss:$8 sps:$4 sm:$0xff]  }
 0x12a   : > { %8984 = vmatmul.mubr.msk.bf16.vlgmr.msra.gmra.mxu0 %vm8983_vm11, %v11135_v57  ;;  %vm9071_vm15 = vmpackc.low %vm1203_vm9, %vm1201_vm10 }
 0x12b   : > { %9062 = vmatmul.mubr.msk.bf16.gmra.mxu1 %vm9061_vm12, %v11135_v57  ;;  %v11652_v18 = vpop.permute.xlu1 %1126  ;;  %v11654_v19 = vpop.permute.xlu0 %1123  ;;  %1474 = vmatprep.mubr.bf16.mxu0 %v11134_v0 }
 0x12c   : > { %9064 = vmatprep.mubr.msk.bf16.mxu1 %vm9063_vm13, %v11135_v57  ;;  %2343 = vmatpush1.bf16.msra.mxu0 %v10064_v15  ;;  %vm1206_vm9 = vcmp.eq.s32.totalorder %v11589_v47, %v11652_v18  ;;  %vm1204_vm10 = vcmp.eq.s32.totalorder %v11589_v47, %v11654_v19  ;;  %v10112_v15 = vld [vmem:[%s16457_s6 + $0xf0] ss:$8 sps:$4 sm:$0xff]  }
 0x12d   : > { %2344 = vmatprep.subr.bf16.mxu0 %v10072_v17  ;;  %2752 = vmatpush1.bf16.msra.mxu1 %v10067_v33  ;;  %vm9077_vm0 = vmpackc.low %vm1206_vm9, %vm1204_vm10 }
 0x12e   : > { %2753 = vmatprep.subr.bf16.mxu1 %v10075_v36 }
 0x12f   : > { %v915_v23 = vpop.permute.xlu1 %914  ;;  %v912_v24 = vpop.permute.xlu0 %911 }
 0x130   : > { %vm1003_vm2 = vcmp.eq.s32.totalorder %v11589_v47, %v915_v23  ;;  %vm1002_vm3 = vcmp.eq.s32.totalorder %v11589_v47, %v912_v24  ;;  %2345 = vmatpush1.bf16.msra.mxu0 %v10070_v21  ;;  %v10118_v21 = vld [vmem:[%s16457_s6 + $0xe0] ss:$8 sps:$4 sm:$0xff]  }
 0x131   : > { %vm8985_vm4 = vmpackc.low %vm1003_vm2, %vm1002_vm3  ;;  %2346 = vmatprep.subr.bf16.mxu0 %v10078_v26  ;;  %2754 = vmatpush1.bf16.msra.mxu1 %v10073_v38  ;;  %vm1207_vm2 = vcmp.eq.s32.totalorder %v11594_v50, %v11652_v18  ;;  %vm1205_vm3 = vcmp.eq.s32.totalorder %v11594_v50, %v11654_v19  ;;  %v10115_v19 = vld [vmem:[#allocation5 + $0x90] ss:$8 sps:$4 sm:$0xff]   ;;  %v10126_v26 = vld [vmem:[%s16457_s6 + $0xd4] ss:$8 sps:$4 sm:$0xff]  }
 0x132   : > { %8986 = vmatmul.mubr.msk.bf16.gmra.mxu0 %vm8985_vm4, %v11135_v57  ;;  %2755 = vmatprep.subr.bf16.mxu1 %v10081_v42  ;;  %vm9075_vm8 = vmpackc.low %vm1207_vm2, %vm1205_vm3  ;;  %v10135_v38 = vld [vmem:[%s16457_s6 + $0xa4] ss:$8 sps:$4 sm:$0xff]   ;;  %v10138_v42 = vld [vmem:[%s16457_s6 + $0x94] ss:$8 sps:$4 sm:$0xff]  }
 0x133   : > { %9066 = vmatmul.mubr.msk.bf16.gmra.mxu1 %vm9065_vm5, %v11135_v57  ;;  %v11685_v29 = vpop.permute.xlu1 %1132  ;;  %v11687_v30 = vpop.permute.xlu0 %1129  ;;  %1484 = vmatprep.mubr.bf16.mxu0 %v11134_v0 }
 0x134   : > { %9068 = vmatprep.mubr.msk.bf16.mxu1 %vm9067_vm6, %v11135_v57  ;;  %2347 = vmatpush1.bf16.msra.mxu0 %v10076_v28  ;;  %vm1210_vm2 = vcmp.eq.s32.totalorder %v11589_v47, %v11685_v29  ;;  %vm1208_vm3 = vcmp.eq.s32.totalorder %v11589_v47, %v11687_v30 }
 0x135   : > { %2348 = vmatprep.subr.bf16.mxu0 %v10084_v32  ;;  %2756 = vmatpush2.bf16.msra.mxu1 %v10079_v45  ;;  %vm9081_vm9 = vmpackc.low %vm1210_vm2, %vm1208_vm3 }
 0x136   : > { %2757 = vmatprep.subr.bf16.mxu1 %v10087_v49  ;;  %v10139_v49 = vld [vmem:[%s16457_s6 + $0x80] ss:$8 sps:$4 sm:$0xff]  }
 0x137   : > { %v921_v34 = vpop.permute.xlu1 %920  ;;  %v918_v35 = vpop.permute.xlu0 %917 }
 0x138   : > { %vm1005_vm11 = vcmp.eq.s32.totalorder %v11589_v47, %v921_v34  ;;  %vm1004_vm12 = vcmp.eq.s32.totalorder %v11589_v47, %v918_v35  ;;  %2349 = vmatpush1.bf16.msra.mxu0 %v10082_v37  ;;  %v10132_v34 = vld [vmem:[%s16457_s6 + $0xb4] ss:$8 sps:$4 sm:$0xff]   ;;  %v10130_v35 = vld [vmem:[%s16457_s6 + $0xb0] ss:$8 sps:$4 sm:$0xff]  }
 0x139   : > { %vm8987_vm13 = vmpackc.low %vm1005_vm11, %vm1004_vm12  ;;  %2350 = vmatprep.subr.bf16.mxu0 %v10090_v39  ;;  %2758 = vmatpush2.bf16.msra.mxu1 %v10085_v52  ;;  %vm1211_vm11 = vcmp.eq.s32.totalorder %v11594_v50, %v11685_v29  ;;  %vm1209_vm12 = vcmp.eq.s32.totalorder %v11594_v50, %v11687_v30  ;;  %v10129_v30 = vld [vmem:[%s16457_s6 + $0xc4] ss:$8 sps:$4 sm:$0xff]   ;;  %v10133_v39 = vld [vmem:[%s16457_s6 + $0xa0] ss:$8 sps:$4 sm:$0xff]  }
 0x13a   : > { %8988 = vmatmul.mubr.msk.bf16.gmra.mxu0 %vm8987_vm13, %v11135_v57  ;;  %2759 = vmatprep.subr.bf16.mxu1 %v10093_v56  ;;  %vm9079_vm1 = vmpackc.low %vm1211_vm11, %vm1209_vm12 }
 0x13b   : > { %9070 = vmatmul.mubr.msk.bf16.gmra.mxu1 %vm9069_vm14, %v11135_v57  ;;  %v11718_v40 = vpop.permute.xlu1 %1138  ;;  %v11720_v41 = vpop.permute.xlu0 %1135  ;;  %1494 = vmatprep.mubr.bf16.mxu0 %v11134_v0 }
 0x13c   : > { %9072 = vmatprep.mubr.msk.bf16.mxu1 %vm9071_vm15, %v11135_v57  ;;  %2351 = vmatpush1.bf16.msra.mxu0 %v10088_v43  ;;  %vm1214_vm11 = vcmp.eq.s32.totalorder %v11589_v47, %v11718_v40  ;;  %vm1212_vm12 = vcmp.eq.s32.totalorder %v11589_v47, %v11720_v41  ;;  %v10136_v43 = vld [vmem:[%s16457_s6 + $0x90] ss:$8 sps:$4 sm:$0xff]  }
 0x13d   : > { %2352 = vmatprep.subr.bf16.mxu0 %v10096_v51  ;;  %2760 = vmatpush2.bf16.msra.mxu1 %v10091_v59  ;;  %vm9085_vm2 = vmpackc.low %vm1214_vm11, %vm1212_vm12 }
 0x13e   : > { %2761 = vmatprep.subr.bf16.mxu1 %v10099_v62 }
 0x13f   : > { %v927_v46 = vpop.permute.xlu1 %926  ;;  %v924_v48 = vpop.permute.xlu0 %923 }
 0x140   : > { %vm1007_vm4 = vcmp.eq.s32.totalorder %v11589_v47, %v927_v46  ;;  %vm1006_vm5 = vcmp.eq.s32.totalorder %v11589_v47, %v924_v48  ;;  %2353 = vmatpush1.bf16.msra.mxu0 %v10094_v53  ;;  %v10141_v48 = vld [vmem:[%s16457_s6 + $0x84] ss:$8 sps:$4 sm:$0xff]   ;;  %s11049_s6 = sshll.u32 %s11136_s5, 4  ;;  %s11050_s6 = int_to_ptr.vmem [resolvable:$false] %s11049_s6 }
 0x141   : > { %vm8989_vm6 = vmpackc.low %vm1007_vm4, %vm1006_vm5  ;;  %2354 = vmatprep.subr.bf16.mxu0 %v10102_v58  ;;  %2762 = vmatpush2.bf16.msra.mxu1 %v10097_v1  ;;  %vm1215_vm4 = vcmp.eq.s32.totalorder %v11594_v50, %v11718_v40  ;;  %vm1213_vm5 = vcmp.eq.s32.totalorder %v11594_v50, %v11720_v41  ;;  %s11051_s2 = scalar_lea.vmem %s11050_s6, 8192  ;;  %p11052_p9 = scmp.lt.s32.totalorder %s16145_s25, %s11050_s6 }
 0x142   : > { %8990 = vmatmul.mubr.msk.bf16.gmra.mxu0 %vm8989_vm6, %v11135_v57  ;;  %2763 = vmatprep.subr.bf16.mxu1 %v10105_v5  ;;  %vm9083_vm10 = vmpackc.low %vm1215_vm4, %vm1213_vm5  ;;  %v1660_v5 = vld [vmem:[%s16458_s27 + $0x18] sm:$0xff]  ;;  %p11053_p13 = scmp.lt.s32.totalorder %s11051_s2, %s11045_s23 }
 0x143   : > { %9074 = vmatmul.mubr.msk.bf16.gmra.mxu1 %vm9073_vm7, %v11135_v57  ;;  %v11748_v54 = vpop.permute.xlu1 %1144  ;;  %v11750_v55 = vpop.permute.xlu0 %1141  ;;  %1504 = vmatprep.mubr.bf16.mxu0 %v11134_v0 }
 0x144   : > { %9076 = vmatprep.mubr.msk.bf16.mxu1 %vm9075_vm8, %v11135_v57  ;;  %2355 = vmatpush1.bf16.msra.mxu0 %v10100_v63  ;;  %vm1218_vm4 = vcmp.eq.s32.totalorder %v11589_v47, %v11748_v54  ;;  %vm1216_vm5 = vcmp.eq.s32.totalorder %v11589_v47, %v11750_v55  ;;  %v10144_v63 = vld [vmem:[#allocation7 + $0x74] ss:$8 sps:$4 sm:$0xff]   ;;  %p11054_p8 = por %p11053_p13, %p11052_p9 }
 0x145   : > { %2356 = vmatprep.subr.bf16.mxu0 %v10108_v2  ;;  %2764 = vmatpush2.bf16.msra.mxu1 %v10103_v7  ;;  %vm9089_vm11 = vmpackc.low %vm1218_vm4, %vm1216_vm5 }
 0x146   : > { %2765 = vmatprep.subr.bf16.mxu1 %v10111_v10  ;;  %p11055_p7 = pnand %p11054_p8, %p11048_p4 }
 0x147   : > { %v933_v60 = vpop.permute.xlu1 %932  ;;  %v930_v61 = vpop.permute.xlu0 %929 }
 0x148   : > { %vm1009_vm13 = vcmp.eq.s32.totalorder %v11589_v47, %v933_v60  ;;  %vm1008_vm14 = vcmp.eq.s32.totalorder %v11589_v47, %v930_v61  ;;  %2357 = vmatpush1.bf16.msra.mxu0 %v10106_v6 }
 0x149   : > { %vm8991_vm15 = vmpackc.low %vm1009_vm13, %vm1008_vm14  ;;  %2358 = vmatprep.subr.bf16.mxu0 %v10114_v14  ;;  %2766 = vmatpush2.bf16.msra.mxu1 %v10109_v13  ;;  %vm1219_vm13 = vcmp.eq.s32.totalorder %v11594_v50, %v11748_v54  ;;  %vm1217_vm14 = vcmp.eq.s32.totalorder %v11594_v50, %v11750_v55 }
 0x14a   : > { %8992 = vmatmul.mubr.msk.bf16.gmra.mxu0 %vm8991_vm15, %v11135_v57  ;;  %2767 = vmatprep.subr.bf16.mxu1 %v10117_v16  ;;  %vm9087_vm3 = vmpackc.low %vm1219_vm13, %vm1217_vm14  ;;  %v1662_v16 = vld [vmem:[%s16458_s27 + $0x28] sm:$0xff] }
 0x14b   : > { %v11780_v3 = vpop.permute.xlu1 %1150  ;;  %9078 = vmatmul.mubr.msk.bf16.gmra.mxu1 %vm9077_vm0, %v11135_v57  ;;  %v11783_v4 = vpop.permute.xlu0 %1147  ;;  %1514 = vmatprep.mubr.bf16.mxu0 %v11134_v0 }
 0x14c   : > { %9080 = vmatprep.mubr.msk.bf16.mxu1 %vm9079_vm1, %v11135_v57  ;;  %2359 = vmatpush2.bf16.msra.mxu0 %v10112_v15  ;;  %vm1222_vm13 = vcmp.eq.s32.totalorder %v11589_v47, %v11780_v3  ;;  %vm1220_vm14 = vcmp.eq.s32.totalorder %v11589_v47, %v11783_v4  ;;  %v1663_v15 = vld [vmem:[%s16458_s27 + $0x30] sm:$0xff] }
 0x14d   : > { %2360 = vmatprep.subr.bf16.mxu0 %v10120_v20  ;;  %2768 = vmatpush2.bf16.msra.mxu1 %v10115_v19  ;;  %vm9093_vm4 = vmpackc.low %vm1222_vm13, %vm1220_vm14  ;;  %v1661_v19 = vld [vmem:[%s16458_s27 + $0x20] sm:$0xff] }
 0x14e   : > { %2769 = vmatprep.subr.bf16.mxu1 %v10123_v22 }
 0x14f   : > { %v939_v8 = vpop.permute.xlu1 %938  ;;  %v936_v9 = vpop.permute.xlu0 %935 }
 0x150   : > { %vm1011_vm6 = vcmp.eq.s32.totalorder %v11589_v47, %v939_v8  ;;  %vm1010_vm7 = vcmp.eq.s32.totalorder %v11589_v47, %v936_v9  ;;  %2361 = vmatpush2.bf16.msra.mxu0 %v10118_v21 }
 0x151   : > { %vm8993_vm8 = vmpackc.low %vm1011_vm6, %vm1010_vm7  ;;  %2362 = vmatprep.subr.bf16.mxu0 %v10126_v26  ;;  %2770 = vmatpush2.bf16.msra.mxu1 %v10121_v25  ;;  %vm1223_vm6 = vcmp.eq.s32.totalorder %v11594_v50, %v11780_v3  ;;  %vm1221_vm7 = vcmp.eq.s32.totalorder %v11594_v50, %v11783_v4  ;;  %v1659_v3 = vld [vmem:[%s16458_s27 + $0x10] sm:$0xff]  ;;  %v1658_v4 = vld [vmem:[%s16458_s27 + $0x8] sm:$0xff] }
 0x152   : > { %8994 = vmatmul.mubr.msk.bf16.gmra.mxu0 %vm8993_vm8, %v11135_v57  ;;  %vm9091_vm12 = vmpackc.low %vm1223_vm6, %vm1221_vm7 }
 0x153   : > { %v11804_v11 = vpop.permute.xlu1 %1156  ;;  %9082 = vmatmul.mubr.msk.bf16.gmra.mxu1 %vm9081_vm9, %v11135_v57  ;;  %v11807_v12 = vpop.permute.xlu0 %1153  ;;  %1524 = vmatprep.mubr.bf16.mxu0 %v11134_v0 }
 0x154   : > { %9084 = vmatprep.mubr.msk.bf16.mxu1 %vm9083_vm10, %v11135_v57  ;;  %2363 = vmatpush2.bf16.msra.mxu0 %v10124_v27  ;;  %vm1226_vm6 = vcmp.eq.s32.totalorder %v11589_v47, %v11804_v11  ;;  %vm1224_vm7 = vcmp.eq.s32.totalorder %v11589_v47, %v11807_v12 }
 0x155   : > { %2364 = vmatprep.subr.bf16.mxu0 %v10129_v30  ;;  %vm9097_vm13 = vmpackc.low %vm1226_vm6, %vm1224_vm7  ;;  %v1666_v30 = vld [vmem:[%s16458_s27 + $0x48] sm:$0xff] }
 0x157   : > { %v945_v17 = vpop.permute.xlu1 %944  ;;  %v942_v18 = vpop.permute.xlu0 %941 }
 0x158   : > { %vm1013_vm15 = vcmp.eq.s32.totalorder %v11589_v47, %v945_v17  ;;  %vm1012_vm0 = vcmp.eq.s32.totalorder %v11589_v47, %v942_v18  ;;  %2365 = vmatpush2.bf16.msra.mxu0 %v10127_v31  ;;  %v1664_v18 = vld [vmem:[%s16458_s27 + $0x38] sm:$0xff] }
 0x159   : > { %vm8995_vm1 = vmpackc.low %vm1013_vm15, %vm1012_vm0  ;;  %2366 = vmatprep.subr.bf16.mxu0 %v10132_v34  ;;  %vm1227_vm15 = vcmp.eq.s32.totalorder %v11594_v50, %v11804_v11  ;;  %vm1225_vm0 = vcmp.eq.s32.totalorder %v11594_v50, %v11807_v12 }
 0x15a   : > { %8996 = vmatmul.mubr.msk.bf16.gmra.mxu0 %vm8995_vm1, %v11135_v57  ;;  %vm9095_vm5 = vmpackc.low %vm1227_vm15, %vm1225_vm0 }
 0x15b   : > { %v11837_v23 = vpop.permute.xlu1 %1162  ;;  %9086 = vmatmul.mubr.msk.bf16.gmra.mxu1 %vm9085_vm2, %v11135_v57  ;;  %v11840_v24 = vpop.permute.xlu0 %1159  ;;  %1534 = vmatprep.mubr.bf16.mxu0 %v11134_v0 }
 0x15c   : > { %9088 = vmatprep.mubr.msk.bf16.mxu1 %vm9087_vm3, %v11135_v57  ;;  %2367 = vmatpush2.bf16.msra.mxu0 %v10130_v35 }
 0x15d   : > { %2368 = vmatprep.subr.bf16.mxu0 %v10135_v38 }
 0x15f   : > { %v951_v28 = vpop.permute.xlu1 %950  ;;  %v948_v29 = vpop.permute.xlu0 %947 }
 0x160   : > { %vm1015_vm8 = vcmp.eq.s32.totalorder %v11589_v47, %v951_v28  ;;  %vm1014_vm9 = vcmp.eq.s32.totalorder %v11589_v47, %v948_v29  ;;  %2369 = vmatpush2.bf16.msra.mxu0 %v10133_v39  ;;  %v1667_v29 = vld [vmem:[%s16458_s27 + $0x50] sm:$0xff] }
 0x161   : > { %vm8997_vm10 = vmpackc.low %vm1015_vm8, %vm1014_vm9  ;;  %2370 = vmatprep.subr.bf16.mxu0 %v10138_v42  ;;  %vm1231_vm8 = vcmp.eq.s32.totalorder %v11594_v50, %v11837_v23  ;;  %vm1229_vm9 = vcmp.eq.s32.totalorder %v11594_v50, %v11840_v24 }
 0x162   : > { %8998 = vmatmul.mubr.msk.bf16.gmra.mxu0 %vm8997_vm10, %v11135_v57  ;;  %vm9099_vm14 = vmpackc.low %vm1231_vm8, %vm1229_vm9 }
 0x163   : > { %v11870_v32 = vpop.permute.xlu1 %1168  ;;  %9090 = vmatmul.mubr.msk.bf16.gmra.mxu1 %vm9089_vm11, %v11135_v57  ;;  %v11873_v33 = vpop.permute.xlu0 %1165  ;;  %1544 = vmatprep.mubr.bf16.mxu0 %v11134_v0 }
 0x164   : > { %9092 = vmatprep.mubr.msk.bf16.mxu1 %vm9091_vm12, %v11135_v57  ;;  %2371 = vmatpush2.bf16.msra.mxu0 %v10136_v43 }
 0x165   : > { %2372 = vmatprep.subr.bf16.mxu0 %v10141_v48  ;;  %v1671_v48 = vld [vmem:[%s16458_s27 + $0x70] sm:$0xff] }
 0x167   : > { %v957_v36 = vpop.permute.xlu1 %956  ;;  %v954_v37 = vpop.permute.xlu0 %953 }
 0x168   : > { %vm1017_vm1 = vcmp.eq.s32.totalorder %v11589_v47, %v957_v36  ;;  %vm1016_vm2 = vcmp.eq.s32.totalorder %v11589_v47, %v954_v37  ;;  %2373 = vmatpush2.bf16.msra.mxu0 %v10139_v49  ;;  %v1670_v49 = vld [vmem:[%s16458_s27 + $0x68] sm:$0xff] }
 0x169   : > { %vm8999_vm3 = vmpackc.low %vm1017_vm1, %vm1016_vm2  ;;  %vm1230_vm1 = vcmp.eq.s32.totalorder %v11589_v47, %v11837_v23  ;;  %vm1228_vm2 = vcmp.eq.s32.totalorder %v11589_v47, %v11840_v24  ;;  %3136 = vmatprep.subr.bf16.mxu0 %v10144_v63  ;;  %v10147_v63 = vld [vmem:[#allocation7 + $0x64] ss:$8 sps:$4 sm:$0xff]  }
 0x16a   : > { %9000 = vmatmul.mubr.msk.bf16.gmra.mxu0 %vm8999_vm3, %v11135_v57  ;;  %vm1235_vm3 = vcmp.eq.s32.totalorder %v11594_v50, %v11870_v32  ;;  %vm9101_vm6 = vmpackc.low %vm1230_vm1, %vm1228_vm2 }
 0x16b   : > { %v11900_v40 = vpop.permute.xlu1 %1174  ;;  %9094 = vmatmul.mubr.msk.bf16.gmra.mxu1 %vm9093_vm4, %v11135_v57  ;;  %v11903_v41 = vpop.permute.xlu0 %1171  ;;  %1554 = vmatprep.mubr.bf16.mxu0 %v11134_v0  ;;  %vm1233_vm4 = vcmp.eq.s32.totalorder %v11594_v50, %v11873_v33 }
 0x16c   : > { %9096 = vmatprep.mubr.msk.bf16.mxu1 %vm9095_vm5, %v11135_v57  ;;  %vm9103_vm7 = vmpackc.low %vm1235_vm3, %vm1233_vm4  ;;  %vm1238_vm3 = vcmp.eq.s32.totalorder %v11589_v47, %v11900_v40  ;;  %vm1236_vm4 = vcmp.eq.s32.totalorder %v11589_v47, %v11903_v41 }
 0x16f   : > { %v963_v45 = vpop.permute.xlu1 %962  ;;  %v960_v46 = vpop.permute.xlu0 %959 }
 0x170   : > { %vm1019_vm10 = vcmp.eq.s32.totalorder %v11589_v47, %v963_v45  ;;  %vm1018_vm11 = vcmp.eq.s32.totalorder %v11589_v47, %v960_v46 }
 0x171   : > { %vm9001_vm12 = vmpackc.low %vm1019_vm10, %vm1018_vm11  ;;  %vm1234_vm10 = vcmp.eq.s32.totalorder %v11589_v47, %v11870_v32  ;;  %vm1232_vm11 = vcmp.eq.s32.totalorder %v11589_v47, %v11873_v33  ;;  %v1668_v32 = vld [vmem:[%s16458_s27 + $0x58] sm:$0xff]  ;;  %v1665_v33 = vld [vmem:[%s16458_s27 + $0x40] sm:$0xff] }
 0x172   : > { %9002 = vmatmul.mubr.msk.bf16.gmra.mxu0 %vm9001_vm12, %v11135_v57  ;;  %vm1239_vm12 = vcmp.eq.s32.totalorder %v11594_v50, %v11900_v40 }
 0x173   : > { %v969_v51 = vpop.permute.xlu1 %968  ;;  %9098 = vmatmul.mubr.msk.bf16.gmra.mxu1 %vm9097_vm13, %v11135_v57  ;;  %v966_v52 = vpop.permute.xlu0 %965  ;;  %1564 = vmatprep.mubr.bf16.mxu0 %v11134_v0  ;;  %vm1237_vm13 = vcmp.eq.s32.totalorder %v11594_v50, %v11903_v41 }
 0x174   : > { %9100 = vmatprep.mubr.msk.bf16.mxu1 %vm9099_vm14, %v11135_v57  ;;  %vm1021_vm15 = vcmp.eq.s32.totalorder %v11589_v47, %v969_v51  ;;  %vm1020_vm0 = vcmp.eq.s32.totalorder %v11589_v47, %v966_v52  ;;  %v1672_v52 = vld [vmem:[%s16458_s27 + $0x78] sm:$0xff] }
 0x175   : > { %vm9003_vm5 = vmpackc.low %vm1021_vm15, %vm1020_vm0 }
 0x176   : > { %vm9105_vm15 = vmpackc.low %vm1234_vm10, %vm1232_vm11 }
 0x177   : > { %v975_v53 = vpop.permute.xlu1 %974  ;;  %v972_v54 = vpop.permute.xlu0 %971  ;;  %vm9107_vm0 = vmpackc.low %vm1239_vm12, %vm1237_vm13 }
 0x178   : > { %vm1023_vm8 = vcmp.eq.s32.totalorder %v11589_v47, %v975_v53  ;;  %vm1022_vm9 = vcmp.eq.s32.totalorder %v11589_v47, %v972_v54  ;;  %v1669_v53 = vld [vmem:[%s16458_s27 + $0x60] sm:$0xff] }
 0x179   : > { %vm9005_vm14 = vmpackc.low %vm1023_vm8, %vm1022_vm9 }
 0x17a   : > { %9004 = vmatmul.mubr.msk.bf16.gmra.mxu0 %vm9003_vm5, %v11135_v57 }
 0x17b   : > { %9102 = vmatmul.mubr.msk.bf16.gmra.mxu1 %vm9101_vm6, %v11135_v57  ;;  %1574 = vmatprep.mubr.bf16.mxu0 %v11134_v0  ;;  %v981_v55 = vpop.permute.xlu1 %980  ;;  %v978_v56 = vpop.permute.xlu0 %977  ;;  %vm9109_vm6 = vmpackc.low %vm1238_vm3, %vm1236_vm4 }
 0x17c   : > { %9104 = vmatprep.mubr.msk.bf16.mxu1 %vm9103_vm7, %v11135_v57  ;;  %vm1025_vm1 = vcmp.eq.s32.totalorder %v11589_v47, %v981_v55  ;;  %vm1024_vm2 = vcmp.eq.s32.totalorder %v11589_v47, %v978_v56 }
 0x17d   : > { %vm9007_vm5 = vmpackc.low %vm1025_vm1, %vm1024_vm2  ;;  %vm3782_vm1 = vcmask 523264  }
 0x17f   : > { %v987_v50 = vpop.permute.xlu1 %986  ;;  %v984_v58 = vpop.permute.xlu0 %983 }
 0x180   : > { %vm1027_vm7 = vcmp.eq.s32.totalorder %v11589_v47, %v987_v50  ;;  %vm1026_vm8 = vcmp.eq.s32.totalorder %v11589_v47, %v984_v58  ;;  %v10142_v58 = vld [vmem:[#allocation7 + $0x70] ss:$8 sps:$4 sm:$0xff]  }
 0x181   : > { %vm9009_vm9 = vmpackc.low %vm1027_vm7, %vm1026_vm8 }
 0x182   : > { %9006 = vmatmul.mubr.msk.bf16.gmra.mxu0 %vm9005_vm14, %v11135_v57 }
 0x183   : > { %9106 = vmatmul.mubr.msk.bf16.gmra.mxu1 %vm9105_vm15, %v11135_v57  ;;  %1584 = vmatprep.mubr.bf16.mxu0 %v11134_v0  ;;  %v993_v59 = vpop.permute.xlu1 %992  ;;  %v990_v60 = vpop.permute.xlu0 %989 }
 0x184   : > { %9108 = vmatprep.mubr.msk.bf16.mxu1 %vm9107_vm0, %v11135_v57  ;;  %vm1029_vm10 = vcmp.eq.s32.totalorder %v11589_v47, %v993_v59  ;;  %vm1028_vm11 = vcmp.eq.s32.totalorder %v11589_v47, %v990_v60 }
 0x185   : > { %vm9011_vm12 = vmpackc.low %vm1029_vm10, %vm1028_vm11 }
 0x187   : > { %v999_v61 = vpop.permute.xlu1 %998  ;;  %v996_v62 = vpop.permute.xlu0 %995 }
 0x188   : > { %vm1031_vm13 = vcmp.eq.s32.totalorder %v11589_v47, %v999_v61  ;;  %vm1030_vm14 = vcmp.eq.s32.totalorder %v11589_v47, %v996_v62 }
 0x189   : > { %vm9013_vm15 = vmpackc.low %vm1031_vm13, %vm1030_vm14 }
 0x18a   : > { %9008 = vmatmul.mubr.msk.bf16.gmra.mxu0 %vm9007_vm5, %v11135_v57 }
 0x18b   : > { %9110 = vmatmul.mubr.msk.bf16.gmra.mxu1 %vm9109_vm6, %v11135_v57  ;;  %1594 = vmatprep.mubr.bf16.mxu0 %v11134_v0 }
 0x192   : > { %9010 = vmatmul.mubr.msk.bf16.gmra.mxu0 %vm9009_vm9, %v11135_v57 }
 0x193   : > { %1604 = vmatprep.mubr.bf16.mxu0 %v11134_v0 }
 0x19a   : > { %9012 = vmatmul.mubr.msk.bf16.gmra.mxu0 %vm9011_vm12, %v11135_v57 }
 0x19b   : > { %1614 = vmatprep.mubr.bf16.mxu0 %v11134_v0 }
 0x1a2   : > { %9014 = vmatmul.mubr.msk.bf16.gmra.mxu0 %vm9013_vm15, %v11135_v57  ;;  %v1657_v57 = vld [vmem:[%s16458_s27] sm:$0xff] }
 0x1d3   : > { %v1915_v1 = vpop.f32.mrf.mxu1 }
 0x1d4   : > { %v1916_v10 = vadd.f32 %v1915_v1, %v1657_v57  ;;  %v10145_v57 = vld [vmem:[#allocation7 + $0x60] ss:$8 sps:$4 sm:$0xff]  }
 0x1d5   : > { %v1917_v2 = vpop.f32.mrf.mxu1 }
 0x1d6   : > { %v1918_v8 = vadd.f32 %v1917_v2, %v1658_v4 }
 0x1d7   : > { %v1919_v0 = vpop.f32.mrf.mxu1 }
 0x1d8   : > { %v1920_v6 = vadd.f32 %v1919_v0, %v1659_v3 }
 0x1d9   : > { %v1921_v7 = vpop.f32.mrf.mxu1 }
 0x1da   : > { %v1922_v9 = vadd.f32 %v1921_v7, %v1660_v5  ;;  %v11995_v13 = vpack.c.bf16 %v1920_v6, %v1916_v10  ;;  %v1675_v7 = vld [vmem:[%s16458_s27 + $0x90] sm:$0xff] }
 0x1db   : > { %v1925_v11 = vpop.f32.mrf.mxu1 }
 0x1dc   : > { %v11993_v12 = vpack.c.bf16 %v1922_v9, %v1918_v8  ;;  %v1926_v24 = vadd.f32 %v1925_v11, %v1661_v19  ;;  %v10150_v8 = vld [vmem:[#allocation7 + $0x54] ss:$8 sps:$4 sm:$0xff]   ;;  %v1674_v9 = vld [vmem:[%s16458_s27 + $0x88] sm:$0xff]  ;;  %v10148_v19 = vld [vmem:[#allocation7 + $0x50] ss:$8 sps:$4 sm:$0xff]  }
 0x1dd   : > { %v1927_v14 = vpop.f32.mrf.mxu1  ;;  %v1676_v11 = vld [vmem:[%s16458_s27 + $0x98] sm:$0xff] }
 0x1de   : > { %2771 = vmatprep.mubr.bf16.mxu1 %v11993_v12  ;;  %v1928_v22 = vadd.f32 %v1927_v14, %v1662_v16  ;;  %v1673_v14 = vld [vmem:[%s16458_s27 + $0x80] sm:$0xff] }
 0x1df   : > { %v1929_v17 = vpop.f32.mrf.mxu1  ;;  %2772 = vmatmul.mubr.bf16.vlgmr.msra.gmra.mxu1 %v11995_v13 }
 0x1e0   : > { %v1930_v20 = vadd.f32 %v1929_v17, %v1663_v15 }
 0x1e1   : > { %v1931_v21 = vpop.f32.mrf.mxu1 }
 0x1e2   : > { %v1932_v23 = vadd.f32 %v1931_v21, %v1664_v18  ;;  %v12013_v27 = vpack.c.bf16 %v1930_v20, %v1926_v24  ;;  %v10153_v24 = vld [vmem:[#allocation7 + $0x44] ss:$8 sps:$4 sm:$0xff]  }
 0x1e3   : > { %v1935_v25 = vpop.f32.mrf.mxu1 }
 0x1e4   : > { %v12011_v26 = vpack.c.bf16 %v1932_v23, %v1928_v22  ;;  %v1936_v39 = vadd.f32 %v1935_v25, %v1665_v33  ;;  %v10151_v33 = vld [vmem:[#allocation7 + $0x40] ss:$8 sps:$4 sm:$0xff]  }
 0x1e5   : > { %v1937_v28 = vpop.f32.mrf.mxu1 }
 0x1e6   : > { %2781 = vmatprep.mubr.bf16.mxu1 %v12011_v26  ;;  %v1938_v36 = vadd.f32 %v1937_v28, %v1666_v30 }
 0x1e7   : > { %v1939_v31 = vpop.f32.mrf.mxu1  ;;  %2782 = vmatmul.mubr.bf16.gmra.mxu1 %v12013_v27 }
 0x1e8   : > { %v1940_v34 = vadd.f32 %v1939_v31, %v1667_v29 }
 0x1e9   : > { %v1941_v35 = vpop.f32.mrf.mxu1 }
 0x1ea   : > { %v1942_v37 = vadd.f32 %v1941_v35, %v1668_v32  ;;  %v12029_v38 = vpop.f32.mrf.mxu0  ;;  %v12035_v43 = vpack.c.bf16 %v1940_v34, %v1936_v39  ;;  %v1679_v35 = vld [vmem:[%s16458_s27 + $0xb0] sm:$0xff] }
 0x1eb   : > { %16459 = vst [vmem:[#allocation27_spill] sm:$0xff] %v12029_v38  ;;  %v1945_v40 = vpop.f32.mrf.mxu1 }
 0x1ec   : > { %v12031_v41 = vpack.c.bf16 %v1942_v37, %v1938_v36  ;;  %v12033_v42 = vpop.f32.mrf.mxu0  ;;  %v1946_v1 = vadd.f32 %v1945_v40, %v1669_v53  ;;  %v10156_v36 = vld [vmem:[#allocation7 + $0x34] ss:$8 sps:$4 sm:$0xff]   ;;  %v1678_v37 = vld [vmem:[%s16458_s27 + $0xa8] sm:$0xff]  ;;  %v10154_v53 = vld [vmem:[#allocation7 + $0x30] ss:$8 sps:$4 sm:$0xff]  }
 0x1ed   : > { %16460 = vst [vmem:[#allocation28_spill] sm:$0xff] %v12033_v42  ;;  %v1947_v45 = vpop.f32.mrf.mxu1  ;;  %v1680_v40 = vld [vmem:[%s16458_s27 + $0xb8] sm:$0xff] }
 0x1ee   : > { %v12037_v46 = vpop.f32.mrf.mxu0  ;;  %2791 = vmatprep.mubr.bf16.mxu1 %v12031_v41  ;;  %v1948_v59 = vadd.f32 %v1947_v45, %v1670_v49  ;;  %v1677_v45 = vld [vmem:[%s16458_s27 + $0xa0] sm:$0xff] }
 0x1ef   : > { %16461 = vst [vmem:[#allocation29_spill] sm:$0xff] %v12037_v46  ;;  %v1949_v51 = vpop.f32.mrf.mxu1  ;;  %2792 = vmatmul.mubr.bf16.gmra.mxu1 %v12035_v43  ;;  %v2074_v60 = vpack.c.bf16 %v12037_v46, %v12029_v38 }
 0x1f0   : > { %v12053_v54 = vpop.f32.mrf.mxu0  ;;  %v1950_v55 = vadd.f32 %v1949_v51, %v1671_v48 }
 0x1f1   : > { %16462 = vst [vmem:[#allocation30_spill] sm:$0xff] %v12053_v54  ;;  %v2075_v56 = vpack.c.bf16 %v12053_v54, %v12033_v42  ;;  %v1951_v50 = vpop.f32.mrf.mxu1 }
 0x1f2   : > { %v1952_v61 = vadd.f32 %v1951_v50, %v1672_v52  ;;  %v12059_v62 = vpop.f32.mrf.mxu0  ;;  %v12065_v0 = vpack.c.bf16 %v1950_v55, %v1946_v1 }
 0x1f3   : > { %16463 = vst [vmem:[#allocation31_spill] sm:$0xff] %v12059_v62  ;;  %v1955_v2 = vpop.f32.mrf.mxu1  ;;  %2374 = vmatprep.mubr.bf16.mxu0 %v2075_v56 }
 0x1f4   : > { %v12061_v3 = vpack.c.bf16 %v1952_v61, %v1948_v59  ;;  %v12063_v4 = vpop.f32.mrf.mxu0  ;;  %2375 = vmatmul.mubr.bf16.vlgmr.msra.gmra.mxu0 %v2074_v60  ;;  %v1956_v25 = vadd.f32 %v1955_v2, %v1673_v14  ;;  %v10159_v59 = vld [vmem:[#allocation7 + $0x24] ss:$8 sps:$4 sm:$0xff]   ;;  %v1684_v14 = vld [vmem:[%s16458_s27 + $0xd8] sm:$0xff] }
 0x1f5   : > { %16464 = vst [vmem:[#allocation32_spill] sm:$0xff] %v12063_v4  ;;  %v1957_v5 = vpop.f32.mrf.mxu1  ;;  %3137 = vmatpush1.bf16.msra.mxu0 %v10142_v58 }
 0x1f6   : > { %v12067_v6 = vpop.f32.mrf.mxu0  ;;  %2801 = vmatprep.mubr.bf16.mxu1 %v12061_v3  ;;  %3138 = vmatprep.subr.bf16.mxu0 %v10147_v63  ;;  %v1958_v20 = vadd.f32 %v1957_v5, %v1674_v9  ;;  %v10162_v9 = vld [vmem:[#allocation7 + $0x14] ss:$8 sps:$4 sm:$0xff]  }
 0x1f7   : > { %16465 = vst [vmem:[#allocation33_spill] sm:$0xff] %v12067_v6  ;;  %v1959_v10 = vpop.f32.mrf.mxu1  ;;  %2802 = vmatmul.mubr.bf16.gmra.mxu1 %v12065_v0  ;;  %v2076_v21 = vpack.c.bf16 %v12067_v6, %v12059_v62 }
 0x1f8   : > { %v12083_v15 = vpop.f32.mrf.mxu0  ;;  %v1960_v16 = vadd.f32 %v1959_v10, %v1675_v7  ;;  %v1682_v10 = vld [vmem:[%s16458_s27 + $0xc8] sm:$0xff] }
 0x1f9   : > { %16466 = vst [vmem:[#allocation34_spill] sm:$0xff] %v12083_v15  ;;  %v2077_v17 = vpack.c.bf16 %v12083_v15, %v12063_v4  ;;  %v1961_v18 = vpop.f32.mrf.mxu1  ;;  %3139 = vmatpush1.bf16.msra.mxu0 %v10145_v57  ;;  %v10157_v57 = vld [vmem:[#allocation7 + $0x20] ss:$8 sps:$4 sm:$0xff]  }
 0x1fa   : > { %v1962_v22 = vadd.f32 %v1961_v18, %v1676_v11  ;;  %v12089_v23 = vpop.f32.mrf.mxu0  ;;  %3140 = vmatprep.subr.bf16.mxu0 %v10150_v8  ;;  %v12095_v31 = vpack.c.bf16 %v1960_v16, %v1956_v25  ;;  %v1683_v8 = vld [vmem:[%s16458_s27 + $0xd0] sm:$0xff]  ;;  %v1681_v16 = vld [vmem:[%s16458_s27 + $0xc0] sm:$0xff] }
 0x1fb   : > { %16467 = vst [vmem:[#allocation35_spill] sm:$0xff] %v12089_v23  ;;  %v1965_v28 = vpop.f32.mrf.mxu1  ;;  %2384 = vmatprep.mubr.bf16.mxu0 %v2077_v17 }
 0x1fc   : > { %v12091_v29 = vpack.c.bf16 %v1962_v22, %v1958_v20  ;;  %v12093_v30 = vpop.f32.mrf.mxu0  ;;  %2385 = vmatmul.mubr.bf16.gmra.mxu0 %v2076_v21  ;;  %v1966_v60 = vadd.f32 %v1965_v28, %v1677_v45  ;;  %v10160_v21 = vld [vmem:[#allocation7 + $0x10] ss:$8 sps:$4 sm:$0xff]   ;;  %v10163_v45 = vld [vmem:[#allocation7] ss:$8 sps:$4 sm:$0xff]  }
 0x1fd   : > { %16468 = vst [vmem:[#allocation36_spill] sm:$0xff] %v12093_v30  ;;  %v1967_v32 = vpop.f32.mrf.mxu1  ;;  %3141 = vmatpush1.bf16.msra.mxu0 %v10148_v19 }
 0x1fe   : > { %v12097_v34 = vpop.f32.mrf.mxu0  ;;  %2811 = vmatprep.mubr.bf16.mxu1 %v12091_v29  ;;  %3142 = vmatprep.subr.bf16.mxu0 %v10153_v24  ;;  %v1968_v55 = vadd.f32 %v1967_v32, %v1678_v37  ;;  %v10165_v32 = vld [vmem:[#allocation7 + $0x4] ss:$8 sps:$4 sm:$0xff]  }
 0x1ff   : > { %16469 = vst [vmem:[#allocation37_spill] sm:$0xff] %v12097_v34  ;;  %v1969_v39 = vpop.f32.mrf.mxu1  ;;  %2812 = vmatmul.mubr.bf16.gmra.mxu1 %v12095_v31  ;;  %v2078_v56 = vpack.c.bf16 %v12097_v34, %v12089_v23 }
 0x200   : > { %v12113_v48 = vpop.f32.mrf.mxu0  ;;  %v1970_v49 = vadd.f32 %v1969_v39, %v1679_v35 }
 0x201   : > { %16470 = vst [vmem:[#allocation38_spill] sm:$0xff] %v12113_v48  ;;  %v2079_v51 = vpack.c.bf16 %v12113_v48, %v12093_v30  ;;  %v1971_v52 = vpop.f32.mrf.mxu1  ;;  %3143 = vmatpush1.bf16.msra.mxu0 %v10151_v33 }
 0x202   : > { %v1972_v50 = vadd.f32 %v1971_v52, %v1680_v40  ;;  %v12119_v58 = vpop.f32.mrf.mxu0  ;;  %3144 = vmatprep.subr.bf16.mxu0 %v10156_v36  ;;  %v12125_v2 = vpack.c.bf16 %v1970_v49, %v1966_v60  ;;  %v10168_v52 = vld [vmem:[#allocation7 + $0xf4] ss:$8 sps:$4 sm:$0xff]  }
 0x203   : > { %16471 = vst [vmem:[#allocation39_spill] sm:$0xff] %v12119_v58  ;;  %v1975_v61 = vpop.f32.mrf.mxu1  ;;  %2394 = vmatprep.mubr.bf16.mxu0 %v2079_v51  ;;  %v1687_v51 = vld [vmem:[%s16458_s27 + $0xf0] sm:$0xff] }
 0x204   : > { %v12121_v63 = vpack.c.bf16 %v1972_v50, %v1968_v55  ;;  %v12123_v1 = vpop.f32.mrf.mxu0  ;;  %2395 = vmatmul.mubr.bf16.gmra.mxu0 %v2078_v56  ;;  %v1976_v33 = vadd.f32 %v1975_v61, %v1681_v16  ;;  %v1688_v56 = vld [vmem:[%s16458_s27 + $0xf8] sm:$0xff]  ;;  %v1685_v50 = vld [vmem:[%s16458_s27 + $0xe0] sm:$0xff] }
 0x205   : > { %16472 = vst [vmem:[#allocation40_spill] sm:$0xff] %v12123_v1  ;;  %v1977_v5 = vpop.f32.mrf.mxu1  ;;  %3145 = vmatpush1.bf16.msra.mxu0 %v10154_v53  ;;  %v1686_v53 = vld [vmem:[%s16458_s27 + $0xe8] sm:$0xff] }
 0x206   : > { %v12127_v7 = vpop.f32.mrf.mxu0  ;;  %2821 = vmatprep.mubr.bf16.mxu1 %v12121_v63  ;;  %3146 = vmatprep.subr.bf16.mxu0 %v10159_v59  ;;  %v1978_v22 = vadd.f32 %v1977_v5, %v1682_v10 }
 0x207   : > { %16473 = vst [vmem:[#allocation41_spill] sm:$0xff] %v12127_v7  ;;  %v1979_v11 = vpop.f32.mrf.mxu1  ;;  %2822 = vmatmul.mubr.bf16.gmra.mxu1 %v12125_v2  ;;  %v2080_v24 = vpack.c.bf16 %v12127_v7, %v12119_v58 }
 0x208   : > { %v12143_v17 = vpop.f32.mrf.mxu0  ;;  %v1980_v18 = vadd.f32 %v1979_v11, %v1683_v8 }
 0x209   : > { %16474 = vst [vmem:[#allocation42_spill] sm:$0xff] %v12143_v17  ;;  %v2081_v19 = vpack.c.bf16 %v12143_v17, %v12123_v1  ;;  %v1981_v20 = vpop.f32.mrf.mxu1  ;;  %3147 = vmatpush1.bf16.msra.mxu0 %v10157_v57  ;;  %v10166_v57 = vld [vmem:[#allocation7 + $0xf0] ss:$8 sps:$4 sm:$0xff]  }
 0x20a   : > { %v1982_v25 = vadd.f32 %v1981_v20, %v1684_v14  ;;  %v12149_v28 = vpop.f32.mrf.mxu0  ;;  %3148 = vmatprep.subr.bf16.mxu0 %v10162_v9  ;;  %v12155_v39 = vpack.c.bf16 %v1980_v18, %v1976_v33  ;;  %v10171_v14 = vld [vmem:[#allocation7 + $0xe4] ss:$8 sps:$4 sm:$0xff]   ;;  %v10174_v33 = vld [vmem:[#allocation7 + $0xd4] ss:$8 sps:$4 sm:$0xff]  }
 0x20b   : > { %16475 = vst [vmem:[#allocation43_spill] sm:$0xff] %v12149_v28  ;;  %v1985_v35 = vpop.f32.mrf.mxu1  ;;  %2404 = vmatprep.mubr.bf16.mxu0 %v2081_v19 }
 0x20c   : > { %v12151_v36 = vpack.c.bf16 %v1982_v25, %v1978_v22  ;;  %v12153_v37 = vpop.f32.mrf.mxu0  ;;  %2405 = vmatmul.mubr.bf16.gmra.mxu0 %v2080_v24  ;;  %v1986_v16 = vadd.f32 %v1985_v35, %v1685_v50  ;;  %v10169_v24 = vld [vmem:[#allocation7 + $0xe0] ss:$8 sps:$4 sm:$0xff]   ;;  %v10172_v50 = vld [vmem:[#allocation7 + $0xd0] ss:$8 sps:$4 sm:$0xff]  }
 0x20d   : > { %16476 = vst [vmem:[#allocation44_spill] sm:$0xff] %v12153_v37  ;;  %v1987_v40 = vpop.f32.mrf.mxu1  ;;  %3149 = vmatpush1.bf16.msra.mxu0 %v10160_v21  ;;  %v1690_v35 = vld [vmem:[%s16458_s27 + $0x108] sm:$0xff] }
 0x20e   : > { %v12157_v49 = vpop.f32.mrf.mxu0  ;;  %2831 = vmatprep.mubr.bf16.mxu1 %v12151_v36  ;;  %3150 = vmatprep.subr.bf16.mxu0 %v10165_v32  ;;  %v1988_v8 = vadd.f32 %v1987_v40, %v1686_v53  ;;  %v1691_v32 = vld [vmem:[%s16458_s27 + $0x110] sm:$0xff] }
 0x20f   : > { %16477 = vst [vmem:[#allocation45_spill] sm:$0xff] %v12157_v49  ;;  %v1989_v55 = vpop.f32.mrf.mxu1  ;;  %2832 = vmatmul.mubr.bf16.gmra.mxu1 %v12155_v39  ;;  %v2082_v9 = vpack.c.bf16 %v12157_v49, %v12149_v28 }
 0x210   : > { %v12173_v59 = vpop.f32.mrf.mxu0  ;;  %v1990_v60 = vadd.f32 %v1989_v55, %v1687_v51  ;;  %v1689_v51 = vld [vmem:[%s16458_s27 + $0x100] sm:$0xff] }
 0x211   : > { %16478 = vst [vmem:[#allocation46_spill] sm:$0xff] %v12173_v59  ;;  %v2083_v61 = vpack.c.bf16 %v12173_v59, %v12153_v37  ;;  %v1991_v5 = vpop.f32.mrf.mxu1  ;;  %3151 = vmatpush1.bf16.msra.mxu0 %v10163_v45  ;;  %v1692_v45 = vld [vmem:[%s16458_s27 + $0x118] sm:$0xff] }
 0x212   : > { %v1992_v10 = vadd.f32 %v1991_v5, %v1688_v56  ;;  %v12179_v11 = vpop.f32.mrf.mxu0  ;;  %3152 = vmatprep.subr.bf16.mxu0 %v10168_v52  ;;  %v12185_v21 = vpack.c.bf16 %v1990_v60, %v1986_v16 }
 0x213   : > { %16479 = vst [vmem:[#allocation47_spill] sm:$0xff] %v12179_v11  ;;  %v1995_v18 = vpop.f32.mrf.mxu1  ;;  %2414 = vmatprep.mubr.bf16.mxu0 %v2083_v61 }
 0x214   : > { %v12181_v19 = vpack.c.bf16 %v1992_v10, %v1988_v8  ;;  %v12183_v20 = vpop.f32.mrf.mxu0  ;;  %2415 = vmatmul.mubr.bf16.gmra.mxu0 %v2082_v9  ;;  %v10177_v8 = vld [vmem:[#allocation7 + $0xc4] ss:$8 sps:$4 sm:$0xff]   ;;  %v1996_v9 = vadd.f32 %v1995_v18, %v1689_v51  ;;  %v1695_v18 = vld [vmem:[%s16458_s27 + $0x130] sm:$0xff]  ;;  %v1696_v51 = vld [vmem:[%s16458_s27 + $0x138] sm:$0xff] }
 0x215   : > { %16480 = vst [vmem:[#allocation48_spill] sm:$0xff] %v12183_v20  ;;  %v1997_v22 = vpop.f32.mrf.mxu1  ;;  %3153 = vmatpush2.bf16.msra.mxu0 %v10166_v57 }
 0x216   : > { %v12187_v25 = vpop.f32.mrf.mxu0  ;;  %2841 = vmatprep.mubr.bf16.mxu1 %v12181_v19  ;;  %3154 = vmatprep.subr.bf16.mxu0 %v10171_v14  ;;  %v1998_v60 = vadd.f32 %v1997_v22, %v1690_v35  ;;  %v10175_v22 = vld [vmem:[#allocation7 + $0xc0] ss:$8 sps:$4 sm:$0xff]  }
 0x217   : > { %16481 = vst [vmem:[#allocation49_spill] sm:$0xff] %v12187_v25  ;;  %v1999_v40 = vpop.f32.mrf.mxu1  ;;  %2842 = vmatmul.mubr.bf16.gmra.mxu1 %v12185_v21  ;;  %v2084_v61 = vpack.c.bf16 %v12187_v25, %v12179_v11 }
 0x218   : > { %v12203_v52 = vpop.f32.mrf.mxu0  ;;  %v2000_v53 = vadd.f32 %v1999_v40, %v1691_v32  ;;  %v1694_v40 = vld [vmem:[%s16458_s27 + $0x128] sm:$0xff] }
 0x219   : > { %16482 = vst [vmem:[#allocation50_spill] sm:$0xff] %v12203_v52  ;;  %v2085_v55 = vpack.c.bf16 %v12203_v52, %v12183_v20  ;;  %v2001_v56 = vpop.f32.mrf.mxu1  ;;  %3155 = vmatpush2.bf16.msra.mxu0 %v10169_v24  ;;  %v10183_v52 = vld [vmem:[#allocation7 + $0xa4] ss:$8 sps:$4 sm:$0xff]  }
 0x21a   : > { %v2002_v5 = vadd.f32 %v2001_v56, %v1692_v45  ;;  %v12209_v57 = vpop.f32.mrf.mxu0  ;;  %3156 = vmatprep.subr.bf16.mxu0 %v10174_v33  ;;  %v12215_v32 = vpack.c.bf16 %v2000_v53, %v1996_v9  ;;  %v10180_v33 = vld [vmem:[#allocation7 + $0xb4] ss:$8 sps:$4 sm:$0xff]   ;;  %v1693_v53 = vld [vmem:[%s16458_s27 + $0x120] sm:$0xff] }
 0x21b   : > { %16483 = vst [vmem:[#allocation51_spill] sm:$0xff] %v12209_v57  ;;  %v2005_v10 = vpop.f32.mrf.mxu1  ;;  %2424 = vmatprep.mubr.bf16.mxu0 %v2085_v55 }
 0x21c   : > { %v12211_v14 = vpack.c.bf16 %v2002_v5, %v1998_v60  ;;  %v12213_v16 = vpop.f32.mrf.mxu0  ;;  %2425 = vmatmul.mubr.bf16.gmra.mxu0 %v2084_v61  ;;  %v10178_v61 = vld [vmem:[#allocation7 + $0xb0] ss:$8 sps:$4 sm:$0xff]   ;;  %v2006_v25 = vadd.f32 %v2005_v10, %v1693_v53 }
 0x21d   : > { %16484 = vst [vmem:[#allocation52_spill] sm:$0xff] %v12213_v16  ;;  %v2007_v24 = vpop.f32.mrf.mxu1  ;;  %3157 = vmatpush2.bf16.msra.mxu0 %v10172_v50  ;;  %v1699_v10 = vld [vmem:[%s16458_s27 + $0x150] sm:$0xff] }
 0x21e   : > { %v12217_v35 = vpop.f32.mrf.mxu0  ;;  %2851 = vmatprep.mubr.bf16.mxu1 %v12211_v14  ;;  %3158 = vmatprep.subr.bf16.mxu0 %v10177_v8  ;;  %v2008_v5 = vadd.f32 %v2007_v24, %v1694_v40  ;;  %v10181_v24 = vld [vmem:[#allocation7 + $0xa0] ss:$8 sps:$4 sm:$0xff]  }
 0x21f   : > { %16485 = vst [vmem:[#allocation53_spill] sm:$0xff] %v12217_v35  ;;  %v2009_v45 = vpop.f32.mrf.mxu1  ;;  %2852 = vmatmul.mubr.bf16.gmra.mxu1 %v12215_v32  ;;  %v2086_v8 = vpack.c.bf16 %v12217_v35, %v12209_v57 }
 0x220   : > { %v12233_v55 = vpop.f32.mrf.mxu0  ;;  %v2010_v56 = vadd.f32 %v2009_v45, %v1695_v18 }
 0x221   : > { %16486 = vst [vmem:[#allocation54_spill] sm:$0xff] %v12233_v55  ;;  %v2087_v50 = vpack.c.bf16 %v12233_v55, %v12213_v16  ;;  %v2011_v60 = vpop.f32.mrf.mxu1  ;;  %3159 = vmatpush2.bf16.msra.mxu0 %v10175_v22  ;;  %v10189_v16 = vld [vmem:[#allocation7 + $0x84] ss:$8 sps:$4 sm:$0xff]  }
 0x222   : > { %v2012_v9 = vadd.f32 %v2011_v60, %v1696_v51  ;;  %v12239_v44 = vpop.f32.mrf.mxu0  ;;  %3160 = vmatprep.subr.bf16.mxu0 %v10180_v33  ;;  %v12245_v45 = vpack.c.bf16 %v2010_v56, %v2006_v25  ;;  %v10186_v33 = vld [vmem:[#allocation7 + $0x94] ss:$8 sps:$4 sm:$0xff]   ;;  %v1698_v51 = vld [vmem:[%s16458_s27 + $0x148] sm:$0xff]  ;;  %v1697_v56 = vld [vmem:[%s16458_s27 + $0x140] sm:$0xff] }
 0x223   : > { %16487 = vst [vmem:[#allocation55_spill] sm:$0xff] %v12239_v44  ;;  %v2015_v20 = vpop.f32.mrf.mxu1  ;;  %2434 = vmatprep.mubr.bf16.mxu0 %v2087_v50  ;;  %v1700_v25 = vld [vmem:[%s16458_s27 + $0x158] sm:$0xff] }
 0x224   : > { %v12241_v11 = vpack.c.bf16 %v2012_v9, %v2008_v5  ;;  %v12243_v18 = vpop.f32.mrf.mxu0  ;;  %2435 = vmatmul.mubr.bf16.gmra.mxu0 %v2086_v8  ;;  %v10184_v5 = vld [vmem:[#allocation7 + $0x90] ss:$8 sps:$4 sm:$0xff]   ;;  %v2016_v57 = vadd.f32 %v2015_v20, %v1697_v56 }
 0x225   : > { %16488 = vst [vmem:[#allocation56_spill] sm:$0xff] %v12243_v18  ;;  %v2017_v22 = vpop.f32.mrf.mxu1  ;;  %3161 = vmatpush2.bf16.msra.mxu0 %v10178_v61  ;;  %v1703_v20 = vld [vmem:[%s16458_s27 + $0x170] sm:$0xff] }
 0x226   : > { %v12247_v40 = vpop.f32.mrf.mxu0  ;;  %2861 = vmatprep.mubr.bf16.mxu1 %v12241_v11  ;;  %3162 = vmatprep.subr.bf16.mxu0 %v10183_v52  ;;  %v2018_v8 = vadd.f32 %v2017_v22, %v1698_v51  ;;  %v10187_v22 = vld [vmem:[#allocation7 + $0x80] ss:$8 sps:$4 sm:$0xff]  }
 0x227   : > { %16489 = vst [vmem:[#allocation57_spill] sm:$0xff] %v12247_v40  ;;  %v2019_v53 = vpop.f32.mrf.mxu1  ;;  %2862 = vmatmul.mubr.bf16.gmra.mxu1 %v12245_v45  ;;  %v2088_v9 = vpack.c.bf16 %v12247_v40, %v12239_v44 }
 0x228   : > { %v12263_v50 = vpop.f32.mrf.mxu0  ;;  %v2020_v60 = vadd.f32 %v2019_v53, %v1699_v10 }
 0x229   : > { %16490 = vst [vmem:[#allocation58_spill] sm:$0xff] %v12263_v50  ;;  %v2089_v52 = vpack.c.bf16 %v12263_v50, %v12243_v18  ;;  %v2021_v61 = vpop.f32.mrf.mxu1  ;;  %3163 = vmatpush2.bf16.msra.mxu0 %v10181_v24 }
 0x22a   : > { %v2022_v55 = vadd.f32 %v2021_v61, %v1700_v25  ;;  %v12269_v35 = vpop.f32.mrf.mxu0  ;;  %3164 = vmatprep.subr.bf16.mxu0 %v10186_v33  ;;  %v12275_v53 = vpack.c.bf16 %v2020_v60, %v2016_v57  ;;  %v1704_v57 = vld [vmem:[%s16458_s27 + $0x178] sm:$0xff]  ;;  %v1701_v25 = vld [vmem:[%s16458_s27 + $0x160] sm:$0xff] }
 0x22b   : > { %16491 = vst [vmem:[#allocation59_spill] sm:$0xff] %v12269_v35  ;;  %v2025_v59 = vpop.f32.mrf.mxu1  ;;  %2444 = vmatprep.mubr.bf16.mxu0 %v2089_v52 }
 0x22c   : > { %v12271_v49 = vpack.c.bf16 %v2022_v55, %v2018_v8  ;;  %v12273_v10 = vpop.f32.mrf.mxu0  ;;  %2445 = vmatmul.mubr.bf16.gmra.mxu0 %v2088_v9  ;;  %v1702_v55 = vld [vmem:[%s16458_s27 + $0x168] sm:$0xff]  ;;  %v2026_v50 = vadd.f32 %v2025_v59, %v1701_v25 }
 0x22d   : > { %16492 = vst [vmem:[#allocation60_spill] sm:$0xff] %v12273_v10  ;;  %v2027_v24 = vpop.f32.mrf.mxu1  ;;  %3165 = vmatpush2.bf16.msra.mxu0 %v10184_v5  ;;  %v1706_v59 = vld [vmem:[%s16458_s27 + $0x188] sm:$0xff] }
 0x22e   : > { %v12277_v51 = vpop.f32.mrf.mxu0  ;;  %2871 = vmatprep.mubr.bf16.mxu1 %v12271_v49  ;;  %3166 = vmatprep.subr.bf16.mxu0 %v10189_v16  ;;  %v2028_v61 = vadd.f32 %v2027_v24, %v1702_v55  ;;  %v1707_v24 = vld [vmem:[%s16458_s27 + $0x190] sm:$0xff]  ;;  %v1705_v55 = vld [vmem:[%s16458_s27 + $0x180] sm:$0xff] }
 0x22f   : > { %16493 = vst [vmem:[#allocation61_spill] sm:$0xff] %v12277_v51  ;;  %v2029_v33 = vpop.f32.mrf.mxu1  ;;  %2872 = vmatmul.mubr.bf16.gmra.mxu1 %v12275_v53  ;;  %v2090_v5 = vpack.c.bf16 %v12277_v51, %v12269_v35 }
 0x230   : > { %v12293_v56 = vpop.f32.mrf.mxu0  ;;  %v2030_v60 = vadd.f32 %v2029_v33, %v1703_v20 }
 0x231   : > { %16494 = vst [vmem:[#allocation62_spill] sm:$0xff] %v12293_v56  ;;  %v2091_v16 = vpack.c.bf16 %v12293_v56, %v12273_v10  ;;  %v2031_v52 = vpop.f32.mrf.mxu1  ;;  %3167 = vmatpush2.bf16.msra.mxu0 %v10187_v22 }
 0x232   : > { %v2032_v8 = vadd.f32 %v2031_v52, %v1704_v57  ;;  %v12299_v9 = vpop.f32.mrf.mxu0  ;;  %v12305_v20 = vpack.c.bf16 %v2030_v60, %v2026_v50  ;;  %v1708_v50 = vld [vmem:[%s16458_s27 + $0x198] sm:$0xff] }
 0x233   : > { %16495 = vst [vmem:[#allocation63_spill] sm:$0xff] %v12299_v9  ;;  %v2035_v40 = vpop.f32.mrf.mxu1  ;;  %2454 = vmatprep.mubr.bf16.mxu0 %v2091_v16 }
 0x234   : > { %v12301_v18 = vpack.c.bf16 %v2032_v8, %v2028_v61  ;;  %v12303_v44 = vpop.f32.mrf.mxu0  ;;  %2455 = vmatmul.mubr.bf16.gmra.mxu0 %v2090_v5  ;;  %v2036_v51 = vadd.f32 %v2035_v40, %v1705_v55  ;;  %v1710_v40 = vld [vmem:[%s16458_s27 + $0x1a8] sm:$0xff] }
 0x235   : > { %16496 = vst [vmem:[#allocation64_spill] sm:$0xff] %v12303_v44  ;;  %v2037_v33 = vpop.f32.mrf.mxu1 }
 0x236   : > { %v12307_v56 = vpop.f32.mrf.mxu0  ;;  %2881 = vmatprep.mubr.bf16.mxu1 %v12301_v18  ;;  %v2038_v52 = vadd.f32 %v2037_v33, %v1706_v59  ;;  %v1711_v33 = vld [vmem:[%s16458_s27 + $0x1b0] sm:$0xff] }
 0x237   : > { %16497 = vst [vmem:[#allocation65_spill] sm:$0xff] %v12307_v56  ;;  %v2039_v22 = vpop.f32.mrf.mxu1  ;;  %2882 = vmatmul.mubr.bf16.gmra.mxu1 %v12305_v20  ;;  %v2092_v61 = vpack.c.bf16 %v12307_v56, %v12299_v9 }
 0x238   : > { %v12323_v57 = vpop.f32.mrf.mxu0  ;;  %v2040_v25 = vadd.f32 %v2039_v22, %v1707_v24 }
 0x239   : > { %16498 = vst [vmem:[#allocation66_spill] sm:$0xff] %v12323_v57  ;;  %v2093_v60 = vpack.c.bf16 %v12323_v57, %v12303_v44  ;;  %v2041_v16 = vpop.f32.mrf.mxu1 }
 0x23a   : > { %v2042_v5 = vadd.f32 %v2041_v16, %v1708_v50  ;;  %v12329_v8 = vpop.f32.mrf.mxu0  ;;  %v12335_v24 = vpack.c.bf16 %v2040_v25, %v2036_v51  ;;  %v1712_v51 = vld [vmem:[%s16458_s27 + $0x1b8] sm:$0xff]  ;;  %v1709_v50 = vld [vmem:[%s16458_s27 + $0x1a0] sm:$0xff] }
 0x23b   : > { %16499 = vst [vmem:[#allocation67_spill] sm:$0xff] %v12329_v8  ;;  %v2045_v10 = vpop.f32.mrf.mxu1  ;;  %2464 = vmatprep.mubr.bf16.mxu0 %v2093_v60 }
 0x23c   : > { %v12331_v35 = vpack.c.bf16 %v2042_v5, %v2038_v52  ;;  %v12333_v37 = vpop.f32.mrf.mxu0  ;;  %2465 = vmatmul.mubr.bf16.gmra.mxu0 %v2092_v61  ;;  %v2046_v44 = vadd.f32 %v2045_v10, %v1709_v50  ;;  %v1714_v10 = vld [vmem:[%s16458_s27 + $0x1c8] sm:$0xff] }
 0x23d   : > { %16500 = vst [vmem:[#allocation68_spill] sm:$0xff] %v12333_v37  ;;  %v2047_v22 = vpop.f32.mrf.mxu1 }
 0x23e   : > { %v12337_v57 = vpop.f32.mrf.mxu0  ;;  %2891 = vmatprep.mubr.bf16.mxu1 %v12331_v35  ;;  %v2048_v52 = vadd.f32 %v2047_v22, %v1710_v40  ;;  %v1715_v22 = vld [vmem:[%s16458_s27 + $0x1d0] sm:$0xff] }
 0x23f   : > { %16501 = vst [vmem:[#allocation69_spill] sm:$0xff] %v12337_v57  ;;  %v2049_v59 = vpop.f32.mrf.mxu1  ;;  %2892 = vmatmul.mubr.bf16.gmra.mxu1 %v12335_v24  ;;  %v2094_v61 = vpack.c.bf16 %v12337_v57, %v12329_v8 }
 0x240   : > { %v12353_v55 = vpop.f32.mrf.mxu0  ;;  %v2050_v25 = vadd.f32 %v2049_v59, %v1711_v33 }
 0x241   : > { %16502 = vst [vmem:[#allocation70_spill] sm:$0xff] %v12353_v55  ;;  %v2095_v60 = vpack.c.bf16 %v12353_v55, %v12333_v37  ;;  %v2051_v16 = vpop.f32.mrf.mxu1 }
 0x242   : > { %v2052_v5 = vadd.f32 %v2051_v16, %v1712_v51  ;;  %v12359_v56 = vpop.f32.mrf.mxu0  ;;  %v12365_v33 = vpack.c.bf16 %v2050_v25, %v2046_v44  ;;  %v1716_v44 = vld [vmem:[%s16458_s27 + $0x1d8] sm:$0xff]  ;;  %v1713_v51 = vld [vmem:[%s16458_s27 + $0x1c0] sm:$0xff] }
 0x243   : > { %16503 = vst [vmem:[#allocation71_spill] sm:$0xff] %v12359_v56  ;;  %v2055_v9 = vpop.f32.mrf.mxu1  ;;  %2474 = vmatprep.mubr.bf16.mxu0 %v2095_v60 }
 0x244   : > { %v12361_v28 = vpack.c.bf16 %v2052_v5, %v2048_v52  ;;  %v12363_v17 = vpop.f32.mrf.mxu0  ;;  %2475 = vmatmul.mubr.bf16.gmra.mxu0 %v2094_v61  ;;  %v2056_v8 = vadd.f32 %v2055_v9, %v1713_v51  ;;  %v1718_v9 = vld [vmem:[%s16458_s27 + $0x1e8] sm:$0xff] }
 0x245   : > { %16504 = vst [vmem:[#allocation72_spill] sm:$0xff] %v12363_v17  ;;  %v2057_v59 = vpop.f32.mrf.mxu1 }
 0x246   : > { %v12367_v55 = vpop.f32.mrf.mxu0  ;;  %2901 = vmatprep.mubr.bf16.mxu1 %v12361_v28  ;;  %v2058_v52 = vadd.f32 %v2057_v59, %v1714_v10  ;;  %v1719_v59 = vld [vmem:[%s16458_s27 + $0x1f0] sm:$0xff] }
 0x247   : > { %16505 = vst [vmem:[#allocation73_spill] sm:$0xff] %v12367_v55  ;;  %v2059_v40 = vpop.f32.mrf.mxu1  ;;  %2902 = vmatmul.mubr.bf16.gmra.mxu1 %v12365_v33  ;;  %v2096_v61 = vpack.c.bf16 %v12367_v55, %v12359_v56 }
 0x248   : > { %v12383_v50 = vpop.f32.mrf.mxu0  ;;  %v2060_v25 = vadd.f32 %v2059_v40, %v1715_v22 }
 0x249   : > { %16506 = vst [vmem:[#allocation74_spill] sm:$0xff] %v12383_v50  ;;  %v2097_v60 = vpack.c.bf16 %v12383_v50, %v12363_v17  ;;  %v2061_v16 = vpop.f32.mrf.mxu1 }
 0x24a   : > { %v2062_v5 = vadd.f32 %v2061_v16, %v1716_v44  ;;  %v12389_v57 = vpop.f32.mrf.mxu0  ;;  %v12395_v22 = vpack.c.bf16 %v2060_v25, %v2056_v8  ;;  %v1720_v8 = vld [vmem:[%s16458_s27 + $0x1f8] sm:$0xff]  ;;  %v1717_v44 = vld [vmem:[%s16458_s27 + $0x1e0] sm:$0xff] }
 0x24b   : > { %16507 = vst [vmem:[#allocation75_spill] sm:$0xff] %v12389_v57  ;;  %v2065_v37 = vpop.f32.mrf.mxu1  ;;  %2484 = vmatprep.mubr.bf16.mxu0 %v2097_v60 }
 0x24c   : > { %v12391_v7 = vpack.c.bf16 %v2062_v5, %v2058_v52  ;;  %v12393_v1 = vpop.f32.mrf.mxu0  ;;  %2485 = vmatmul.mubr.bf16.gmra.mxu0 %v2096_v61  ;;  %v2066_v56 = vadd.f32 %v2065_v37, %v1717_v44 }
 0x24d   : > { %16508 = vst [vmem:[#allocation76_spill] sm:$0xff] %v12393_v1  ;;  %v2067_v40 = vpop.f32.mrf.mxu1 }
 0x24e   : > { %v12397_v50 = vpop.f32.mrf.mxu0  ;;  %2911 = vmatprep.mubr.bf16.mxu1 %v12391_v7  ;;  %v2068_v52 = vadd.f32 %v2067_v40, %v1718_v9 }
 0x24f   : > { %16509 = vst [vmem:[#allocation77_spill] sm:$0xff] %v12397_v50  ;;  %v2069_v10 = vpop.f32.mrf.mxu1  ;;  %2912 = vmatmul.mubr.bf16.gmra.mxu1 %v12395_v22  ;;  %v2098_v61 = vpack.c.bf16 %v12397_v50, %v12389_v57 }
 0x250   : > { %v12413_v51 = vpop.f32.mrf.mxu0  ;;  %v2070_v25 = vadd.f32 %v2069_v10, %v1719_v59 }
 0x251   : > { %16510 = vst [vmem:[#allocation78_spill] sm:$0xff] %v12413_v51  ;;  %v2099_v60 = vpack.c.bf16 %v12413_v51, %v12393_v1  ;;  %v2071_v16 = vpop.f32.mrf.mxu1 }
 0x252   : > { %v2072_v5 = vadd.f32 %v2071_v16, %v1720_v8  ;;  %v12419_v55 = vpop.f32.mrf.mxu0  ;;  %v12425_v48 = vpack.c.bf16 %v2070_v25, %v2066_v56 }
 0x253   : > { %16511 = vst [vmem:[#allocation79_spill] sm:$0xff] %v12419_v55  ;;  %2494 = vmatprep.mubr.bf16.mxu0 %v2099_v60 }
 0x254   : > { %v12421_v17 = vpack.c.bf16 %v2072_v5, %v2068_v52  ;;  %v12423_v58 = vpop.f32.mrf.mxu0  ;;  %2495 = vmatmul.mubr.bf16.gmra.mxu0 %v2098_v61 }
 0x255   : > { %16512 = vst [vmem:[#allocation80_spill] sm:$0xff] %v12423_v58 }
 0x256   : > { %v12427_v59 = vpop.f32.mrf.mxu0  ;;  %2921 = vmatprep.mubr.bf16.mxu1 %v12421_v17 }
 0x257   : > { %16513 = vst [vmem:[#allocation81_spill] sm:$0xff] %v12427_v59  ;;  %2922 = vmatmul.mubr.bf16.gmra.mxu1 %v12425_v48  ;;  %v2100_v37 = vpack.c.bf16 %v12427_v59, %v12419_v55 }
 0x258   : > { %v12431_v40 = vpop.f32.mrf.mxu0 }
 0x259   : > { %16514 = vst [vmem:[#allocation82_spill] sm:$0xff] %v12431_v40  ;;  %v2101_v9 = vpack.c.bf16 %v12431_v40, %v12423_v58 }
 0x25a   : > { %v12437_v10 = vpop.f32.mrf.mxu0 }
 0x25b   : > { %16515 = vst [vmem:[#allocation83_spill] sm:$0xff] %v12437_v10  ;;  %2504 = vmatprep.mubr.bf16.mxu0 %v2101_v9 }
 0x25c   : > { %v12439_v8 = vpop.f32.mrf.mxu0  ;;  %2505 = vmatmul.mubr.bf16.gmra.mxu0 %v2100_v37 }
 0x25d   : > { %16516 = vst [vmem:[#allocation84_spill] sm:$0xff] %v12439_v8 }
 0x25e   : > { %v12441_v56 = vpop.f32.mrf.mxu0 }
 0x25f   : > { %16517 = vst [vmem:[#allocation85_spill] sm:$0xff] %v12441_v56  ;;  %v2102_v60 = vpack.c.bf16 %v12441_v56, %v12437_v10 }
 0x260   : > { %v12443_v44 = vpop.f32.mrf.mxu0 }
 0x261   : > { %16518 = vst [vmem:[#allocation86_spill] sm:$0xff] %v12443_v44  ;;  %v2103_v25 = vpack.c.bf16 %v12443_v44, %v12439_v8 }
 0x262   : > { %v12449_v16 = vpop.f32.mrf.mxu0 }
 0x263   : > { %16519 = vst [vmem:[#allocation87_spill] sm:$0xff] %v12449_v16  ;;  %2514 = vmatprep.mubr.bf16.mxu0 %v2103_v25 }
 0x264   : > { %v12451_v52 = vpop.f32.mrf.mxu0  ;;  %2515 = vmatmul.mubr.bf16.gmra.mxu0 %v2102_v60 }
 0x265   : > { %16520 = vst [vmem:[#allocation88_spill] sm:$0xff] %v12451_v52 }
 0x266   : > { %v12453_v61 = vpop.f32.mrf.mxu0 }
 0x267   : > { %16521 = vst [vmem:[#allocation89_spill] sm:$0xff] %v12453_v61  ;;  %v2104_v37 = vpack.c.bf16 %v12453_v61, %v12449_v16 }
 0x268   : > { %v12455_v5 = vpop.f32.mrf.mxu0 }
 0x269   : > { %16522 = vst [vmem:[#allocation90_spill] sm:$0xff] %v12455_v5  ;;  %v2105_v9 = vpack.c.bf16 %v12455_v5, %v12451_v52 }
 0x26b   : > { %2524 = vmatprep.mubr.bf16.mxu0 %v2105_v9 }
 0x26c   : > { %2525 = vmatmul.mubr.bf16.gmra.mxu0 %v2104_v37  ;;  %v12514_v37 = vld [vmem:[%s16527_s8] sm:$0x3] }
 0x26d   : > { %3168 = vmatprep.mubr.bf16.mxu0 %v11993_v12 }
 0x274   : > { %3169 = vmatmul.mubr.bf16.vlgmr.msra.gmra.mxu0 %v11995_v13 }
 0x275   : > { %3178 = vmatprep.mubr.bf16.mxu0 %v12011_v26 }
 0x27c   : > { %3179 = vmatmul.mubr.bf16.gmra.mxu0 %v12013_v27 }
 0x27d   : > { %3188 = vmatprep.mubr.bf16.mxu0 %v12031_v41 }
 0x284   : > { %3189 = vmatmul.mubr.bf16.gmra.mxu0 %v12035_v43 }
 0x285   : > { %3198 = vmatprep.mubr.bf16.mxu0 %v12061_v3 }
 0x28c   : > { %3199 = vmatmul.mubr.bf16.gmra.mxu0 %v12065_v0 }
 0x28d   : > { %3208 = vmatprep.mubr.bf16.mxu0 %v12091_v29  ;;  %v16523_v29 = vlaneseq }
 0x294   : > { %3209 = vmatmul.mubr.bf16.gmra.mxu0 %v12095_v31  ;;  %v12491_v31 = vshrl.u32 %v16523_v29, 7 }
 0x295   : > { %3218 = vmatprep.mubr.bf16.mxu0 %v12121_v63 }
 0x296   : > { %vm12887_vm2 = vcmp.le.s32.totalorder %v11589_v47, %v12491_v31 }
 0x29c   : > { %3219 = vmatmul.mubr.bf16.gmra.mxu0 %v12125_v2 }
 0x29d   : > { %3228 = vmatprep.mubr.bf16.mxu0 %v12151_v36  ;;  %v2170_v36 = vld [vmem:[%s16524_s0] sm:$0x3]  ;;  %s16150_s0 = scalar_lea.sflag [#allocation4], %s820_s24 }
 0x29f   : > { %v12474_v12 = vpop.f32.mrf.mxu1 }
 0x2a1   : > { %v12476_v13 = vpop.f32.mrf.mxu1 }
 0x2a3   : > { %v12478_v26 = vpop.f32.mrf.mxu1 }
 0x2a4   : > { %3229 = vmatmul.mubr.bf16.gmra.mxu0 %v12155_v39  ;;  %v12499_v39 = vsub.s32 0, %v12491_v31 }
 0x2a5   : > { %v12481_v27 = vpop.f32.mrf.mxu1  ;;  %3238 = vmatprep.mubr.bf16.mxu0 %v12181_v19 }
 0x2a6   : > { %16525 = vst [vmem:[#allocation91_spill] sm:$0xff] %v12499_v39 }
 0x2a7   : > { %v2783_v41 = vpop.f32.mrf.mxu1 }
 0x2a9   : > { %v12484_v43 = vpop.f32.mrf.mxu1 }
 0x2ab   : > { %v2787_v3 = vpop.f32.mrf.mxu1 }
 0x2ac   : > { %3239 = vmatmul.mubr.bf16.gmra.mxu0 %v12185_v21  ;;  %v12503_v21 = vsub.s32 1, %v12491_v31 }
 0x2ad   : > { %v12487_v0 = vpop.f32.mrf.mxu1  ;;  %3248 = vmatprep.mubr.bf16.mxu0 %v12211_v14  ;;  %v12506_v14 = vrot.slane %v2170_v36, %v12499_v39 }
 0x2ae   : > { %16526 = vst [vmem:[#allocation92_spill] sm:$0xff] %v12503_v21  ;;  %v12517_v29 = vrot.slane %v2170_v36, %v12503_v21 }
 0x2af   : > { %v2793_v63 = vpop.f32.mrf.mxu1 }
 0x2b0   : > { %16528 = vst [vmem:[#allocation93_spill] sm:$0xff] %v12517_v29 }
 0x2b1   : > { %v12493_v2 = vpop.f32.mrf.mxu1 }
 0x2b3   : > { %v2797_v19 = vpop.f32.mrf.mxu1 }
 0x2b4   : > { %v2376_v25 = vpop.f32.mrf.mxu0  ;;  %3249 = vmatmul.mubr.bf16.gmra.mxu0 %v12215_v32 }
 0x2b5   : > { %v12508_v60 = vpop.f32.mrf.mxu1  ;;  %3258 = vmatprep.mubr.bf16.mxu0 %v12241_v11  ;;  %v2377_v5 = vadd.f32 %v2376_v25, %v12506_v14  ;;  %v12525_v11 = vrot.slane %v12514_v37, %v12499_v39 }
 0x2b6   : > { %v2378_v9 = vpop.f32.mrf.mxu0 }
 0x2b7   : > { %v2803_v32 = vpop.f32.mrf.mxu1  ;;  %v12528_v44 = vadd.f32 %v2378_v9, %v12517_v29  ;;  %v2798_v59 = vadd.f32 %v2797_v19, %v12525_v11 }
 0x2b8   : > { %v2380_v61 = vpop.f32.mrf.mxu0  ;;  %v2804_v25 = vadd.f32 %v2803_v32, %v12525_v11 }
 0x2b9   : > { %v2381_v16 = vadd.f32 %v2380_v61, %v12506_v14  ;;  %v12521_v52 = vpop.f32.mrf.mxu1  ;;  %16529 = vst [vmem:[#allocation94_spill] sm:$0xff] %v12528_v44 }
 0x2ba   : > { %v2382_v56 = vpop.f32.mrf.mxu0 }
 0x2bb   : > { %v3329_v10 = vpack.c.bf16 %v2381_v16, %v2377_v5  ;;  %v12531_v36 = vadd.f32 %v2382_v56, %v12517_v29  ;;  %v2807_v8 = vpop.f32.mrf.mxu1  ;;  %v2794_v56 = vadd.f32 %v2793_v63, %v12525_v11  ;;  %v2788_v63 = vadd.f32 %v2787_v3, %v12525_v11 }
 0x2bc   : > { %v2808_v61 = vadd.f32 %v2807_v8, %v12525_v11  ;;  %v12536_v40 = vpop.f32.mrf.mxu0  ;;  %3259 = vmatmul.mubr.bf16.gmra.mxu0 %v12245_v45 }
 0x2bd   : > { %16530 = vst [vmem:[#allocation95_spill] sm:$0xff] %v12531_v36  ;;  %v12541_v9 = vpop.f32.mrf.mxu1  ;;  %3268 = vmatprep.mubr.bf16.mxu0 %v12271_v49  ;;  %9606 = vmatprep.mubr.bf16.mxu1 %v3329_v10  ;;  %v3365_v32 = vpack.c.bf16 %v2798_v59, %v2794_v56  ;;  %v2784_v56 = vadd.f32 %v2783_v41, %v12525_v11 }
 0x2be   : > { %v3367_v16 = vpack.c.bf16 %v2808_v61, %v2804_v25  ;;  %v2388_v5 = vpop.f32.mrf.mxu0 }
 0x2bf   : > { %v12545_v19 = vpop.f32.mrf.mxu1  ;;  %v12550_v55 = vadd.f32 %v2388_v5, %v12517_v29 }
 0x2c0   : > { %v2390_v8 = vpop.f32.mrf.mxu0  ;;  %9598 = vmatprep.subr.bf16.mxu1 %v3367_v16 }
 0x2c1   : > { %v12547_v58 = vpop.f32.mrf.mxu1  ;;  %9599 = vmatpush3.bf16.xpose.msra.mxu1 %v3367_v16  ;;  %16532 = vst [vmem:[#allocation97_spill] sm:$0xff] %v12550_v55 }
 0x2c2   : > { %16531 = vst [vmem:[#allocation96_spill] sm:$0xff] %v12547_v58  ;;  %v2392_v45 = vpop.f32.mrf.mxu0  ;;  %9600 = vmatprep.subr.bf16.mxu1 %v3365_v32 }
 0x2c3   : > { %v12553_v49 = vadd.f32 %v2392_v45, %v12517_v29  ;;  %v12555_v10 = vpop.f32.mrf.mxu1  ;;  %v3363_v45 = vpack.c.bf16 %v2788_v63, %v2784_v56 }
 0x2c4   : > { %v2396_v25 = vpop.f32.mrf.mxu0  ;;  %3269 = vmatmul.mubr.bf16.gmra.mxu0 %v12275_v53 }
 0x2c5   : > { %16533 = vst [vmem:[#allocation98_spill] sm:$0xff] %v12553_v49  ;;  %v12561_v61 = vpop.f32.mrf.mxu1  ;;  %3278 = vmatprep.mubr.bf16.mxu0 %v12301_v18  ;;  %v2778_v18 = vadd.f32 %v12478_v26, %v12525_v11 }
 0x2c6   : > { %16534 = vst [vmem:[#allocation99_spill] sm:$0xff] %v12561_v61  ;;  %v2398_v16 = vpop.f32.mrf.mxu0 }
 0x2c7   : > { %v12565_v5 = vpop.f32.mrf.mxu1  ;;  %v12570_v53 = vadd.f32 %v2398_v16, %v12517_v29 }
 0x2c8   : > { %v2400_v50 = vpop.f32.mrf.mxu0 }
 0x2c9   : > { %v12567_v51 = vpop.f32.mrf.mxu1  ;;  %9601 = vmatpush3.bf16.xpose.msra.mxu1 %v3365_v32  ;;  %16536 = vst [vmem:[#allocation101_spill] sm:$0xff] %v12570_v53  ;;  %v2774_v32 = vadd.f32 %v12474_v12, %v12525_v11  ;;  %v2387_v12 = vadd.f32 %v12536_v40, %v12506_v14 }
 0x2ca   : > { %16535 = vst [vmem:[#allocation100_spill] sm:$0xff] %v12567_v51  ;;  %v2402_v3 = vpop.f32.mrf.mxu0  ;;  %9602 = vmatprep.subr.bf16.mxu1 %v3363_v45 }
 0x2cb   : > { %v12573_v59 = vadd.f32 %v2402_v3, %v12517_v29  ;;  %v2827_v57 = vpop.f32.mrf.mxu1  ;;  %v3361_v1 = vpack.c.bf16 %v2778_v18, %v2774_v32 }
 0x2cc   : > { %v2406_v41 = vpop.f32.mrf.mxu0  ;;  %3279 = vmatmul.mubr.bf16.gmra.mxu0 %v12305_v20 }
 0x2cd   : > { %16537 = vst [vmem:[#allocation102_spill] sm:$0xff] %v12573_v59  ;;  %v12580_v56 = vpop.f32.mrf.mxu1  ;;  %3288 = vmatprep.mubr.bf16.mxu0 %v12331_v35 }
 0x2ce   : > { %16538 = vst [vmem:[#allocation103_spill] sm:$0xff] %v12580_v56  ;;  %v2408_v16 = vpop.f32.mrf.mxu0 }
 0x2cf   : > { %v2833_v3 = vpop.f32.mrf.mxu1  ;;  %v12588_v20 = vadd.f32 %v2408_v16, %v12517_v29 }
 0x2d0   : > { %v2410_v34 = vpop.f32.mrf.mxu0  ;;  %v2834_v42 = vadd.f32 %v2833_v3, %v12525_v11 }
 0x2d1   : > { %v12585_v30 = vpop.f32.mrf.mxu1  ;;  %9603 = vmatpush3.bf16.xpose.msra.mxu1 %v3363_v45  ;;  %16540 = vst [vmem:[#allocation105_spill] sm:$0xff] %v12588_v20 }
 0x2d2   : > { %16539 = vst [vmem:[#allocation104_spill] sm:$0xff] %v12585_v30  ;;  %v2412_v26 = vpop.f32.mrf.mxu0  ;;  %9604 = vmatprep.subr.bf16.mxu1 %v3361_v1 }
 0x2d3   : > { %v12591_v63 = vadd.f32 %v2412_v26, %v12517_v29  ;;  %v2837_v23 = vpop.f32.mrf.mxu1  ;;  %v2391_v26 = vadd.f32 %v2390_v8, %v12506_v14 }
 0x2d4   : > { %v2416_v35 = vpop.f32.mrf.mxu0  ;;  %3289 = vmatmul.mubr.bf16.gmra.mxu0 %v12335_v24  ;;  %v2401_v24 = vadd.f32 %v2400_v50, %v12506_v14  ;;  %v2838_v62 = vadd.f32 %v2837_v23, %v12525_v11 }
 0x2d5   : > { %16541 = vst [vmem:[#allocation106_spill] sm:$0xff] %v12591_v63  ;;  %v12596_v18 = vpop.f32.mrf.mxu1  ;;  %3298 = vmatprep.mubr.bf16.mxu0 %v12361_v28  ;;  %v3331_v50 = vpack.c.bf16 %v2391_v26, %v2387_v12  ;;  %v2828_v12 = vadd.f32 %v2827_v57, %v12525_v11  ;;  %v2417_v26 = vadd.f32 %v2416_v35, %v12506_v14 }
 0x2d6   : > { %16542 = vst [vmem:[#allocation107_spill] sm:$0xff] %v12596_v18  ;;  %v12599_v45 = vpop.f32.mrf.mxu0 }
 0x2d7   : > { %16543 = vst [vmem:[#allocation108_spill] sm:$0xff] %v12599_v45  ;;  %v2843_v32 = vpop.f32.mrf.mxu1 }
 0x2d8   : > { %v2420_v15 = vpop.f32.mrf.mxu0  ;;  %v2844_v28 = vadd.f32 %v2843_v32, %v12525_v11 }
 0x2d9   : > { %v12601_v16 = vpop.f32.mrf.mxu1  ;;  %9605 = vmatpush3.bf16.xpose.msra.mxu1 %v3361_v1  ;;  %v2397_v1 = vadd.f32 %v2396_v25, %v12506_v14  ;;  %v2411_v25 = vadd.f32 %v2410_v34, %v12506_v14  ;;  %v2824_v34 = vadd.f32 %v12565_v5, %v12525_v11  ;;  %v2818_v5 = vadd.f32 %v12555_v10, %v12525_v11 }
 0x2da   : > { %16544 = vst [vmem:[#allocation109_spill] sm:$0xff] %v12601_v16  ;;  %v12604_v6 = vpop.f32.mrf.mxu0 }
 0x2db   : > { %16545 = vst [vmem:[#allocation110_spill] sm:$0xff] %v12604_v6  ;;  %v2847_v4 = vpop.f32.mrf.mxu1  ;;  %v3333_v23 = vpack.c.bf16 %v2401_v24, %v2397_v1  ;;  %v3371_v57 = vpack.c.bf16 %v2828_v12, %v2824_v34 }
 0x2dc   : > { %v2848_v54 = vadd.f32 %v2847_v4, %v12525_v11  ;;  %v12612_v46 = vpop.f32.mrf.mxu0  ;;  %3299 = vmatmul.mubr.bf16.gmra.mxu0 %v12365_v33  ;;  %v3373_v4 = vpack.c.bf16 %v2838_v62, %v2834_v42  ;;  %v2407_v42 = vadd.f32 %v2406_v41, %v12506_v14 }
 0x2dd   : > { %v12616_v8 = vpop.f32.mrf.mxu1  ;;  %3308 = vmatprep.mubr.bf16.mxu0 %v12391_v7 }
 0x2de   : > { %v3375_v40 = vpack.c.bf16 %v2848_v54, %v2844_v28  ;;  %v12620_v38 = vpop.f32.mrf.mxu0  ;;  %v2421_v54 = vadd.f32 %v2420_v15, %v12506_v14  ;;  %v3335_v28 = vpack.c.bf16 %v2411_v25, %v2407_v42  ;;  %v2814_v25 = vadd.f32 %v12545_v19, %v12525_v11 }
 0x2df   : > { %16546 = vst [vmem:[#allocation111_spill] sm:$0xff] %v12620_v38  ;;  %v12622_v32 = vpop.f32.mrf.mxu1 }
 0x2e0   : > { %v2430_v58 = vpop.f32.mrf.mxu0  ;;  %9607 = vmatmul.mubr.bf16.vlgmr.msra.gmra.mxu1 %v3331_v50  ;;  %9614 = vmatprep.subr.bf16.mxu1 %v3375_v40  ;;  %v3337_v1 = vpack.c.bf16 %v2421_v54, %v2417_v26 }
 0x2e1   : > { %v12624_v33 = vpop.f32.mrf.mxu1  ;;  %9610 = vmatprep.mubr.bf16.mxu1 %v3333_v23  ;;  %9615 = vmatpush3.bf16.xpose.msra.mxu1 %v3375_v40 }
 0x2e2   : > { %16547 = vst [vmem:[#allocation112_spill] sm:$0xff] %v12624_v33  ;;  %v12627_v7 = vpop.f32.mrf.mxu0  ;;  %9616 = vmatprep.subr.bf16.mxu1 %v3373_v4 }
 0x2e3   : > { %16548 = vst [vmem:[#allocation113_spill] sm:$0xff] %v12627_v7  ;;  %v12630_v3 = vpop.f32.mrf.mxu1 }
 0x2e4   : > { %v2436_v62 = vpop.f32.mrf.mxu0  ;;  %3309 = vmatmul.mubr.bf16.gmra.mxu0 %v12395_v22 }
 0x2e5   : > { %v12636_v24 = vpop.f32.mrf.mxu1  ;;  %3318 = vmatprep.mubr.bf16.mxu0 %v12421_v17 }
 0x2e6   : > { %16549 = vst [vmem:[#allocation114_spill] sm:$0xff] %v12636_v24  ;;  %v12641_v15 = vpop.f32.mrf.mxu0 }
 0x2e7   : > { %16550 = vst [vmem:[#allocation115_spill] sm:$0xff] %v12641_v15  ;;  %v12643_v50 = vpop.f32.mrf.mxu1 }
 0x2e8   : > { %v2440_v41 = vpop.f32.mrf.mxu0  ;;  %9611 = vmatmul.mubr.bf16.gmra.mxu1 %v3335_v28 }
 0x2e9   : > { %v12645_v40 = vpop.f32.mrf.mxu1  ;;  %9617 = vmatpush3.bf16.xpose.msra.mxu1 %v3373_v4  ;;  %9622 = vmatprep.mubr.bf16.mxu1 %v3337_v1  ;;  %v3369_v4 = vpack.c.bf16 %v2818_v5, %v2814_v25  ;;  %v2431_v5 = vadd.f32 %v2430_v58, %v12506_v14 }
 0x2ea   : > { %16551 = vst [vmem:[#allocation116_spill] sm:$0xff] %v12645_v40  ;;  %v12647_v22 = vpop.f32.mrf.mxu0  ;;  %9618 = vmatprep.subr.bf16.mxu1 %v3371_v57 }
 0x2eb   : > { %16552 = vst [vmem:[#allocation117_spill] sm:$0xff] %v12647_v22  ;;  %v2867_v17 = vpop.f32.mrf.mxu1 }
 0x2ec   : > { %v2446_v35 = vpop.f32.mrf.mxu0  ;;  %3319 = vmatmul.mubr.bf16.gmra.mxu0 %v12425_v48 }
 0x2ed   : > { %v12652_v23 = vpop.f32.mrf.mxu1 }
 0x2ee   : > { %16553 = vst [vmem:[#allocation118_spill] sm:$0xff] %v12652_v23  ;;  %v12656_v54 = vpop.f32.mrf.mxu0 }
 0x2ef   : > { %16554 = vst [vmem:[#allocation119_spill] sm:$0xff] %v12656_v54  ;;  %v2873_v12 = vpop.f32.mrf.mxu1 }
 0x2f0   : > { %v2450_v42 = vpop.f32.mrf.mxu0  ;;  %v2874_v51 = vadd.f32 %v2873_v12, %v12525_v11  ;;  %v2868_v12 = vadd.f32 %v2867_v17, %v12525_v11 }
 0x2f1   : > { %v12658_v26 = vpop.f32.mrf.mxu1  ;;  %9619 = vmatpush3.bf16.xpose.msra.mxu1 %v3371_v57  ;;  %v2441_v57 = vadd.f32 %v2440_v41, %v12506_v14 }
 0x2f2   : > { %16555 = vst [vmem:[#allocation120_spill] sm:$0xff] %v12658_v26  ;;  %v12660_v34 = vpop.f32.mrf.mxu0  ;;  %9620 = vmatprep.subr.bf16.mxu1 %v3369_v4 }
 0x2f3   : > { %16556 = vst [vmem:[#allocation121_spill] sm:$0xff] %v12660_v34  ;;  %v2877_v10 = vpop.f32.mrf.mxu1  ;;  %v2427_v34 = vadd.f32 %v12612_v46, %v12506_v14 }
 0x2f4   : > { %v2456_v28 = vpop.f32.mrf.mxu0  ;;  %v2878_v22 = vadd.f32 %v2877_v10, %v12525_v11 }
 0x2f5   : > { %v12662_v1 = vpop.f32.mrf.mxu1  ;;  %v3339_v58 = vpack.c.bf16 %v2431_v5, %v2427_v34  ;;  %v2457_v34 = vadd.f32 %v2456_v28, %v12506_v14  ;;  %v2858_v28 = vadd.f32 %v12630_v3, %v12525_v11 }
 0x2f6   : > { %16557 = vst [vmem:[#allocation122_spill] sm:$0xff] %v12662_v1  ;;  %v12664_v48 = vpop.f32.mrf.mxu0  ;;  %v3381_v10 = vpack.c.bf16 %v2878_v22, %v2874_v51  ;;  %v2447_v51 = vadd.f32 %v2446_v35, %v12506_v14 }
 0x2f7   : > { %16558 = vst [vmem:[#allocation123_spill] sm:$0xff] %v12664_v48  ;;  %v2883_v15 = vpop.f32.mrf.mxu1 }
 0x2f8   : > { %v2460_v38 = vpop.f32.mrf.mxu0  ;;  %v2884_v7 = vadd.f32 %v2883_v15, %v12525_v11 }
 0x2f9   : > { %v12666_v19 = vpop.f32.mrf.mxu1  ;;  %9621 = vmatpush3.bf16.xpose.msra.mxu1 %v3369_v4  ;;  %v2437_v4 = vadd.f32 %v2436_v62, %v12506_v14  ;;  %v2451_v62 = vadd.f32 %v2450_v42, %v12506_v14 }
 0x2fa   : > { %16559 = vst [vmem:[#allocation124_spill] sm:$0xff] %v12666_v19  ;;  %v12669_v25 = vpop.f32.mrf.mxu0 }
 0x2fb   : > { %16560 = vst [vmem:[#allocation125_spill] sm:$0xff] %v12669_v25  ;;  %v2887_v54 = vpop.f32.mrf.mxu1  ;;  %v3341_v63 = vpack.c.bf16 %v2441_v57, %v2437_v4  ;;  %v3343_v42 = vpack.c.bf16 %v2451_v62, %v2447_v51 }
 0x2fc   : > { %v2888_v61 = vadd.f32 %v2887_v54, %v12525_v11  ;;  %v12677_v33 = vpop.f32.mrf.mxu0 }
 0x2fd   : > { %v12680_v24 = vpop.f32.mrf.mxu1 }
 0x2fe   : > { %v3383_v41 = vpack.c.bf16 %v2888_v61, %v2884_v7  ;;  %v12683_v20 = vpop.f32.mrf.mxu0  ;;  %v2461_v61 = vadd.f32 %v2460_v38, %v12506_v14 }
 0x2ff   : > { %16561 = vst [vmem:[#allocation126_spill] sm:$0xff] %v12683_v20  ;;  %v12685_v46 = vpop.f32.mrf.mxu1 }
 0x300   : > { %v2470_v45 = vpop.f32.mrf.mxu0  ;;  %9623 = vmatmul.mubr.bf16.vlgmr.msra.gmra.mxu1 %v3339_v58  ;;  %9630 = vmatprep.subr.bf16.mxu1 %v3383_v41  ;;  %v3345_v4 = vpack.c.bf16 %v2461_v61, %v2457_v34  ;;  %v2854_v61 = vadd.f32 %v12622_v32, %v12525_v11 }
 0x301   : > { %v12687_v15 = vpop.f32.mrf.mxu1  ;;  %9626 = vmatprep.mubr.bf16.mxu1 %v3341_v63  ;;  %9631 = vmatpush3.bf16.xpose.msra.mxu1 %v3383_v41  ;;  %v2864_v63 = vadd.f32 %v12643_v50, %v12525_v11 }
 0x302   : > { %16562 = vst [vmem:[#allocation127_spill] sm:$0xff] %v12687_v15  ;;  %v12690_v54 = vpop.f32.mrf.mxu0  ;;  %9632 = vmatprep.subr.bf16.mxu1 %v3381_v10  ;;  %v3377_v34 = vpack.c.bf16 %v2858_v28, %v2854_v61 }
 0x303   : > { %16563 = vst [vmem:[#allocation128_spill] sm:$0xff] %v12690_v54  ;;  %v12693_v7 = vpop.f32.mrf.mxu1  ;;  %v3379_v38 = vpack.c.bf16 %v2868_v12, %v2864_v63 }
 0x304   : > { %v2476_v22 = vpop.f32.mrf.mxu0 }
 0x305   : > { %v12698_v5 = vpop.f32.mrf.mxu1 }
 0x306   : > { %16564 = vst [vmem:[#allocation129_spill] sm:$0xff] %v12698_v5  ;;  %v12702_v57 = vpop.f32.mrf.mxu0 }
 0x307   : > { %16565 = vst [vmem:[#allocation130_spill] sm:$0xff] %v12702_v57  ;;  %v2903_v58 = vpop.f32.mrf.mxu1 }
 0x308   : > { %v2480_v41 = vpop.f32.mrf.mxu0  ;;  %9627 = vmatmul.mubr.bf16.gmra.mxu1 %v3343_v42 }
 0x309   : > { %v12704_v15 = vpop.f32.mrf.mxu1  ;;  %9633 = vmatpush3.bf16.xpose.msra.mxu1 %v3381_v10  ;;  %9638 = vmatprep.mubr.bf16.mxu1 %v3345_v4 }
 0x30a   : > { %16566 = vst [vmem:[#allocation131_spill] sm:$0xff] %v12704_v15  ;;  %v12706_v17 = vpop.f32.mrf.mxu0  ;;  %9634 = vmatprep.subr.bf16.mxu1 %v3379_v38 }
 0x30b   : > { %16567 = vst [vmem:[#allocation132_spill] sm:$0xff] %v12706_v17  ;;  %v2907_v35 = vpop.f32.mrf.mxu1 }
 0x30c   : > { %v2486_v50 = vpop.f32.mrf.mxu0 }
 0x30d   : > { %v12710_v62 = vpop.f32.mrf.mxu1 }
 0x30e   : > { %16568 = vst [vmem:[#allocation133_spill] sm:$0xff] %v12710_v62  ;;  %v12714_v12 = vpop.f32.mrf.mxu0 }
 0x30f   : > { %16569 = vst [vmem:[#allocation134_spill] sm:$0xff] %v12714_v12  ;;  %v2913_v51 = vpop.f32.mrf.mxu1 }
 0x310   : > { %v2490_v63 = vpop.f32.mrf.mxu0 }
 0x311   : > { %v12716_v10 = vpop.f32.mrf.mxu1  ;;  %9635 = vmatpush3.bf16.xpose.msra.mxu1 %v3379_v38  ;;  %v2471_v38 = vadd.f32 %v2470_v45, %v12506_v14 }
 0x312   : > { %16570 = vst [vmem:[#allocation135_spill] sm:$0xff] %v12716_v10  ;;  %v12718_v42 = vpop.f32.mrf.mxu0  ;;  %9636 = vmatprep.subr.bf16.mxu1 %v3377_v34 }
 0x313   : > { %16571 = vst [vmem:[#allocation136_spill] sm:$0xff] %v12718_v42  ;;  %v2917_v4 = vpop.f32.mrf.mxu1  ;;  %v2481_v42 = vadd.f32 %v2480_v41, %v12506_v14 }
 0x314   : > { %v2496_v5 = vpop.f32.mrf.mxu0 }
 0x315   : > { %v12720_v3 = vpop.f32.mrf.mxu1  ;;  %v2497_v32 = vadd.f32 %v2496_v5, %v12506_v14 }
 0x316   : > { %16572 = vst [vmem:[#allocation137_spill] sm:$0xff] %v12720_v3  ;;  %v12722_v15 = vpop.f32.mrf.mxu0  ;;  %v2918_v3 = vadd.f32 %v2917_v4, %v12525_v11 }
 0x317   : > { %16573 = vst [vmem:[#allocation138_spill] sm:$0xff] %v12722_v15  ;;  %v2923_v62 = vpop.f32.mrf.mxu1  ;;  %v2467_v15 = vadd.f32 %v12677_v33, %v12506_v14  ;;  %v2491_v33 = vadd.f32 %v2490_v63, %v12506_v14  ;;  %v2898_v63 = vadd.f32 %v12693_v7, %v12525_v11 }
 0x318   : > { %v2500_v57 = vpop.f32.mrf.mxu0  ;;  %v2924_v5 = vadd.f32 %v2923_v62, %v12525_v11 }
 0x319   : > { %v2501_v12 = vadd.f32 %v2500_v57, %v12506_v14  ;;  %v12726_v28 = vpop.f32.mrf.mxu1  ;;  %9637 = vmatpush3.bf16.xpose.msra.mxu1 %v3377_v34  ;;  %v2477_v34 = vadd.f32 %v2476_v22, %v12506_v14  ;;  %v3347_v45 = vpack.c.bf16 %v2471_v38, %v2467_v15  ;;  %v2908_v22 = vadd.f32 %v2907_v35, %v12525_v11 }
 0x31a   : > { %16574 = vst [vmem:[#allocation139_spill] sm:$0xff] %v12726_v28  ;;  %v12729_v61 = vpop.f32.mrf.mxu0  ;;  %v2487_v15 = vadd.f32 %v2486_v50, %v12506_v14  ;;  %v2894_v35 = vadd.f32 %v12685_v46, %v12525_v11 }
 0x31b   : > { %16575 = vst [vmem:[#allocation140_spill] sm:$0xff] %v12729_v61  ;;  %v3353_v10 = vpack.c.bf16 %v2501_v12, %v2497_v32  ;;  %v2927_v20 = vpop.f32.mrf.mxu1  ;;  %v2914_v61 = vadd.f32 %v2913_v51, %v12525_v11  ;;  %v3349_v12 = vpack.c.bf16 %v2481_v42, %v2477_v34  ;;  %v2904_v51 = vadd.f32 %v2903_v58, %v12525_v11 }
 0x31c   : > { %v2928_v57 = vadd.f32 %v2927_v20, %v12525_v11  ;;  %v2506_v17 = vpop.f32.mrf.mxu0  ;;  %v3385_v58 = vpack.c.bf16 %v2898_v63, %v2894_v35 }
 0x31d   : > { %9654 = vmatprep.mubr.bf16.mxu0 %v3353_v10  ;;  %v3389_v32 = vpack.c.bf16 %v2918_v3, %v2914_v61  ;;  %v3351_v10 = vpack.c.bf16 %v2491_v33, %v2487_v15  ;;  %v3387_v4 = vpack.c.bf16 %v2908_v22, %v2904_v51  ;;  %v2507_v11 = vadd.f32 %v2506_v17, %v12506_v14 }
 0x31e   : > { %v3391_v54 = vpack.c.bf16 %v2928_v57, %v2924_v5  ;;  %v12739_v41 = vpop.f32.mrf.mxu0 }
 0x31f   : > { %16576 = vst [vmem:[#allocation141_spill] sm:$0xff] %v12739_v41 }
 0x320   : > { %v2510_v28 = vpop.f32.mrf.mxu0  ;;  %9639 = vmatmul.mubr.bf16.vlgmr.msra.gmra.mxu1 %v3347_v45  ;;  %9646 = vmatprep.subr.bf16.mxu0 %v3391_v54 }
 0x321   : > { %9642 = vmatprep.mubr.bf16.mxu1 %v3349_v12  ;;  %9647 = vmatpush3.bf16.xpose.msra.mxu0 %v3391_v54  ;;  %v2511_v12 = vadd.f32 %v2510_v28, %v12506_v14 }
 0x322   : > { %v12742_v20 = vpop.f32.mrf.mxu0  ;;  %9648 = vmatprep.subr.bf16.mxu0 %v3389_v32 }
 0x323   : > { %16577 = vst [vmem:[#allocation142_spill] sm:$0xff] %v12742_v20  ;;  %v3355_v22 = vpack.c.bf16 %v2511_v12, %v2507_v11  ;;  %v2964_v12 = vld [vmem:[%s16200_s10] sm:$0x3] }
 0x324   : > { %v2516_v62 = vpop.f32.mrf.mxu0 }
 0x325   : > { %v2517_v33 = vadd.f32 %v2516_v62, %v12506_v14 }
 0x326   : > { %v12747_v42 = vpop.f32.mrf.mxu0 }
 0x327   : > { %16578 = vst [vmem:[#allocation143_spill] sm:$0xff] %v12747_v42 }
 0x328   : > { %v2520_v3 = vpop.f32.mrf.mxu0  ;;  %9643 = vmatmul.mubr.bf16.gmra.mxu1 %v3351_v10 }
 0x329   : > { %9649 = vmatpush3.bf16.xpose.msra.mxu0 %v3389_v32  ;;  %v2521_v32 = vadd.f32 %v2520_v3, %v12506_v14 }
 0x32a   : > { %v12749_v54 = vpop.f32.mrf.mxu0  ;;  %9650 = vmatprep.subr.bf16.mxu0 %v3387_v4 }
 0x32b   : > { %16579 = vst [vmem:[#allocation144_spill] sm:$0xff] %v12749_v54  ;;  %v3357_v51 = vpack.c.bf16 %v2521_v32, %v2517_v33 }
 0x32c   : > { %v2526_v38 = vpop.f32.mrf.mxu0 }
 0x32d   : > { %v2527_v28 = vadd.f32 %v2526_v38, %v12506_v14 }
 0x32e   : > { %v12755_v50 = vpop.f32.mrf.mxu0 }
 0x32f   : > { %16580 = vst [vmem:[#allocation145_spill] sm:$0xff] %v12755_v50 }
 0x330   : > { %v2530_v61 = vpop.f32.mrf.mxu0 }
 0x331   : > { %9651 = vmatpush3.bf16.xpose.msra.mxu0 %v3387_v4  ;;  %v2531_v4 = vadd.f32 %v2530_v61, %v12506_v14  ;;  %v12783_v61 = vrot.slane %v2964_v12, %v12499_v39 }
 0x332   : > { %v12757_v5 = vpop.f32.mrf.mxu0  ;;  %9652 = vmatprep.subr.bf16.mxu0 %v3385_v58 }
 0x333   : > { %16581 = vst [vmem:[#allocation146_spill] sm:$0xff] %v12757_v5  ;;  %v3359_v3 = vpack.c.bf16 %v2531_v4, %v2527_v28 }
 0x334   : > { %v3170_v57 = vpop.f32.mrf.mxu0 }
 0x336   : > { %v12759_v34 = vpop.f32.mrf.mxu0 }
 0x337   : > { %16582 = vst [vmem:[#allocation147_spill] sm:$0xff] %v12759_v34 }
 0x338   : > { %v3174_v45 = vpop.f32.mrf.mxu0 }
 0x339   : > { %9653 = vmatpush3.bf16.xpose.msra.mxu0 %v3385_v58 }
 0x33a   : > { %v12762_v7 = vpop.f32.mrf.mxu0 }
 0x33b   : > { %16583 = vst [vmem:[#allocation148_spill] sm:$0xff] %v12762_v7  ;;  %v3430_v7 = vadd.s32 32, %v12491_v31 }
 0x33c   : > { %v3180_v46 = vpop.f32.mrf.mxu0 }
 0x33d   : > { %v3181_v12 = vadd.f32 %v3180_v46, %v12783_v61  ;;  %vm12950_vm6 = vcmp.le.s32.totalorder %v11589_v47, %v3430_v7 }
 0x33e   : > { %v12767_v15 = vpop.f32.mrf.mxu0 }
 0x33f   : > { %16584 = vst [vmem:[#allocation149_spill] sm:$0xff] %v12767_v15 }
 0x340   : > { %v3184_v10 = vpop.f32.mrf.mxu0  ;;  %9655 = vmatmul.mubr.bf16.vlgmr.msra.gmra.mxu0 %v3355_v22 }
 0x341   : > { %9658 = vmatprep.mubr.bf16.mxu0 %v3357_v51  ;;  %v3185_v50 = vadd.f32 %v3184_v10, %v12783_v61  ;;  %v3171_v10 = vadd.f32 %v3170_v57, %v12783_v61 }
 0x342   : > { %v12770_v63 = vpop.f32.mrf.mxu0 }
 0x343   : > { %16585 = vst [vmem:[#allocation150_spill] sm:$0xff] %v12770_v63 }
 0x344   : > { %v3190_v35 = vpop.f32.mrf.mxu0 }
 0x345   : > { %v3191_v4 = vadd.f32 %v3190_v35, %v12783_v61 }
 0x346   : > { %v12773_v58 = vpop.f32.mrf.mxu0 }
 0x347   : > { %16586 = vst [vmem:[#allocation151_spill] sm:$0xff] %v12773_v58 }
 0x348   : > { %v3194_v17 = vpop.f32.mrf.mxu0  ;;  %9659 = vmatmul.mubr.bf16.gmra.mxu0 %v3359_v3 }
 0x349   : > { %v3195_v14 = vadd.f32 %v3194_v17, %v12783_v61 }
 0x34a   : > { %v12775_v62 = vpop.f32.mrf.mxu0 }
 0x34b   : > { %16587 = vst [vmem:[#allocation152_spill] sm:$0xff] %v12775_v62  ;;  %v3397_v5 = vpack.c.bf16 %v3195_v14, %v3191_v4  ;;  %v3431_v62 = vadd.s32 40, %v12491_v31 }
 0x34c   : > { %v3200_v32 = vpop.f32.mrf.mxu0 }
 0x34d   : > { %v3201_v38 = vadd.f32 %v3200_v32, %v12783_v61  ;;  %v3175_v32 = vadd.f32 %v3174_v45, %v12783_v61  ;;  %vm12959_vm7 = vcmp.le.s32.totalorder %v11589_v47, %v3431_v62 }
 0x34e   : > { %v12780_v11 = vpop.f32.mrf.mxu0 }
 0x34f   : > { %16588 = vst [vmem:[#allocation153_spill] sm:$0xff] %v12780_v11  ;;  %v3393_v4 = vpack.c.bf16 %v3175_v32, %v3171_v10 }
 0x350   : > { %v3204_v33 = vpop.f32.mrf.mxu0 }
 0x351   : > { %v3205_v22 = vadd.f32 %v3204_v33, %v12783_v61  ;;  %v3395_v33 = vpack.c.bf16 %v3185_v50, %v3181_v12 }
 0x352   : > { %v12788_v51 = vpop.f32.mrf.mxu0 }
 0x353   : > { %16589 = vst [vmem:[#allocation154_spill] sm:$0xff] %v12788_v51  ;;  %v3399_v28 = vpack.c.bf16 %v3205_v22, %v3201_v38 }
 0x354   : > { %v3210_v3 = vpop.f32.mrf.mxu0 }
 0x355   : > { %9662 = vmatprep.subr.bf16.mxu1 %v3399_v28  ;;  %v3211_v39 = vadd.f32 %v3210_v3, %v12783_v61 }
 0x356   : > { %v12792_v42 = vpop.f32.mrf.mxu0  ;;  %9663 = vmatpush3.bf16.msra.mxu1 %v3399_v28 }
 0x357   : > { %16590 = vst [vmem:[#allocation155_spill] sm:$0xff] %v12792_v42  ;;  %9664 = vmatprep.subr.bf16.mxu1 %v3397_v5 }
 0x358   : > { %v3214_v17 = vpop.f32.mrf.mxu0 }
 0x359   : > { %v3215_v35 = vadd.f32 %v3214_v17, %v12783_v61 }
 0x35a   : > { %v12798_v38 = vpop.f32.mrf.mxu0  ;;  %9665 = vmatpush3.bf16.msra.mxu1 %v3397_v5 }
 0x35b   : > { %16591 = vst [vmem:[#allocation156_spill] sm:$0xff] %v12798_v38  ;;  %v12801_v14 = vpack.c.bf16 %v3215_v35, %v3211_v39  ;;  %9666 = vmatprep.subr.bf16.mxu1 %v3395_v33 }
 0x35c   : > { %v3220_v22 = vpop.f32.mrf.mxu0 }
 0x35d   : > { %v3221_v50 = vadd.f32 %v3220_v22, %v12783_v61 }
 0x35e   : > { %v12803_v46 = vpop.f32.mrf.mxu0  ;;  %9667 = vmatpush3.bf16.msra.mxu1 %v3395_v33 }
 0x35f   : > { %16592 = vst [vmem:[#allocation157_spill] sm:$0xff] %v12803_v46  ;;  %9668 = vmatprep.subr.bf16.mxu1 %v3393_v4 }
 0x360   : > { %v3224_v45 = vpop.f32.mrf.mxu0 }
 0x361   : > { %v3225_v28 = vadd.f32 %v3224_v45, %v12783_v61 }
 0x362   : > { %v12807_v3 = vpop.f32.mrf.mxu0  ;;  %9669 = vmatpush3.bf16.msra.mxu1 %v3393_v4 }
 0x363   : > { %16593 = vst [vmem:[#allocation158_spill] sm:$0xff] %v12807_v3  ;;  %v12809_v5 = vpack.c.bf16 %v3225_v28, %v3221_v50 }
 0x364   : > { %v3230_v57 = vpop.f32.mrf.mxu0 }
 0x365   : > { %v3231_v17 = vadd.f32 %v3230_v57, %v12783_v61 }
 0x366   : > { %v12811_v39 = vpop.f32.mrf.mxu0 }
 0x367   : > { %16594 = vst [vmem:[#allocation159_spill] sm:$0xff] %v12811_v39 }
 0x368   : > { %v3234_v12 = vpop.f32.mrf.mxu0 }
 0x369   : > { %v3235_v32 = vadd.f32 %v3234_v12, %v12783_v61 }
 0x36a   : > { %v12815_v33 = vpop.f32.mrf.mxu0 }
 0x36b   : > { %16595 = vst [vmem:[#allocation160_spill] sm:$0xff] %v12815_v33  ;;  %v12817_v35 = vpack.c.bf16 %v3235_v32, %v3231_v17 }
 0x36c   : > { %v3240_v10 = vpop.f32.mrf.mxu0 }
 0x36d   : > { %v3241_v4 = vadd.f32 %v3240_v10, %v12783_v61 }
 0x36e   : > { %v12819_v22 = vpop.f32.mrf.mxu0 }
 0x36f   : > { %16596 = vst [vmem:[#allocation161_spill] sm:$0xff] %v12819_v22 }
 0x370   : > { %v3244_v45 = vpop.f32.mrf.mxu0 }
 0x371   : > { %v3245_v50 = vadd.f32 %v3244_v45, %v12783_v61 }
 0x372   : > { %v12823_v28 = vpop.f32.mrf.mxu0 }
 0x373   : > { %16597 = vst [vmem:[#allocation162_spill] sm:$0xff] %v12823_v28  ;;  %v12825_v42 = vpack.c.bf16 %v3245_v50, %v3241_v4 }
 0x374   : > { %v3250_v38 = vpop.f32.mrf.mxu0 }
 0x375   : > { %9678 = vmatprep.subr.bf16.mxu1 %v12825_v42 }
 0x376   : > { %v12828_v57 = vpop.f32.mrf.mxu0 }
 0x377   : > { %16598 = vst [vmem:[#allocation163_spill] sm:$0xff] %v12828_v57 }
 0x378   : > { %v3254_v12 = vpop.f32.mrf.mxu0 }
 0x37a   : > { %v12830_v17 = vpop.f32.mrf.mxu0 }
 0x37b   : > { %16599 = vst [vmem:[#allocation164_spill] sm:$0xff] %v12830_v17 }
 0x37c   : > { %v3260_v32 = vpop.f32.mrf.mxu0 }
 0x37e   : > { %v12832_v46 = vpop.f32.mrf.mxu0 }
 0x37f   : > { %16600 = vst [vmem:[#allocation165_spill] sm:$0xff] %v12832_v46 }
 0x380   : > { %v3264_v3 = vpop.f32.mrf.mxu0 }
 0x382   : > { %v12834_v39 = vpop.f32.mrf.mxu0 }
 0x383   : > { %16601 = vst [vmem:[#allocation166_spill] sm:$0xff] %v12834_v39 }
 0x384   : > { %v3270_v10 = vpop.f32.mrf.mxu0 }
 0x385   : > { %v3271_v39 = vadd.f32 %v3270_v10, %v12783_v61 }
 0x386   : > { %v12836_v45 = vpop.f32.mrf.mxu0 }
 0x387   : > { %16602 = vst [vmem:[#allocation167_spill] sm:$0xff] %v12836_v45  ;;  %v3265_v45 = vadd.f32 %v3264_v3, %v12783_v61 }
 0x388   : > { %v3274_v33 = vpop.f32.mrf.mxu0 }
 0x389   : > { %v3275_v57 = vadd.f32 %v3274_v33, %v12783_v61 }
 0x38a   : > { %v12838_v4 = vpop.f32.mrf.mxu0 }
 0x38b   : > { %16603 = vst [vmem:[#allocation168_spill] sm:$0xff] %v12838_v4  ;;  %v3413_v34 = vpack.c.bf16 %v3275_v57, %v3271_v39  ;;  %v3251_v39 = vadd.f32 %v3250_v38, %v12783_v61 }
 0x38c   : > { %v3280_v50 = vpop.f32.mrf.mxu0 }
 0x38d   : > { %v3281_v17 = vadd.f32 %v3280_v50, %v12783_v61  ;;  %v3255_v50 = vadd.f32 %v3254_v12, %v12783_v61 }
 0x38e   : > { %v12840_v41 = vpop.f32.mrf.mxu0 }
 0x38f   : > { %16604 = vst [vmem:[#allocation169_spill] sm:$0xff] %v12840_v41  ;;  %v3261_v41 = vadd.f32 %v3260_v32, %v12783_v61  ;;  %v3409_v12 = vpack.c.bf16 %v3255_v50, %v3251_v39  ;;  %v16615_v39 = vmov 0 }
 0x390   : > { %v3284_v54 = vpop.f32.mrf.mxu0  ;;  %v16616_v39 = vsel %vm12887_vm2, 4294967295, %v16615_v39 }
 0x391   : > { %v3285_v20 = vadd.f32 %v3284_v54, %v12783_v61  ;;  %v3411_v54 = vpack.c.bf16 %v3265_v45, %v3261_v41  ;;  %v3429_v45 = vadd.s32 24, %v12491_v31  ;;  %16617 = vst [vmem:[#allocation178_spill] sm:$0xff] %v16616_v39 }
 0x392   : > { %v12845_v46 = vpop.f32.mrf.mxu0 }
 0x393   : > { %16605 = vst [vmem:[#allocation170_spill] sm:$0xff] %v12845_v46  ;;  %v3415_v22 = vpack.c.bf16 %v3285_v20, %v3281_v17  ;;  %v12857_v20 = vrot.slane %v12514_v37, %v12503_v21  ;;  %v12869_v37 = vpop.f32.mrf.mxu1  ;;  %vm12902_vm3 = vcmp.le.s32.totalorder %v11589_v47, %v3429_v45  ;;  %v16622_v45 = vmov 0 }
 0x394   : > { %v3290_v28 = vpop.f32.mrf.mxu0  ;;  %16609 = vst [vmem:[#allocation174_spill] sm:$0xff] %v12869_v37 }
 0x395   : > { %9694 = vmatprep.subr.bf16.mxu0 %v3415_v22  ;;  %v3291_v46 = vadd.f32 %v3290_v28, %v12783_v61  ;;  %v2810_v57 = vadd.f32 %v12541_v9, %v12857_v20  ;;  %v3428_v28 = vadd.s32 16, %v12491_v31  ;;  %v2806_v17 = vadd.f32 %v12521_v52, %v12857_v20 }
 0x396   : > { %v12849_v4 = vpop.f32.mrf.mxu0  ;;  %9695 = vmatpush3.bf16.msra.mxu0 %v3415_v22  ;;  %v16611_v9 = vmov 0 }
 0x397   : > { %16606 = vst [vmem:[#allocation171_spill] sm:$0xff] %v12849_v4  ;;  %9696 = vmatprep.subr.bf16.mxu0 %v3413_v34  ;;  %vm12876_vm0 = vcmp.le.s32.totalorder %v11589_v47, %v3428_v28  ;;  %v16618_v4 = vmov 0 }
 0x398   : > { %v3294_v33 = vpop.f32.mrf.mxu0  ;;  %v16612_v9 = vsel %vm12876_vm0, 4294967295, %v16611_v9  ;;  %v16619_v4 = vsel %vm12902_vm3, 4294967295, %v16618_v4 }
 0x399   : > { %v3295_v10 = vadd.f32 %v3294_v33, %v12783_v61  ;;  %16613 = vst [vmem:[#allocation176_spill] sm:$0xff] %v16612_v9  ;;  %16620 = vst [vmem:[#allocation179_spill] sm:$0xff] %v16619_v4 }
 0x39a   : > { %v12859_v3 = vpop.f32.mrf.mxu0  ;;  %9697 = vmatpush3.bf16.msra.mxu0 %v3413_v34  ;;  %v12873_v34 = vpack.c.bf16 %v2810_v57, %v2806_v17  ;;  %v3427_v57 = vadd.s32 8, %v12491_v31 }
 0x39b   : > { %16607 = vst [vmem:[#allocation172_spill] sm:$0xff] %v12859_v3  ;;  %v12862_v22 = vpack.c.bf16 %v3295_v10, %v3291_v46  ;;  %9698 = vmatprep.subr.bf16.mxu0 %v3411_v54 }
 0x39c   : > { %v3300_v41 = vpop.f32.mrf.mxu0  ;;  %vm12916_vm4 = vcmp.le.s32.totalorder %v11589_v47, %v3427_v57 }
 0x39d   : > { %16608 = vst [vmem:[#allocation173_spill] sm:$0xff] %v12862_v22  ;;  %v3301_v33 = vadd.f32 %v3300_v41, %v12783_v61  ;;  %v16623_v45 = vsel %vm12916_vm4, 4294967295, %v16622_v45 }
 0x39e   : > { %v12871_v32 = vpop.f32.mrf.mxu0  ;;  %9699 = vmatpush3.bf16.msra.mxu0 %v3411_v54  ;;  %16624 = vst [vmem:[#allocation181_spill] sm:$0xff] %v16623_v45 }
 0x39f   : > { %16610 = vst [vmem:[#allocation175_spill] sm:$0xff] %v12871_v32  ;;  %9700 = vmatprep.subr.bf16.mxu0 %v3409_v12 }
 0x3a0   : > { %v3304_v38 = vpop.f32.mrf.mxu0  ;;  %v9608_v46 = vpop.f32.mrf.mxu1 }
 0x3a1   : > { %v3305_v52 = vadd.f32 %v3304_v38, %v12783_v61  ;;  %v3704_v50 = vmul.f32 0.088388346, %v9608_v46 }
 0x3a2   : > { %v12883_v10 = vpop.f32.mrf.mxu0  ;;  %v3476_v54 = vpop.f32.mrf.mxu1  ;;  %9701 = vmatpush3.bf16.msra.mxu0 %v3409_v12 }
 0x3a3   : > { %16614 = vst [vmem:[#allocation177_spill] sm:$0xff] %v12883_v10  ;;  %v12892_v28 = vpack.c.bf16 %v3305_v52, %v3301_v33  ;;  %v3702_v17 = vmul.f32 0.088388346, %v3476_v54  ;;  %9726 = vmatprep.subr.bf16.mxu0 %v12873_v34  ;;  %v12897_v41 = vsel %vm12876_vm0, %v3704_v50, -1e+09  ;;  %v3432_v33 = vadd.s32 48, %v12491_v31 }
 0x3a4   : > { %v3310_v38 = vpop.f32.mrf.mxu0  ;;  %v9609_v46 = vpop.f32.mrf.mxu1  ;;  %v3789_v12 = vsel %vm3782_vm1, %v12897_v41, -inf }
 0x3a5   : > { %v3705_v52 = vmul.f32 0.088388346, %v9609_v46  ;;  %3790 = vmax.xlane.f32.xlu1 %v3789_v12  ;;  %v12909_v54 = vsel %vm12887_vm2, %v3702_v17, -1e+09  ;;  %vm12925_vm5 = vcmp.le.s32.totalorder %v11589_v47, %v3432_v33  ;;  %v3311_v57 = vadd.f32 %v3310_v38, %v12783_v61 }
 0x3a6   : > { %v12911_v50 = vpop.f32.mrf.mxu0  ;;  %v3479_v3 = vpop.f32.mrf.mxu1  ;;  %v3783_v32 = vsel %vm3782_vm1, %v12909_v54, -inf }
 0x3a7   : > { %16621 = vst [vmem:[#allocation180_spill] sm:$0xff] %v12911_v50  ;;  %v3703_v10 = vmul.f32 0.088388346, %v3479_v3  ;;  %3784 = vmax.xlane.f32.xlu0 %v3783_v32  ;;  %v12922_v46 = vsel %vm12902_vm3, %v3705_v52, -1e+09  ;;  %v16625_v50 = vmov 0 }
 0x3a8   : > { %v3314_v12 = vpop.f32.mrf.mxu0  ;;  %v9612_v17 = vpop.f32.mrf.mxu1  ;;  %v16626_v50 = vsel %vm12925_vm5, 4294967295, %v16625_v50  ;;  %v3792_v33 = vsel %vm3782_vm1, %v12922_v46, -inf }
 0x3a9   : > { %16627 = vst [vmem:[#allocation182_spill] sm:$0xff] %v16626_v50  ;;  %v3315_v15 = vadd.f32 %v3314_v12, %v12783_v61  ;;  %v3708_v63 = vmul.f32 0.088388346, %v9612_v17  ;;  %v12934_v3 = vsel %vm12916_vm4, %v3703_v10, -1e+09 }
 0x3aa   : > { %v12936_v32 = vpop.f32.mrf.mxu0  ;;  %v3492_v52 = vpop.f32.mrf.mxu1  ;;  %v3786_v58 = vsel %vm3782_vm1, %v12934_v3, -inf }
 0x3ab   : > { %16628 = vst [vmem:[#allocation183_spill] sm:$0xff] %v12936_v32  ;;  %v12943_v37 = vpack.c.bf16 %v3315_v15, %v3311_v57  ;;  %v3706_v38 = vmul.f32 0.088388346, %v3492_v52  ;;  %3793 = vmax.xlane.f32.xlu0 %v3792_v33  ;;  %3787 = vmax.xlane.f32.xlu1 %v3786_v58  ;;  %v12947_v10 = vsel %vm12925_vm5, %v3708_v63, -1e+09  ;;  %v16629_v32 = vmov 0 }
 0x3ac   : > { %v3320_v12 = vpop.f32.mrf.mxu0  ;;  %v9613_v17 = vpop.f32.mrf.mxu1  ;;  %v16630_v32 = vsel %vm12950_vm6, 4294967295, %v16629_v32  ;;  %v3801_v15 = vsel %vm3782_vm1, %v12947_v10, -inf  ;;  %v16633_v58 = vmov 0 }
 0x3ad   : > { %16631 = vst [vmem:[#allocation184_spill] sm:$0xff] %v16630_v32  ;;  %v16634_v58 = vsel %vm12959_vm7, 4294967295, %v16633_v58  ;;  %v12965_v57 = vsel %vm12950_vm6, %v3706_v38, -1e+09  ;;  %v3321_v52 = vadd.f32 %v3320_v12, %v12783_v61 }
 0x3ae   : > { %v12954_v11 = vpop.f32.mrf.mxu0  ;;  %v3495_v51 = vpop.f32.mrf.mxu1  ;;  %16635 = vst [vmem:[#allocation186_spill] sm:$0xff] %v16634_v58  ;;  %v3795_v62 = vsel %vm3782_vm1, %v12965_v57, -inf }
 0x3af   : > { %16632 = vst [vmem:[#allocation185_spill] sm:$0xff] %v12954_v11  ;;  %v3707_v63 = vmul.f32 0.088388346, %v3495_v51  ;;  %3802 = vmax.xlane.f32.xlu1 %v3801_v15 }
 0x3b0   : > { %v3324_v7 = vpop.f32.mrf.mxu0 }
 0x3b1   : > { %v3325_v33 = vadd.f32 %v3324_v7, %v12783_v61  ;;  %v12971_v11 = vsel %vm12959_vm7, %v3707_v63, -1e+09 }
 0x3b2   : > { %v3798_v51 = vsel %vm3782_vm1, %v12971_v11, -inf  ;;  %v13069_v49 = vpop.f32.mrf.mxu0 }
 0x3b3   : > { %v12977_v15 = vpack.c.bf16 %v3325_v33, %v3321_v52  ;;  %3796 = vmax.xlane.f32.xlu1 %v3795_v62  ;;  %3799 = vmax.xlane.f32.xlu0 %v3798_v51  ;;  %16639 = vst [vmem:[#allocation188_spill] sm:$0xff] %v13069_v49 }
 0x3c0   : > { %v9624_v38 = vpop.f32.mrf.mxu1 }
 0x3c1   : > { %v3712_v33 = vmul.f32 0.088388346, %v9624_v38 }
 0x3c2   : > { %v3541_v21 = vpop.f32.mrf.mxu1 }
 0x3c3   : > { %v3710_v48 = vmul.f32 0.088388346, %v3541_v21 }
 0x3c4   : > { %v9625_v56 = vpop.f32.mrf.mxu1 }
 0x3c6   : > { %v3544_v12 = vpop.f32.mrf.mxu1 }
 0x3c8   : > { %v9628_v40 = vpop.f32.mrf.mxu1 }
 0x3ca   : > { %v3557_v61 = vpop.f32.mrf.mxu1 }
 0x3cc   : > { %v12979_v7 = vpop.f32.mrf.mxu1 }
 0x3ce   : > { %v3560_v63 = vpop.f32.mrf.mxu1 }
 0x3e0   : > { %v9640_v6 = vpop.f32.mrf.mxu1 }
 0x3e1   : > { %v3720_v23 = vmul.f32 0.088388346, %v9640_v6  ;;  %v12993_v6 = vsel %vm12887_vm2, %v3710_v48, -1e+09  ;;  %v13006_v48 = vsel %vm12876_vm0, %v3712_v33, -1e+09 }
 0x3e2   : > { %v3606_v25 = vpop.f32.mrf.mxu1  ;;  %v3813_v55 = vsel %vm3782_vm1, %v13006_v48, -inf }
 0x3e3   : > { %v3718_v29 = vmul.f32 0.088388346, %v3606_v25  ;;  %v12983_v52 = vsel %vm12876_vm0, %v3720_v23, -1e+09 }
 0x3e4   : > { %v9641_v62 = vpop.f32.mrf.mxu1  ;;  %v3837_v51 = vsel %vm3782_vm1, %v12983_v52, -inf }
 0x3e5   : > { %v3721_v53 = vmul.f32 0.088388346, %v9641_v62  ;;  %3838 = vmax.xlane.f32.xlu1 %v3837_v51  ;;  %v12989_v59 = vsel %vm12887_vm2, %v3718_v29, -1e+09  ;;  %v3807_v62 = vsel %vm3782_vm1, %v12993_v6, -inf  ;;  %v3433_v29 = vadd.s32 56, %v12491_v31 }
 0x3e6   : > { %v3609_v21 = vpop.f32.mrf.mxu1  ;;  %v3831_v23 = vsel %vm3782_vm1, %v12989_v59, -inf  ;;  %v3714_v51 = vmul.f32 0.088388346, %v3557_v61  ;;  %v16636_v31 = vmov 0 }
 0x3e7   : > { %v3719_v25 = vmul.f32 0.088388346, %v3609_v21  ;;  %3832 = vmax.xlane.f32.xlu0 %v3831_v23  ;;  %v12999_v38 = vsel %vm12902_vm3, %v3721_v53, -1e+09  ;;  %v3709_v23 = vmul.f32 0.088388346, %v9613_v17  ;;  %vm13017_vm8 = vcmp.le.s32.totalorder %v11589_v47, %v3433_v29 }
 0x3e8   : > { %v9644_v30 = vpop.f32.mrf.mxu1  ;;  %v3840_v21 = vsel %vm3782_vm1, %v12999_v38, -inf  ;;  %v16637_v31 = vsel %vm13017_vm8, 4294967295, %v16636_v31  ;;  %v13023_v33 = vsel %vm12950_vm6, %v3714_v51, -1e+09  ;;  %v3713_v51 = vmul.f32 0.088388346, %v9625_v56 }
 0x3e9   : > { %3808 = vmax.xlane.f32.xlu1 %v3807_v62  ;;  %v13012_v53 = vsel %vm12916_vm4, %v3719_v25, -1e+09  ;;  %16638 = vst [vmem:[#allocation187_spill] sm:$0xff] %v16637_v31  ;;  %v3724_v61 = vmul.f32 0.088388346, %v9644_v30  ;;  %v3819_v47 = vsel %vm3782_vm1, %v13023_v33, -inf }
 0x3ea   : > { %v3622_v17 = vpop.f32.mrf.mxu1  ;;  %v3834_v62 = vsel %vm3782_vm1, %v13012_v53, -inf  ;;  %v3711_v25 = vmul.f32 0.088388346, %v3544_v12  ;;  %v13053_v56 = vsel %vm12902_vm3, %v3713_v51, -1e+09 }
 0x3eb   : > { %3841 = vmax.xlane.f32.xlu0 %v3840_v21  ;;  %v13029_v21 = vsel %vm13017_vm8, %v3709_v23, -1e+09  ;;  %v3722_v29 = vmul.f32 0.088388346, %v3622_v17  ;;  %v13035_v30 = vsel %vm12925_vm5, %v3724_v61, -1e+09 }
 0x3ec   : > { %v13041_v12 = vsel %vm12916_vm4, %v3711_v25, -1e+09  ;;  %v3849_v23 = vsel %vm3782_vm1, %v13035_v30, -inf  ;;  %v9645_v25 = vpop.f32.mrf.mxu1 }
 0x3ed   : > { %3814 = vmax.xlane.f32.xlu1 %v3813_v55  ;;  %v3804_v55 = vsel %vm3782_vm1, %v13029_v21, -inf  ;;  %v13047_v17 = vsel %vm12950_vm6, %v3722_v29, -1e+09  ;;  %v3810_v61 = vsel %vm3782_vm1, %v13041_v12, -inf  ;;  %v3816_v29 = vsel %vm3782_vm1, %v13053_v56, -inf }
 0x3ee   : > { %v3625_v51 = vpop.f32.mrf.mxu1 }
 0x3ef   : > { %3835 = vmax.xlane.f32.xlu0 %v3834_v62  ;;  %v3716_v62 = vmul.f32 0.088388346, %v9628_v40 }
 0x3f1   : > { %3820 = vmax.xlane.f32.xlu1 %v3819_v47  ;;  %v3715_v47 = vmul.f32 0.088388346, %v3560_v63  ;;  %v13059_v40 = vsel %vm12925_vm5, %v3716_v62, -1e+09 }
 0x3f3   : > { %3805 = vmax.xlane.f32.xlu0 %v3804_v55  ;;  %v3843_v55 = vsel %vm3782_vm1, %v13047_v17, -inf  ;;  %v13065_v63 = vsel %vm12959_vm7, %v3715_v47, -1e+09  ;;  %v3717_v47 = vmul.f32 0.088388346, %v12979_v7 }
 0x3f4   : > { %v3822_v62 = vsel %vm3782_vm1, %v13065_v63, -inf }
 0x3f5   : > { %3850 = vmax.xlane.f32.xlu1 %v3849_v23  ;;  %v3725_v23 = vmul.f32 0.088388346, %v9645_v25 }
 0x3f7   : > { %3811 = vmax.xlane.f32.xlu0 %v3810_v61  ;;  %v3825_v61 = vsel %vm3782_vm1, %v13059_v40, -inf  ;;  %v13075_v25 = vsel %vm13017_vm8, %v3725_v23, -1e+09 }
 0x3f8   : > { %v3852_v26 = vsel %vm3782_vm1, %v13075_v25, -inf }
 0x3f9   : > { %3844 = vmax.xlane.f32.xlu1 %v3843_v55  ;;  %v3723_v55 = vmul.f32 0.088388346, %v3625_v51 }
 0x3fb   : > { %3817 = vmax.xlane.f32.xlu0 %v3816_v29  ;;  %v13082_v49 = vsel %vm12959_vm7, %v3723_v55, -1e+09 }
 0x3fc   : > { %v3846_v7 = vsel %vm3782_vm1, %v13082_v49, -inf }
 0x3fd   : > { %3826 = vmax.xlane.f32.xlu1 %v3825_v61 }
 0x3ff   : > { %3823 = vmax.xlane.f32.xlu0 %v3822_v62 }
 0x400   : > { %v9656_v29 = vpop.f32.mrf.mxu0 }
 0x401   : > { %v3728_v1 = vmul.f32 0.088388346, %v9656_v29 }
 0x402   : > { %v3671_v18 = vpop.f32.mrf.mxu0 }
 0x403   : > { %v3726_v61 = vmul.f32 0.088388346, %v3671_v18  ;;  %3853 = vmax.xlane.f32.xlu0 %v3852_v26  ;;  %v13094_v18 = vsel %vm13017_vm8, %v3717_v47, -1e+09  ;;  %v13098_v26 = vsel %vm12876_vm0, %v3728_v1, -1e+09 }
 0x404   : > { %v9657_v51 = vpop.f32.mrf.mxu0  ;;  %v3828_v39 = vsel %vm3782_vm1, %v13094_v18, -inf  ;;  %v3861_v19 = vsel %vm3782_vm1, %v13098_v26, -inf }
 0x405   : > { %v13086_v62 = vsel %vm12887_vm2, %v3726_v61, -1e+09  ;;  %v3729_v29 = vmul.f32 0.088388346, %v9657_v51 }
 0x406   : > { %v3674_v23 = vpop.f32.mrf.mxu0  ;;  %v3855_v44 = vsel %vm3782_vm1, %v13086_v62, -inf }
 0x407   : > { %v3727_v36 = vmul.f32 0.088388346, %v3674_v23  ;;  %3847 = vmax.xlane.f32.xlu0 %v3846_v7  ;;  %3856 = vmax.xlane.f32.xlu1 %v3855_v44 }
 0x408   : > { %v9660_v55 = vpop.f32.mrf.mxu0 }
 0x409   : > { %v3732_v23 = vmul.f32 0.088388346, %v9660_v55  ;;  %v13106_v44 = vsel %vm12916_vm4, %v3727_v36, -1e+09 }
 0x40a   : > { %v3687_v61 = vpop.f32.mrf.mxu0  ;;  %v3858_v9 = vsel %vm3782_vm1, %v13106_v44, -inf }
 0x40b   : > { %v3730_v7 = vmul.f32 0.088388346, %v3687_v61  ;;  %3829 = vmax.xlane.f32.xlu0 %v3828_v39  ;;  %3862 = vmax.xlane.f32.xlu1 %v3861_v19  ;;  %v13118_v19 = vsel %vm12902_vm3, %v3729_v29, -1e+09  ;;  %v13122_v36 = vsel %vm12925_vm5, %v3732_v23, -1e+09 }
 0x40c   : > { %v9661_v47 = vpop.f32.mrf.mxu0  ;;  %v3864_v39 = vsel %vm3782_vm1, %v13118_v19, -inf  ;;  %v3873_v61 = vsel %vm3782_vm1, %v13122_v36, -inf }
 0x40d   : > { %v13110_v1 = vsel %vm12950_vm6, %v3730_v7, -1e+09  ;;  %v3733_v7 = vmul.f32 0.088388346, %v9661_v47 }
 0x40e   : > { %v3690_v51 = vpop.f32.mrf.mxu0  ;;  %v3867_v22 = vsel %vm3782_vm1, %v13110_v1, -inf }
 0x40f   : > { %v3731_v55 = vmul.f32 0.088388346, %v3690_v51  ;;  %3859 = vmax.xlane.f32.xlu0 %v3858_v9  ;;  %3868 = vmax.xlane.f32.xlu1 %v3867_v22  ;;  %v13136_v29 = vsel %vm13017_vm8, %v3733_v7, -1e+09 }
 0x410   : > { %v3876_v23 = vsel %vm3782_vm1, %v13136_v29, -inf }
 0x411   : > { %v13130_v22 = vsel %vm12959_vm7, %v3731_v55, -1e+09 }
 0x412   : > { %v3870_v9 = vsel %vm3782_vm1, %v13130_v22, -inf }
 0x413   : > { %3865 = vmax.xlane.f32.xlu0 %v3864_v39  ;;  %3874 = vmax.xlane.f32.xlu1 %v3873_v61 }
 0x417   : > { %3871 = vmax.xlane.f32.xlu0 %v3870_v9 }
 0x41b   : > { %3877 = vmax.xlane.f32.xlu0 %v3876_v23 }
 0x42e   : > { %v3791_v51 = vpop.xlane.xlu1 %3790 }
 0x42f   : > { %v3881_v47 = vsub.f32 %v12897_v41, %v3791_v51 }
 0x430   : > { %v3785_v39 = vpop.xlane.xlu0 %3784 }
 0x431   : > { %v3915_v61 = vmul.f32 1.442695, %v3881_v47  ;;  %v3879_v55 = vsub.f32 %v12909_v54, %v3785_v39 }
 0x433   : > { %10350 = vpow2.f32 %v3915_v61  ;;  %v3911_v58 = vmul.f32 1.442695, %v3879_v55 }
 0x434   : > { %v3794_v50 = vpop.xlane.xlu0 %3793  ;;  %v3788_v32 = vpop.xlane.xlu1 %3787 }
 0x435   : > { %10352 = vpow2.f32 %v3911_v58  ;;  %v3882_v9 = vsub.f32 %v12922_v46, %v3794_v50  ;;  %v3880_v7 = vsub.f32 %v12934_v3, %v3788_v32 }
 0x437   : > { %v3917_v31 = vmul.f32 1.442695, %v3882_v9  ;;  %v3913_v4 = vmul.f32 1.442695, %v3880_v7 }
 0x438   : > { %v3803_v45 = vpop.xlane.xlu1 %3802 }
 0x439   : > { %10354 = vpow2.f32 %v3917_v31 }
 0x43a   : > { %10356 = vpow2.f32 %v3913_v4 }
 0x43c   : > { %v3797_v23 = vpop.xlane.xlu1 %3796  ;;  %v3800_v41 = vpop.xlane.xlu0 %3799 }
 0x43d   : > { %v3883_v51 = vsub.f32 %v12965_v57, %v3797_v23  ;;  %v3884_v54 = vsub.f32 %v12971_v11, %v3800_v41  ;;  %v3885_v41 = vsub.f32 %v12947_v10, %v3803_v45 }
 0x43f   : > { %v3919_v47 = vmul.f32 1.442695, %v3883_v51  ;;  %v3921_v39 = vmul.f32 1.442695, %v3884_v54 }
 0x440   : > { %v13146_v61 = vpop.eup %10350 }
 0x441   : > { %10358 = vpow2.f32 %v3919_v47  ;;  %v3981_v50 = vsel %vm3782_vm1, %v13146_v61, 0.0 }
 0x442   : > { %v13150_v46 = vpop.eup %10352  ;;  %10360 = vpow2.f32 %v3921_v39  ;;  %3982 = vadd.xlane.f32.xlu1 %v3981_v50 }
 0x443   : > { %v3975_v4 = vsel %vm3782_vm1, %v13150_v46, 0.0 }
 0x446   : > { %v13154_v3 = vpop.eup %10354  ;;  %3976 = vadd.xlane.f32.xlu1 %v3975_v4  ;;  %v3923_v4 = vmul.f32 1.442695, %v3885_v41 }
 0x447   : > { %v3984_v11 = vsel %vm3782_vm1, %v13154_v3, 0.0  ;;  %v13158_v32 = vpop.eup %10356 }
 0x448   : > { %3985 = vadd.xlane.f32.xlu0 %v3984_v11  ;;  %v3978_v58 = vsel %vm3782_vm1, %v13158_v32, 0.0 }
 0x44c   : > { %3979 = vadd.xlane.f32.xlu0 %v3978_v58 }
 0x44e   : > { %v13162_v57 = vpop.eup %10358 }
 0x44f   : > { %v13164_v31 = vpop.eup %10360  ;;  %v3987_v55 = vsel %vm3782_vm1, %v13162_v57, 0.0 }
 0x450   : > { %3988 = vadd.xlane.f32.xlu1 %v3987_v55  ;;  %v3990_v9 = vsel %vm3782_vm1, %v13164_v31, 0.0 }
 0x451   : > { %3991 = vadd.xlane.f32.xlu0 %v3990_v9 }
 0x46e   : > { %v3839_v7 = vpop.xlane.xlu1 %3838 }
 0x46f   : > { %v3897_v23 = vsub.f32 %v12983_v52, %v3839_v7 }
 0x470   : > { %v3833_v51 = vpop.xlane.xlu0 %3832 }
 0x471   : > { %v3947_v54 = vmul.f32 1.442695, %v3897_v23  ;;  %v3895_v47 = vsub.f32 %v12989_v59, %v3833_v51 }
 0x472   : > { %v3809_v39 = vpop.xlane.xlu1 %3808 }
 0x473   : > { %10362 = vpow2.f32 %v3947_v54  ;;  %v3943_v50 = vmul.f32 1.442695, %v3895_v47  ;;  %v3887_v11 = vsub.f32 %v12993_v6, %v3809_v39 }
 0x474   : > { %v3842_v58 = vpop.xlane.xlu0 %3841 }
 0x475   : > { %10364 = vpow2.f32 %v3943_v50  ;;  %v3898_v55 = vsub.f32 %v12999_v38, %v3842_v58  ;;  %v3927_v52 = vmul.f32 1.442695, %v3887_v11 }
 0x476   : > { %v3815_v9 = vpop.xlane.xlu1 %3814  ;;  %10366 = vpow2.f32 %v3923_v4 }
 0x477   : > { %v3949_v16 = vmul.f32 1.442695, %v3898_v55  ;;  %v3889_v45 = vsub.f32 %v13006_v48, %v3815_v9 }
 0x478   : > { %v3836_v10 = vpop.xlane.xlu0 %3835 }
 0x479   : > { %10368 = vpow2.f32 %v3949_v16  ;;  %v3896_v59 = vsub.f32 %v13012_v53, %v3836_v10  ;;  %v3931_v41 = vmul.f32 1.442695, %v3889_v45 }
 0x47a   : > { %v3821_v7 = vpop.xlane.xlu1 %3820  ;;  %10370 = vpow2.f32 %v3927_v52 }
 0x47b   : > { %v3945_v23 = vmul.f32 1.442695, %v3896_v59  ;;  %v3891_v6 = vsub.f32 %v13023_v33, %v3821_v7 }
 0x47c   : > { %v3806_v51 = vpop.xlane.xlu0 %3805 }
 0x47d   : > { %10372 = vpow2.f32 %v3945_v23  ;;  %v3886_v38 = vsub.f32 %v13029_v21, %v3806_v51  ;;  %v3935_v48 = vmul.f32 1.442695, %v3891_v6 }
 0x47e   : > { %v3851_v54 = vpop.xlane.xlu1 %3850  ;;  %10374 = vpow2.f32 %v3931_v41 }
 0x47f   : > { %v3925_v47 = vmul.f32 1.442695, %v3886_v38  ;;  %v3901_v16 = vsub.f32 %v13035_v30, %v3851_v54 }
 0x480   : > { %v13179_v39 = vpop.eup %10362  ;;  %v3812_v50 = vpop.xlane.xlu0 %3811 }
 0x481   : > { %10376 = vpow2.f32 %v3925_v47  ;;  %v3888_v53 = vsub.f32 %v13041_v12, %v3812_v50  ;;  %v4029_v4 = vsel %vm3782_vm1, %v13179_v39, 0.0  ;;  %v3955_v58 = vmul.f32 1.442695, %v3901_v16 }
 0x482   : > { %v13185_v33 = vpop.eup %10364  ;;  %v3845_v11 = vpop.xlane.xlu1 %3844  ;;  %4030 = vadd.xlane.f32.xlu1 %v4029_v4  ;;  %10378 = vpow2.f32 %v3935_v48 }
 0x483   : > { %v3929_v21 = vmul.f32 1.442695, %v3888_v53  ;;  %v3899_v55 = vsub.f32 %v13047_v17, %v3845_v11  ;;  %v13188_v52 = vpop.eup %10366  ;;  %v4023_v12 = vsel %vm3782_vm1, %v13185_v33, 0.0 }
 0x484   : > { %v3818_v9 = vpop.xlane.xlu0 %3817  ;;  %v3993_v51 = vsel %vm3782_vm1, %v13188_v52, 0.0 }
 0x485   : > { %10380 = vpow2.f32 %v3929_v21  ;;  %v3890_v30 = vsub.f32 %v13053_v56, %v3818_v9  ;;  %v3951_v23 = vmul.f32 1.442695, %v3899_v55 }
 0x486   : > { %v13193_v45 = vpop.eup %10368  ;;  %v3827_v10 = vpop.xlane.xlu1 %3826  ;;  %4024 = vadd.xlane.f32.xlu1 %v4023_v12  ;;  %10382 = vpow2.f32 %v3955_v58 }
 0x487   : > { %v3933_v59 = vmul.f32 1.442695, %v3890_v30  ;;  %v4032_v7 = vsel %vm3782_vm1, %v13193_v45, 0.0  ;;  %v3893_v17 = vsub.f32 %v13059_v40, %v3827_v10  ;;  %v13198_v6 = vpop.eup %10370 }
 0x488   : > { %v3824_v41 = vpop.xlane.xlu0 %3823  ;;  %4033 = vadd.xlane.f32.xlu0 %v4032_v7 }
 0x489   : > { %10384 = vpow2.f32 %v3933_v59  ;;  %v3892_v56 = vsub.f32 %v13065_v63, %v3824_v41  ;;  %v3939_v48 = vmul.f32 1.442695, %v3893_v17  ;;  %v3999_v63 = vsel %vm3782_vm1, %v13198_v6, 0.0 }
 0x48a   : > { %v13203_v38 = vpop.eup %10372  ;;  %3994 = vadd.xlane.f32.xlu1 %v3993_v51  ;;  %10386 = vpow2.f32 %v3951_v23 }
 0x48b   : > { %v3937_v54 = vmul.f32 1.442695, %v3892_v56  ;;  %v4026_v47 = vsel %vm3782_vm1, %v13203_v38, 0.0  ;;  %v13207_v16 = vpop.eup %10374 }
 0x48c   : > { %v3854_v40 = vpop.xlane.xlu0 %3853  ;;  %4027 = vadd.xlane.f32.xlu0 %v4026_v47  ;;  %v4005_v30 = vsel %vm3782_vm1, %v13207_v16, 0.0 }
 0x48d   : > { %10388 = vpow2.f32 %v3937_v54  ;;  %v3902_v50 = vsub.f32 %v13075_v25, %v3854_v40 }
 0x48e   : > { %v13212_v53 = vpop.eup %10376  ;;  %4000 = vadd.xlane.f32.xlu1 %v3999_v63  ;;  %10390 = vpow2.f32 %v3939_v48 }
 0x48f   : > { %v3957_v4 = vmul.f32 1.442695, %v3902_v50  ;;  %v3996_v11 = vsel %vm3782_vm1, %v13212_v53, 0.0  ;;  %v13216_v55 = vpop.eup %10378 }
 0x490   : > { %v3848_v21 = vpop.xlane.xlu0 %3847  ;;  %v3857_v58 = vpop.xlane.xlu1 %3856  ;;  %3997 = vadd.xlane.f32.xlu0 %v3996_v11  ;;  %v4011_v56 = vsel %vm3782_vm1, %v13216_v55, 0.0 }
 0x491   : > { %10392 = vpow2.f32 %v3957_v4  ;;  %v3900_v9 = vsub.f32 %v13082_v49, %v3848_v21  ;;  %v3903_v25 = vsub.f32 %v13086_v62, %v3857_v58 }
 0x492   : > { %v13222_v12 = vpop.eup %10380  ;;  %4006 = vadd.xlane.f32.xlu1 %v4005_v30 }
 0x493   : > { %v3953_v10 = vmul.f32 1.442695, %v3900_v9  ;;  %v3959_v59 = vmul.f32 1.442695, %v3903_v25  ;;  %v4002_v7 = vsel %vm3782_vm1, %v13222_v12, 0.0  ;;  %v13226_v41 = vpop.eup %10382 }
 0x494   : > { %v3830_v23 = vpop.xlane.xlu0 %3829  ;;  %v3863_v17 = vpop.xlane.xlu1 %3862  ;;  %4003 = vadd.xlane.f32.xlu0 %v4002_v7  ;;  %v4041_v4 = vsel %vm3782_vm1, %v13226_v41, 0.0 }
 0x495   : > { %10394 = vpow2.f32 %v3953_v10  ;;  %v3894_v49 = vsub.f32 %v13094_v18, %v3830_v23  ;;  %v3905_v62 = vsub.f32 %v13098_v26, %v3863_v17 }
 0x496   : > { %v13232_v51 = vpop.eup %10384  ;;  %10396 = vpow2.f32 %v3959_v59  ;;  %4012 = vadd.xlane.f32.xlu1 %v4011_v56 }
 0x497   : > { %v3941_v54 = vmul.f32 1.442695, %v3894_v49  ;;  %v3963_v47 = vmul.f32 1.442695, %v3905_v62  ;;  %v4008_v48 = vsel %vm3782_vm1, %v13232_v51, 0.0  ;;  %v13236_v63 = vpop.eup %10386 }
 0x498   : > { %v3860_v40 = vpop.xlane.xlu0 %3859  ;;  %v3869_v50 = vpop.xlane.xlu1 %3868  ;;  %4009 = vadd.xlane.f32.xlu0 %v4008_v48  ;;  %v4035_v59 = vsel %vm3782_vm1, %v13236_v63, 0.0 }
 0x499   : > { %10398 = vpow2.f32 %v3941_v54  ;;  %v3904_v18 = vsub.f32 %v13106_v44, %v3860_v40  ;;  %v3907_v26 = vsub.f32 %v13110_v1, %v3869_v50 }
 0x49a   : > { %v13242_v11 = vpop.eup %10388  ;;  %10400 = vpow2.f32 %v3963_v47  ;;  %4042 = vadd.xlane.f32.xlu1 %v4041_v4 }
 0x49b   : > { %v3961_v21 = vmul.f32 1.442695, %v3904_v18  ;;  %v3967_v58 = vmul.f32 1.442695, %v3907_v26  ;;  %v4014_v9 = vsel %vm3782_vm1, %v13242_v11, 0.0  ;;  %v13246_v10 = vpop.eup %10390 }
 0x49c   : > { %v3866_v25 = vpop.xlane.xlu0 %3865  ;;  %v3875_v30 = vpop.xlane.xlu1 %3874  ;;  %4015 = vadd.xlane.f32.xlu0 %v4014_v9 }
 0x49d   : > { %10402 = vpow2.f32 %v3961_v21  ;;  %v3906_v44 = vsub.f32 %v13118_v19, %v3866_v25  ;;  %v3909_v1 = vsub.f32 %v13122_v36, %v3875_v30  ;;  %v4017_v19 = vsel %vm3782_vm1, %v13246_v10, 0.0 }
 0x49e   : > { %v13252_v7 = vpop.eup %10392  ;;  %10404 = vpow2.f32 %v3967_v58  ;;  %4036 = vadd.xlane.f32.xlu1 %v4035_v59 }
 0x49f   : > { %v3965_v23 = vmul.f32 1.442695, %v3906_v44  ;;  %v3971_v17 = vmul.f32 1.442695, %v3909_v1  ;;  %v4044_v49 = vsel %vm3782_vm1, %v13252_v7, 0.0 }
 0x4a0   : > { %4045 = vadd.xlane.f32.xlu0 %v4044_v49  ;;  %v3872_v62 = vpop.xlane.xlu0 %3871 }
 0x4a1   : > { %10406 = vpow2.f32 %v3965_v23  ;;  %v3908_v56 = vsub.f32 %v13130_v22, %v3872_v62 }
 0x4a2   : > { %v13259_v36 = vpop.eup %10394  ;;  %10408 = vpow2.f32 %v3971_v17  ;;  %4018 = vadd.xlane.f32.xlu1 %v4017_v19 }
 0x4a3   : > { %v13261_v54 = vpop.eup %10396  ;;  %v3969_v47 = vmul.f32 1.442695, %v3908_v56  ;;  %v4038_v48 = vsel %vm3782_vm1, %v13259_v36, 0.0 }
 0x4a4   : > { %4039 = vadd.xlane.f32.xlu0 %v4038_v48  ;;  %v3878_v40 = vpop.xlane.xlu0 %3877  ;;  %v4047_v22 = vsel %vm3782_vm1, %v13261_v54, 0.0 }
 0x4a5   : > { %10410 = vpow2.f32 %v3969_v47  ;;  %v3910_v50 = vsub.f32 %v13136_v29, %v3878_v40 }
 0x4a6   : > { %v13268_v18 = vpop.eup %10398  ;;  %4048 = vadd.xlane.f32.xlu1 %v4047_v22 }
 0x4a7   : > { %v13270_v26 = vpop.eup %10400  ;;  %v3973_v4 = vmul.f32 1.442695, %v3910_v50  ;;  %v4020_v21 = vsel %vm3782_vm1, %v13268_v18, 0.0 }
 0x4a8   : > { %4021 = vadd.xlane.f32.xlu0 %v4020_v21  ;;  %v4053_v58 = vsel %vm3782_vm1, %v13270_v26, 0.0 }
 0x4a9   : > { %10412 = vpow2.f32 %v3973_v4 }
 0x4aa   : > { %v13276_v9 = vpop.eup %10402  ;;  %4054 = vadd.xlane.f32.xlu1 %v4053_v58 }
 0x4ab   : > { %v13278_v29 = vpop.eup %10404  ;;  %v4050_v25 = vsel %vm3782_vm1, %v13276_v9, 0.0 }
 0x4ac   : > { %4051 = vadd.xlane.f32.xlu0 %v4050_v25  ;;  %v4059_v30 = vsel %vm3782_vm1, %v13278_v29, 0.0 }
 0x4ae   : > { %v13284_v44 = vpop.eup %10406  ;;  %4060 = vadd.xlane.f32.xlu1 %v4059_v30 }
 0x4af   : > { %v13286_v1 = vpop.eup %10408  ;;  %v4056_v59 = vsel %vm3782_vm1, %v13284_v44, 0.0 }
 0x4b0   : > { %4057 = vadd.xlane.f32.xlu0 %v4056_v59  ;;  %v4065_v23 = vsel %vm3782_vm1, %v13286_v1, 0.0 }
 0x4b2   : > { %v13292_v17 = vpop.eup %10410  ;;  %4066 = vadd.xlane.f32.xlu1 %v4065_v23 }
 0x4b3   : > { %v4062_v49 = vsel %vm3782_vm1, %v13292_v17, 0.0 }
 0x4b4   : > { %4063 = vadd.xlane.f32.xlu0 %v4062_v49 }
 0x4b6   : > { %v13296_v62 = vpop.eup %10412 }
 0x4b7   : > { %v4068_v56 = vsel %vm3782_vm1, %v13296_v62, 0.0 }
 0x4b8   : > { %4069 = vadd.xlane.f32.xlu0 %v4068_v56 }
 0x4cb   : > { %v3983_v19 = vpop.xlane.xlu1 %3982 }
 0x4cf   : > { %v3977_v47 = vpop.xlane.xlu1 %3976 }
 0x4d1   : > { %v3986_v48 = vpop.xlane.xlu0 %3985 }
 0x4d2   : > { %10414 = vrcp.f32 %v3986_v48 }
 0x4d3   : > { %10416 = vrcp.f32 %v3977_v47 }
 0x4d4   : > { %10418 = vrcp.f32 %v3983_v19 }
 0x4d5   : > { %v3980_v40 = vpop.xlane.xlu0 %3979 }
 0x4d6   : > { %10420 = vrcp.f32 %v3980_v40 }
 0x4d9   : > { %v3989_v50 = vpop.xlane.xlu1 %3988 }
 0x4da   : > { %10422 = vrcp.f32 %v3989_v50  ;;  %v3992_v22 = vpop.xlane.xlu0 %3991 }
 0x4db   : > { %10424 = vrcp.f32 %v3992_v22 }
 0x4df   : > { %v10415_v4 = vpop.eup %10414 }
 0x4e0   : > { %v10417_v21 = vpop.eup %10416  ;;  %v4106_v30 = vmul.f32 %v10415_v4, %v13154_v3 }
 0x4e1   : > { %v10419_v58 = vpop.eup %10418  ;;  %v4103_v59 = vmul.f32 %v10417_v21, %v13150_v46 }
 0x4e2   : > { %v4105_v49 = vmul.f32 %v10419_v58, %v13146_v61 }
 0x4e3   : > { %v10421_v25 = vpop.eup %10420 }
 0x4e4   : > { %v4104_v23 = vmul.f32 %v10421_v25, %v13158_v32  ;;  %v4136_v47 = vpack.c.bf16 %v4106_v30, %v4105_v49 }
 0x4e6   : > { %v4135_v56 = vpack.c.bf16 %v4104_v23, %v4103_v59 }
 0x4e7   : > { %v10423_v19 = vpop.eup %10422 }
 0x4e8   : > { %v10425_v48 = vpop.eup %10424  ;;  %9670 = vmatprep.mubr.msk.bf16.mxu1 %vm3782_vm1, %v4135_v56  ;;  %v4107_v40 = vmul.f32 %v10423_v19, %v13162_v57 }
 0x4e9   : > { %9671 = vmatmul.mubr.msk.bf16.vlgmr.msra.gmra.mxu1 %vm3782_vm1, %v4136_v47  ;;  %v4108_v50 = vmul.f32 %v10425_v48, %v13164_v31  ;;  %v2800_v47 = vadd.f32 %v12508_v60, %v12857_v20 }
 0x4ea   : > { %9679 = vmatpush3.bf16.msra.mxu1 %v12825_v42 }
 0x4eb   : > { %9680 = vmatprep.subr.bf16.mxu1 %v12817_v35  ;;  %v4137_v46 = vpack.c.bf16 %v4108_v50, %v4107_v40 }
 0x4ed   : > { %9674 = vmatprep.mubr.msk.bf16.mxu1 %vm3782_vm1, %v4137_v46 }
 0x4ee   : > { %9681 = vmatpush3.bf16.msra.mxu1 %v12817_v35 }
 0x4ef   : > { %9682 = vmatprep.subr.bf16.mxu1 %v12809_v5 }
 0x4f2   : > { %9683 = vmatpush3.bf16.msra.mxu1 %v12809_v5 }
 0x4f3   : > { %9684 = vmatprep.subr.bf16.mxu1 %v12801_v14 }
 0x4f6   : > { %9685 = vmatpush3.bf16.msra.mxu1 %v12801_v14 }
 0x4f7   : > { %9710 = vmatprep.subr.bf16.mxu1 %v12977_v15 }
 0x50b   : > { %v4031_v61 = vpop.xlane.xlu1 %4030 }
 0x50f   : > { %v4025_v3 = vpop.xlane.xlu1 %4024 }
 0x511   : > { %v4034_v42 = vpop.xlane.xlu0 %4033 }
 0x512   : > { %10426 = vrcp.f32 %v4034_v42 }
 0x513   : > { %v3995_v32 = vpop.xlane.xlu1 %3994  ;;  %10428 = vrcp.f32 %v4025_v3 }
 0x514   : > { %10430 = vrcp.f32 %v4031_v61  ;;  %v2796_v61 = vadd.f32 %v12493_v2, %v12857_v20 }
 0x515   : > { %v4028_v57 = vpop.xlane.xlu0 %4027 }
 0x516   : > { %10432 = vrcp.f32 %v4028_v57 }
 0x517   : > { %v4001_v35 = vpop.xlane.xlu1 %4000  ;;  %10434 = vrcp.f32 %v3995_v32  ;;  %v3366_v32 = vpack.c.bf16 %v2800_v47, %v2796_v61 }
 0x519   : > { %v3998_v31 = vpop.xlane.xlu0 %3997 }
 0x51a   : > { %10436 = vrcp.f32 %v3998_v31  ;;  %v2790_v31 = vadd.f32 %v12487_v0, %v12857_v20 }
 0x51b   : > { %v4007_v5 = vpop.xlane.xlu1 %4006  ;;  %10438 = vrcp.f32 %v4001_v35 }
 0x51d   : > { %v4004_v22 = vpop.xlane.xlu0 %4003 }
 0x51e   : > { %10440 = vrcp.f32 %v4004_v22 }
 0x51f   : > { %v4013_v14 = vpop.xlane.xlu1 %4012  ;;  %v10427_v4 = vpop.eup %10426  ;;  %10442 = vrcp.f32 %v4007_v5 }
 0x520   : > { %v10429_v21 = vpop.eup %10428  ;;  %v4122_v59 = vmul.f32 %v10427_v4, %v13193_v45 }
 0x521   : > { %v4010_v58 = vpop.xlane.xlu0 %4009  ;;  %v10431_v25 = vpop.eup %10430  ;;  %v4119_v49 = vmul.f32 %v10429_v21, %v13185_v33 }
 0x522   : > { %10444 = vrcp.f32 %v4010_v58  ;;  %v4121_v48 = vmul.f32 %v10431_v25, %v13179_v39 }
 0x523   : > { %v10433_v30 = vpop.eup %10432  ;;  %v4043_v23 = vpop.xlane.xlu1 %4042  ;;  %10446 = vrcp.f32 %v4013_v14  ;;  %v2786_v14 = vadd.f32 %v12484_v43, %v12857_v20 }
 0x524   : > { %v4120_v56 = vmul.f32 %v10433_v30, %v13203_v38  ;;  %v10435_v19 = vpop.eup %10434  ;;  %v4144_v45 = vpack.c.bf16 %v4122_v59, %v4121_v48 }
 0x525   : > { %v4016_v40 = vpop.xlane.xlu0 %4015  ;;  %v4109_v33 = vmul.f32 %v10435_v19, %v13188_v52 }
 0x526   : > { %10448 = vrcp.f32 %v4016_v40  ;;  %v4143_v50 = vpack.c.bf16 %v4120_v56, %v4119_v49  ;;  %v2776_v56 = vadd.f32 %v12476_v13, %v12857_v20  ;;  %v2850_v13 = vadd.f32 %v12616_v8, %v12857_v20 }
 0x527   : > { %v10437_v46 = vpop.eup %10436  ;;  %v4037_v3 = vpop.xlane.xlu1 %4036 }
 0x528   : > { %9702 = vmatprep.mubr.msk.bf16.mxu0 %vm3782_vm1, %v4143_v50  ;;  %v4110_v38 = vmul.f32 %v10437_v46, %v13212_v53  ;;  %v10439_v42 = vpop.eup %10438 }
 0x529   : > { %9703 = vmatmul.mubr.msk.bf16.vlgmr.msra.gmra.mxu0 %vm3782_vm1, %v4144_v45  ;;  %v4046_v60 = vpop.xlane.xlu0 %4045  ;;  %v4111_v35 = vmul.f32 %v10439_v42, %v13198_v6  ;;  %v16641_v42 = vld [vmem:[#allocation173_spill] sm:$0xff] }
 0x52a   : > { %9727 = vmatpush3.bf16.xpose.msra.mxu0 %v12873_v34  ;;  %v4138_v39 = vpack.c.bf16 %v4110_v38, %v4109_v33  ;;  %10450 = vrcp.f32 %v4046_v60 }
 0x52b   : > { %v10441_v57 = vpop.eup %10440  ;;  %9728 = vmatprep.subr.bf16.mxu0 %v3366_v32  ;;  %v4019_v2 = vpop.xlane.xlu1 %4018  ;;  %10452 = vrcp.f32 %v4037_v3 }
 0x52c   : > { %9675 = vmatmul.mubr.msk.bf16.gmra.mxu1 %vm3782_vm1, %v4138_v39  ;;  %v4112_v52 = vmul.f32 %v10441_v57, %v13222_v12  ;;  %v10443_v53 = vpop.eup %10442  ;;  %10454 = vrcp.f32 %v4043_v23  ;;  %v3364_v12 = vpack.c.bf16 %v2790_v31, %v2786_v14  ;;  %v16644_v31 = vld [vmem:[#allocation94_spill] sm:$0xff] }
 0x52d   : > { %v4040_v5 = vpop.xlane.xlu0 %4039  ;;  %v4113_v21 = vmul.f32 %v10443_v53, %v13207_v16  ;;  %v16643_v53 = vld [vmem:[#allocation95_spill] sm:$0xff] }
 0x52e   : > { %10456 = vrcp.f32 %v4040_v5  ;;  %v4139_v34 = vpack.c.bf16 %v4112_v52, %v4111_v35  ;;  %v16645_v5 = vpack.c.bf16 %v16643_v53, %v16644_v31  ;;  %v16669_v53 = vld [vmem:[#allocation112_spill] sm:$0xff] }
 0x52f   : > { %v10445_v22 = vpop.eup %10444  ;;  %v4049_v4 = vpop.xlane.xlu1 %4048  ;;  %10458 = vrcp.f32 %v4019_v2  ;;  %v2856_v31 = vadd.f32 %v16669_v53, %v12857_v20  ;;  %v16694_v53 = vld [vmem:[#allocation121_spill] sm:$0xff] }
 0x530   : > { %v4114_v58 = vmul.f32 %v10445_v22, %v13232_v51  ;;  %9686 = vmatprep.mubr.msk.bf16.mxu1 %vm3782_vm1, %v4139_v34  ;;  %v10447_v6 = vpop.eup %10446  ;;  %v2780_v51 = vadd.f32 %v12481_v27, %v12857_v20  ;;  %v16646_v22 = vld [vmem:[#allocation122_spill] sm:$0xff] }
 0x531   : > { %v4022_v25 = vpop.xlane.xlu0 %4021  ;;  %v4115_v43 = vmul.f32 %v10447_v6, %v13216_v55  ;;  %v2880_v14 = vadd.f32 %v16646_v22, %v12857_v20 }
 0x532   : > { %v4140_v0 = vpack.c.bf16 %v4114_v58, %v4113_v21  ;;  %9729 = vmatpush3.bf16.xpose.msra.mxu0 %v3366_v32  ;;  %10460 = vrcp.f32 %v4022_v25  ;;  %v16647_v58 = vld [vmem:[#allocation120_spill] sm:$0xff] }
 0x533   : > { %v10449_v30 = vpop.eup %10448  ;;  %9730 = vmatprep.subr.bf16.mxu0 %v3364_v12  ;;  %v4055_v59 = vpop.xlane.xlu1 %4054  ;;  %10462 = vrcp.f32 %v4049_v4  ;;  %v2876_v6 = vadd.f32 %v16647_v58, %v12857_v20 }
 0x534   : > { %9687 = vmatmul.mubr.msk.bf16.vlgmr.msra.gmra.mxu1 %vm3782_vm1, %v4140_v0  ;;  %v4116_v16 = vmul.f32 %v10449_v30, %v13242_v11  ;;  %v3362_v11 = vpack.c.bf16 %v2780_v51, %v2776_v56  ;;  %v16652_v51 = vld [vmem:[#allocation104_spill] sm:$0xff]  ;;  %v16653_v56 = vld [vmem:[#allocation102_spill] sm:$0xff] }
 0x535   : > { %9711 = vmatpush3.bf16.msra.mxu1 %v12977_v15  ;;  %v4052_v23 = vpop.xlane.xlu0 %4051 }
 0x536   : > { %9712 = vmatprep.subr.bf16.mxu1 %v12943_v37  ;;  %10464 = vrcp.f32 %v4052_v23  ;;  %v4141_v49 = vpack.c.bf16 %v4116_v16, %v4115_v43  ;;  %v16650_v43 = vld [vmem:[#allocation97_spill] sm:$0xff]  ;;  %v2836_v23 = vadd.f32 %v16652_v51, %v12857_v20 }
 0x537   : > { %v4061_v19 = vpop.xlane.xlu1 %4060  ;;  %v10451_v47 = vpop.eup %10450  ;;  %10466 = vrcp.f32 %v4055_v59  ;;  %v16649_v59 = vld [vmem:[#allocation98_spill] sm:$0xff] }
 0x538   : > { %9690 = vmatprep.mubr.msk.bf16.mxu1 %vm3782_vm1, %v4141_v49  ;;  %v10453_v55 = vpop.eup %10452  ;;  %v4126_v40 = vmul.f32 %v10451_v47, %v13252_v7  ;;  %v16640_v7 = vld [vmem:[#allocation109_spill] sm:$0xff]  ;;  %v16651_v16 = vpack.c.bf16 %v16649_v59, %v16650_v43  ;;  %v16676_v59 = vld [vmem:[#allocation139_spill] sm:$0xff] }
 0x539   : > { %9713 = vmatpush3.bf16.msra.mxu1 %v12943_v37  ;;  %v4058_v27 = vpop.xlane.xlu0 %4057  ;;  %v10455_v48 = vpop.eup %10454  ;;  %v4123_v50 = vmul.f32 %v10453_v55, %v13236_v63  ;;  %v2890_v37 = vadd.f32 %v12680_v24, %v12857_v20  ;;  %v2846_v38 = vadd.f32 %v16640_v7, %v12857_v20  ;;  %v16656_v55 = vld [vmem:[#allocation93_spill] sm:$0xff]  ;;  %v16661_v7 = vld [vmem:[#allocation116_spill] sm:$0xff]  ;;  %v2926_v43 = vadd.f32 %v16676_v59, %v12857_v20 }
 0x53a   : > { %9714 = vmatprep.subr.bf16.mxu1 %v12892_v28  ;;  %9731 = vmatpush3.bf16.xpose.msra.mxu0 %v3364_v12  ;;  %10468 = vrcp.f32 %v4058_v27  ;;  %v4125_v33 = vmul.f32 %v10455_v48, %v13226_v41  ;;  %v16648_v12 = vld [vmem:[#allocation107_spill] sm:$0xff] }
 0x53b   : > { %v10457_v15 = vpop.eup %10456  ;;  %9732 = vmatprep.subr.bf16.mxu0 %v3362_v11  ;;  %10470 = vrcp.f32 %v4061_v19  ;;  %v4067_v45 = vpop.xlane.xlu1 %4066  ;;  %v3376_v39 = vpack.c.bf16 %v2850_v13, %v2846_v38  ;;  %v2840_v25 = vadd.f32 %v16648_v12, %v12857_v20  ;;  %v16654_v19 = vld [vmem:[#allocation101_spill] sm:$0xff]  ;;  %v16658_v13 = vld [vmem:[#allocation118_spill] sm:$0xff]  ;;  %v2866_v38 = vadd.f32 %v16661_v7, %v12857_v20 }
 0x53c   : > { %v4124_v46 = vmul.f32 %v10457_v15, %v13259_v36  ;;  %v10459_v61 = vpop.eup %10458  ;;  %v16642_v36 = vld [vmem:[#allocation124_spill] sm:$0xff]  ;;  %v4146_v60 = vpack.c.bf16 %v4126_v40, %v4125_v33  ;;  %v16655_v47 = vpack.c.bf16 %v16653_v56, %v16654_v19  ;;  %v16679_v19 = vld [vmem:[#allocation126_spill] sm:$0xff] }
 0x53d   : > { %9715 = vmatpush3.bf16.msra.mxu1 %v12892_v28  ;;  %v4064_v3 = vpop.xlane.xlu0 %4063  ;;  %v2886_v32 = vadd.f32 %v16642_v36, %v12857_v20  ;;  %v4117_v24 = vmul.f32 %v10459_v61, %v13246_v10  ;;  %v16663_v36 = vld [vmem:[#allocation108_spill] sm:$0xff] }
 0x53e   : > { %9716 = vmatprep.subr.bf16.mxu1 %v16641_v42  ;;  %10472 = vrcp.f32 %v4064_v3  ;;  %v4145_v8 = vpack.c.bf16 %v4124_v46, %v4123_v50  ;;  %v2870_v50 = vadd.f32 %v16658_v13, %v12857_v20  ;;  %v16659_v46 = vld [vmem:[#allocation123_spill] sm:$0xff]  ;;  %v16660_v3 = vld [vmem:[#allocation110_spill] sm:$0xff] }
 0x53f   : > { %v10461_v63 = vpop.eup %10460  ;;  %10474 = vrcp.f32 %v4067_v45  ;;  %v3384_v57 = vpack.c.bf16 %v2890_v37, %v2886_v32  ;;  %v2459_v61 = vadd.f32 %v16659_v46, %v16656_v55  ;;  %v2423_v33 = vadd.f32 %v16660_v3, %v16656_v55  ;;  %v16684_v46 = vld [vmem:[#allocation151_spill] sm:$0xff] }
 0x540   : > { %9706 = vmatprep.mubr.msk.bf16.mxu0 %vm3782_vm1, %v4145_v8  ;;  %v4118_v28 = vmul.f32 %v10461_v63, %v13268_v18  ;;  %v10463_v41 = vpop.eup %10462  ;;  %v2419_v32 = vadd.f32 %v16663_v36, %v16656_v55  ;;  %v16689_v36 = vld [vmem:[#allocation135_spill] sm:$0xff] }
 0x541   : > { %9717 = vmatpush3.bf16.msra.mxu1 %v16641_v42  ;;  %9707 = vmatmul.mubr.msk.bf16.gmra.mxu0 %vm3782_vm1, %v4146_v60  ;;  %v4070_v2 = vpop.xlane.xlu0 %4069  ;;  %v4127_v10 = vmul.f32 %v10463_v41, %v13261_v54  ;;  %v3380_v60 = vpack.c.bf16 %v2870_v50, %v2866_v38  ;;  %v16667_v41 = vld [vmem:[#allocation100_spill] sm:$0xff]  ;;  %v16687_v38 = vld [vmem:[#allocation115_spill] sm:$0xff] }
 0x542   : > { %9733 = vmatpush3.bf16.xpose.msra.mxu0 %v3362_v11  ;;  %9742 = vmatprep.subr.bf16.mxu1 %v3376_v39  ;;  %10476 = vrcp.f32 %v4070_v2  ;;  %v4142_v35 = vpack.c.bf16 %v4118_v28, %v4117_v24  ;;  %v16657_v11 = vld [vmem:[#allocation125_spill] sm:$0xff] }
 0x543   : > { %v10465_v52 = vpop.eup %10464  ;;  %9734 = vmatprep.mubr.bf16.mxu0 %v16645_v5  ;;  %9758 = vmatprep.subr.bf16.mxu0 %v3384_v57  ;;  %v2463_v27 = vadd.f32 %v16657_v11, %v16656_v55  ;;  %v16665_v24 = vld [vmem:[#allocation105_spill] sm:$0xff]  ;;  %v16670_v5 = vld [vmem:[#allocation99_spill] sm:$0xff] }
 0x544   : > { %9691 = vmatmul.mubr.msk.bf16.gmra.mxu1 %vm3782_vm1, %v4142_v35  ;;  %v4128_v18 = vmul.f32 %v10465_v52, %v13276_v9  ;;  %v10467_v34 = vpop.eup %10466  ;;  %v3382_v9 = vpack.c.bf16 %v2880_v14, %v2876_v6  ;;  %v3338_v35 = vpack.c.bf16 %v2423_v33, %v2419_v32  ;;  %v10862_v14 = vld [vmem:[%s16200_s10] sm:$0x3]  ;;  %v16673_v6 = vld [vmem:[#allocation154_spill] sm:$0xff]  ;;  %v16681_v11 = vld [vmem:[#allocation113_spill] sm:$0xff]  ;;  %v2916_v32 = vadd.f32 %v16689_v36, %v12857_v20 }
 0x545   : > { %v4129_v0 = vmul.f32 %v10467_v34, %v13270_v26  ;;  %v3346_v42 = vpack.c.bf16 %v2463_v27, %v2459_v61  ;;  %v16671_v34 = vld [vmem:[#allocation96_spill] sm:$0xff]  ;;  %v2433_v27 = vadd.f32 %v16681_v11, %v16656_v55  ;;  %v16686_v33 = vld [vmem:[#allocation137_spill] sm:$0xff]  ;;  %v16713_v36 = vld [vmem:[#allocation158_spill] sm:$0xff] }
 0x546   : > { %v4147_v4 = vpack.c.bf16 %v4128_v18, %v4127_v10  ;;  %v2820_v10 = vadd.f32 %v16670_v5, %v12857_v20  ;;  %v2816_v22 = vadd.f32 %v16671_v34, %v12857_v20  ;;  %v2920_v7 = vadd.f32 %v16686_v33, %v12857_v20  ;;  %v16696_v34 = vld [vmem:[#allocation147_spill] sm:$0xff]  ;;  %v16710_v33 = vld [vmem:[#allocation160_spill] sm:$0xff] }
 0x547   : > { %v10469_v21 = vpop.eup %10468 }
 0x548   : > { %v4130_v30 = vmul.f32 %v10469_v21, %v13284_v44  ;;  %9718 = vmatprep.mubr.msk.bf16.mxu1 %vm3782_vm1, %v4147_v4  ;;  %v10471_v54 = vpop.eup %10470  ;;  %v3374_v44 = vpack.c.bf16 %v2840_v25, %v2836_v23  ;;  %v16672_v4 = vld [vmem:[#allocation92_spill] sm:$0xff]  ;;  %v3370_v58 = vpack.c.bf16 %v2820_v10, %v2816_v22  ;;  %v16674_v25 = vld [vmem:[#allocation153_spill] sm:$0xff] }
 0x549   : > { %9735 = vmatmul.mubr.bf16.vlgmr.msra.gmra.mxu0 %v16651_v16  ;;  %v4131_v48 = vmul.f32 %v10471_v54, %v13278_v29  ;;  %v16662_v29 = vld [vmem:[#allocation103_spill] sm:$0xff]  ;;  %v13432_v21 = vrot.slane %v10862_v14, %v16672_v4  ;;  %v16677_v16 = vld [vmem:[#allocation128_spill] sm:$0xff] }
 0x54a   : > { %v4148_v49 = vpack.c.bf16 %v4130_v30, %v4129_v0  ;;  %9759 = vmatpush3.bf16.xpose.msra.mxu0 %v3384_v57  ;;  %9738 = vmatprep.mubr.bf16.mxu0 %v16655_v47  ;;  %v2826_v57 = vadd.f32 %v16667_v41, %v12857_v20  ;;  %v16675_v30 = vld [vmem:[#allocation174_spill] sm:$0xff]  ;;  %v2473_v51 = vadd.f32 %v16677_v16, %v16656_v55  ;;  %v16678_v23 = vld [vmem:[#allocation132_spill] sm:$0xff]  ;;  %v16697_v14 = vld [vmem:[#allocation119_spill] sm:$0xff] }
 0x54b   : > { %v10473_v26 = vpop.eup %10472  ;;  %9760 = vmatprep.subr.bf16.mxu0 %v3382_v9  ;;  %v3207_v12 = vadd.f32 %v16673_v6, %v13432_v21  ;;  %v3203_v0 = vadd.f32 %v16674_v25, %v13432_v21  ;;  %v2930_v54 = vadd.f32 %v16675_v30, %v12857_v20  ;;  %v2469_v47 = vadd.f32 %v16679_v19, %v16656_v55  ;;  %v16695_v10 = vld [vmem:[#allocation140_spill] sm:$0xff]  ;;  %v16698_v6 = vld [vmem:[#allocation133_spill] sm:$0xff]  ;;  %v16699_v25 = vld [vmem:[#allocation138_spill] sm:$0xff] }
 0x54c   : > { %9719 = vmatmul.mubr.msk.bf16.vlgmr.msra.gmra.mxu1 %vm3782_vm1, %v4148_v49  ;;  %v4132_v15 = vmul.f32 %v10473_v26, %v13292_v17  ;;  %v10475_v40 = vpop.eup %10474  ;;  %v2830_v17 = vadd.f32 %v16662_v29, %v12857_v20  ;;  %v2483_v49 = vadd.f32 %v16678_v23, %v16656_v55  ;;  %v16680_v26 = vld [vmem:[#allocation152_spill] sm:$0xff]  ;;  %v3193_v61 = vadd.f32 %v16684_v46, %v13432_v21  ;;  %v16702_v23 = vld [vmem:[#allocation169_spill] sm:$0xff]  ;;  %v16707_v46 = vld [vmem:[#allocation142_spill] sm:$0xff] }
 0x54d   : > { %9743 = vmatpush3.bf16.xpose.msra.mxu1 %v3376_v39  ;;  %v4133_v8 = vmul.f32 %v10475_v40, %v13286_v1  ;;  %v16664_v39 = vld [vmem:[#allocation106_spill] sm:$0xff]  ;;  %v3392_v56 = vpack.c.bf16 %v2930_v54, %v2926_v43  ;;  %v16683_v40 = vld [vmem:[#allocation117_spill] sm:$0xff]  ;;  %v3348_v50 = vpack.c.bf16 %v2473_v51, %v2469_v47  ;;  %v2439_v29 = vadd.f32 %v16687_v38, %v16656_v55  ;;  %v16701_v43 = vld [vmem:[#allocation131_spill] sm:$0xff] }
 0x54e   : > { %9744 = vmatprep.subr.bf16.mxu1 %v3374_v44  ;;  %v4149_v37 = vpack.c.bf16 %v4132_v15, %v4131_v48  ;;  %v16666_v28 = vpack.c.bf16 %v16664_v39, %v16665_v24  ;;  %v3372_v52 = vpack.c.bf16 %v2830_v17, %v2826_v57  ;;  %v16668_v1 = vld [vmem:[#allocation114_spill] sm:$0xff]  ;;  %v2443_v13 = vadd.f32 %v16683_v40, %v16656_v55  ;;  %v16690_v39 = vld [vmem:[#allocation136_spill] sm:$0xff]  ;;  %v16703_v47 = vld [vmem:[#allocation129_spill] sm:$0xff] }
 0x54f   : > { %v10477_v45 = vpop.eup %10476  ;;  %v16682_v48 = vld [vmem:[#allocation130_spill] sm:$0xff]  ;;  %v2493_v24 = vadd.f32 %v16690_v39, %v16656_v55  ;;  %v3390_v57 = vpack.c.bf16 %v2920_v7, %v2916_v32  ;;  %v3173_v22 = vadd.f32 %v16696_v34, %v13432_v21  ;;  %v2906_v16 = vadd.f32 %v16701_v43, %v12857_v20  ;;  %v16706_v40 = vld [vmem:[#allocation161_spill] sm:$0xff]  ;;  %v16711_v38 = vld [vmem:[#allocation143_spill] sm:$0xff] }
 0x550   : > { %9722 = vmatprep.mubr.msk.bf16.mxu1 %vm3782_vm1, %v4149_v37  ;;  %v4134_v63 = vmul.f32 %v10477_v45, %v13296_v62  ;;  %v2860_v62 = vadd.f32 %v16668_v1, %v12857_v20  ;;  %v2479_v15 = vadd.f32 %v16682_v48, %v16656_v55  ;;  %v16685_v37 = vld [vmem:[#allocation111_spill] sm:$0xff]  ;;  %v16688_v17 = vld [vmem:[#allocation150_spill] sm:$0xff]  ;;  %v3237_v7 = vadd.f32 %v16710_v33, %v13432_v21  ;;  %v16720_v34 = vld [vmem:[#allocation185_spill] sm:$0xff] }
 0x551   : > { %9739 = vmatmul.mubr.bf16.gmra.mxu0 %v16666_v28  ;;  %v2429_v45 = vadd.f32 %v16685_v37, %v16656_v55  ;;  %v16691_v28 = vld [vmem:[#allocation149_spill] sm:$0xff]  ;;  %v16700_v54 = vld [vmem:[#allocation170_spill] sm:$0xff]  ;;  %v16708_v37 = vld [vmem:[#allocation144_spill] sm:$0xff]  ;;  %v3227_v32 = vadd.f32 %v16713_v36, %v13432_v21 }
 0x552   : > { %9761 = vmatpush3.bf16.xpose.msra.mxu0 %v3382_v9  ;;  %9766 = vmatprep.mubr.bf16.mxu0 %v3346_v42  ;;  %v4150_v2 = vpack.c.bf16 %v4134_v63, %v4133_v8  ;;  %v3378_v18 = vpack.c.bf16 %v2860_v62, %v2856_v31  ;;  %v3400_v9 = vpack.c.bf16 %v3207_v12, %v3203_v0  ;;  %v16705_v48 = vld [vmem:[#allocation162_spill] sm:$0xff] }
 0x553   : > { %9762 = vmatprep.subr.bf16.mxu0 %v3380_v60  ;;  %v3350_v3 = vpack.c.bf16 %v2483_v49, %v2479_v15  ;;  %v3187_v42 = vadd.f32 %v16688_v17, %v13432_v21  ;;  %v3340_v63 = vpack.c.bf16 %v2433_v27, %v2429_v45  ;;  %v3183_v41 = vadd.f32 %v16691_v28, %v13432_v21  ;;  %v16714_v39 = vld [vmem:[#allocation146_spill] sm:$0xff]  ;;  %v16715_v28 = vld [vmem:[#allocation157_spill] sm:$0xff] }
 0x554   : > { %9723 = vmatmul.mubr.msk.bf16.gmra.mxu1 %vm3782_vm1, %v4150_v2  ;;  %v16692_v2 = vld [vmem:[#allocation134_spill] sm:$0xff]  ;;  %v2453_v31 = vadd.f32 %v16694_v53, %v16656_v55  ;;  %v2910_v12 = vadd.f32 %v16698_v6, %v12857_v20  ;;  %v2499_v0 = vadd.f32 %v16699_v25, %v16656_v55  ;;  %v3283_v49 = vadd.f32 %v16702_v23, %v13432_v21  ;;  %v16718_v53 = vld [vmem:[#allocation155_spill] sm:$0xff] }
 0x555   : > { %9745 = vmatpush3.bf16.xpose.msra.mxu1 %v3374_v44  ;;  %9750 = vmatprep.mubr.bf16.mxu1 %v3338_v35  ;;  %v3197_v44 = vadd.f32 %v16680_v26, %v13432_v21  ;;  %v2489_v35 = vadd.f32 %v16692_v2, %v16656_v55  ;;  %v3396_v62 = vpack.c.bf16 %v3187_v42, %v3183_v41  ;;  %v16712_v42 = vld [vmem:[#allocation159_spill] sm:$0xff] }
 0x556   : > { %9746 = vmatprep.subr.bf16.mxu1 %v3372_v52  ;;  %v2900_v26 = vadd.f32 %v16703_v47, %v12857_v20  ;;  %v3247_v15 = vadd.f32 %v16705_v48, %v13432_v21  ;;  %v2523_v45 = vadd.f32 %v16708_v37, %v16656_v55  ;;  %v3223_v41 = vadd.f32 %v16715_v28, %v13432_v21 }
 0x557   : > { %v3398_v8 = vpack.c.bf16 %v3197_v44, %v3193_v61  ;;  %v3352_v5 = vpack.c.bf16 %v2493_v24, %v2489_v35  ;;  %v16704_v44 = vld [vmem:[#allocation127_spill] sm:$0xff]  ;;  %v2513_v61 = vadd.f32 %v16707_v46, %v16656_v55  ;;  %v2533_v24 = vadd.f32 %v16714_v39, %v16656_v55  ;;  %v16717_v35 = vld [vmem:[#allocation156_spill] sm:$0xff] }
 0x558   : > { %v2896_v11 = vadd.f32 %v16704_v44, %v12857_v20  ;;  %v16709_v20 = vld [vmem:[#allocation141_spill] sm:$0xff] }
 0x55a   : > { %9763 = vmatpush3.bf16.xpose.msra.mxu0 %v3380_v60  ;;  %v3342_v60 = vpack.c.bf16 %v2443_v13, %v2439_v29  ;;  %v3386_v27 = vpack.c.bf16 %v2900_v26, %v2896_v11  ;;  %v3243_v13 = vadd.f32 %v16706_v40, %v13432_v21  ;;  %v2519_v29 = vadd.f32 %v16711_v38, %v16656_v55 }
 0x55b   : > { %9764 = vmatprep.subr.bf16.mxu0 %v3378_v18 }
 0x55d   : > { %9747 = vmatpush3.bf16.xpose.msra.mxu1 %v3372_v52  ;;  %v16693_v52 = vld [vmem:[#allocation148_spill] sm:$0xff] }
 0x55e   : > { %9748 = vmatprep.subr.bf16.mxu1 %v3370_v58  ;;  %v3177_v1 = vadd.f32 %v16693_v52, %v13432_v21  ;;  %v3217_v52 = vadd.f32 %v16717_v35, %v13432_v21 }
 0x560   : > { %v3394_v30 = vpack.c.bf16 %v3177_v1, %v3173_v22  ;;  %v3404_v1 = vpack.c.bf16 %v3227_v32, %v3223_v41  ;;  %v3323_v22 = vadd.f32 %v16720_v34, %v13432_v21 }
 0x562   : > { %9765 = vmatpush3.bf16.xpose.msra.mxu0 %v3378_v18  ;;  %v2503_v18 = vadd.f32 %v16695_v10, %v16656_v55  ;;  %v16719_v10 = vld [vmem:[#allocation188_spill] sm:$0xff] }
 0x563   : > { %9790 = vmatprep.subr.bf16.mxu0 %v3400_v9 }
 0x564   : > { %v3354_v51 = vpack.c.bf16 %v2503_v18, %v2499_v0  ;;  %v3327_v18 = vadd.f32 %v16719_v10, %v13432_v21 }
 0x565   : > { %9749 = vmatpush3.bf16.xpose.msra.mxu1 %v3370_v58  ;;  %v2449_v58 = vadd.f32 %v16697_v14, %v16656_v55 }
 0x566   : > { %9774 = vmatprep.subr.bf16.mxu1 %v3392_v56 }
 0x567   : > { %v3344_v59 = vpack.c.bf16 %v2453_v31, %v2449_v58  ;;  %v3213_v31 = vadd.f32 %v16718_v53, %v13432_v21 }
 0x569   : > { %9767 = vmatmul.mubr.bf16.vlgmr.msra.gmra.mxu0 %v3348_v50  ;;  %v3408_v50 = vpack.c.bf16 %v3247_v15, %v3243_v13 }
 0x56a   : > { %9770 = vmatprep.mubr.bf16.mxu0 %v3350_v3  ;;  %9791 = vmatpush3.bf16.msra.mxu0 %v3400_v9  ;;  %v3287_v9 = vadd.f32 %v16700_v54, %v13432_v21  ;;  %v2509_v3 = vadd.f32 %v16709_v20, %v16656_v55 }
 0x56b   : > { %9792 = vmatprep.subr.bf16.mxu0 %v3398_v8 }
 0x56c   : > { %9751 = vmatmul.mubr.bf16.vlgmr.msra.gmra.mxu1 %v3340_v63  ;;  %v13494_v19 = vpack.c.bf16 %v3287_v9, %v3283_v49  ;;  %v3356_v17 = vpack.c.bf16 %v2513_v61, %v2509_v3  ;;  %v3358_v63 = vpack.c.bf16 %v2523_v45, %v2519_v29 }
 0x56d   : > { %9754 = vmatprep.mubr.bf16.mxu1 %v3342_v60  ;;  %9775 = vmatpush3.bf16.xpose.msra.mxu1 %v3392_v56  ;;  %v3388_v56 = vpack.c.bf16 %v2910_v12, %v2906_v16 }
 0x56e   : > { %9776 = vmatprep.subr.bf16.mxu1 %v3390_v57  ;;  %9793 = vmatpush3.bf16.msra.mxu0 %v3398_v8  ;;  %v3233_v8 = vadd.f32 %v16712_v42, %v13432_v21 }
 0x56f   : > { %9794 = vmatprep.subr.bf16.mxu0 %v3396_v62 }
 0x570   : > { %v3406_v60 = vpack.c.bf16 %v3237_v7, %v3233_v8 }
 0x571   : > { %9771 = vmatmul.mubr.bf16.gmra.mxu0 %v3352_v5  ;;  %v3402_v5 = vpack.c.bf16 %v3217_v52, %v3213_v31 }
 0x572   : > { %9795 = vmatpush3.bf16.msra.mxu0 %v3396_v62 }
 0x573   : > { %9796 = vmatprep.subr.bf16.mxu0 %v3394_v30 }
 0x574   : > { %9755 = vmatmul.mubr.bf16.gmra.mxu1 %v3344_v59 }
 0x575   : > { %9777 = vmatpush3.bf16.xpose.msra.mxu1 %v3390_v57  ;;  %9782 = vmatprep.mubr.bf16.mxu1 %v3354_v51  ;;  %v16716_v57 = vld [vmem:[#allocation145_spill] sm:$0xff] }
 0x576   : > { %9778 = vmatprep.subr.bf16.mxu1 %v3388_v56  ;;  %9797 = vmatpush3.bf16.msra.mxu0 %v3394_v30  ;;  %v2529_v2 = vadd.f32 %v16716_v57, %v16656_v55  ;;  %v13533_v55 = vpack.c.bf16 %v3327_v18, %v3323_v22 }
 0x577   : > { %9822 = vmatprep.subr.bf16.mxu0 %v13494_v19 }
 0x578   : > { %v3360_v62 = vpack.c.bf16 %v2533_v24, %v2529_v2 }
 0x57d   : > { %9779 = vmatpush3.bf16.xpose.msra.mxu1 %v3388_v56 }
 0x57e   : > { %9780 = vmatprep.subr.bf16.mxu1 %v3386_v27 }
 0x585   : > { %9781 = vmatpush3.bf16.xpose.msra.mxu1 %v3386_v27 }
 0x586   : > { %9806 = vmatprep.subr.bf16.mxu1 %v3408_v50 }
 0x58c   : > { %9783 = vmatmul.mubr.bf16.vlgmr.msra.gmra.mxu1 %v3356_v17 }
 0x58d   : > { %9786 = vmatprep.mubr.bf16.mxu1 %v3358_v63  ;;  %9807 = vmatpush3.bf16.msra.mxu1 %v3408_v50 }
 0x58e   : > { %9808 = vmatprep.subr.bf16.mxu1 %v3406_v60 }
 0x591   : > { %9809 = vmatpush3.bf16.msra.mxu1 %v3406_v60 }
 0x592   : > { %9810 = vmatprep.subr.bf16.mxu1 %v3404_v1 }
 0x594   : > { %9787 = vmatmul.mubr.bf16.gmra.mxu1 %v3360_v62 }
 0x595   : > { %9811 = vmatpush3.bf16.msra.mxu1 %v3404_v1 }
 0x596   : > { %9812 = vmatprep.subr.bf16.mxu1 %v3402_v5 }
 0x599   : > { %9813 = vmatpush3.bf16.msra.mxu1 %v3402_v5 }
 0x59a   : > { %9838 = vmatprep.subr.bf16.mxu1 %v13533_v55 }
 0x5a9   : > { %v13536_v14 = vpop.f32.mrf.mxu1 }
 0x5ab   : > { %v13538_v58 = vpop.f32.mrf.mxu1 }
 0x5ad   : > { %v13540_v6 = vpop.f32.mrf.mxu1 }
 0x5af   : > { %v13546_v0 = vpop.f32.mrf.mxu1 }
 0x5e9   : > { %v13544_v25 = vpop.f32.mrf.mxu0 }
 0x5ea   : > { %16721 = vst [vmem:[#allocation109_spill] sm:$0xff] %v13544_v25 }
 0x5eb   : > { %v13548_v30 = vpop.f32.mrf.mxu0 }
 0x5ec   : > { %16722 = vst [vmem:[#allocation173_spill] sm:$0xff] %v13548_v30  ;;  %v13550_v54 = vpop.f32.mrf.mxu1 }
 0x5ed   : > { %v13552_v9 = vpop.f32.mrf.mxu0 }
 0x5ee   : > { %16723 = vst [vmem:[#allocation124_spill] sm:$0xff] %v13552_v9  ;;  %v13556_v43 = vpop.f32.mrf.mxu1 }
 0x5ef   : > { %v13572_v44 = vpop.f32.mrf.mxu0 }
 0x5f0   : > { %v13558_v16 = vpop.f32.mrf.mxu1  ;;  %16724 = vst [vmem:[#allocation95_spill] sm:$0xff] %v13572_v44 }
 0x5f2   : > { %v13562_v23 = vpop.f32.mrf.mxu1 }
 0x5f4   : > { %v13564_v49 = vpop.f32.mrf.mxu1 }
 0x5f6   : > { %v13566_v56 = vpop.f32.mrf.mxu1 }
 0x5f8   : > { %v13568_v47 = vpop.f32.mrf.mxu1 }
 0x5fa   : > { %v13576_v27 = vpop.f32.mrf.mxu1 }
 0x601   : > { %v13574_v11 = vpop.f32.mrf.mxu0 }
 0x602   : > { %16725 = vst [vmem:[#allocation94_spill] sm:$0xff] %v13574_v11 }
 0x603   : > { %v13578_v48 = vpop.f32.mrf.mxu0 }
 0x604   : > { %16726 = vst [vmem:[#allocation122_spill] sm:$0xff] %v13578_v48  ;;  %v13580_v15 = vpop.f32.mrf.mxu1 }
 0x605   : > { %16727 = vst [vmem:[#allocation120_spill] sm:$0xff] %v13580_v15  ;;  %v13582_v40 = vpop.f32.mrf.mxu0 }
 0x606   : > { %16728 = vst [vmem:[#allocation107_spill] sm:$0xff] %v13582_v40  ;;  %v13586_v50 = vpop.f32.mrf.mxu1 }
 0x607   : > { %v13588_v46 = vpop.f32.mrf.mxu0 }
 0x608   : > { %16729 = vst [vmem:[#allocation98_spill] sm:$0xff] %v13588_v46  ;;  %v13590_v61 = vpop.f32.mrf.mxu1 }
 0x609   : > { %16730 = vst [vmem:[#allocation97_spill] sm:$0xff] %v13590_v61  ;;  %v9736_v45 = vpop.f32.mrf.mxu0 }
 0x60a   : > { %v13594_v20 = vpop.f32.mrf.mxu1  ;;  %v4721_v33 = vmul.f32 0.088388346, %v9736_v45 }
 0x60b   : > { %16731 = vst [vmem:[#allocation104_spill] sm:$0xff] %v13594_v20  ;;  %v4493_v3 = vpop.f32.mrf.mxu0 }
 0x60c   : > { %v4719_v7 = vmul.f32 0.088388346, %v4493_v3  ;;  %v13596_v38 = vpop.f32.mrf.mxu1  ;;  %v13608_v60 = vsel %vm12876_vm0, %v4721_v33, -1e+09 }
 0x60d   : > { %16732 = vst [vmem:[#allocation102_spill] sm:$0xff] %v13596_v38  ;;  %v9737_v29 = vpop.f32.mrf.mxu0  ;;  %v4789_v62 = vsel %vm3782_vm1, %v13608_v60, -inf }
 0x60e   : > { %v13600_v42 = vsel %vm12887_vm2, %v4719_v7, -1e+09  ;;  %v13602_v8 = vpop.f32.mrf.mxu1  ;;  %v4722_v39 = vmul.f32 0.088388346, %v9737_v29 }
 0x60f   : > { %16734 = vst [vmem:[#allocation101_spill] sm:$0xff] %v13602_v8  ;;  %v4496_v63 = vpop.f32.mrf.mxu0  ;;  %v4783_v36 = vsel %vm3782_vm1, %v13600_v42, -inf }
 0x610   : > { %v4720_v24 = vmul.f32 0.088388346, %v4496_v63  ;;  %4784 = vmax.xlane.f32.xlu1 %v4783_v36  ;;  %v13610_v28 = vpop.f32.mrf.mxu1  ;;  %v13626_v5 = vsel %vm12902_vm3, %v4722_v39, -1e+09 }
 0x611   : > { %16736 = vst [vmem:[#allocation93_spill] sm:$0xff] %v13610_v28  ;;  %v9740_v57 = vpop.f32.mrf.mxu0  ;;  %v4792_v29 = vsel %vm3782_vm1, %v13626_v5, -inf }
 0x612   : > { %v13614_v2 = vpop.f32.mrf.mxu1  ;;  %v13618_v52 = vsel %vm12916_vm4, %v4720_v24, -1e+09  ;;  %v4725_v10 = vmul.f32 0.088388346, %v9740_v57 }
 0x613   : > { %16737 = vst [vmem:[#allocation125_spill] sm:$0xff] %v13614_v2  ;;  %v4509_v1 = vpop.f32.mrf.mxu0  ;;  %v4786_v53 = vsel %vm3782_vm1, %v13618_v52, -inf }
 0x614   : > { %v4723_v18 = vmul.f32 0.088388346, %v4509_v1  ;;  %4790 = vmax.xlane.f32.xlu1 %v4789_v62  ;;  %4787 = vmax.xlane.f32.xlu0 %v4786_v53  ;;  %v13628_v34 = vpop.f32.mrf.mxu1  ;;  %v13642_v39 = vsel %vm12925_vm5, %v4725_v10, -1e+09 }
 0x615   : > { %16740 = vst [vmem:[#allocation118_spill] sm:$0xff] %v13628_v34  ;;  %v9741_v22 = vpop.f32.mrf.mxu0  ;;  %v4801_v41 = vsel %vm3782_vm1, %v13642_v39, -inf }
 0x616   : > { %v13632_v3 = vsel %vm12950_vm6, %v4723_v18, -1e+09  ;;  %v13634_v33 = vpop.f32.mrf.mxu1  ;;  %v4726_v24 = vmul.f32 0.088388346, %v9741_v22 }
 0x617   : > { %16742 = vst [vmem:[#allocation123_spill] sm:$0xff] %v13634_v33  ;;  %v4512_v7 = vpop.f32.mrf.mxu0  ;;  %v4795_v63 = vsel %vm3782_vm1, %v13632_v3, -inf }
 0x618   : > { %v4724_v57 = vmul.f32 0.088388346, %v4512_v7  ;;  %4793 = vmax.xlane.f32.xlu0 %v4792_v29  ;;  %4796 = vmax.xlane.f32.xlu1 %v4795_v63  ;;  %v13644_v1 = vpop.f32.mrf.mxu1  ;;  %v13658_v22 = vsel %vm13017_vm8, %v4726_v24, -1e+09 }
 0x619   : > { %16744 = vst [vmem:[#allocation110_spill] sm:$0xff] %v13644_v1  ;;  %v4804_v7 = vsel %vm3782_vm1, %v13658_v22, -inf }
 0x61a   : > { %v13650_v18 = vsel %vm12959_vm7, %v4724_v57, -1e+09  ;;  %v13662_v63 = vpop.f32.mrf.mxu1 }
 0x61b   : > { %v4798_v10 = vsel %vm3782_vm1, %v13650_v18, -inf  ;;  %16747 = vst [vmem:[#allocation116_spill] sm:$0xff] %v13662_v63 }
 0x61c   : > { %4802 = vmax.xlane.f32.xlu1 %v4801_v41  ;;  %4799 = vmax.xlane.f32.xlu0 %v4798_v10 }
 0x620   : > { %4805 = vmax.xlane.f32.xlu0 %v4804_v7 }
 0x629   : > { %v9768_v29 = vpop.f32.mrf.mxu0 }
 0x62b   : > { %v4623_v57 = vpop.f32.mrf.mxu0 }
 0x62c   : > { %v9752_v62 = vpop.f32.mrf.mxu1  ;;  %v4735_v28 = vmul.f32 0.088388346, %v4623_v57  ;;  %v4737_v57 = vmul.f32 0.088388346, %v9768_v29 }
 0x62d   : > { %v4729_v37 = vmul.f32 0.088388346, %v9752_v62  ;;  %v9769_v51 = vpop.f32.mrf.mxu0 }
 0x62e   : > { %v4558_v59 = vpop.f32.mrf.mxu1  ;;  %v13720_v46 = vsel %vm12876_vm0, %v4737_v57, -1e+09 }
 0x62f   : > { %v4727_v26 = vmul.f32 0.088388346, %v4558_v59  ;;  %v13672_v7 = vsel %vm12876_vm0, %v4729_v37, -1e+09  ;;  %v4626_v1 = vpop.f32.mrf.mxu0 }
 0x630   : > { %v9753_v12 = vpop.f32.mrf.mxu1 }
 0x631   : > { %v13666_v24 = vsel %vm12887_vm2, %v4727_v26, -1e+09  ;;  %v4730_v4 = vmul.f32 0.088388346, %v9753_v12  ;;  %v4813_v26 = vsel %vm3782_vm1, %v13672_v7, -inf }
 0x632   : > { %v4561_v41 = vpop.f32.mrf.mxu1  ;;  %v4807_v10 = vsel %vm3782_vm1, %v13666_v24, -inf }
 0x633   : > { %v4728_v34 = vmul.f32 0.088388346, %v4561_v41  ;;  %4808 = vmax.xlane.f32.xlu1 %v4807_v10  ;;  %v13684_v37 = vsel %vm12902_vm3, %v4730_v4, -1e+09  ;;  %v9772_v10 = vpop.f32.mrf.mxu0 }
 0x634   : > { %v9756_v62 = vpop.f32.mrf.mxu1  ;;  %v4816_v8 = vsel %vm3782_vm1, %v13684_v37, -inf  ;;  %v4741_v57 = vmul.f32 0.088388346, %v9772_v10 }
 0x635   : > { %v13676_v59 = vsel %vm12916_vm4, %v4728_v34, -1e+09  ;;  %v4733_v12 = vmul.f32 0.088388346, %v9756_v62  ;;  %v4639_v62 = vpop.f32.mrf.mxu0 }
 0x636   : > { %v4574_v63 = vpop.f32.mrf.mxu1  ;;  %v4810_v33 = vsel %vm3782_vm1, %v13676_v59, -inf }
 0x637   : > { %v4731_v41 = vmul.f32 0.088388346, %v4574_v63  ;;  %4814 = vmax.xlane.f32.xlu1 %v4813_v26  ;;  %4811 = vmax.xlane.f32.xlu0 %v4810_v33  ;;  %v13696_v4 = vsel %vm12925_vm5, %v4733_v12, -1e+09  ;;  %v13708_v12 = vsel %vm12887_vm2, %v4735_v28, -1e+09 }
 0x638   : > { %v9757_v38 = vpop.f32.mrf.mxu1  ;;  %v4831_v29 = vsel %vm3782_vm1, %v13708_v12, -inf  ;;  %v4739_v28 = vmul.f32 0.088388346, %v4639_v62 }
 0x639   : > { %v13688_v34 = vsel %vm12950_vm6, %v4731_v41, -1e+09  ;;  %v4734_v63 = vmul.f32 0.088388346, %v9757_v38  ;;  %v4825_v41 = vsel %vm3782_vm1, %v13696_v4, -inf }
 0x63a   : > { %v4577_v2 = vpop.f32.mrf.mxu1  ;;  %v4819_v11 = vsel %vm3782_vm1, %v13688_v34, -inf  ;;  %v4736_v38 = vmul.f32 0.088388346, %v4626_v1  ;;  %v13736_v62 = vsel %vm12950_vm6, %v4739_v28, -1e+09 }
 0x63b   : > { %v4732_v33 = vmul.f32 0.088388346, %v4577_v2  ;;  %4817 = vmax.xlane.f32.xlu0 %v4816_v8  ;;  %4820 = vmax.xlane.f32.xlu1 %v4819_v11  ;;  %v13712_v11 = vsel %vm13017_vm8, %v4734_v63, -1e+09  ;;  %v9773_v8 = vpop.f32.mrf.mxu0  ;;  %v4738_v2 = vmul.f32 0.088388346, %v9769_v51 }
 0x63c   : > { %v13724_v1 = vsel %vm12916_vm4, %v4736_v38, -1e+09  ;;  %v4837_v63 = vsel %vm3782_vm1, %v13720_v46, -inf  ;;  %v4843_v38 = vsel %vm3782_vm1, %v13736_v62, -inf  ;;  %v4742_v48 = vmul.f32 0.088388346, %v9773_v8 }
 0x63d   : > { %v13700_v26 = vsel %vm12959_vm7, %v4732_v33, -1e+09  ;;  %v4828_v33 = vsel %vm3782_vm1, %v13712_v11, -inf  ;;  %v13728_v51 = vsel %vm12902_vm3, %v4738_v2, -1e+09 }
 0x63e   : > { %v4822_v40 = vsel %vm3782_vm1, %v13700_v26, -inf  ;;  %v4840_v2 = vsel %vm3782_vm1, %v13728_v51, -inf }
 0x63f   : > { %4826 = vmax.xlane.f32.xlu1 %v4825_v41  ;;  %4823 = vmax.xlane.f32.xlu0 %v4822_v40  ;;  %v4642_v40 = vpop.f32.mrf.mxu0  ;;  %v4834_v41 = vsel %vm3782_vm1, %v13724_v1, -inf }
 0x643   : > { %4832 = vmax.xlane.f32.xlu1 %v4831_v29  ;;  %4829 = vmax.xlane.f32.xlu0 %v4828_v33  ;;  %v4740_v29 = vmul.f32 0.088388346, %v4642_v40  ;;  %v13744_v33 = vsel %vm12925_vm5, %v4741_v57, -1e+09 }
 0x644   : > { %v4849_v28 = vsel %vm3782_vm1, %v13744_v33, -inf }
 0x645   : > { %v13748_v10 = vsel %vm12959_vm7, %v4740_v29, -1e+09 }
 0x646   : > { %v4846_v40 = vsel %vm3782_vm1, %v13748_v10, -inf }
 0x647   : > { %4838 = vmax.xlane.f32.xlu1 %v4837_v63  ;;  %4835 = vmax.xlane.f32.xlu0 %v4834_v41  ;;  %v13756_v63 = vsel %vm13017_vm8, %v4742_v48, -1e+09 }
 0x648   : > { %v4852_v8 = vsel %vm3782_vm1, %v13756_v63, -inf }
 0x64b   : > { %4844 = vmax.xlane.f32.xlu1 %v4843_v38  ;;  %4841 = vmax.xlane.f32.xlu0 %v4840_v2 }
 0x64c   : > { %v9784_v20 = vpop.f32.mrf.mxu1 }
 0x64f   : > { %4850 = vmax.xlane.f32.xlu1 %v4849_v28  ;;  %4847 = vmax.xlane.f32.xlu0 %v4846_v40 }
 0x653   : > { %4853 = vmax.xlane.f32.xlu0 %v4852_v8 }
 0x699   : > { %v4785_v41 = vpop.xlane.xlu1 %4784 }
 0x69a   : > { %v4879_v57 = vsub.f32 %v13600_v42, %v4785_v41  ;;  %v4688_v41 = vpop.f32.mrf.mxu1 }
 0x69c   : > { %v4911_v25 = vmul.f32 1.442695, %v4879_v57 }
 0x69d   : > { %v4791_v29 = vpop.xlane.xlu1 %4790  ;;  %v4788_v38 = vpop.xlane.xlu0 %4787 }
 0x69e   : > { %v4881_v2 = vsub.f32 %v13608_v60, %v4791_v29  ;;  %v4880_v44 = vsub.f32 %v13618_v52, %v4788_v38 }
 0x6a0   : > { %v4915_v9 = vmul.f32 1.442695, %v4881_v2  ;;  %v4913_v15 = vmul.f32 1.442695, %v4880_v44  ;;  %v4743_v2 = vmul.f32 0.088388346, %v4688_v41 }
 0x6a1   : > { %v4797_v30 = vpop.xlane.xlu1 %4796  ;;  %v4794_v48 = vpop.xlane.xlu0 %4793 }
 0x6a2   : > { %10478 = vpow2.f32 %v4915_v9  ;;  %v4882_v28 = vsub.f32 %v13626_v5, %v4794_v48  ;;  %v4883_v57 = vsub.f32 %v13632_v3, %v4797_v30  ;;  %v9785_v5 = vpop.f32.mrf.mxu1  ;;  %v4745_v3 = vmul.f32 0.088388346, %v9784_v20 }
 0x6a3   : > { %10480 = vpow2.f32 %v4911_v25  ;;  %v4746_v41 = vmul.f32 0.088388346, %v9785_v5 }
 0x6a4   : > { %v4917_v40 = vmul.f32 1.442695, %v4882_v28  ;;  %v4919_v25 = vmul.f32 1.442695, %v4883_v57  ;;  %v4691_v48 = vpop.f32.mrf.mxu1  ;;  %v13780_v28 = vsel %vm12887_vm2, %v4743_v2, -1e+09 }
 0x6a5   : > { %v4803_v8 = vpop.xlane.xlu1 %4802  ;;  %v4800_v61 = vpop.xlane.xlu0 %4799  ;;  %v4855_v20 = vsel %vm3782_vm1, %v13780_v28, -inf  ;;  %v13807_v5 = vsel %vm12902_vm3, %v4746_v41, -1e+09 }
 0x6a6   : > { %10482 = vpow2.f32 %v4917_v40  ;;  %v4885_v42 = vsub.f32 %v13642_v39, %v4803_v8  ;;  %v4744_v8 = vmul.f32 0.088388346, %v4691_v48  ;;  %v4864_v31 = vsel %vm3782_vm1, %v13807_v5, -inf }
 0x6a7   : > { %10484 = vpow2.f32 %v4913_v15  ;;  %v4884_v15 = vsub.f32 %v13650_v18, %v4800_v61 }
 0x6a8   : > { %v4923_v52 = vmul.f32 1.442695, %v4885_v42  ;;  %v9788_v42 = vpop.f32.mrf.mxu1  ;;  %v13796_v57 = vsel %vm12916_vm4, %v4744_v8, -1e+09 }
 0x6a9   : > { %v4806_v60 = vpop.xlane.xlu0 %4805  ;;  %v4921_v40 = vmul.f32 1.442695, %v4884_v15  ;;  %v4858_v2 = vsel %vm3782_vm1, %v13796_v57, -inf }
 0x6aa   : > { %v4886_v29 = vsub.f32 %v13658_v22, %v4806_v60  ;;  %10486 = vpow2.f32 %v4923_v52  ;;  %v13790_v60 = vsel %vm12876_vm0, %v4745_v3, -1e+09  ;;  %v4704_v52 = vpop.f32.mrf.mxu1 }
 0x6ab   : > { %10488 = vpow2.f32 %v4919_v25  ;;  %v4861_v25 = vsel %vm3782_vm1, %v13790_v60, -inf }
 0x6ac   : > { %v4925_v39 = vmul.f32 1.442695, %v4886_v29  ;;  %v9789_v35 = vpop.f32.mrf.mxu1 }
 0x6ae   : > { %10490 = vpow2.f32 %v4925_v39  ;;  %v4747_v39 = vmul.f32 0.088388346, %v4704_v52  ;;  %v4749_v52 = vmul.f32 0.088388346, %v9788_v42 }
 0x6af   : > { %v13767_v9 = vpop.eup %10478  ;;  %10492 = vpow2.f32 %v4921_v40 }
 0x6b0   : > { %v4981_v44 = vsel %vm3782_vm1, %v13767_v9, 0.0  ;;  %v13771_v38 = vpop.eup %10480 }
 0x6b1   : > { %4982 = vadd.xlane.f32.xlu1 %v4981_v44  ;;  %v4975_v22 = vsel %vm3782_vm1, %v13771_v38, 0.0 }
 0x6b3   : > { %v13774_v30 = vpop.eup %10482 }
 0x6b4   : > { %v4984_v61 = vsel %vm3782_vm1, %v13774_v30, 0.0  ;;  %v13784_v18 = vpop.eup %10484 }
 0x6b5   : > { %4976 = vadd.xlane.f32.xlu1 %v4975_v22  ;;  %4985 = vadd.xlane.f32.xlu0 %v4984_v61  ;;  %v4978_v17 = vsel %vm3782_vm1, %v13784_v18, 0.0 }
 0x6b7   : > { %v13800_v44 = vpop.eup %10486 }
 0x6b8   : > { %v4993_v22 = vsel %vm3782_vm1, %v13800_v44, 0.0  ;;  %v13811_v40 = vpop.eup %10488 }
 0x6b9   : > { %4856 = vmax.xlane.f32.xlu1 %v4855_v20  ;;  %4979 = vadd.xlane.f32.xlu0 %v4978_v17  ;;  %v4707_v20 = vpop.f32.mrf.mxu1 }
 0x6ba   : > { %v4748_v42 = vmul.f32 0.088388346, %v4707_v20  ;;  %v4750_v20 = vmul.f32 0.088388346, %v9789_v35 }
 0x6bb   : > { %v13817_v8 = vpop.eup %10490 }
 0x6bc   : > { %v4809_v29 = vpop.xlane.xlu1 %4808  ;;  %v13843_v36 = vsel %vm12959_vm7, %v4748_v42, -1e+09  ;;  %v13855_v53 = vsel %vm13017_vm8, %v4750_v20, -1e+09 }
 0x6bd   : > { %v4887_v32 = vsub.f32 %v13666_v24, %v4809_v29  ;;  %4862 = vmax.xlane.f32.xlu1 %v4861_v25  ;;  %4859 = vmax.xlane.f32.xlu0 %v4858_v2  ;;  %v13821_v29 = vsel %vm12950_vm6, %v4747_v39, -1e+09  ;;  %v4870_v35 = vsel %vm3782_vm1, %v13843_v36, -inf  ;;  %v4876_v13 = vsel %vm3782_vm1, %v13855_v53, -inf }
 0x6bf   : > { %v4927_v15 = vmul.f32 1.442695, %v4887_v32 }
 0x6c0   : > { %v4815_v48 = vpop.xlane.xlu1 %4814  ;;  %v4812_v3 = vpop.xlane.xlu0 %4811 }
 0x6c1   : > { %10494 = vpow2.f32 %v4927_v15  ;;  %v4889_v24 = vsub.f32 %v13672_v7, %v4815_v48  ;;  %v4888_v61 = vsub.f32 %v13676_v59, %v4812_v3  ;;  %4994 = vadd.xlane.f32.xlu1 %v4993_v22  ;;  %4865 = vmax.xlane.f32.xlu0 %v4864_v31  ;;  %v4987_v7 = vsel %vm3782_vm1, %v13811_v40, 0.0  ;;  %v13829_v48 = vpop.eup %10492 }
 0x6c2   : > { %v4996_v15 = vsel %vm3782_vm1, %v13817_v8, 0.0  ;;  %v13833_v3 = vsel %vm12925_vm5, %v4749_v52, -1e+09  ;;  %v4990_v31 = vsel %vm3782_vm1, %v13829_v48, 0.0 }
 0x6c3   : > { %v4931_v17 = vmul.f32 1.442695, %v4889_v24  ;;  %v4929_v41 = vmul.f32 1.442695, %v4888_v61 }
 0x6c4   : > { %v4821_v25 = vpop.xlane.xlu1 %4820  ;;  %v4818_v32 = vpop.xlane.xlu0 %4817 }
 0x6c5   : > { %10496 = vpow2.f32 %v4931_v17  ;;  %v4891_v59 = vsub.f32 %v13688_v34, %v4821_v25  ;;  %v4890_v2 = vsub.f32 %v13684_v37, %v4818_v32  ;;  %4988 = vadd.xlane.f32.xlu1 %v4987_v7  ;;  %4997 = vadd.xlane.f32.xlu0 %v4996_v15  ;;  %v4867_v37 = vsel %vm3782_vm1, %v13821_v29, -inf }
 0x6c6   : > { %10498 = vpow2.f32 %v4929_v41 }
 0x6c7   : > { %v4935_v45 = vmul.f32 1.442695, %v4891_v59  ;;  %v4933_v39 = vmul.f32 1.442695, %v4890_v2 }
 0x6c8   : > { %v4827_v22 = vpop.xlane.xlu1 %4826  ;;  %v4824_v24 = vpop.xlane.xlu0 %4823 }
 0x6c9   : > { %10500 = vpow2.f32 %v4935_v45  ;;  %v4893_v34 = vsub.f32 %v13696_v4, %v4827_v22  ;;  %v4892_v61 = vsub.f32 %v13700_v26, %v4824_v24  ;;  %4868 = vmax.xlane.f32.xlu1 %v4867_v37  ;;  %4991 = vadd.xlane.f32.xlu0 %v4990_v31  ;;  %v4873_v4 = vsel %vm3782_vm1, %v13833_v3, -inf }
 0x6ca   : > { %10502 = vpow2.f32 %v4933_v39 }
 0x6cb   : > { %v4939_v17 = vmul.f32 1.442695, %v4893_v34  ;;  %v4937_v41 = vmul.f32 1.442695, %v4892_v61 }
 0x6cc   : > { %v4833_v52 = vpop.xlane.xlu1 %4832  ;;  %v4830_v25 = vpop.xlane.xlu0 %4829 }
 0x6cd   : > { %10504 = vpow2.f32 %v4939_v17  ;;  %v4895_v26 = vsub.f32 %v13708_v12, %v4833_v52  ;;  %v4894_v32 = vsub.f32 %v13712_v11, %v4830_v25  ;;  %4874 = vmax.xlane.f32.xlu1 %v4873_v4  ;;  %4871 = vmax.xlane.f32.xlu0 %v4870_v35 }
 0x6ce   : > { %v13851_v7 = vpop.eup %10494  ;;  %10506 = vpow2.f32 %v4937_v41 }
 0x6cf   : > { %v4943_v59 = vmul.f32 1.442695, %v4895_v26  ;;  %v4941_v2 = vmul.f32 1.442695, %v4894_v32  ;;  %v4999_v12 = vsel %vm3782_vm1, %v13851_v7, 0.0 }
 0x6d0   : > { %v4839_v15 = vpop.xlane.xlu1 %4838  ;;  %v4836_v42 = vpop.xlane.xlu0 %4835 }
 0x6d1   : > { %10508 = vpow2.f32 %v4943_v59  ;;  %v4897_v11 = vsub.f32 %v13720_v46, %v4839_v15  ;;  %v4896_v45 = vsub.f32 %v13724_v1, %v4836_v42  ;;  %5000 = vadd.xlane.f32.xlu1 %v4999_v12  ;;  %4877 = vmax.xlane.f32.xlu0 %v4876_v13 }
 0x6d2   : > { %v13863_v39 = vpop.eup %10496  ;;  %10510 = vpow2.f32 %v4941_v2 }
 0x6d3   : > { %v13865_v22 = vpop.eup %10498  ;;  %v4947_v24 = vmul.f32 1.442695, %v4897_v11  ;;  %v4945_v37 = vmul.f32 1.442695, %v4896_v45  ;;  %v5005_v31 = vsel %vm3782_vm1, %v13863_v39, 0.0 }
 0x6d4   : > { %v4845_v34 = vpop.xlane.xlu1 %4844  ;;  %v4842_v61 = vpop.xlane.xlu0 %4841  ;;  %v5002_v20 = vsel %vm3782_vm1, %v13865_v22, 0.0 }
 0x6d5   : > { %10512 = vpow2.f32 %v4947_v24  ;;  %v4899_v46 = vsub.f32 %v13736_v62, %v4845_v34  ;;  %v4898_v1 = vsub.f32 %v13728_v51, %v4842_v61  ;;  %5006 = vadd.xlane.f32.xlu1 %v5005_v31  ;;  %5003 = vadd.xlane.f32.xlu0 %v5002_v20 }
 0x6d6   : > { %v13873_v17 = vpop.eup %10500  ;;  %10514 = vpow2.f32 %v4945_v37 }
 0x6d7   : > { %v13875_v41 = vpop.eup %10502  ;;  %v4951_v52 = vmul.f32 1.442695, %v4899_v46  ;;  %v4949_v25 = vmul.f32 1.442695, %v4898_v1  ;;  %v5011_v32 = vsel %vm3782_vm1, %v13873_v17, 0.0 }
 0x6d8   : > { %v4851_v4 = vpop.xlane.xlu1 %4850  ;;  %v4848_v26 = vpop.xlane.xlu0 %4847  ;;  %v5008_v35 = vsel %vm3782_vm1, %v13875_v41, 0.0 }
 0x6d9   : > { %10516 = vpow2.f32 %v4951_v52  ;;  %v4901_v51 = vsub.f32 %v13744_v33, %v4851_v4  ;;  %v4900_v62 = vsub.f32 %v13748_v10, %v4848_v26  ;;  %5012 = vadd.xlane.f32.xlu1 %v5011_v32  ;;  %5009 = vadd.xlane.f32.xlu0 %v5008_v35 }
 0x6da   : > { %v13883_v59 = vpop.eup %10504  ;;  %10518 = vpow2.f32 %v4949_v25 }
 0x6db   : > { %v13885_v2 = vpop.eup %10506  ;;  %v4955_v15 = vmul.f32 1.442695, %v4901_v51  ;;  %v4953_v42 = vmul.f32 1.442695, %v4900_v62  ;;  %v5017_v11 = vsel %vm3782_vm1, %v13883_v59, 0.0 }
 0x6dc   : > { %v4854_v12 = vpop.xlane.xlu0 %4853  ;;  %v5014_v10 = vsel %vm3782_vm1, %v13885_v2, 0.0 }
 0x6dd   : > { %10520 = vpow2.f32 %v4955_v15  ;;  %v4902_v33 = vsub.f32 %v13756_v63, %v4854_v12  ;;  %5018 = vadd.xlane.f32.xlu1 %v5017_v11  ;;  %5015 = vadd.xlane.f32.xlu0 %v5014_v10 }
 0x6de   : > { %v13892_v45 = vpop.eup %10508  ;;  %10522 = vpow2.f32 %v4953_v42 }
 0x6df   : > { %v13894_v13 = vpop.eup %10510  ;;  %v4957_v24 = vmul.f32 1.442695, %v4902_v33  ;;  %v5023_v37 = vsel %vm3782_vm1, %v13892_v45, 0.0 }
 0x6e0   : > { %v5020_v34 = vsel %vm3782_vm1, %v13894_v13, 0.0 }
 0x6e1   : > { %10524 = vpow2.f32 %v4957_v24  ;;  %5024 = vadd.xlane.f32.xlu1 %v5023_v37  ;;  %5021 = vadd.xlane.f32.xlu0 %v5020_v34 }
 0x6e2   : > { %v13900_v63 = vpop.eup %10512 }
 0x6e3   : > { %v13902_v61 = vpop.eup %10514  ;;  %v5029_v31 = vsel %vm3782_vm1, %v13900_v63, 0.0 }
 0x6e4   : > { %v5026_v46 = vsel %vm3782_vm1, %v13902_v61, 0.0 }
 0x6e5   : > { %5030 = vadd.xlane.f32.xlu1 %v5029_v31  ;;  %5027 = vadd.xlane.f32.xlu0 %v5026_v46 }
 0x6e6   : > { %v13908_v1 = vpop.eup %10516 }
 0x6e7   : > { %v13910_v20 = vpop.eup %10518  ;;  %v5035_v52 = vsel %vm3782_vm1, %v13908_v1, 0.0 }
 0x6e8   : > { %v5032_v25 = vsel %vm3782_vm1, %v13910_v20, 0.0 }
 0x6e9   : > { %5036 = vadd.xlane.f32.xlu1 %v5035_v52  ;;  %5033 = vadd.xlane.f32.xlu0 %v5032_v25 }
 0x6ea   : > { %v13916_v4 = vpop.eup %10520 }
 0x6eb   : > { %v13918_v26 = vpop.eup %10522  ;;  %v5041_v32 = vsel %vm3782_vm1, %v13916_v4, 0.0 }
 0x6ec   : > { %v5038_v51 = vsel %vm3782_vm1, %v13918_v26, 0.0 }
 0x6ed   : > { %5042 = vadd.xlane.f32.xlu1 %v5041_v32  ;;  %5039 = vadd.xlane.f32.xlu0 %v5038_v51 }
 0x6ee   : > { %v13924_v62 = vpop.eup %10524 }
 0x6ef   : > { %v5044_v35 = vsel %vm3782_vm1, %v13924_v62, 0.0 }
 0x6f1   : > { %5045 = vadd.xlane.f32.xlu0 %v5044_v35 }
 0x73a   : > { %v4983_v15 = vpop.xlane.xlu1 %4982 }
 0x73e   : > { %v4977_v42 = vpop.xlane.xlu1 %4976  ;;  %v4986_v12 = vpop.xlane.xlu0 %4985 }
 0x73f   : > { %10526 = vrcp.f32 %v4986_v12 }
 0x740   : > { %10528 = vrcp.f32 %v4977_v42 }
 0x741   : > { %10530 = vrcp.f32 %v4983_v15 }
 0x742   : > { %v4857_v11 = vpop.xlane.xlu1 %4856  ;;  %v4980_v10 = vpop.xlane.xlu0 %4979 }
 0x743   : > { %v4903_v33 = vsub.f32 %v13780_v28, %v4857_v11  ;;  %10532 = vrcp.f32 %v4980_v10 }
 0x745   : > { %v4959_v24 = vmul.f32 1.442695, %v4903_v33 }
 0x746   : > { %v4863_v37 = vpop.xlane.xlu1 %4862  ;;  %v4860_v31 = vpop.xlane.xlu0 %4859 }
 0x747   : > { %10534 = vpow2.f32 %v4959_v24  ;;  %v4905_v34 = vsub.f32 %v13790_v60, %v4863_v37  ;;  %v4904_v46 = vsub.f32 %v13796_v57, %v4860_v31 }
 0x749   : > { %v4963_v52 = vmul.f32 1.442695, %v4905_v34  ;;  %v4961_v25 = vmul.f32 1.442695, %v4904_v46  ;;  %v16748_v34 = vld [vmem:[#allocation168_spill] sm:$0xff] }
 0x74a   : > { %v4995_v32 = vpop.xlane.xlu1 %4994  ;;  %v4866_v51 = vpop.xlane.xlu0 %4865 }
 0x74b   : > { %10536 = vpow2.f32 %v4963_v52  ;;  %v4906_v35 = vsub.f32 %v13807_v5, %v4866_v51  ;;  %v3277_v5 = vadd.f32 %v16748_v34, %v13432_v21  ;;  %v16749_v51 = vld [vmem:[#allocation167_spill] sm:$0xff] }
 0x74c   : > { %10538 = vpow2.f32 %v4961_v25  ;;  %v10527_v15 = vpop.eup %10526 }
 0x74d   : > { %v4965_v28 = vmul.f32 1.442695, %v4906_v35  ;;  %v10529_v12 = vpop.eup %10528  ;;  %v5106_v60 = vmul.f32 %v10527_v15, %v13774_v30  ;;  %v3273_v35 = vadd.f32 %v16749_v51, %v13432_v21  ;;  %v16753_v51 = vld [vmem:[#allocation163_spill] sm:$0xff] }
 0x74e   : > { %v4989_v42 = vpop.xlane.xlu1 %4988  ;;  %v4998_v11 = vpop.xlane.xlu0 %4997  ;;  %v5103_v24 = vmul.f32 %v10529_v12, %v13771_v38 }
 0x74f   : > { %v10531_v33 = vpop.eup %10530  ;;  %10540 = vpow2.f32 %v4965_v28  ;;  %v3414_v28 = vpack.c.bf16 %v3277_v5, %v3273_v35  ;;  %v3253_v35 = vadd.f32 %v16753_v51, %v13432_v21 }
 0x750   : > { %v10533_v10 = vpop.eup %10532  ;;  %10542 = vrcp.f32 %v4998_v11  ;;  %v5105_v31 = vmul.f32 %v10531_v33, %v13767_v9 }
 0x751   : > { %10544 = vrcp.f32 %v4989_v42  ;;  %v5104_v37 = vmul.f32 %v10533_v10, %v13784_v18 }
 0x752   : > { %v4869_v57 = vpop.xlane.xlu1 %4868  ;;  %10546 = vrcp.f32 %v4995_v32  ;;  %v4992_v52 = vpop.xlane.xlu0 %4991  ;;  %v5136_v15 = vpack.c.bf16 %v5106_v60, %v5105_v31  ;;  %v16750_v32 = vld [vmem:[#allocation166_spill] sm:$0xff]  ;;  %v16751_v60 = vld [vmem:[#allocation165_spill] sm:$0xff] }
 0x753   : > { %v4907_v46 = vsub.f32 %v13821_v29, %v4869_v57  ;;  %10548 = vrcp.f32 %v4992_v52  ;;  %v5135_v30 = vpack.c.bf16 %v5104_v37, %v5103_v24  ;;  %v3267_v29 = vadd.f32 %v16750_v32, %v13432_v21 }
 0x754   : > { %v13939_v25 = vpop.eup %10534  ;;  %v3263_v57 = vadd.f32 %v16751_v60, %v13432_v21 }
 0x755   : > { %v4967_v38 = vmul.f32 1.442695, %v4907_v46  ;;  %v5047_v18 = vsel %vm3782_vm1, %v13939_v25, 0.0  ;;  %9798 = vmatprep.mubr.msk.bf16.mxu0 %vm3782_vm1, %v5135_v30 }
 0x756   : > { %5048 = vadd.xlane.f32.xlu1 %v5047_v18  ;;  %v4875_v9 = vpop.xlane.xlu1 %4874  ;;  %9799 = vmatmul.mubr.msk.bf16.vlgmr.msra.gmra.mxu0 %vm3782_vm1, %v5136_v15  ;;  %v4872_v12 = vpop.xlane.xlu0 %4871 }
 0x757   : > { %10550 = vpow2.f32 %v4967_v38  ;;  %v4909_v42 = vsub.f32 %v13833_v3, %v4875_v9  ;;  %9823 = vmatpush3.bf16.msra.mxu0 %v13494_v19  ;;  %v4908_v33 = vsub.f32 %v13843_v36, %v4872_v12  ;;  %v16752_v19 = vld [vmem:[#allocation164_spill] sm:$0xff]  ;;  %v3412_v36 = vpack.c.bf16 %v3267_v29, %v3263_v57 }
 0x758   : > { %v13950_v11 = vpop.eup %10536  ;;  %9824 = vmatprep.subr.bf16.mxu0 %v3414_v28  ;;  %v3257_v31 = vadd.f32 %v16752_v19, %v13432_v21 }
 0x759   : > { %v13954_v10 = vpop.eup %10538  ;;  %v4971_v24 = vmul.f32 1.442695, %v4909_v42  ;;  %v5053_v37 = vsel %vm3782_vm1, %v13950_v11, 0.0  ;;  %v4969_v3 = vmul.f32 1.442695, %v4908_v33 }
 0x75a   : > { %5054 = vadd.xlane.f32.xlu1 %v5053_v37  ;;  %v5001_v34 = vpop.xlane.xlu1 %5000  ;;  %v5050_v5 = vsel %vm3782_vm1, %v13954_v10, 0.0  ;;  %v4878_v46 = vpop.xlane.xlu0 %4877  ;;  %v3410_v29 = vpack.c.bf16 %v3257_v31, %v3253_v35  ;;  %v10192_v33 = vld [vmem:[#allocation8 + $0x74] ss:$8 sps:$4 sm:$0xff]  }
 0x75b   : > { %10552 = vpow2.f32 %v4971_v24  ;;  %5051 = vadd.xlane.f32.xlu0 %v5050_v5  ;;  %9825 = vmatpush3.bf16.msra.mxu0 %v3414_v28  ;;  %v4910_v52 = vsub.f32 %v13855_v53, %v4878_v46 }
 0x75c   : > { %10554 = vpow2.f32 %v4969_v3  ;;  %v13965_v30 = vpop.eup %10540  ;;  %9826 = vmatprep.subr.bf16.mxu0 %v3412_v36 }
 0x75d   : > { %v10543_v15 = vpop.eup %10542  ;;  %v4973_v38 = vmul.f32 1.442695, %v4910_v52  ;;  %v5056_v9 = vsel %vm3782_vm1, %v13965_v30, 0.0  ;;  %10556 = vrcp.f32 %v5001_v34 }
 0x75e   : > { %v5007_v18 = vpop.xlane.xlu1 %5006  ;;  %v10545_v32 = vpop.eup %10544  ;;  %v5110_v12 = vmul.f32 %v10543_v15, %v13817_v8 }
 0x75f   : > { %5057 = vadd.xlane.f32.xlu0 %v5056_v9  ;;  %v5004_v42 = vpop.xlane.xlu0 %5003  ;;  %v10547_v28 = vpop.eup %10546  ;;  %10558 = vpow2.f32 %v4973_v38  ;;  %9827 = vmatpush3.bf16.msra.mxu0 %v3412_v36  ;;  %v5107_v57 = vmul.f32 %v10545_v32, %v13811_v40 }
 0x760   : > { %v10549_v53 = vpop.eup %10548  ;;  %10560 = vrcp.f32 %v5004_v42  ;;  %9828 = vmatprep.subr.bf16.mxu0 %v3410_v29  ;;  %v5109_v3 = vmul.f32 %v10547_v28, %v13800_v44 }
 0x761   : > { %10562 = vrcp.f32 %v5007_v18  ;;  %v5108_v24 = vmul.f32 %v10549_v53, %v13829_v48 }
 0x762   : > { %v5013_v60 = vpop.xlane.xlu1 %5012  ;;  %v5138_v31 = vpack.c.bf16 %v5110_v12, %v5109_v3 }
 0x763   : > { %v5010_v37 = vpop.xlane.xlu0 %5009  ;;  %9829 = vmatpush3.bf16.msra.mxu0 %v3410_v29  ;;  %v5137_v5 = vpack.c.bf16 %v5108_v24, %v5107_v57 }
 0x764   : > { %v13975_v34 = vpop.eup %10550  ;;  %10564 = vrcp.f32 %v5010_v37  ;;  %5695 = vmatprep.subr.bf16.mxu0 %v10192_v33  ;;  %v16754_v33 = vld [vmem:[#allocation183_spill] sm:$0xff] }
 0x765   : > { %v5059_v19 = vsel %vm3782_vm1, %v13975_v34, 0.0  ;;  %10566 = vrcp.f32 %v5013_v60  ;;  %9802 = vmatprep.mubr.msk.bf16.mxu0 %vm3782_vm1, %v5137_v5  ;;  %v3317_v60 = vadd.f32 %v16754_v33, %v13432_v21 }
 0x766   : > { %5060 = vadd.xlane.f32.xlu1 %v5059_v19  ;;  %v5019_v40 = vpop.xlane.xlu1 %5018  ;;  %9803 = vmatmul.mubr.msk.bf16.gmra.mxu0 %vm3782_vm1, %v5138_v31 }
 0x767   : > { %v5016_v8 = vpop.xlane.xlu0 %5015 }
 0x768   : > { %v13981_v48 = vpop.eup %10552  ;;  %10568 = vrcp.f32 %v5016_v8 }
 0x769   : > { %v13983_v44 = vpop.eup %10554  ;;  %v5065_v36 = vsel %vm3782_vm1, %v13981_v48, 0.0  ;;  %10570 = vrcp.f32 %v5019_v40  ;;  %v16756_v40 = vld [vmem:[#allocation177_spill] sm:$0xff] }
 0x76a   : > { %5066 = vadd.xlane.f32.xlu1 %v5065_v36  ;;  %v5025_v46 = vpop.xlane.xlu1 %5024  ;;  %v5062_v52 = vsel %vm3782_vm1, %v13983_v44, 0.0  ;;  %v10557_v35 = vpop.eup %10556  ;;  %v3307_v8 = vadd.f32 %v16756_v40, %v13432_v21 }
 0x76b   : > { %5063 = vadd.xlane.f32.xlu0 %v5062_v52  ;;  %v5022_v51 = vpop.xlane.xlu0 %5021  ;;  %v5111_v42 = vmul.f32 %v10557_v35, %v13851_v7  ;;  %v16755_v7 = vld [vmem:[#allocation180_spill] sm:$0xff]  ;;  %v16757_v35 = vld [vmem:[#allocation175_spill] sm:$0xff] }
 0x76c   : > { %10572 = vrcp.f32 %v5022_v51  ;;  %v13989_v15 = vpop.eup %10558  ;;  %v3313_v19 = vadd.f32 %v16755_v7, %v13432_v21 }
 0x76d   : > { %v10561_v38 = vpop.eup %10560  ;;  %10574 = vrcp.f32 %v5025_v46  ;;  %v5068_v9 = vsel %vm3782_vm1, %v13989_v15, 0.0 }
 0x76e   : > { %v5031_v18 = vpop.xlane.xlu1 %5030  ;;  %v10563_v32 = vpop.eup %10562  ;;  %v5112_v28 = vmul.f32 %v10561_v38, %v13865_v22  ;;  %v3422_v36 = vpack.c.bf16 %v3317_v60, %v3313_v19  ;;  %v3303_v38 = vadd.f32 %v16757_v35, %v13432_v21  ;;  %v10190_v19 = vld [vmem:[#allocation8 + $0x70] ss:$8 sps:$4 sm:$0xff]   ;;  %v10204_v35 = vld [vmem:[#allocation8 + $0x34] ss:$8 sps:$4 sm:$0xff]  }
 0x76f   : > { %5069 = vadd.xlane.f32.xlu0 %v5068_v9  ;;  %v5028_v29 = vpop.xlane.xlu0 %5027  ;;  %v5113_v57 = vmul.f32 %v10563_v32, %v13863_v39  ;;  %v16758_v32 = vld [vmem:[#allocation172_spill] sm:$0xff] }
 0x770   : > { %10576 = vrcp.f32 %v5028_v29  ;;  %v5139_v12 = vpack.c.bf16 %v5112_v28, %v5111_v42  ;;  %v3297_v29 = vadd.f32 %v16758_v32, %v13432_v21  ;;  %v3420_v42 = vpack.c.bf16 %v3307_v8, %v3303_v38  ;;  %v10202_v38 = vld [vmem:[#allocation8 + $0x30] ss:$8 sps:$4 sm:$0xff]   ;;  %v10213_v32 = vld [vmem:[#allocation8 + $0x4] ss:$8 sps:$4 sm:$0xff]  }
 0x771   : > { %v10565_v53 = vpop.eup %10564  ;;  %10578 = vrcp.f32 %v5031_v18 }
 0x772   : > { %v5114_v24 = vmul.f32 %v10565_v53, %v13875_v41  ;;  %v5037_v37 = vpop.xlane.xlu1 %5036  ;;  %v10567_v3 = vpop.eup %10566  ;;  %9814 = vmatprep.mubr.msk.bf16.mxu1 %vm3782_vm1, %v5139_v12  ;;  %v16759_v53 = vld [vmem:[#allocation171_spill] sm:$0xff] }
 0x773   : > { %v5034_v5 = vpop.xlane.xlu0 %5033  ;;  %v5115_v39 = vmul.f32 %v10567_v3, %v13873_v17  ;;  %v3293_v12 = vadd.f32 %v16759_v53, %v13432_v21  ;;  %v10220_v53 = vld [vmem:[#allocation8 + $0xd0] ss:$8 sps:$4 sm:$0xff]  }
 0x774   : > { %v5140_v22 = vpack.c.bf16 %v5114_v24, %v5113_v57  ;;  %10580 = vrcp.f32 %v5034_v5 }
 0x775   : > { %v10569_v31 = vpop.eup %10568  ;;  %10582 = vrcp.f32 %v5037_v37  ;;  %v3418_v57 = vpack.c.bf16 %v3297_v29, %v3293_v12  ;;  %v10211_v29 = vld [vmem:[#allocation8] ss:$8 sps:$4 sm:$0xff]   ;;  %v10225_v12 = vld [vmem:[#allocation8 + $0xc4] ss:$8 sps:$4 sm:$0xff]  }
 0x776   : > { %9815 = vmatmul.mubr.msk.bf16.vlgmr.msra.gmra.mxu1 %vm3782_vm1, %v5140_v22  ;;  %v5116_v41 = vmul.f32 %v10569_v31, %v13885_v2  ;;  %v10571_v46 = vpop.eup %10570  ;;  %v5043_v52 = vpop.xlane.xlu1 %5042  ;;  %v10195_v31 = vld [vmem:[#allocation8 + $0x64] ss:$8 sps:$4 sm:$0xff]  }
 0x777   : > { %9839 = vmatpush3.bf16.msra.mxu1 %v13533_v55  ;;  %v5040_v51 = vpop.xlane.xlu0 %5039  ;;  %v5117_v17 = vmul.f32 %v10571_v46, %v13883_v59 }
 0x778   : > { %9840 = vmatprep.subr.bf16.mxu1 %v3422_v36  ;;  %10584 = vrcp.f32 %v5040_v51  ;;  %v5141_v18 = vpack.c.bf16 %v5116_v41, %v5115_v39 }
 0x779   : > { %v10573_v9 = vpop.eup %10572  ;;  %10586 = vrcp.f32 %v5043_v52  ;;  %v10196_v52 = vld [vmem:[#allocation8 + $0x50] ss:$8 sps:$4 sm:$0xff]  }
 0x77a   : > { %9818 = vmatprep.mubr.msk.bf16.mxu1 %vm3782_vm1, %v5141_v18  ;;  %v5118_v55 = vmul.f32 %v10573_v9, %v13894_v13  ;;  %v10575_v2 = vpop.eup %10574  ;;  %v10207_v18 = vld [vmem:[#allocation8 + $0x24] ss:$8 sps:$4 sm:$0xff]   ;;  %v10205_v9 = vld [vmem:[#allocation8 + $0x20] ss:$8 sps:$4 sm:$0xff]  }
 0x77b   : > { %9841 = vmatpush3.bf16.msra.mxu1 %v3422_v36  ;;  %v5046_v28 = vpop.xlane.xlu0 %5045  ;;  %v5119_v24 = vmul.f32 %v10575_v2, %v13892_v45  ;;  %v10193_v36 = vld [vmem:[#allocation8 + $0x60] ss:$8 sps:$4 sm:$0xff]  }
 0x77c   : > { %9842 = vmatprep.subr.bf16.mxu1 %v3420_v42  ;;  %10588 = vrcp.f32 %v5046_v28  ;;  %v5142_v33 = vpack.c.bf16 %v5118_v55, %v5117_v17  ;;  %v10214_v17 = vld [vmem:[#allocation8 + $0xf0] ss:$8 sps:$4 sm:$0xff]   ;;  %v10219_v55 = vld [vmem:[#allocation8 + $0xe4] ss:$8 sps:$4 sm:$0xff]   ;;  %v10217_v2 = vld [vmem:[#allocation8 + $0xe0] ss:$8 sps:$4 sm:$0xff]  }
 0x77d   : > { %v10577_v60 = vpop.eup %10576  ;;  %v10222_v28 = vld [vmem:[#allocation8 + $0xd4] ss:$8 sps:$4 sm:$0xff]  }
 0x77e   : > { %9819 = vmatmul.mubr.msk.bf16.gmra.mxu1 %vm3782_vm1, %v5142_v33  ;;  %v5120_v37 = vmul.f32 %v10577_v60, %v13902_v61  ;;  %v10579_v59 = vpop.eup %10578  ;;  %v10223_v33 = vld [vmem:[#allocation8 + $0xc0] ss:$8 sps:$4 sm:$0xff]   ;;  %v10228_v60 = vld [vmem:[#allocation8 + $0xb4] ss:$8 sps:$4 sm:$0xff]  }
 0x77f   : > { %9843 = vmatpush3.bf16.msra.mxu1 %v3420_v42  ;;  %v5121_v5 = vmul.f32 %v10579_v59, %v13900_v63  ;;  %v10216_v42 = vld [vmem:[#allocation8 + $0xf4] ss:$8 sps:$4 sm:$0xff]  }
 0x780   : > { %9844 = vmatprep.subr.bf16.mxu1 %v3418_v57  ;;  %v5143_v13 = vpack.c.bf16 %v5120_v37, %v5119_v24  ;;  %v10231_v24 = vld [vmem:[#allocation8 + $0xa4] ss:$8 sps:$4 sm:$0xff]   ;;  %v10229_v37 = vld [vmem:[#allocation8 + $0xa0] ss:$8 sps:$4 sm:$0xff]   ;;  %v10234_v59 = vld [vmem:[#allocation8 + $0x94] ss:$8 sps:$4 sm:$0xff]  }
 0x781   : > { %v10581_v3 = vpop.eup %10580 }
 0x782   : > { %v5122_v21 = vmul.f32 %v10581_v3, %v13910_v20  ;;  %9830 = vmatprep.mubr.msk.bf16.mxu0 %vm3782_vm1, %v5143_v13  ;;  %v10583_v7 = vpop.eup %10582  ;;  %v10198_v20 = vld [vmem:[#allocation8 + $0x54] ss:$8 sps:$4 sm:$0xff]   ;;  %v10232_v13 = vld [vmem:[#allocation8 + $0x90] ss:$8 sps:$4 sm:$0xff]   ;;  %v10237_v3 = vld [vmem:[#allocation8 + $0x84] ss:$8 sps:$4 sm:$0xff]  }
 0x783   : > { %9845 = vmatpush3.bf16.msra.mxu1 %v3418_v57  ;;  %v5123_v45 = vmul.f32 %v10583_v7, %v13908_v1  ;;  %v10201_v1 = vld [vmem:[#allocation8 + $0x44] ss:$8 sps:$4 sm:$0xff]   ;;  %v10226_v57 = vld [vmem:[#allocation8 + $0xb0] ss:$8 sps:$4 sm:$0xff]  }
 0x784   : > { %v5144_v22 = vpack.c.bf16 %v5122_v21, %v5121_v5  ;;  %v10235_v5 = vld [vmem:[#allocation8 + $0x80] ss:$8 sps:$4 sm:$0xff]  }
 0x785   : > { %v10585_v40 = vpop.eup %10584 }
 0x786   : > { %9831 = vmatmul.mubr.msk.bf16.vlgmr.msra.gmra.mxu0 %vm3782_vm1, %v5144_v22  ;;  %v5124_v61 = vmul.f32 %v10585_v40, %v13918_v26  ;;  %v10587_v8 = vpop.eup %10586  ;;  %v10199_v26 = vld [vmem:[#allocation8 + $0x40] ss:$8 sps:$4 sm:$0xff]  }
 0x787   : > { %5696 = vmatpush1.bf16.msra.mxu0 %v10190_v19  ;;  %v5125_v41 = vmul.f32 %v10587_v8, %v13916_v4  ;;  %v10210_v4 = vld [vmem:[#allocation8 + $0x14] ss:$8 sps:$4 sm:$0xff]  }
 0x788   : > { %v5145_v63 = vpack.c.bf16 %v5124_v61, %v5123_v45  ;;  %5697 = vmatprep.subr.bf16.mxu0 %v10195_v31 }
 0x789   : > { %v10589_v39 = vpop.eup %10588 }
 0x78a   : > { %9834 = vmatprep.mubr.msk.bf16.mxu0 %vm3782_vm1, %v5145_v63  ;;  %v5126_v46 = vmul.f32 %v10589_v39, %v13924_v62  ;;  %v10208_v62 = vld [vmem:[#allocation8 + $0x10] ss:$8 sps:$4 sm:$0xff]  }
 0x78b   : > { %5698 = vmatpush1.bf16.msra.mxu0 %v10193_v36 }
 0x78c   : > { %v5146_v51 = vpack.c.bf16 %v5126_v46, %v5125_v41  ;;  %5699 = vmatprep.subr.bf16.mxu0 %v10198_v20 }
 0x78e   : > { %9835 = vmatmul.mubr.msk.bf16.gmra.mxu0 %vm3782_vm1, %v5146_v51 }
 0x78f   : > { %5700 = vmatpush1.bf16.msra.mxu0 %v10196_v52 }
 0x790   : > { %5701 = vmatprep.subr.bf16.mxu0 %v10201_v1 }
 0x793   : > { %5702 = vmatpush1.bf16.msra.mxu0 %v10199_v26 }
 0x794   : > { %5703 = vmatprep.subr.bf16.mxu0 %v10204_v35 }
 0x797   : > { %5704 = vmatpush1.bf16.msra.mxu0 %v10202_v38 }
 0x798   : > { %5705 = vmatprep.subr.bf16.mxu0 %v10207_v18 }
 0x79b   : > { %5706 = vmatpush1.bf16.msra.mxu0 %v10205_v9 }
 0x79c   : > { %5707 = vmatprep.subr.bf16.mxu0 %v10210_v4 }
 0x79f   : > { %5708 = vmatpush1.bf16.msra.mxu0 %v10208_v62 }
 0x7a0   : > { %5709 = vmatprep.subr.bf16.mxu0 %v10213_v32 }
 0x7a3   : > { %5710 = vmatpush1.bf16.msra.mxu0 %v10211_v29 }
 0x7a4   : > { %5711 = vmatprep.subr.bf16.mxu0 %v10216_v42 }
 0x7a7   : > { %5712 = vmatpush2.bf16.msra.mxu0 %v10214_v17 }
 0x7a8   : > { %5713 = vmatprep.subr.bf16.mxu0 %v10219_v55 }
 0x7ab   : > { %5714 = vmatpush2.bf16.msra.mxu0 %v10217_v2 }
 0x7ac   : > { %5715 = vmatprep.subr.bf16.mxu0 %v10222_v28 }
 0x7af   : > { %5716 = vmatpush2.bf16.msra.mxu0 %v10220_v53 }
 0x7b0   : > { %5717 = vmatprep.subr.bf16.mxu0 %v10225_v12  ;;  %v5463_v12 = vpack.c.bf16 %v13562_v23, %v13556_v43 }
 0x7b3   : > { %5718 = vmatpush2.bf16.msra.mxu0 %v10223_v33 }
 0x7b4   : > { %5719 = vmatprep.subr.bf16.mxu0 %v10228_v60  ;;  %v16761_v60 = vpack.c.bf16 %v13558_v16, %v13550_v54  ;;  %v16762_v54 = vpack.c.bf16 %v13568_v47, %v13564_v49  ;;  %v16767_v49 = vld [vmem:[#allocation173_spill] sm:$0xff]  ;;  %v16768_v47 = vld [vmem:[#allocation95_spill] sm:$0xff] }
 0x7b7   : > { %5720 = vmatpush2.bf16.msra.mxu0 %v10226_v57 }
 0x7b8   : > { %5721 = vmatprep.subr.bf16.mxu0 %v10231_v24 }
 0x7bb   : > { %5722 = vmatpush2.bf16.msra.mxu0 %v10229_v37  ;;  %v5467_v37 = vpack.c.bf16 %v13576_v27, %v13566_v56 }
 0x7bc   : > { %5723 = vmatprep.subr.bf16.mxu0 %v10234_v59 }
 0x7bf   : > { %5724 = vmatpush2.bf16.msra.mxu0 %v10232_v13 }
 0x7c0   : > { %5725 = vmatprep.subr.bf16.mxu0 %v10237_v3 }
 0x7c3   : > { %5726 = vmatpush2.bf16.msra.mxu0 %v10235_v5 }
 0x7df   : > { %v5049_v21 = vpop.xlane.xlu1 %5048 }
 0x7e0   : > { %10590 = vrcp.f32 %v5049_v21  ;;  %v16763_v21 = vld [vmem:[#allocation104_spill] sm:$0xff] }
 0x7e3   : > { %v5055_v7 = vpop.xlane.xlu1 %5054 }
 0x7e4   : > { %v5052_v19 = vpop.xlane.xlu0 %5051 }
 0x7e5   : > { %10592 = vrcp.f32 %v5052_v19 }
 0x7e6   : > { %10594 = vrcp.f32 %v5055_v7  ;;  %v5471_v7 = vpack.c.bf16 %v16763_v21, %v13586_v50  ;;  %v16790_v21 = vld [vmem:[#allocation28_spill] sm:$0xff] }
 0x7e8   : > { %v5058_v22 = vpop.xlane.xlu0 %5057 }
 0x7e9   : > { %10596 = vrcp.f32 %v5058_v22 }
 0x7ed   : > { %v10591_v40 = vpop.eup %10590 }
 0x7ee   : > { %v5127_v61 = vmul.f32 %v10591_v40, %v13939_v25  ;;  %v16764_v40 = vld [vmem:[#allocation97_spill] sm:$0xff] }
 0x7ef   : > { %v5061_v31 = vpop.xlane.xlu1 %5060 }
 0x7f0   : > { %10598 = vrcp.f32 %v5061_v31 }
 0x7f2   : > { %v10593_v45 = vpop.eup %10592 }
 0x7f3   : > { %v5128_v8 = vmul.f32 %v10593_v45, %v13954_v10  ;;  %v10595_v36 = vpop.eup %10594  ;;  %v5067_v63 = vpop.xlane.xlu1 %5066  ;;  %v16765_v45 = vld [vmem:[#allocation120_spill] sm:$0xff] }
 0x7f4   : > { %v5064_v20 = vpop.xlane.xlu0 %5063  ;;  %v5129_v46 = vmul.f32 %v10595_v36, %v13950_v11  ;;  %v5475_v36 = vpack.c.bf16 %v16768_v47, %v16767_v49 }
 0x7f5   : > { %10600 = vrcp.f32 %v5064_v20  ;;  %v5147_v39 = vpack.c.bf16 %v5128_v8, %v5127_v61  ;;  %v16766_v61 = vpack.c.bf16 %v16764_v40, %v16765_v45  ;;  %v16791_v40 = vld [vmem:[#allocation29_spill] sm:$0xff] }
 0x7f6   : > { %v10597_v41 = vpop.eup %10596  ;;  %10602 = vrcp.f32 %v5067_v63 }
 0x7f7   : > { %v5130_v52 = vmul.f32 %v10597_v41, %v13965_v30  ;;  %9846 = vmatprep.mubr.msk.bf16.mxu1 %vm3782_vm1, %v5147_v39  ;;  %v16769_v41 = vld [vmem:[#allocation124_spill] sm:$0xff] }
 0x7f8   : > { %v5070_v51 = vpop.xlane.xlu0 %5069 }
 0x7f9   : > { %v5148_v1 = vpack.c.bf16 %v5130_v52, %v5129_v46  ;;  %10604 = vrcp.f32 %v5070_v51  ;;  %v16770_v46 = vld [vmem:[#allocation109_spill] sm:$0xff]  ;;  %v16772_v51 = vld [vmem:[#allocation122_spill] sm:$0xff] }
 0x7fa   : > { %v16771_v52 = vpack.c.bf16 %v16769_v41, %v16770_v46  ;;  %v16794_v41 = vld [vmem:[#allocation32_spill] sm:$0xff] }
 0x7fb   : > { %9847 = vmatmul.mubr.msk.bf16.vlgmr.msra.gmra.mxu1 %vm3782_vm1, %v5148_v1  ;;  %v16773_v1 = vld [vmem:[#allocation98_spill] sm:$0xff] }
 0x7fd   : > { %v10599_v25 = vpop.eup %10598 }
 0x7fe   : > { %v5131_v26 = vmul.f32 %v10599_v25, %v13975_v34  ;;  %v5459_v34 = vpack.c.bf16 %v13546_v0, %v13538_v58  ;;  %v5479_v25 = vpack.c.bf16 %v16773_v1, %v16772_v51 }
 0x802   : > { %v10601_v10 = vpop.eup %10600 }
 0x803   : > { %v5132_v35 = vmul.f32 %v10601_v10, %v13983_v44  ;;  %v10603_v38 = vpop.eup %10602 }
 0x804   : > { %v5133_v11 = vmul.f32 %v10603_v38, %v13981_v48  ;;  %v16760_v48 = vpack.c.bf16 %v13540_v6, %v13536_v14 }
 0x805   : > { %v5149_v18 = vpack.c.bf16 %v5132_v35, %v5131_v26  ;;  %v16774_v26 = vld [vmem:[#allocation107_spill] sm:$0xff]  ;;  %v16775_v35 = vld [vmem:[#allocation94_spill] sm:$0xff] }
 0x806   : > { %v10605_v9 = vpop.eup %10604  ;;  %v16776_v38 = vpack.c.bf16 %v16774_v26, %v16775_v35  ;;  %v16795_v26 = vld [vmem:[#allocation33_spill] sm:$0xff] }
 0x807   : > { %9850 = vmatprep.mubr.msk.bf16.mxu1 %vm3782_vm1, %v5149_v18  ;;  %v5134_v30 = vmul.f32 %v10605_v9, %v13989_v15 }
 0x809   : > { %v5150_v4 = vpack.c.bf16 %v5134_v30, %v5133_v11 }
 0x80b   : > { %9851 = vmatmul.mubr.msk.bf16.gmra.mxu1 %vm3782_vm1, %v5150_v4 }
 0x816   : > { %v9800_v62 = vpop.f32.mrf.mxu0 }
 0x818   : > { %v5197_v32 = vpop.f32.mrf.mxu0 }
 0x81a   : > { %v9801_v29 = vpop.f32.mrf.mxu0 }
 0x81b   : > { %v5462_v44 = vpack.c.bf16 %v9801_v29, %v9800_v62  ;;  %v16777_v62 = vld [vmem:[#allocation101_spill] sm:$0xff] }
 0x81c   : > { %v5200_v42 = vpop.f32.mrf.mxu0 }
 0x81d   : > { %v5460_v17 = vpack.c.bf16 %v5200_v42, %v5197_v32  ;;  %v16778_v32 = vld [vmem:[#allocation125_spill] sm:$0xff] }
 0x81e   : > { %v5483_v29 = vpack.c.bf16 %v16778_v32, %v16777_v62  ;;  %v16797_v32 = vld [vmem:[#allocation35_spill] sm:$0xff] }
 0x81f   : > { %5727 = vmatprep.mubr.bf16.mxu0 %v5460_v17 }
 0x820   : > { %5728 = vmatmul.mubr.bf16.vlgmr.msra.gmra.mxu0 %v5459_v34 }
 0x821   : > { %5737 = vmatprep.mubr.bf16.mxu0 %v5462_v44  ;;  %v16779_v44 = vld [vmem:[#allocation93_spill] sm:$0xff] }
 0x826   : > { %v9804_v55 = vpop.f32.mrf.mxu0 }
 0x828   : > { %v5213_v2 = vpop.f32.mrf.mxu0  ;;  %5738 = vmatmul.mubr.bf16.gmra.mxu0 %v16760_v48 }
 0x82a   : > { %v9805_v15 = vpop.f32.mrf.mxu0 }
 0x82b   : > { %v5466_v33 = vpack.c.bf16 %v9805_v15, %v9804_v55  ;;  %v16780_v55 = vld [vmem:[#allocation102_spill] sm:$0xff] }
 0x82c   : > { %v5216_v28 = vpop.f32.mrf.mxu0 }
 0x82d   : > { %v5464_v53 = vpack.c.bf16 %v5216_v28, %v5213_v2  ;;  %v16781_v2 = vpack.c.bf16 %v16779_v44, %v16780_v55 }
 0x82f   : > { %5747 = vmatprep.mubr.bf16.mxu0 %v5464_v53  ;;  %v16782_v53 = vld [vmem:[#allocation123_spill] sm:$0xff] }
 0x830   : > { %5748 = vmatmul.mubr.bf16.gmra.mxu0 %v5463_v12  ;;  %v16783_v12 = vld [vmem:[#allocation116_spill] sm:$0xff] }
 0x831   : > { %5757 = vmatprep.mubr.bf16.mxu0 %v5466_v33  ;;  %v5487_v33 = vpack.c.bf16 %v16783_v12, %v16782_v53  ;;  %v16800_v53 = vld [vmem:[#allocation38_spill] sm:$0xff] }
 0x836   : > { %v9816_v58 = vpop.f32.mrf.mxu1 }
 0x838   : > { %v5274_v0 = vpop.f32.mrf.mxu1  ;;  %5758 = vmatmul.mubr.bf16.gmra.mxu0 %v16761_v60  ;;  %v16784_v60 = vld [vmem:[#allocation110_spill] sm:$0xff] }
 0x83a   : > { %v9817_v57 = vpop.f32.mrf.mxu1 }
 0x83b   : > { %v5470_v59 = vpack.c.bf16 %v9817_v57, %v9816_v58  ;;  %v16785_v57 = vld [vmem:[#allocation118_spill] sm:$0xff] }
 0x83c   : > { %v5277_v24 = vpop.f32.mrf.mxu1 }
 0x83d   : > { %v5468_v14 = vpack.c.bf16 %v5277_v24, %v5274_v0  ;;  %v5523_v0 = vld [vmem:[%s16202_s12] sm:$0x3]  ;;  %v16786_v24 = vpack.c.bf16 %v16784_v60, %v16785_v57 }
 0x83e   : > { %v9820_v6 = vpop.f32.mrf.mxu1 }
 0x83f   : > { %5767 = vmatprep.mubr.bf16.mxu0 %v5468_v14  ;;  %v16787_v14 = vld [vmem:[#allocation91_spill] sm:$0xff] }
 0x840   : > { %v5290_v43 = vpop.f32.mrf.mxu1  ;;  %5768 = vmatmul.mubr.bf16.gmra.mxu0 %v5467_v37  ;;  %v16788_v37 = vld [vmem:[#allocation92_spill] sm:$0xff] }
 0x841   : > { %5777 = vmatprep.mubr.bf16.mxu0 %v5470_v59  ;;  %v14089_v59 = vrot.slane %v5523_v0, %v16788_v37 }
 0x842   : > { %v9821_v23 = vpop.f32.mrf.mxu1 }
 0x843   : > { %v5474_v19 = vpack.c.bf16 %v9821_v23, %v9820_v6  ;;  %v14086_v6 = vrot.slane %v5523_v0, %v16787_v14 }
 0x844   : > { %v5293_v13 = vpop.f32.mrf.mxu1 }
 0x845   : > { %v5472_v3 = vpack.c.bf16 %v5293_v13, %v5290_v43 }
 0x846   : > { %v9832_v5 = vpop.f32.mrf.mxu0 }
 0x848   : > { %5778 = vmatmul.mubr.bf16.gmra.mxu0 %v16762_v54  ;;  %v5351_v16 = vpop.f32.mrf.mxu0  ;;  %v16789_v54 = vld [vmem:[#allocation27_spill] sm:$0xff] }
 0x849   : > { %5787 = vmatprep.mubr.bf16.mxu0 %v5472_v3 }
 0x84a   : > { %v9833_v56 = vpop.f32.mrf.mxu0 }
 0x84b   : > { %v5478_v63 = vpack.c.bf16 %v9833_v56, %v9832_v5 }
 0x84c   : > { %v5354_v27 = vpop.f32.mrf.mxu0 }
 0x84d   : > { %v5476_v22 = vpack.c.bf16 %v5354_v27, %v5351_v16 }
 0x84e   : > { %v9836_v31 = vpop.f32.mrf.mxu0 }
 0x850   : > { %5788 = vmatmul.mubr.bf16.gmra.mxu0 %v5471_v7  ;;  %v5367_v8 = vpop.f32.mrf.mxu0 }
 0x851   : > { %5797 = vmatprep.mubr.bf16.mxu0 %v5474_v19 }
 0x852   : > { %v9837_v20 = vpop.f32.mrf.mxu0 }
 0x853   : > { %v5482_v10 = vpack.c.bf16 %v9837_v20, %v9836_v31 }
 0x854   : > { %v5370_v50 = vpop.f32.mrf.mxu0 }
 0x855   : > { %v5480_v39 = vpack.c.bf16 %v5370_v50, %v5367_v8  ;;  %v16793_v50 = vld [vmem:[#allocation31_spill] sm:$0xff] }
 0x858   : > { %5798 = vmatmul.mubr.bf16.gmra.mxu0 %v16766_v61  ;;  %v16792_v61 = vld [vmem:[#allocation30_spill] sm:$0xff] }
 0x859   : > { %5807 = vmatprep.mubr.bf16.mxu0 %v5476_v22 }
 0x860   : > { %5808 = vmatmul.mubr.bf16.gmra.mxu0 %v5475_v36 }
 0x861   : > { %5817 = vmatprep.mubr.bf16.mxu0 %v5478_v63 }
 0x868   : > { %5818 = vmatmul.mubr.bf16.gmra.mxu0 %v16771_v52 }
 0x869   : > { %5827 = vmatprep.mubr.bf16.mxu0 %v5480_v39 }
 0x870   : > { %5828 = vmatmul.mubr.bf16.gmra.mxu0 %v5479_v25 }
 0x871   : > { %5837 = vmatprep.mubr.bf16.mxu0 %v5482_v10 }
 0x878   : > { %5838 = vmatmul.mubr.bf16.gmra.mxu0 %v16776_v38  ;;  %v16796_v38 = vld [vmem:[#allocation34_spill] sm:$0xff] }
 0x8bb   : > { %v9848_v18 = vpop.f32.mrf.mxu1 }
 0x8bd   : > { %v5428_v9 = vpop.f32.mrf.mxu1 }
 0x8bf   : > { %v9849_v11 = vpop.f32.mrf.mxu1 }
 0x8c0   : > { %v5486_v42 = vpack.c.bf16 %v9849_v11, %v9848_v18 }
 0x8c1   : > { %v5431_v30 = vpop.f32.mrf.mxu1 }
 0x8c2   : > { %v5484_v4 = vpack.c.bf16 %v5431_v30, %v5428_v9 }
 0x8c4   : > { %5847 = vmatprep.mubr.bf16.mxu0 %v5484_v4 }
 0x8c5   : > { %5848 = vmatmul.mubr.bf16.gmra.mxu0 %v5483_v29 }
 0x8c6   : > { %5857 = vmatprep.mubr.bf16.mxu0 %v5486_v42  ;;  %v16798_v42 = vld [vmem:[#allocation36_spill] sm:$0xff] }
 0x8cb   : > { %v9852_v17 = vpop.f32.mrf.mxu1 }
 0x8cd   : > { %v5444_v34 = vpop.f32.mrf.mxu1  ;;  %5858 = vmatmul.mubr.bf16.gmra.mxu0 %v16781_v2 }
 0x8cf   : > { %v9853_v48 = vpop.f32.mrf.mxu1 }
 0x8d0   : > { %v5490_v58 = vpack.c.bf16 %v9853_v48, %v9852_v17 }
 0x8d1   : > { %v5447_v15 = vpop.f32.mrf.mxu1 }
 0x8d2   : > { %v5488_v28 = vpack.c.bf16 %v5447_v15, %v5444_v34  ;;  %v16799_v15 = vld [vmem:[#allocation37_spill] sm:$0xff] }
 0x8d4   : > { %5867 = vmatprep.mubr.bf16.mxu0 %v5488_v28 }
 0x8d5   : > { %5868 = vmatmul.mubr.bf16.gmra.mxu0 %v5487_v33 }
 0x8d6   : > { %5877 = vmatprep.mubr.bf16.mxu0 %v5490_v58 }
 0x8dd   : > { %5878 = vmatmul.mubr.bf16.gmra.mxu0 %v16786_v24  ;;  %v16801_v24 = vld [vmem:[#allocation39_spill] sm:$0xff] }
 0x8e0   : > { %v5729_v43 = vpop.f32.mrf.mxu0 }
 0x8e1   : > { %v5730_v23 = vadd.f32 %v5729_v43, %v14086_v6 }
 0x8e2   : > { %v5731_v13 = vpop.f32.mrf.mxu0 }
 0x8e3   : > { %v5732_v3 = vadd.f32 %v5731_v13, %v14089_v59  ;;  %v14094_v16 = vadd.f32 %v5730_v23, %v16789_v54  ;;  %v16802_v23 = vld [vmem:[#allocation40_spill] sm:$0xff] }
 0x8e4   : > { %v5733_v5 = vpop.f32.mrf.mxu0 }
 0x8e5   : > { %v14097_v7 = vadd.f32 %v5732_v3, %v16790_v21  ;;  %v5734_v19 = vadd.f32 %v5733_v5, %v14086_v6 }
 0x8e6   : > { %v5735_v56 = vpop.f32.mrf.mxu0 }
 0x8e7   : > { %v5736_v27 = vadd.f32 %v5735_v56, %v14089_v59  ;;  %v5952_v22 = vadd.f32 %v14097_v7, %v14094_v16  ;;  %v14104_v45 = vadd.f32 %v5734_v19, %v16791_v40  ;;  %v16803_v56 = vld [vmem:[#allocation41_spill] sm:$0xff] }
 0x8e8   : > { %v5739_v31 = vpop.f32.mrf.mxu0 }
 0x8e9   : > { %v14107_v8 = vadd.f32 %v5736_v27, %v16792_v61  ;;  %v5740_v49 = vadd.f32 %v5739_v31, %v14086_v6  ;;  %5953 = vadd.xlane.f32.xlu1 %v5952_v22  ;;  %v16804_v22 = vld [vmem:[#allocation42_spill] sm:$0xff] }
 0x8ea   : > { %v5741_v47 = vpop.f32.mrf.mxu0 }
 0x8eb   : > { %v5742_v36 = vadd.f32 %v5741_v47, %v14089_v59  ;;  %v5955_v63 = vadd.f32 %v14107_v8, %v14104_v45  ;;  %v14114_v39 = vadd.f32 %v5740_v49, %v16793_v50  ;;  %v16806_v50 = vld [vmem:[#allocation44_spill] sm:$0xff] }
 0x8ec   : > { %v5743_v20 = vpop.f32.mrf.mxu0 }
 0x8ed   : > { %v14117_v46 = vadd.f32 %v5742_v36, %v16794_v41  ;;  %v5744_v52 = vadd.f32 %v5743_v20, %v14086_v6  ;;  %5956 = vadd.xlane.f32.xlu0 %v5955_v63  ;;  %v16805_v63 = vld [vmem:[#allocation43_spill] sm:$0xff] }
 0x8ee   : > { %v5745_v51 = vpop.f32.mrf.mxu0 }
 0x8ef   : > { %v5746_v1 = vadd.f32 %v5745_v51, %v14089_v59  ;;  %v5958_v25 = vadd.f32 %v14117_v46, %v14114_v39  ;;  %v14124_v35 = vadd.f32 %v5744_v52, %v16795_v26  ;;  %v16807_v26 = vld [vmem:[#allocation45_spill] sm:$0xff] }
 0x8f0   : > { %v5749_v10 = vpop.f32.mrf.mxu0 }
 0x8f1   : > { %v14127_v18 = vadd.f32 %v5746_v1, %v16796_v38  ;;  %v5750_v9 = vadd.f32 %v5749_v10, %v14086_v6  ;;  %5959 = vadd.xlane.f32.xlu1 %v5958_v25 }
 0x8f2   : > { %v5751_v11 = vpop.f32.mrf.mxu0 }
 0x8f3   : > { %v5752_v30 = vadd.f32 %v5751_v11, %v14089_v59  ;;  %v5961_v4 = vadd.f32 %v14127_v18, %v14124_v35  ;;  %v14134_v29 = vadd.f32 %v5750_v9, %v16797_v32  ;;  %v16808_v9 = vld [vmem:[#allocation46_spill] sm:$0xff] }
 0x8f4   : > { %v5753_v62 = vpop.f32.mrf.mxu0 }
 0x8f5   : > { %v14137_v17 = vadd.f32 %v5752_v30, %v16798_v42  ;;  %v5754_v34 = vadd.f32 %v5753_v62, %v14086_v6  ;;  %5962 = vadd.xlane.f32.xlu0 %v5961_v4 }
 0x8f6   : > { %v5755_v44 = vpop.f32.mrf.mxu0 }
 0x8f7   : > { %v5756_v55 = vadd.f32 %v5755_v44, %v14089_v59  ;;  %v5964_v2 = vadd.f32 %v14137_v17, %v14134_v29  ;;  %v14144_v28 = vadd.f32 %v5754_v34, %v16799_v15  ;;  %v16809_v34 = vld [vmem:[#allocation47_spill] sm:$0xff] }
 0x8f8   : > { %v5759_v48 = vpop.f32.mrf.mxu0 }
 0x8f9   : > { %v14147_v12 = vadd.f32 %v5756_v55, %v16800_v53  ;;  %v5760_v33 = vadd.f32 %v5759_v48, %v14086_v6  ;;  %5965 = vadd.xlane.f32.xlu1 %v5964_v2  ;;  %v16810_v55 = vld [vmem:[#allocation48_spill] sm:$0xff] }
 0x8fa   : > { %v5761_v58 = vpop.f32.mrf.mxu0 }
 0x8fb   : > { %v5762_v0 = vadd.f32 %v5761_v58, %v14089_v59  ;;  %v5967_v60 = vadd.f32 %v14147_v12, %v14144_v28  ;;  %v14154_v43 = vadd.f32 %v5760_v33, %v16801_v24 }
 0x8fc   : > { %v5763_v57 = vpop.f32.mrf.mxu0 }
 0x8fd   : > { %v14157_v13 = vadd.f32 %v5762_v0, %v16802_v23  ;;  %v5764_v3 = vadd.f32 %v5763_v57, %v14086_v6  ;;  %5968 = vadd.xlane.f32.xlu0 %v5967_v60  ;;  %v16811_v0 = vld [vmem:[#allocation49_spill] sm:$0xff]  ;;  %v16812_v57 = vld [vmem:[#allocation50_spill] sm:$0xff] }
 0x8fe   : > { %v5765_v5 = vpop.f32.mrf.mxu0 }
 0x8ff   : > { %v5766_v54 = vadd.f32 %v5765_v5, %v14089_v59  ;;  %v5970_v21 = vadd.f32 %v14157_v13, %v14154_v43  ;;  %v14164_v27 = vadd.f32 %v5764_v3, %v16803_v56 }
 0x900   : > { %v5769_v19 = vpop.f32.mrf.mxu0 }
 0x901   : > { %v14167_v31 = vadd.f32 %v5766_v54, %v16804_v22  ;;  %v5770_v40 = vadd.f32 %v5769_v19, %v14086_v6  ;;  %5971 = vadd.xlane.f32.xlu1 %v5970_v21  ;;  %v16813_v19 = vld [vmem:[#allocation51_spill] sm:$0xff]  ;;  %v16814_v22 = vld [vmem:[#allocation52_spill] sm:$0xff] }
 0x902   : > { %v5771_v61 = vpop.f32.mrf.mxu0 }
 0x903   : > { %v5772_v49 = vadd.f32 %v5771_v61, %v14089_v59  ;;  %v5973_v47 = vadd.f32 %v14167_v31, %v14164_v27  ;;  %v14174_v20 = vadd.f32 %v5770_v40, %v16805_v63 }
 0x904   : > { %v5773_v36 = vpop.f32.mrf.mxu0 }
 0x905   : > { %v14177_v41 = vadd.f32 %v5772_v49, %v16806_v50  ;;  %v5774_v52 = vadd.f32 %v5773_v36, %v14086_v6  ;;  %5974 = vadd.xlane.f32.xlu0 %v5973_v47  ;;  %v16815_v50 = vld [vmem:[#allocation53_spill] sm:$0xff] }
 0x906   : > { %v5775_v51 = vpop.f32.mrf.mxu0 }
 0x907   : > { %v5776_v1 = vadd.f32 %v5775_v51, %v14089_v59  ;;  %v5976_v25 = vadd.f32 %v14177_v41, %v14174_v20  ;;  %v14184_v38 = vadd.f32 %v5774_v52, %v16807_v26  ;;  %v16816_v51 = vld [vmem:[#allocation54_spill] sm:$0xff] }
 0x908   : > { %v5779_v10 = vpop.f32.mrf.mxu0 }
 0x909   : > { %v14187_v11 = vadd.f32 %v5776_v1, %v16808_v9  ;;  %v5780_v30 = vadd.f32 %v5779_v10, %v14086_v6  ;;  %5977 = vadd.xlane.f32.xlu1 %v5976_v25 }
 0x90a   : > { %v5781_v4 = vpop.f32.mrf.mxu0 }
 0x90b   : > { %v5782_v62 = vadd.f32 %v5781_v4, %v14089_v59  ;;  %v5979_v32 = vadd.f32 %v14187_v11, %v14184_v38  ;;  %v14194_v44 = vadd.f32 %v5780_v30, %v16809_v34  ;;  %v16817_v4 = vld [vmem:[#allocation55_spill] sm:$0xff] }
 0x90c   : > { %v5783_v42 = vpop.f32.mrf.mxu0 }
 0x90d   : > { %v14197_v2 = vadd.f32 %v5782_v62, %v16810_v55  ;;  %v5784_v48 = vadd.f32 %v5783_v42, %v14086_v6  ;;  %5980 = vadd.xlane.f32.xlu0 %v5979_v32  ;;  %v16818_v32 = vld [vmem:[#allocation56_spill] sm:$0xff] }
 0x90e   : > { %v5785_v15 = vpop.f32.mrf.mxu0 }
 0x90f   : > { %v5786_v53 = vadd.f32 %v5785_v15, %v14089_v59  ;;  %v5982_v33 = vadd.f32 %v14197_v2, %v14194_v44  ;;  %v14204_v60 = vadd.f32 %v5784_v48, %v16811_v0  ;;  %v16820_v0 = vld [vmem:[#allocation58_spill] sm:$0xff] }
 0x910   : > { %v5789_v58 = vpop.f32.mrf.mxu0 }
 0x911   : > { %v14207_v24 = vadd.f32 %v5786_v53, %v16812_v57  ;;  %v5790_v23 = vadd.f32 %v5789_v58, %v14086_v6  ;;  %5983 = vadd.xlane.f32.xlu1 %v5982_v33  ;;  %v16819_v33 = vld [vmem:[#allocation57_spill] sm:$0xff] }
 0x912   : > { %v5791_v3 = vpop.f32.mrf.mxu0 }
 0x913   : > { %v5792_v5 = vadd.f32 %v5791_v3, %v14089_v59  ;;  %v5985_v54 = vadd.f32 %v14207_v24, %v14204_v60  ;;  %v14214_v56 = vadd.f32 %v5790_v23, %v16813_v19  ;;  %v16821_v19 = vld [vmem:[#allocation59_spill] sm:$0xff] }
 0x914   : > { %v5793_v21 = vpop.f32.mrf.mxu0 }
 0x915   : > { %v14217_v40 = vadd.f32 %v5792_v5, %v16814_v22  ;;  %v5794_v61 = vadd.f32 %v5793_v21, %v14086_v6  ;;  %5986 = vadd.xlane.f32.xlu0 %v5985_v54 }
 0x916   : > { %v5795_v49 = vpop.f32.mrf.mxu0 }
 0x917   : > { %v5796_v47 = vadd.f32 %v5795_v49, %v14089_v59  ;;  %v5988_v36 = vadd.f32 %v14217_v40, %v14214_v56  ;;  %v14224_v52 = vadd.f32 %v5794_v61, %v16815_v50  ;;  %v16822_v61 = vld [vmem:[#allocation60_spill] sm:$0xff] }
 0x918   : > { %v5799_v63 = vpop.f32.mrf.mxu0 }
 0x919   : > { %v14227_v1 = vadd.f32 %v5796_v47, %v16816_v51  ;;  %v5800_v25 = vadd.f32 %v5799_v63, %v14086_v6  ;;  %5989 = vadd.xlane.f32.xlu1 %v5988_v36 }
 0x91a   : > { %v5801_v10 = vpop.f32.mrf.mxu0 }
 0x91b   : > { %v5802_v26 = vadd.f32 %v5801_v10, %v14089_v59  ;;  %v5991_v9 = vadd.f32 %v14227_v1, %v14224_v52  ;;  %v14234_v62 = vadd.f32 %v5800_v25, %v16817_v4  ;;  %v16823_v25 = vld [vmem:[#allocation61_spill] sm:$0xff] }
 0x91c   : > { %v5803_v30 = vpop.f32.mrf.mxu0 }
 0x91d   : > { %v14237_v42 = vadd.f32 %v5802_v26, %v16818_v32  ;;  %v5804_v34 = vadd.f32 %v5803_v30, %v14086_v6  ;;  %5992 = vadd.xlane.f32.xlu0 %v5991_v9  ;;  %v16824_v26 = vld [vmem:[#allocation62_spill] sm:$0xff] }
 0x91e   : > { %v5805_v55 = vpop.f32.mrf.mxu0 }
 0x91f   : > { %v5806_v48 = vadd.f32 %v5805_v55, %v14089_v59  ;;  %v5994_v15 = vadd.f32 %v14237_v42, %v14234_v62  ;;  %v14244_v58 = vadd.f32 %v5804_v34, %v16819_v33 }
 0x920   : > { %v5809_v53 = vpop.f32.mrf.mxu0 }
 0x921   : > { %v14247_v57 = vadd.f32 %v5806_v48, %v16820_v0  ;;  %v5810_v23 = vadd.f32 %v5809_v53, %v14086_v6  ;;  %5995 = vadd.xlane.f32.xlu1 %v5994_v15  ;;  %v16825_v48 = vld [vmem:[#allocation63_spill] sm:$0xff]  ;;  %v16826_v53 = vld [vmem:[#allocation64_spill] sm:$0xff] }
 0x922   : > { %v5811_v3 = vpop.f32.mrf.mxu0 }
 0x923   : > { %v5812_v5 = vadd.f32 %v5811_v3, %v14089_v59  ;;  %v5997_v54 = vadd.f32 %v14247_v57, %v14244_v58  ;;  %v14254_v22 = vadd.f32 %v5810_v23, %v16821_v19  ;;  %v16828_v19 = vld [vmem:[#allocation66_spill] sm:$0xff] }
 0x924   : > { %v5813_v21 = vpop.f32.mrf.mxu0 }
 0x925   : > { %v14257_v49 = vadd.f32 %v5812_v5, %v16822_v61  ;;  %v5814_v47 = vadd.f32 %v5813_v21, %v14086_v6  ;;  %5998 = vadd.xlane.f32.xlu0 %v5997_v54  ;;  %v16827_v54 = vld [vmem:[#allocation65_spill] sm:$0xff] }
 0x926   : > { %v5815_v36 = vpop.f32.mrf.mxu0 }
 0x927   : > { %v5816_v63 = vadd.f32 %v5815_v36, %v14089_v59  ;;  %v6000_v50 = vadd.f32 %v14257_v49, %v14254_v22  ;;  %v14264_v10 = vadd.f32 %v5814_v47, %v16823_v25  ;;  %v10238_v36 = vld [vmem:[#allocation10 + $0x70] ss:$8 sps:$4 sm:$0xff]   ;;  %v10246_v25 = vld [vmem:[#allocation10 + $0x54] ss:$8 sps:$4 sm:$0xff]  }
 0x928   : > { %v5819_v51 = vpop.f32.mrf.mxu0 }
 0x929   : > { %v14267_v9 = vadd.f32 %v5816_v63, %v16824_v26  ;;  %v5820_v30 = vadd.f32 %v5819_v51, %v14086_v6  ;;  %6001 = vadd.xlane.f32.xlu1 %v6000_v50  ;;  %v10240_v63 = vld [vmem:[#allocation10 + $0x74] ss:$8 sps:$4 sm:$0xff]   ;;  %v10243_v50 = vld [vmem:[#allocation10 + $0x64] ss:$8 sps:$4 sm:$0xff]   ;;  %v10241_v51 = vld [vmem:[#allocation10 + $0x60] ss:$8 sps:$4 sm:$0xff]  }
 0x92a   : > { %v5821_v4 = vpop.f32.mrf.mxu0  ;;  %6853 = vmatprep.subr.bf16.mxu1 %v10240_v63  ;;  %v10244_v26 = vld [vmem:[#allocation10 + $0x50] ss:$8 sps:$4 sm:$0xff]  }
 0x92b   : > { %v5822_v32 = vadd.f32 %v5821_v4, %v14089_v59  ;;  %v6003_v34 = vadd.f32 %v14267_v9, %v14264_v10  ;;  %v14274_v15 = vadd.f32 %v5820_v30, %v16825_v48  ;;  %6854 = vmatpush1.bf16.msra.mxu1 %v10238_v36  ;;  %v10249_v30 = vld [vmem:[#allocation10 + $0x44] ss:$8 sps:$4 sm:$0xff]   ;;  %v10247_v4 = vld [vmem:[#allocation10 + $0x40] ss:$8 sps:$4 sm:$0xff]  }
 0x92c   : > { %v5823_v55 = vpop.f32.mrf.mxu0  ;;  %6855 = vmatprep.subr.bf16.mxu1 %v10243_v50  ;;  %v10253_v48 = vld [vmem:[#allocation10 + $0x20] ss:$8 sps:$4 sm:$0xff]  }
 0x92d   : > { %v14277_v33 = vadd.f32 %v5822_v32, %v16826_v53  ;;  %v5824_v0 = vadd.f32 %v5823_v55, %v14086_v6  ;;  %6004 = vadd.xlane.f32.xlu0 %v6003_v34  ;;  %v10252_v32 = vld [vmem:[#allocation10 + $0x34] ss:$8 sps:$4 sm:$0xff]   ;;  %v10250_v34 = vld [vmem:[#allocation10 + $0x30] ss:$8 sps:$4 sm:$0xff]   ;;  %v10255_v55 = vld [vmem:[#allocation10 + $0x24] ss:$8 sps:$4 sm:$0xff]  }
 0x92e   : > { %v5825_v23 = vpop.f32.mrf.mxu0  ;;  %v10258_v53 = vld [vmem:[#allocation10 + $0x14] ss:$8 sps:$4 sm:$0xff]  }
 0x92f   : > { %v5826_v3 = vadd.f32 %v5825_v23, %v14089_v59  ;;  %v6006_v5 = vadd.f32 %v14277_v33, %v14274_v15  ;;  %v14284_v21 = vadd.f32 %v5824_v0, %v16827_v54  ;;  %6856 = vmatpush1.bf16.msra.mxu1 %v10241_v51  ;;  %v10256_v0 = vld [vmem:[#allocation10 + $0x10] ss:$8 sps:$4 sm:$0xff]   ;;  %v10261_v23 = vld [vmem:[#allocation10 + $0x4] ss:$8 sps:$4 sm:$0xff]  }
 0x930   : > { %6857 = vmatprep.subr.bf16.mxu1 %v10246_v25 }
 0x931   : > { %v14287_v61 = vadd.f32 %v5826_v3, %v16828_v19  ;;  %6007 = vadd.xlane.f32.xlu1 %v6006_v5  ;;  %v10259_v3 = vld [vmem:[#allocation10] ss:$8 sps:$4 sm:$0xff]   ;;  %v5829_v5 = vpop.f32.mrf.mxu0 }
 0x933   : > { %v6009_v47 = vadd.f32 %v14287_v61, %v14284_v21  ;;  %6858 = vmatpush1.bf16.msra.mxu1 %v10244_v26  ;;  %v5831_v54 = vpop.f32.mrf.mxu0 }
 0x934   : > { %6859 = vmatprep.subr.bf16.mxu1 %v10249_v30  ;;  %v5832_v51 = vadd.f32 %v5831_v54, %v14089_v59  ;;  %v5830_v30 = vadd.f32 %v5829_v5, %v14086_v6  ;;  %v16832_v5 = vld [vmem:[#allocation67_spill] sm:$0xff] }
 0x935   : > { %6010 = vadd.xlane.f32.xlu0 %v6009_v47  ;;  %v5833_v19 = vpop.f32.mrf.mxu0 }
 0x936   : > { %v14314_v54 = vadd.f32 %v5830_v30, %v16832_v5 }
 0x937   : > { %6860 = vmatpush1.bf16.msra.mxu1 %v10247_v4  ;;  %v5835_v47 = vpop.f32.mrf.mxu0 }
 0x938   : > { %6861 = vmatprep.subr.bf16.mxu1 %v10252_v32 }
 0x939   : > { %v5839_v63 = vpop.f32.mrf.mxu0 }
 0x93b   : > { %6862 = vmatpush1.bf16.msra.mxu1 %v10250_v34  ;;  %v5841_v32 = vpop.f32.mrf.mxu0 }
 0x93c   : > { %6863 = vmatprep.subr.bf16.mxu1 %v10255_v55  ;;  %v5842_v30 = vadd.f32 %v5841_v32, %v14089_v59 }
 0x93f   : > { %6864 = vmatpush1.bf16.msra.mxu1 %v10253_v48 }
 0x940   : > { %6865 = vmatprep.subr.bf16.mxu1 %v10258_v53  ;;  %v16830_v53 = vld [vmem:[#allocation68_spill] sm:$0xff] }
 0x943   : > { %6866 = vmatpush1.bf16.msra.mxu1 %v10256_v0  ;;  %v14304_v0 = vadd.f32 %v5832_v51, %v16830_v53 }
 0x944   : > { %6867 = vmatprep.subr.bf16.mxu1 %v10261_v23 }
 0x947   : > { %6868 = vmatpush1.bf16.msra.mxu1 %v10259_v3 }
 0x972   : > { %v5954_v36 = vpop.xlane.xlu1 %5953 }
 0x973   : > { %v6049_v50 = vmul.f32 0.00390625, %v5954_v36  ;;  %v5834_v36 = vadd.f32 %v5833_v19, %v14086_v6 }
 0x975   : > { %v14293_v25 = vsub.f32 %v14094_v16, %v6049_v50  ;;  %v14296_v26 = vsub.f32 %v14097_v7, %v6049_v50  ;;  %v5836_v16 = vadd.f32 %v5835_v47, %v14089_v59 }
 0x976   : > { %v5957_v4 = vpop.xlane.xlu0 %5956 }
 0x977   : > { %16829 = vst [vmem:[#allocation103_spill] sm:$0xff] %v14296_v26  ;;  %v6145_v34 = vmul.f32 %v14293_v25, %v14293_v25  ;;  %v6146_v55 = vmul.f32 %v14296_v26, %v14296_v26  ;;  %v6050_v48 = vmul.f32 0.00390625, %v5957_v4  ;;  %v5843_v26 = vpop.f32.mrf.mxu0 }
 0x979   : > { %v14308_v23 = vsub.f32 %v14104_v45, %v6050_v48  ;;  %v14311_v7 = vsub.f32 %v14107_v8, %v6050_v48  ;;  %v6209_v3 = vadd.f32 %v6146_v55, %v6145_v34  ;;  %v16833_v45 = vld [vmem:[#allocation70_spill] sm:$0xff]  ;;  %v6012_v8 = vadd.f32 %v14304_v0, %v14314_v54  ;;  %v16835_v48 = vld [vmem:[#allocation69_spill] sm:$0xff] }
 0x97a   : > { %v5960_v50 = vpop.xlane.xlu1 %5959  ;;  %v14322_v53 = vadd.f32 %v5836_v16, %v16833_v45  ;;  %v14334_v5 = vadd.f32 %v5834_v36, %v16835_v48  ;;  %v5845_v16 = vpop.f32.mrf.mxu0 }
 0x97b   : > { %16831 = vst [vmem:[#allocation108_spill] sm:$0xff] %v14311_v7  ;;  %v6147_v51 = vmul.f32 %v14308_v23, %v14308_v23  ;;  %v6148_v47 = vmul.f32 %v14311_v7, %v14311_v7  ;;  %v6051_v4 = vmul.f32 0.00390625, %v5960_v50  ;;  %6210 = vadd.xlane.f32.xlu1 %v6209_v3  ;;  %v5840_v3 = vadd.f32 %v5839_v63, %v14086_v6 }
 0x97d   : > { %v14328_v19 = vsub.f32 %v14114_v39, %v6051_v4  ;;  %v14331_v34 = vsub.f32 %v14117_v46, %v6051_v4  ;;  %v6212_v55 = vadd.f32 %v6148_v47, %v6147_v51  ;;  %v6015_v39 = vadd.f32 %v14322_v53, %v14334_v5  ;;  %v16836_v46 = vld [vmem:[#allocation72_spill] sm:$0xff] }
 0x97e   : > { %v5963_v50 = vpop.xlane.xlu0 %5962  ;;  %v14344_v51 = vadd.f32 %v5842_v30, %v16836_v46  ;;  %v5846_v4 = vadd.f32 %v5845_v16, %v14089_v59  ;;  %v16842_v46 = vld [vmem:[#allocation74_spill] sm:$0xff] }
 0x97f   : > { %16834 = vst [vmem:[#allocation106_spill] sm:$0xff] %v14328_v19  ;;  %v6149_v45 = vmul.f32 %v14328_v19, %v14328_v19  ;;  %v6150_v32 = vmul.f32 %v14331_v34, %v14331_v34  ;;  %v6052_v7 = vmul.f32 0.00390625, %v5963_v50  ;;  %6013 = vadd.xlane.f32.xlu1 %v6012_v8  ;;  %6213 = vadd.xlane.f32.xlu0 %v6212_v55  ;;  %v16839_v19 = vld [vmem:[#allocation71_spill] sm:$0xff] }
 0x980   : > { %v14354_v50 = vadd.f32 %v5840_v3, %v16839_v19 }
 0x981   : > { %v14347_v36 = vsub.f32 %v14124_v35, %v6052_v7  ;;  %v14350_v63 = vsub.f32 %v14127_v18, %v6052_v7  ;;  %v6215_v47 = vadd.f32 %v6150_v32, %v6149_v45  ;;  %v10264_v35 = vld [vmem:[#allocation10 + $0xf4] ss:$8 sps:$4 sm:$0xff]   ;;  %v5844_v18 = vadd.f32 %v5843_v26, %v14086_v6  ;;  %v10262_v45 = vld [vmem:[#allocation10 + $0xf0] ss:$8 sps:$4 sm:$0xff]  }
 0x982   : > { %v5966_v48 = vpop.xlane.xlu1 %5965  ;;  %v6018_v3 = vadd.f32 %v14344_v51, %v14354_v50  ;;  %6869 = vmatprep.subr.bf16.mxu1 %v10264_v35 }
 0x983   : > { %16837 = vst [vmem:[#allocation105_spill] sm:$0xff] %v14347_v36  ;;  %16838 = vst [vmem:[#allocation100_spill] sm:$0xff] %v14350_v63  ;;  %v6151_v8 = vmul.f32 %v14347_v36, %v14347_v36  ;;  %v6152_v30 = vmul.f32 %v14350_v63, %v14350_v63  ;;  %v6053_v55 = vmul.f32 0.00390625, %v5966_v48  ;;  %6216 = vadd.xlane.f32.xlu1 %v6215_v47  ;;  %6016 = vadd.xlane.f32.xlu0 %v6015_v39  ;;  %v10267_v36 = vld [vmem:[#allocation10 + $0xe4] ss:$8 sps:$4 sm:$0xff]  }
 0x984   : > { %v14370_v48 = vadd.f32 %v5846_v4, %v16842_v46  ;;  %6870 = vmatpush2.bf16.msra.mxu1 %v10262_v45  ;;  %v10265_v46 = vld [vmem:[#allocation10 + $0xe0] ss:$8 sps:$4 sm:$0xff]  }
 0x985   : > { %v5849_v7 = vpop.f32.mrf.mxu0  ;;  %v14362_v16 = vsub.f32 %v14134_v29, %v6053_v55  ;;  %v14365_v19 = vsub.f32 %v14137_v17, %v6053_v55  ;;  %v6218_v32 = vadd.f32 %v6152_v30, %v6151_v8  ;;  %v16843_v8 = vld [vmem:[#allocation73_spill] sm:$0xff]  ;;  %v16844_v45 = vld [vmem:[#allocation76_spill] sm:$0xff]  ;;  %6871 = vmatprep.subr.bf16.mxu1 %v10267_v36 }
 0x986   : > { %v5969_v47 = vpop.xlane.xlu0 %5968  ;;  %v5850_v17 = vadd.f32 %v5849_v7, %v14086_v6  ;;  %v14379_v30 = vadd.f32 %v5844_v18, %v16843_v8  ;;  %v10270_v36 = vld [vmem:[#allocation10 + $0xd4] ss:$8 sps:$4 sm:$0xff]  }
 0x987   : > { %16840 = vst [vmem:[#allocation114_spill] sm:$0xff] %v14362_v16  ;;  %16841 = vst [vmem:[#allocation112_spill] sm:$0xff] %v14365_v19  ;;  %v5851_v39 = vpop.f32.mrf.mxu0  ;;  %v6153_v26 = vmul.f32 %v14362_v16, %v14362_v16  ;;  %v6154_v29 = vmul.f32 %v14365_v19, %v14365_v19  ;;  %6019 = vadd.xlane.f32.xlu1 %v6018_v3  ;;  %v6054_v4 = vmul.f32 0.00390625, %v5969_v47  ;;  %6219 = vadd.xlane.f32.xlu0 %v6218_v32  ;;  %v16847_v32 = vld [vmem:[#allocation75_spill] sm:$0xff] }
 0x988   : > { %v5852_v55 = vadd.f32 %v5851_v39, %v14089_v59  ;;  %v6021_v18 = vadd.f32 %v14370_v48, %v14379_v30  ;;  %6872 = vmatpush2.bf16.msra.mxu1 %v10265_v46  ;;  %v14393_v47 = vadd.f32 %v5850_v17, %v16847_v32 }
 0x989   : > { %v5853_v35 = vpop.f32.mrf.mxu0  ;;  %v6221_v16 = vadd.f32 %v6154_v29, %v6153_v26  ;;  %v14385_v19 = vsub.f32 %v14144_v28, %v6054_v4  ;;  %v14388_v7 = vsub.f32 %v14147_v12, %v6054_v4  ;;  %v10268_v4 = vld [vmem:[#allocation10 + $0xd0] ss:$8 sps:$4 sm:$0xff]   ;;  %6873 = vmatprep.subr.bf16.mxu1 %v10270_v36 }
 0x98a   : > { %v14382_v63 = vadd.f32 %v5852_v55, %v16844_v45  ;;  %v5972_v3 = vpop.xlane.xlu1 %5971  ;;  %v5854_v26 = vadd.f32 %v5853_v35, %v14086_v6  ;;  %v16850_v45 = vld [vmem:[#allocation78_spill] sm:$0xff]  ;;  %v16851_v36 = vld [vmem:[#allocation77_spill] sm:$0xff] }
 0x98b   : > { %16845 = vst [vmem:[#allocation99_spill] sm:$0xff] %v14385_v19  ;;  %16846 = vst [vmem:[#allocation96_spill] sm:$0xff] %v14388_v7  ;;  %v5855_v39 = vpop.f32.mrf.mxu0  ;;  %v6055_v8 = vmul.f32 0.00390625, %v5972_v3  ;;  %6222 = vadd.xlane.f32.xlu1 %v6221_v16  ;;  %v6155_v28 = vmul.f32 %v14385_v19, %v14385_v19  ;;  %v6156_v12 = vmul.f32 %v14388_v7, %v14388_v7  ;;  %6022 = vadd.xlane.f32.xlu0 %v6021_v18 }
 0x98c   : > { %v5856_v55 = vadd.f32 %v5855_v39, %v14089_v59  ;;  %v6024_v16 = vadd.f32 %v14382_v63, %v14393_v47  ;;  %6874 = vmatpush2.bf16.msra.mxu1 %v10268_v4  ;;  %v14419_v7 = vadd.f32 %v5854_v26, %v16851_v36 }
 0x98d   : > { %v5859_v29 = vpop.f32.mrf.mxu0  ;;  %v14402_v46 = vsub.f32 %v14154_v43, %v6055_v8  ;;  %v14405_v17 = vsub.f32 %v14157_v13, %v6055_v8  ;;  %v6224_v19 = vadd.f32 %v6156_v12, %v6155_v28  ;;  %v10273_v8 = vld [vmem:[#allocation10 + $0xc4] ss:$8 sps:$4 sm:$0xff]   ;;  %v10271_v28 = vld [vmem:[#allocation10 + $0xc0] ss:$8 sps:$4 sm:$0xff]  }
 0x98e   : > { %v14410_v3 = vadd.f32 %v5856_v55, %v16850_v45  ;;  %v5975_v32 = vpop.xlane.xlu0 %5974  ;;  %v5860_v13 = vadd.f32 %v5859_v29, %v14086_v6  ;;  %v16852_v12 = vld [vmem:[#allocation80_spill] sm:$0xff]  ;;  %6875 = vmatprep.subr.bf16.mxu1 %v10273_v8 }
 0x98f   : > { %16848 = vst [vmem:[#allocation154_spill] sm:$0xff] %v14402_v46  ;;  %16849 = vst [vmem:[#allocation153_spill] sm:$0xff] %v14405_v17  ;;  %v5861_v39 = vpop.f32.mrf.mxu0  ;;  %v6157_v35 = vmul.f32 %v14402_v46, %v14402_v46  ;;  %v6158_v43 = vmul.f32 %v14405_v17, %v14405_v17  ;;  %6025 = vadd.xlane.f32.xlu1 %v6024_v16  ;;  %v6056_v55 = vmul.f32 0.00390625, %v5975_v32  ;;  %6225 = vadd.xlane.f32.xlu0 %v6224_v19  ;;  %v16855_v19 = vld [vmem:[#allocation79_spill] sm:$0xff] }
 0x990   : > { %v5862_v18 = vadd.f32 %v5861_v39, %v14089_v59  ;;  %v6027_v26 = vadd.f32 %v14410_v3, %v14419_v7  ;;  %6876 = vmatpush2.bf16.msra.mxu1 %v10271_v28  ;;  %v14433_v32 = vadd.f32 %v5860_v13, %v16855_v19 }
 0x991   : > { %v5863_v45 = vpop.f32.mrf.mxu0  ;;  %v6227_v46 = vadd.f32 %v6158_v43, %v6157_v35  ;;  %v14425_v17 = vsub.f32 %v14164_v27, %v6056_v55  ;;  %v14428_v29 = vsub.f32 %v14167_v31, %v6056_v55  ;;  %v10276_v35 = vld [vmem:[#allocation10 + $0xb4] ss:$8 sps:$4 sm:$0xff]   ;;  %v10274_v55 = vld [vmem:[#allocation10 + $0xb0] ss:$8 sps:$4 sm:$0xff]  }
 0x992   : > { %v14422_v4 = vadd.f32 %v5862_v18, %v16852_v12  ;;  %v5978_v16 = vpop.xlane.xlu1 %5977  ;;  %v5864_v43 = vadd.f32 %v5863_v45, %v14086_v6  ;;  %6877 = vmatprep.subr.bf16.mxu1 %v10276_v35  ;;  %v16858_v12 = vld [vmem:[#allocation82_spill] sm:$0xff]  ;;  %v16859_v35 = vld [vmem:[#allocation81_spill] sm:$0xff] }
 0x993   : > { %16853 = vst [vmem:[#allocation174_spill] sm:$0xff] %v14425_v17  ;;  %16854 = vst [vmem:[#allocation139_spill] sm:$0xff] %v14428_v29  ;;  %v5865_v39 = vpop.f32.mrf.mxu0  ;;  %v6057_v36 = vmul.f32 0.00390625, %v5978_v16  ;;  %6228 = vadd.xlane.f32.xlu1 %v6227_v46  ;;  %v6159_v27 = vmul.f32 %v14425_v17, %v14425_v17  ;;  %v6160_v31 = vmul.f32 %v14428_v29, %v14428_v29  ;;  %6028 = vadd.xlane.f32.xlu0 %v6027_v26 }
 0x994   : > { %v5866_v18 = vadd.f32 %v5865_v39, %v14089_v59  ;;  %v6030_v46 = vadd.f32 %v14422_v4, %v14433_v32  ;;  %6878 = vmatpush2.bf16.msra.mxu1 %v10274_v55  ;;  %v14459_v29 = vadd.f32 %v5864_v43, %v16859_v35 }
 0x995   : > { %v5869_v8 = vpop.f32.mrf.mxu0  ;;  %v14442_v28 = vsub.f32 %v14174_v20, %v6057_v36  ;;  %v14445_v13 = vsub.f32 %v14177_v41, %v6057_v36  ;;  %v6230_v17 = vadd.f32 %v6160_v31, %v6159_v27  ;;  %v10279_v36 = vld [vmem:[#allocation10 + $0xa4] ss:$8 sps:$4 sm:$0xff]   ;;  %v10277_v27 = vld [vmem:[#allocation10 + $0xa0] ss:$8 sps:$4 sm:$0xff]  }
 0x996   : > { %v14450_v16 = vadd.f32 %v5866_v18, %v16858_v12  ;;  %v5981_v19 = vpop.xlane.xlu0 %5980  ;;  %v5870_v41 = vadd.f32 %v5869_v8, %v14086_v6  ;;  %v16860_v31 = vld [vmem:[#allocation84_spill] sm:$0xff]  ;;  %6879 = vmatprep.subr.bf16.mxu1 %v10279_v36 }
 0x997   : > { %16856 = vst [vmem:[#allocation128_spill] sm:$0xff] %v14442_v28  ;;  %16857 = vst [vmem:[#allocation132_spill] sm:$0xff] %v14445_v13  ;;  %v5871_v39 = vpop.f32.mrf.mxu0  ;;  %v6161_v45 = vmul.f32 %v14442_v28, %v14442_v28  ;;  %v6162_v20 = vmul.f32 %v14445_v13, %v14445_v13  ;;  %6031 = vadd.xlane.f32.xlu1 %v6030_v46  ;;  %v6058_v18 = vmul.f32 0.00390625, %v5981_v19  ;;  %6231 = vadd.xlane.f32.xlu0 %v6230_v17  ;;  %v16863_v17 = vld [vmem:[#allocation83_spill] sm:$0xff] }
 0x998   : > { %v5872_v26 = vadd.f32 %v5871_v39, %v14089_v59  ;;  %v6033_v43 = vadd.f32 %v14450_v16, %v14459_v29  ;;  %6880 = vmatpush2.bf16.msra.mxu1 %v10277_v27  ;;  %v14473_v19 = vadd.f32 %v5870_v41, %v16863_v17 }
 0x999   : > { %v5873_v12 = vpop.f32.mrf.mxu0  ;;  %v6233_v28 = vadd.f32 %v6162_v20, %v6161_v45  ;;  %v14465_v13 = vsub.f32 %v14184_v38, %v6058_v18  ;;  %v14468_v8 = vsub.f32 %v14187_v11, %v6058_v18  ;;  %v10282_v45 = vld [vmem:[#allocation10 + $0x94] ss:$8 sps:$4 sm:$0xff]   ;;  %v10280_v18 = vld [vmem:[#allocation10 + $0x90] ss:$8 sps:$4 sm:$0xff]  }
 0x99a   : > { %v14462_v55 = vadd.f32 %v5872_v26, %v16860_v31  ;;  %v5984_v46 = vpop.xlane.xlu1 %5983  ;;  %v5874_v20 = vadd.f32 %v5873_v12, %v14086_v6  ;;  %6881 = vmatprep.subr.bf16.mxu1 %v10282_v45  ;;  %v16866_v31 = vld [vmem:[#allocation86_spill] sm:$0xff]  ;;  %v16867_v45 = vld [vmem:[#allocation85_spill] sm:$0xff] }
 0x99b   : > { %16861 = vst [vmem:[#allocation126_spill] sm:$0xff] %v14465_v13  ;;  %16862 = vst [vmem:[#allocation152_spill] sm:$0xff] %v14468_v8  ;;  %v5875_v39 = vpop.f32.mrf.mxu0  ;;  %v6059_v35 = vmul.f32 0.00390625, %v5984_v46  ;;  %6234 = vadd.xlane.f32.xlu1 %v6233_v28  ;;  %v6163_v38 = vmul.f32 %v14465_v13, %v14465_v13  ;;  %v6164_v11 = vmul.f32 %v14468_v8, %v14468_v8  ;;  %6034 = vadd.xlane.f32.xlu0 %v6033_v43 }
 0x99c   : > { %v5876_v26 = vadd.f32 %v5875_v39, %v14089_v59  ;;  %v6036_v28 = vadd.f32 %v14462_v55, %v14473_v19  ;;  %6882 = vmatpush2.bf16.msra.mxu1 %v10280_v18  ;;  %v14499_v8 = vadd.f32 %v5874_v20, %v16867_v45 }
 0x99d   : > { %v5879_v36 = vpop.f32.mrf.mxu0  ;;  %v14482_v27 = vsub.f32 %v14194_v44, %v6059_v35  ;;  %v14485_v41 = vsub.f32 %v14197_v2, %v6059_v35  ;;  %v6236_v13 = vadd.f32 %v6164_v11, %v6163_v38  ;;  %v10285_v35 = vld [vmem:[#allocation10 + $0x84] ss:$8 sps:$4 sm:$0xff]   ;;  %v10283_v38 = vld [vmem:[#allocation10 + $0x80] ss:$8 sps:$4 sm:$0xff]  }
 0x99e   : > { %v14490_v46 = vadd.f32 %v5876_v26, %v16866_v31  ;;  %v5987_v17 = vpop.xlane.xlu0 %5986  ;;  %v5880_v2 = vadd.f32 %v5879_v36, %v14086_v6  ;;  %v16868_v11 = vld [vmem:[#allocation88_spill] sm:$0xff]  ;;  %6883 = vmatprep.subr.bf16.mxu1 %v10285_v35 }
 0x99f   : > { %16864 = vst [vmem:[#allocation113_spill] sm:$0xff] %v14482_v27  ;;  %16865 = vst [vmem:[#allocation130_spill] sm:$0xff] %v14485_v41  ;;  %v5881_v39 = vpop.f32.mrf.mxu0  ;;  %v6165_v12 = vmul.f32 %v14482_v27, %v14482_v27  ;;  %v6166_v44 = vmul.f32 %v14485_v41, %v14485_v41  ;;  %6037 = vadd.xlane.f32.xlu1 %v6036_v28  ;;  %v6060_v26 = vmul.f32 0.00390625, %v5987_v17  ;;  %6237 = vadd.xlane.f32.xlu0 %v6236_v13  ;;  %v16869_v13 = vld [vmem:[#allocation87_spill] sm:$0xff] }
 0x9a0   : > { %v5882_v43 = vadd.f32 %v5881_v39, %v14089_v59  ;;  %v6039_v20 = vadd.f32 %v14490_v46, %v14499_v8  ;;  %6884 = vmatpush2.bf16.msra.mxu1 %v10283_v38  ;;  %v14513_v17 = vadd.f32 %v5880_v2, %v16869_v13 }
 0x9a1   : > { %v5883_v31 = vpop.f32.mrf.mxu0  ;;  %v6239_v27 = vadd.f32 %v6166_v44, %v6165_v12  ;;  %v14505_v41 = vsub.f32 %v14204_v60, %v6060_v26  ;;  %v14508_v36 = vsub.f32 %v14207_v24, %v6060_v26 }
 0x9a2   : > { %v14502_v18 = vadd.f32 %v5882_v43, %v16868_v11  ;;  %v5990_v28 = vpop.xlane.xlu1 %5989  ;;  %v5884_v12 = vadd.f32 %v5883_v31, %v14086_v6 }
 0x9a3   : > { %v5885_v39 = vpop.f32.mrf.mxu0  ;;  %v6061_v45 = vmul.f32 0.00390625, %v5990_v28  ;;  %6240 = vadd.xlane.f32.xlu1 %v6239_v27  ;;  %v6167_v60 = vmul.f32 %v14505_v41, %v14505_v41  ;;  %v6168_v24 = vmul.f32 %v14508_v36, %v14508_v36  ;;  %6040 = vadd.xlane.f32.xlu0 %v6039_v20 }
 0x9a4   : > { %v5886_v43 = vadd.f32 %v5885_v39, %v14089_v59  ;;  %v6042_v2 = vadd.f32 %v14502_v18, %v14513_v17  ;;  %v16870_v59 = vld [vmem:[#allocation90_spill] sm:$0xff] }
 0x9a5   : > { %v14522_v44 = vsub.f32 %v14214_v56, %v6061_v45  ;;  %v14525_v35 = vsub.f32 %v14217_v40, %v6061_v45  ;;  %v6242_v38 = vadd.f32 %v6168_v24, %v6167_v60  ;;  %v16871_v56 = vld [vmem:[#allocation89_spill] sm:$0xff] }
 0x9a6   : > { %v14530_v27 = vadd.f32 %v5886_v43, %v16870_v59  ;;  %v5993_v26 = vpop.xlane.xlu0 %5992  ;;  %v14537_v28 = vadd.f32 %v5884_v12, %v16871_v56 }
 0x9a7   : > { %v6169_v11 = vmul.f32 %v14522_v44, %v14522_v44  ;;  %v6170_v6 = vmul.f32 %v14525_v35, %v14525_v35  ;;  %v6062_v31 = vmul.f32 0.00390625, %v5993_v26  ;;  %6043 = vadd.xlane.f32.xlu1 %v6042_v2  ;;  %6243 = vadd.xlane.f32.xlu0 %v6242_v38 }
 0x9a8   : > { %v6045_v45 = vadd.f32 %v14530_v27, %v14537_v28 }
 0x9a9   : > { %v14540_v40 = vsub.f32 %v14224_v52, %v6062_v31  ;;  %v14543_v39 = vsub.f32 %v14227_v1, %v6062_v31  ;;  %v6245_v20 = vadd.f32 %v6170_v6, %v6169_v11 }
 0x9aa   : > { %v5996_v13 = vpop.xlane.xlu1 %5995 }
 0x9ab   : > { %v6171_v43 = vmul.f32 %v14540_v40, %v14540_v40  ;;  %v6172_v60 = vmul.f32 %v14543_v39, %v14543_v39  ;;  %v6063_v24 = vmul.f32 0.00390625, %v5996_v13  ;;  %6246 = vadd.xlane.f32.xlu1 %v6245_v20  ;;  %6046 = vadd.xlane.f32.xlu0 %v6045_v45 }
 0x9ad   : > { %v14552_v52 = vsub.f32 %v14234_v62, %v6063_v24  ;;  %v14555_v1 = vsub.f32 %v14237_v42, %v6063_v24  ;;  %v6248_v12 = vadd.f32 %v6172_v60, %v6171_v43 }
 0x9ae   : > { %v5999_v2 = vpop.xlane.xlu0 %5998 }
 0x9af   : > { %v6173_v59 = vmul.f32 %v14552_v52, %v14552_v52  ;;  %v6174_v26 = vmul.f32 %v14555_v1, %v14555_v1  ;;  %v6064_v38 = vmul.f32 0.00390625, %v5999_v2  ;;  %6249 = vadd.xlane.f32.xlu0 %v6248_v12 }
 0x9b1   : > { %v14562_v11 = vsub.f32 %v14244_v58, %v6064_v38  ;;  %v14565_v6 = vsub.f32 %v14247_v57, %v6064_v38  ;;  %v6251_v62 = vadd.f32 %v6174_v26, %v6173_v59 }
 0x9b2   : > { %v6002_v31 = vpop.xlane.xlu1 %6001 }
 0x9b3   : > { %v6175_v42 = vmul.f32 %v14562_v11, %v14562_v11  ;;  %v6176_v56 = vmul.f32 %v14565_v6, %v14565_v6  ;;  %v6065_v20 = vmul.f32 0.00390625, %v6002_v31  ;;  %6252 = vadd.xlane.f32.xlu1 %v6251_v62 }
 0x9b5   : > { %v14572_v13 = vsub.f32 %v14254_v22, %v6065_v20  ;;  %v14575_v45 = vsub.f32 %v14257_v49, %v6065_v20  ;;  %v6254_v58 = vadd.f32 %v6176_v56, %v6175_v42 }
 0x9b6   : > { %v6005_v43 = vpop.xlane.xlu0 %6004 }
 0x9b7   : > { %v6177_v57 = vmul.f32 %v14572_v13, %v14572_v13  ;;  %v6178_v60 = vmul.f32 %v14575_v45, %v14575_v45  ;;  %v6066_v24 = vmul.f32 0.00390625, %v6005_v43  ;;  %6255 = vadd.xlane.f32.xlu0 %v6254_v58 }
 0x9b9   : > { %v14582_v12 = vsub.f32 %v14264_v10, %v6066_v24  ;;  %v14585_v2 = vsub.f32 %v14267_v9, %v6066_v24  ;;  %v6257_v22 = vadd.f32 %v6178_v60, %v6177_v57 }
 0x9ba   : > { %v6008_v59 = vpop.xlane.xlu1 %6007 }
 0x9bb   : > { %v6179_v49 = vmul.f32 %v14582_v12, %v14582_v12  ;;  %v6180_v26 = vmul.f32 %v14585_v2, %v14585_v2  ;;  %v6067_v38 = vmul.f32 0.00390625, %v6008_v59  ;;  %6258 = vadd.xlane.f32.xlu1 %v6257_v22 }
 0x9bd   : > { %v14592_v62 = vsub.f32 %v14274_v15, %v6067_v38  ;;  %v14595_v31 = vsub.f32 %v14277_v33, %v6067_v38  ;;  %v6260_v10 = vadd.f32 %v6180_v26, %v6179_v49 }
 0x9be   : > { %v6011_v42 = vpop.xlane.xlu0 %6010 }
 0x9bf   : > { %v6181_v9 = vmul.f32 %v14592_v62, %v14592_v62  ;;  %v6182_v56 = vmul.f32 %v14595_v31, %v14595_v31  ;;  %v6068_v20 = vmul.f32 0.00390625, %v6011_v42  ;;  %6261 = vadd.xlane.f32.xlu0 %v6260_v10 }
 0x9c1   : > { %v14602_v58 = vsub.f32 %v14284_v21, %v6068_v20  ;;  %v14605_v43 = vsub.f32 %v14287_v61, %v6068_v20  ;;  %v6263_v15 = vadd.f32 %v6182_v56, %v6181_v9 }
 0x9c3   : > { %v6183_v33 = vmul.f32 %v14602_v58, %v14602_v58  ;;  %v6184_v57 = vmul.f32 %v14605_v43, %v14605_v43  ;;  %6264 = vadd.xlane.f32.xlu1 %v6263_v15 }
 0x9c5   : > { %v6266_v60 = vadd.f32 %v6184_v57, %v6183_v33 }
 0x9c7   : > { %6267 = vadd.xlane.f32.xlu0 %v6266_v60 }
 0xa04   : > { %v6211_v24 = vpop.xlane.xlu1 %6210 }
 0xa05   : > { %v6305_v22 = vmul.f32 0.00390625, %v6211_v24 }
 0xa07   : > { %v6337_v59 = vadd.f32 1e-05, %v6305_v22 }
 0xa08   : > { %v6014_v49 = vpop.xlane.xlu1 %6013  ;;  %v6214_v26 = vpop.xlane.xlu0 %6213 }
 0xa09   : > { %10606 = vrsqrt.f32 %v6337_v59  ;;  %v6069_v21 = vmul.f32 0.00390625, %v6014_v49  ;;  %v6306_v38 = vmul.f32 0.00390625, %v6214_v26  ;;  %v6465_v26 = vld [vmem:[%s16203_s13] sm:$0x3] }
 0xa0b   : > { %v14612_v61 = vsub.f32 %v14314_v54, %v6069_v21  ;;  %v14615_v10 = vsub.f32 %v14304_v0, %v6069_v21  ;;  %v6338_v42 = vadd.f32 1e-05, %v6306_v38 }
 0xa0c   : > { %v6217_v9 = vpop.xlane.xlu1 %6216  ;;  %v6017_v56 = vpop.xlane.xlu0 %6016 }
 0xa0d   : > { %v6185_v20 = vmul.f32 %v14612_v61, %v14612_v61  ;;  %v6186_v15 = vmul.f32 %v14615_v10, %v14615_v10  ;;  %10608 = vrsqrt.f32 %v6338_v42  ;;  %v6307_v33 = vmul.f32 0.00390625, %v6217_v9 }
 0xa0e   : > { %v6070_v57 = vmul.f32 0.00390625, %v6017_v56 }
 0xa0f   : > { %v6339_v60 = vadd.f32 1e-05, %v6307_v33  ;;  %v6269_v24 = vadd.f32 %v6186_v15, %v6185_v20 }
 0xa10   : > { %v14622_v54 = vsub.f32 %v14334_v5, %v6070_v57  ;;  %v14625_v0 = vsub.f32 %v14322_v53, %v6070_v57  ;;  %v6020_v22 = vpop.xlane.xlu1 %6019  ;;  %v6220_v49 = vpop.xlane.xlu0 %6219 }
 0xa11   : > { %10610 = vrsqrt.f32 %v6339_v60  ;;  %v6071_v59 = vmul.f32 0.00390625, %v6020_v22  ;;  %6270 = vadd.xlane.f32.xlu1 %v6269_v24  ;;  %v6308_v5 = vmul.f32 0.00390625, %v6220_v49  ;;  %v14645_v24 = vrot.slane %v6465_v26, %v16788_v37 }
 0xa12   : > { %16872 = vst [vmem:[#allocation117_spill] sm:$0xff] %v14622_v54  ;;  %16873 = vst [vmem:[#allocation151_spill] sm:$0xff] %v14625_v0  ;;  %v6187_v21 = vmul.f32 %v14622_v54, %v14622_v54  ;;  %v6188_v38 = vmul.f32 %v14625_v0, %v14625_v0  ;;  %v14651_v22 = vrot.slane %v6465_v26, %v16787_v14 }
 0xa13   : > { %v14635_v42 = vsub.f32 %v14354_v50, %v6071_v59  ;;  %v14638_v53 = vsub.f32 %v14344_v51, %v6071_v59  ;;  %v6340_v9 = vadd.f32 1e-05, %v6308_v5  ;;  %v6541_v50 = vld [vmem:[%s16204_s14] sm:$0x3] }
 0xa14   : > { %v6223_v56 = vpop.xlane.xlu1 %6222  ;;  %v6272_v20 = vadd.f32 %v6188_v38, %v6187_v21  ;;  %v6023_v60 = vpop.xlane.xlu0 %6022  ;;  %v16876_v5 = vld [vmem:[#allocation103_spill] sm:$0xff]  ;;  %v14662_v0 = vrot.slane %v6541_v50, %v16788_v37  ;;  %v16888_v37 = vld [vmem:[#allocation114_spill] sm:$0xff] }
 0xa15   : > { %16874 = vst [vmem:[#allocation111_spill] sm:$0xff] %v14635_v42  ;;  %16875 = vst [vmem:[#allocation137_spill] sm:$0xff] %v14638_v53  ;;  %v6189_v15 = vmul.f32 %v14635_v42, %v14635_v42  ;;  %v6190_v33 = vmul.f32 %v14638_v53, %v14638_v53  ;;  %v6309_v57 = vmul.f32 0.00390625, %v6223_v56  ;;  %10612 = vrsqrt.f32 %v6340_v9 }
 0xa16   : > { %v10607_v51 = vpop.eup %10606  ;;  %v6072_v59 = vmul.f32 0.00390625, %v6023_v60  ;;  %6273 = vadd.xlane.f32.xlu0 %v6272_v20  ;;  %v14666_v20 = vrot.slane %v6541_v50, %v16787_v14  ;;  %v16877_v50 = vld [vmem:[#allocation108_spill] sm:$0xff] }
 0xa17   : > { %v6401_v49 = vmul.f32 %v10607_v51, %v14293_v25  ;;  %v6341_v21 = vadd.f32 1e-05, %v6309_v57  ;;  %v6275_v38 = vadd.f32 %v6190_v33, %v6189_v15  ;;  %v6402_v56 = vmul.f32 %v10607_v51, %v16876_v5 }
 0xa18   : > { %v14656_v42 = vsub.f32 %v14379_v30, %v6072_v59  ;;  %v14659_v53 = vsub.f32 %v14370_v48, %v6072_v59  ;;  %v6026_v54 = vpop.xlane.xlu1 %6025  ;;  %v6226_v9 = vpop.xlane.xlu0 %6225 }
 0xa19   : > { %10614 = vrsqrt.f32 %v6341_v21  ;;  %v6073_v26 = vmul.f32 0.00390625, %v6026_v54  ;;  %6276 = vadd.xlane.f32.xlu1 %v6275_v38  ;;  %v6478_v25 = vmul.f32 %v14645_v24, %v6402_v56  ;;  %v6477_v30 = vmul.f32 %v14651_v22, %v6401_v49 }
 0xa1a   : > { %v10609_v15 = vpop.eup %10608  ;;  %v6191_v48 = vmul.f32 %v14656_v42, %v14656_v42  ;;  %v6192_v33 = vmul.f32 %v14659_v53, %v14659_v53  ;;  %v6310_v57 = vmul.f32 0.00390625, %v6226_v9 }
 0xa1b   : > { %v6403_v60 = vmul.f32 %v10609_v15, %v14308_v23  ;;  %v14675_v54 = vsub.f32 %v14393_v47, %v6073_v26  ;;  %v14678_v51 = vsub.f32 %v14382_v63, %v6073_v26  ;;  %v6404_v59 = vmul.f32 %v10609_v15, %v16877_v50 }
 0xa1c   : > { %v6342_v21 = vadd.f32 1e-05, %v6310_v57  ;;  %v6229_v38 = vpop.xlane.xlu1 %6228  ;;  %v6278_v49 = vadd.f32 %v6192_v33, %v6191_v48  ;;  %v14682_v5 = vadd.f32 %v14662_v0, %v6478_v25  ;;  %v6029_v14 = vpop.xlane.xlu0 %6028  ;;  %v14691_v48 = vadd.f32 %v14666_v20, %v6477_v30 }
 0xa1d   : > { %v6479_v56 = vmul.f32 %v14651_v22, %v6403_v60  ;;  %v6193_v9 = vmul.f32 %v14675_v54, %v14675_v54  ;;  %v6194_v23 = vmul.f32 %v14678_v51, %v14678_v51  ;;  %v6311_v47 = vmul.f32 0.00390625, %v6229_v38 }
 0xa1e   : > { %16878 = vst [vmem:[#allocation115_spill] sm:$0xff] %v14682_v5  ;;  %v10611_v63 = vpop.eup %10610  ;;  %10616 = vrsqrt.f32 %v6342_v21  ;;  %v6074_v26 = vmul.f32 0.00390625, %v6029_v14  ;;  %6279 = vadd.xlane.f32.xlu0 %v6278_v49  ;;  %v6480_v15 = vmul.f32 %v14645_v24, %v6404_v59  ;;  %16879 = vst [vmem:[#allocation150_spill] sm:$0xff] %v14691_v48  ;;  %v16882_v59 = vld [vmem:[#allocation106_spill] sm:$0xff] }
 0xa1f   : > { %v6343_v25 = vadd.f32 1e-05, %v6311_v47  ;;  %v6281_v33 = vadd.f32 %v6194_v23, %v6193_v9  ;;  %v14694_v57 = vadd.f32 %v14666_v20, %v6479_v56  ;;  %v6406_v60 = vmul.f32 %v10611_v63, %v14331_v34 }
 0xa20   : > { %v14698_v50 = vsub.f32 %v14419_v7, %v6074_v26  ;;  %v14701_v38 = vsub.f32 %v14410_v3, %v6074_v26  ;;  %v6032_v14 = vpop.xlane.xlu1 %6031  ;;  %v14704_v21 = vadd.f32 %v14662_v0, %v6480_v15  ;;  %v6405_v30 = vmul.f32 %v10611_v63, %v16882_v59  ;;  %v6232_v9 = vpop.xlane.xlu0 %6231  ;;  %v16885_v59 = vld [vmem:[#allocation100_spill] sm:$0xff] }
 0xa21   : > { %16880 = vst [vmem:[#allocation135_spill] sm:$0xff] %v14694_v57  ;;  %10618 = vrsqrt.f32 %v6343_v25  ;;  %v6075_v49 = vmul.f32 0.00390625, %v6032_v14  ;;  %6282 = vadd.xlane.f32.xlu1 %v6281_v33  ;;  %v6617_v56 = vpack.c.bf16 %v14694_v57, %v14691_v48  ;;  %v6482_v34 = vmul.f32 %v14645_v24, %v6406_v60 }
 0xa22   : > { %16881 = vst [vmem:[#allocation136_spill] sm:$0xff] %v14704_v21  ;;  %v6195_v7 = vmul.f32 %v14698_v50, %v14698_v50  ;;  %v6196_v3 = vmul.f32 %v14701_v38, %v14701_v38  ;;  %v6312_v23 = vmul.f32 0.00390625, %v6232_v9  ;;  %v6618_v47 = vpack.c.bf16 %v14704_v21, %v14682_v5  ;;  %v10613_v63 = vpop.eup %10612  ;;  %v16886_v9 = vld [vmem:[#allocation105_spill] sm:$0xff] }
 0xa23   : > { %v14717_v26 = vsub.f32 %v14433_v32, %v6075_v49  ;;  %v14720_v15 = vsub.f32 %v14422_v4, %v6075_v49  ;;  %v14723_v25 = vadd.f32 %v14662_v0, %v6482_v34  ;;  %v6408_v57 = vmul.f32 %v10613_v63, %v16885_v59  ;;  %v16887_v59 = vld [vmem:[#allocation112_spill] sm:$0xff] }
 0xa24   : > { %v6344_v33 = vadd.f32 1e-05, %v6312_v23  ;;  %6885 = vmatprep.mubr.bf16.mxu1 %v6618_v47  ;;  %v6235_v60 = vpop.xlane.xlu1 %6234  ;;  %v6284_v14 = vadd.f32 %v6196_v3, %v6195_v7  ;;  %v6407_v48 = vmul.f32 %v10613_v63, %v16886_v9  ;;  %v6035_v4 = vpop.xlane.xlu0 %6034  ;;  %v6481_v49 = vmul.f32 %v14651_v22, %v6405_v30 }
 0xa25   : > { %16883 = vst [vmem:[#allocation149_spill] sm:$0xff] %v14717_v26  ;;  %16884 = vst [vmem:[#allocation134_spill] sm:$0xff] %v14723_v25  ;;  %v6197_v21 = vmul.f32 %v14717_v26, %v14717_v26  ;;  %v6198_v32 = vmul.f32 %v14720_v15, %v14720_v15  ;;  %v6313_v5 = vmul.f32 0.00390625, %v6235_v60  ;;  %6886 = vmatmul.mubr.bf16.vlgmr.msra.gmra.mxu1 %v6617_v56  ;;  %v6076_v23 = vmul.f32 0.00390625, %v6035_v4 }
 0xa26   : > { %v10615_v34 = vpop.eup %10614  ;;  %10620 = vrsqrt.f32 %v6344_v33  ;;  %6285 = vadd.xlane.f32.xlu0 %v6284_v14  ;;  %v6484_v7 = vmul.f32 %v14645_v24, %v6408_v57  ;;  %v6483_v3 = vmul.f32 %v14651_v22, %v6407_v48 }
 0xa27   : > { %v6345_v47 = vadd.f32 1e-05, %v6313_v5  ;;  %v6287_v63 = vadd.f32 %v6198_v32, %v6197_v21  ;;  %v6410_v9 = vmul.f32 %v10615_v34, %v16887_v59  ;;  %v6409_v26 = vmul.f32 %v10615_v34, %v16888_v37  ;;  %v16892_v59 = vld [vmem:[#allocation96_spill] sm:$0xff] }
 0xa28   : > { %v14737_v60 = vsub.f32 %v14459_v29, %v6076_v23  ;;  %v14740_v56 = vsub.f32 %v14450_v16, %v6076_v23  ;;  %v6038_v30 = vpop.xlane.xlu1 %6037  ;;  %v14743_v33 = vadd.f32 %v14662_v0, %v6484_v7  ;;  %v14746_v57 = vadd.f32 %v14666_v20, %v6483_v3  ;;  %v6238_v48 = vpop.xlane.xlu0 %6237 }
 0xa29   : > { %10622 = vrsqrt.f32 %v6345_v47  ;;  %v6077_v5 = vmul.f32 0.00390625, %v6038_v30  ;;  %6288 = vadd.xlane.f32.xlu1 %v6287_v63  ;;  %v14749_v21 = vadd.f32 %v14666_v20, %v6481_v49  ;;  %v6486_v37 = vmul.f32 %v14645_v24, %v6410_v9  ;;  %v16893_v30 = vld [vmem:[#allocation99_spill] sm:$0xff] }
 0xa2a   : > { %16889 = vst [vmem:[#allocation148_spill] sm:$0xff] %v14743_v33  ;;  %16890 = vst [vmem:[#allocation121_spill] sm:$0xff] %v14746_v57  ;;  %v6199_v29 = vmul.f32 %v14737_v60, %v14737_v60  ;;  %v6200_v16 = vmul.f32 %v14740_v56, %v14740_v56  ;;  %v6314_v14 = vmul.f32 0.00390625, %v6238_v48  ;;  %v6620_v32 = vpack.c.bf16 %v14743_v33, %v14723_v25  ;;  %v16896_v25 = vld [vmem:[#allocation154_spill] sm:$0xff] }
 0xa2b   : > { %16891 = vst [vmem:[#allocation140_spill] sm:$0xff] %v14749_v21  ;;  %v10617_v4 = vpop.eup %10616  ;;  %v14759_v34 = vsub.f32 %v14473_v19, %v6077_v5  ;;  %v14762_v23 = vsub.f32 %v14462_v55, %v6077_v5  ;;  %v6619_v49 = vpack.c.bf16 %v14746_v57, %v14749_v21  ;;  %v6485_v7 = vmul.f32 %v14651_v22, %v6409_v26 }
 0xa2c   : > { %v6346_v3 = vadd.f32 1e-05, %v6314_v14  ;;  %6895 = vmatprep.mubr.bf16.mxu1 %v6620_v32  ;;  %v6241_v47 = vpop.xlane.xlu1 %6240  ;;  %v6290_v63 = vadd.f32 %v6200_v16, %v6199_v29  ;;  %v6412_v9 = vmul.f32 %v10617_v4, %v16892_v59  ;;  %v6411_v48 = vmul.f32 %v10617_v4, %v16893_v30  ;;  %v6041_v33 = vpop.xlane.xlu0 %6040  ;;  %v16895_v59 = vld [vmem:[#allocation153_spill] sm:$0xff] }
 0xa2d   : > { %v6201_v19 = vmul.f32 %v14759_v34, %v14759_v34  ;;  %v6202_v55 = vmul.f32 %v14762_v23, %v14762_v23  ;;  %v6315_v5 = vmul.f32 0.00390625, %v6241_v47  ;;  %6896 = vmatmul.mubr.bf16.gmra.mxu1 %v6619_v49  ;;  %v14774_v57 = vadd.f32 %v14662_v0, %v6486_v37 }
 0xa2e   : > { %v10619_v26 = vpop.eup %10618  ;;  %10624 = vrsqrt.f32 %v6346_v3  ;;  %v6078_v14 = vmul.f32 0.00390625, %v6041_v33  ;;  %6291 = vadd.xlane.f32.xlu0 %v6290_v63  ;;  %v6488_v29 = vmul.f32 %v14645_v24, %v6412_v9  ;;  %v6487_v16 = vmul.f32 %v14651_v22, %v6411_v48 }
 0xa2f   : > { %16894 = vst [vmem:[#allocation147_spill] sm:$0xff] %v14774_v57  ;;  %v6347_v32 = vadd.f32 1e-05, %v6315_v5  ;;  %v6293_v4 = vadd.f32 %v6202_v55, %v6201_v19  ;;  %v6414_v30 = vmul.f32 %v10619_v26, %v16895_v59  ;;  %v6413_v21 = vmul.f32 %v10619_v26, %v16896_v25  ;;  %v10288_v5 = vld [vmem:[#allocation11 + $0x74] ss:$8 sps:$4 sm:$0xff]  }
 0xa30   : > { %v14781_v49 = vsub.f32 %v14499_v8, %v6078_v14  ;;  %v14784_v37 = vsub.f32 %v14490_v46, %v6078_v14  ;;  %v6044_v47 = vpop.xlane.xlu1 %6043  ;;  %v14787_v33 = vadd.f32 %v14662_v0, %v6488_v29  ;;  %v14790_v3 = vadd.f32 %v14666_v20, %v6487_v16  ;;  %v6244_v9 = vpop.xlane.xlu0 %6243  ;;  %7346 = vmatprep.subr.bf16.mxu0 %v10288_v5 }
 0xa31   : > { %10626 = vrsqrt.f32 %v6347_v32  ;;  %v6079_v63 = vmul.f32 0.00390625, %v6044_v47  ;;  %6294 = vadd.xlane.f32.xlu1 %v6293_v4  ;;  %v14793_v48 = vadd.f32 %v14666_v20, %v6485_v7  ;;  %v6490_v8 = vmul.f32 %v14645_v24, %v6414_v30  ;;  %v10286_v32 = vld [vmem:[#allocation11 + $0x70] ss:$8 sps:$4 sm:$0xff]   ;;  %v16901_v47 = vld [vmem:[#allocation139_spill] sm:$0xff] }
 0xa32   : > { %16897 = vst [vmem:[#allocation119_spill] sm:$0xff] %v14787_v33  ;;  %16898 = vst [vmem:[#allocation133_spill] sm:$0xff] %v14790_v3  ;;  %v6203_v46 = vmul.f32 %v14781_v49, %v14781_v49  ;;  %v6204_v25 = vmul.f32 %v14784_v37, %v14784_v37  ;;  %v6316_v19 = vmul.f32 0.00390625, %v6244_v9  ;;  %v6622_v55 = vpack.c.bf16 %v14787_v33, %v14774_v57  ;;  %v16902_v33 = vld [vmem:[#allocation174_spill] sm:$0xff] }
 0xa33   : > { %16899 = vst [vmem:[#allocation138_spill] sm:$0xff] %v14793_v48  ;;  %v10621_v26 = vpop.eup %10620  ;;  %v14803_v14 = vsub.f32 %v14513_v17, %v6079_v63  ;;  %v14806_v7 = vsub.f32 %v14502_v18, %v6079_v63  ;;  %v6621_v29 = vpack.c.bf16 %v14790_v3, %v14793_v48  ;;  %v6489_v16 = vmul.f32 %v14651_v22, %v6413_v21 }
 0xa34   : > { %v6348_v4 = vadd.f32 1e-05, %v6316_v19  ;;  %6905 = vmatprep.mubr.bf16.mxu1 %v6622_v55  ;;  %v6247_v59 = vpop.xlane.xlu1 %6246  ;;  %v6296_v30 = vadd.f32 %v6204_v25, %v6203_v46  ;;  %v6416_v9 = vmul.f32 %v10621_v26, %v16901_v47  ;;  %v6415_v57 = vmul.f32 %v10621_v26, %v16902_v33  ;;  %v6047_v3 = vpop.xlane.xlu0 %6046  ;;  %7347 = vmatpush1.bf16.msra.mxu0 %v10286_v32  ;;  %v10291_v55 = vld [vmem:[#allocation11 + $0x64] ss:$8 sps:$4 sm:$0xff]  }
 0xa35   : > { %16900 = vst [vmem:[#allocation170_spill] sm:$0xff] %v14803_v14  ;;  %v6205_v17 = vmul.f32 %v14803_v14, %v14803_v14  ;;  %v6206_v18 = vmul.f32 %v14806_v7, %v14806_v7  ;;  %v6317_v63 = vmul.f32 0.00390625, %v6247_v59  ;;  %6906 = vmatmul.mubr.bf16.gmra.mxu1 %v6621_v29  ;;  %v14818_v21 = vadd.f32 %v14662_v0, %v6490_v8  ;;  %v16903_v47 = vld [vmem:[#allocation132_spill] sm:$0xff] }
 0xa36   : > { %v10623_v19 = vpop.eup %10622  ;;  %10628 = vrsqrt.f32 %v6348_v4  ;;  %v6080_v46 = vmul.f32 0.00390625, %v6047_v3  ;;  %6297 = vadd.xlane.f32.xlu0 %v6296_v30  ;;  %v6492_v33 = vmul.f32 %v14645_v24, %v6416_v9  ;;  %v6491_v25 = vmul.f32 %v14651_v22, %v6415_v57  ;;  %v16904_v59 = vld [vmem:[#allocation128_spill] sm:$0xff]  ;;  %7348 = vmatprep.subr.bf16.mxu0 %v10291_v55 }
 0xa37   : > { %v6349_v5 = vadd.f32 1e-05, %v6317_v63  ;;  %v6299_v26 = vadd.f32 %v6206_v18, %v6205_v17  ;;  %v6418_v48 = vmul.f32 %v10623_v19, %v16903_v47  ;;  %v6417_v29 = vmul.f32 %v10623_v19, %v16904_v59  ;;  %v10289_v14 = vld [vmem:[#allocation11 + $0x60] ss:$8 sps:$4 sm:$0xff]   ;;  %v10294_v18 = vld [vmem:[#allocation11 + $0x54] ss:$8 sps:$4 sm:$0xff]  }
 0xa38   : > { %v14825_v8 = vsub.f32 %v14537_v28, %v6080_v46  ;;  %v14828_v32 = vsub.f32 %v14530_v27, %v6080_v46  ;;  %v14831_v3 = vadd.f32 %v14662_v0, %v6492_v33  ;;  %v14834_v4 = vadd.f32 %v14666_v20, %v6491_v25  ;;  %v6250_v57 = vpop.xlane.xlu0 %6249  ;;  %7349 = vmatpush1.bf16.msra.mxu0 %v10289_v14  ;;  %v10292_v14 = vld [vmem:[#allocation11 + $0x50] ss:$8 sps:$4 sm:$0xff]  }
 0xa39   : > { %10630 = vrsqrt.f32 %v6349_v5  ;;  %6300 = vadd.xlane.f32.xlu1 %v6299_v26  ;;  %v14837_v30 = vadd.f32 %v14666_v20, %v6489_v16  ;;  %v6318_v9 = vmul.f32 0.00390625, %v6250_v57  ;;  %v6494_v46 = vmul.f32 %v14645_v24, %v6418_v48  ;;  %v16907_v5 = vld [vmem:[#allocation152_spill] sm:$0xff]  ;;  %v16908_v47 = vld [vmem:[#allocation126_spill] sm:$0xff]  ;;  %7350 = vmatprep.subr.bf16.mxu0 %v10294_v18 }
 0xa3a   : > { %16905 = vst [vmem:[#allocation131_spill] sm:$0xff] %v14831_v3  ;;  %16906 = vst [vmem:[#allocation169_spill] sm:$0xff] %v14834_v4  ;;  %v6207_v28 = vmul.f32 %v14825_v8, %v14825_v8  ;;  %v6208_v27 = vmul.f32 %v14828_v32, %v14828_v32  ;;  %v6624_v17 = vpack.c.bf16 %v14831_v3, %v14818_v21 }
 0xa3b   : > { %v10625_v63 = vpop.eup %10624  ;;  %v6623_v19 = vpack.c.bf16 %v14834_v4, %v14837_v30  ;;  %v6493_v16 = vmul.f32 %v14651_v22, %v6417_v29  ;;  %v6350_v33 = vadd.f32 1e-05, %v6318_v9  ;;  %v10297_v4 = vld [vmem:[#allocation11 + $0x44] ss:$8 sps:$4 sm:$0xff]  }
 0xa3c   : > { %6915 = vmatprep.mubr.bf16.mxu1 %v6624_v17  ;;  %v6253_v25 = vpop.xlane.xlu1 %6252  ;;  %v6302_v55 = vadd.f32 %v6208_v27, %v6207_v28  ;;  %v6420_v26 = vmul.f32 %v10625_v63, %v16907_v5  ;;  %v6419_v59 = vmul.f32 %v10625_v63, %v16908_v47  ;;  %7351 = vmatpush1.bf16.msra.mxu0 %v10292_v14  ;;  %v16909_v28 = vld [vmem:[#allocation130_spill] sm:$0xff]  ;;  %v10295_v5 = vld [vmem:[#allocation11 + $0x40] ss:$8 sps:$4 sm:$0xff]  }
 0xa3d   : > { %v6319_v57 = vmul.f32 0.00390625, %v6253_v25  ;;  %6916 = vmatmul.mubr.bf16.gmra.mxu1 %v6623_v19  ;;  %10632 = vrsqrt.f32 %v6350_v33  ;;  %v14854_v17 = vadd.f32 %v14662_v0, %v6494_v46  ;;  %v14861_v19 = vadd.f32 %v14666_v20, %v6493_v16  ;;  %v16910_v33 = vld [vmem:[#allocation113_spill] sm:$0xff]  ;;  %7352 = vmatprep.subr.bf16.mxu0 %v10297_v4 }
 0xa3e   : > { %v10627_v3 = vpop.eup %10626  ;;  %6303 = vadd.xlane.f32.xlu0 %v6302_v55  ;;  %v6496_v48 = vmul.f32 %v14645_v24, %v6420_v26  ;;  %v6495_v29 = vmul.f32 %v14651_v22, %v6419_v59  ;;  %v10300_v47 = vld [vmem:[#allocation11 + $0x34] ss:$8 sps:$4 sm:$0xff]  }
 0xa3f   : > { %v6351_v9 = vadd.f32 1e-05, %v6319_v57  ;;  %v6422_v27 = vmul.f32 %v10627_v3, %v16909_v28  ;;  %v6421_v25 = vmul.f32 %v10627_v3, %v16910_v33 }
 0xa40   : > { %v6256_v63 = vpop.xlane.xlu0 %6255  ;;  %v14858_v18 = vadd.f32 %v14662_v0, %v6496_v48  ;;  %v14864_v14 = vadd.f32 %v14666_v20, %v6495_v29  ;;  %7353 = vmatpush1.bf16.msra.mxu0 %v10295_v5  ;;  %v10298_v48 = vld [vmem:[#allocation11 + $0x30] ss:$8 sps:$4 sm:$0xff]  }
 0xa41   : > { %10634 = vrsqrt.f32 %v6351_v9  ;;  %v6320_v55 = vmul.f32 0.00390625, %v6256_v63  ;;  %v6498_v16 = vmul.f32 %v14645_v24, %v6422_v27  ;;  %v6497_v9 = vmul.f32 %v14651_v22, %v6421_v25  ;;  %7354 = vmatprep.subr.bf16.mxu0 %v10300_v47  ;;  %v10303_v27 = vld [vmem:[#allocation11 + $0x24] ss:$8 sps:$4 sm:$0xff]  }
 0xa42   : > { %v6626_v46 = vpack.c.bf16 %v14858_v18, %v14854_v17  ;;  %v6625_v26 = vpack.c.bf16 %v14864_v14, %v14861_v19 }
 0xa43   : > { %v10629_v59 = vpop.eup %10628  ;;  %v6352_v57 = vadd.f32 1e-05, %v6320_v55 }
 0xa44   : > { %6925 = vmatprep.mubr.bf16.mxu1 %v6626_v46  ;;  %v6259_v29 = vpop.xlane.xlu1 %6258  ;;  %v6424_v3 = vmul.f32 %v10629_v59, %v14508_v36  ;;  %v6423_v4 = vmul.f32 %v10629_v59, %v14505_v41  ;;  %7355 = vmatpush1.bf16.msra.mxu0 %v10298_v48  ;;  %v14878_v46 = vadd.f32 %v14662_v0, %v6498_v16  ;;  %v10301_v41 = vld [vmem:[#allocation11 + $0x20] ss:$8 sps:$4 sm:$0xff]  }
 0xa45   : > { %10636 = vrsqrt.f32 %v6352_v57  ;;  %v6321_v28 = vmul.f32 0.00390625, %v6259_v29  ;;  %6926 = vmatmul.mubr.bf16.gmra.mxu1 %v6625_v26  ;;  %v14885_v26 = vadd.f32 %v14666_v20, %v6497_v9  ;;  %7356 = vmatprep.subr.bf16.mxu0 %v10303_v27  ;;  %v10306_v29 = vld [vmem:[#allocation11 + $0x14] ss:$8 sps:$4 sm:$0xff]   ;;  %v10309_v27 = vld [vmem:[#allocation11 + $0x4] ss:$8 sps:$4 sm:$0xff]  }
 0xa46   : > { %v10631_v5 = vpop.eup %10630  ;;  %v6500_v63 = vmul.f32 %v14645_v24, %v6424_v3  ;;  %v6499_v33 = vmul.f32 %v14651_v22, %v6423_v4 }
 0xa47   : > { %v6353_v55 = vadd.f32 1e-05, %v6321_v28  ;;  %v6426_v36 = vmul.f32 %v10631_v5, %v14525_v35  ;;  %v6425_v57 = vmul.f32 %v10631_v5, %v14522_v44  ;;  %v10304_v28 = vld [vmem:[#allocation11 + $0x10] ss:$8 sps:$4 sm:$0xff]  }
 0xa48   : > { %v6262_v59 = vpop.xlane.xlu0 %6261  ;;  %v14882_v25 = vadd.f32 %v14662_v0, %v6500_v63  ;;  %v14888_v47 = vadd.f32 %v14666_v20, %v6499_v33  ;;  %7357 = vmatpush1.bf16.msra.mxu0 %v10301_v41  ;;  %v10307_v41 = vld [vmem:[#allocation11] ss:$8 sps:$4 sm:$0xff]  }
 0xa49   : > { %10638 = vrsqrt.f32 %v6353_v55  ;;  %v6322_v48 = vmul.f32 0.00390625, %v6262_v59  ;;  %v6502_v9 = vmul.f32 %v14645_v24, %v6426_v36  ;;  %v6501_v33 = vmul.f32 %v14651_v22, %v6425_v57  ;;  %7358 = vmatprep.subr.bf16.mxu0 %v10306_v29 }
 0xa4a   : > { %v6628_v35 = vpack.c.bf16 %v14882_v25, %v14878_v46  ;;  %v6627_v16 = vpack.c.bf16 %v14888_v47, %v14885_v26  ;;  %v10633_v3 = vpop.eup %10632 }
 0xa4b   : > { %v6354_v4 = vadd.f32 1e-05, %v6322_v48  ;;  %v6428_v44 = vmul.f32 %v10633_v3, %v14543_v39  ;;  %v6427_v5 = vmul.f32 %v10633_v3, %v14540_v40  ;;  %v14904_v57 = vadd.f32 %v14662_v0, %v6502_v9 }
 0xa4c   : > { %6935 = vmatprep.mubr.bf16.mxu1 %v6628_v35  ;;  %v6265_v63 = vpop.xlane.xlu1 %6264  ;;  %7359 = vmatpush1.bf16.msra.mxu0 %v10304_v28 }
 0xa4d   : > { %10640 = vrsqrt.f32 %v6354_v4  ;;  %v6323_v55 = vmul.f32 0.00390625, %v6265_v63  ;;  %6936 = vmatmul.mubr.bf16.gmra.mxu1 %v6627_v16  ;;  %v6504_v48 = vmul.f32 %v14645_v24, %v6428_v44  ;;  %v6503_v36 = vmul.f32 %v14651_v22, %v6427_v5  ;;  %7360 = vmatprep.subr.bf16.mxu0 %v10309_v27  ;;  %v10312_v5 = vld [vmem:[#allocation11 + $0xf4] ss:$8 sps:$4 sm:$0xff]  }
 0xa4e   : > { %v10635_v59 = vpop.eup %10634  ;;  %v14910_v16 = vadd.f32 %v14666_v20, %v6501_v33 }
 0xa4f   : > { %v6355_v35 = vadd.f32 1e-05, %v6323_v55  ;;  %v6430_v39 = vmul.f32 %v10635_v59, %v14555_v1  ;;  %v6429_v40 = vmul.f32 %v10635_v59, %v14552_v52  ;;  %v14907_v29 = vadd.f32 %v14662_v0, %v6504_v48  ;;  %v10310_v59 = vld [vmem:[#allocation11 + $0xf0] ss:$8 sps:$4 sm:$0xff]  }
 0xa50   : > { %v6268_v3 = vpop.xlane.xlu0 %6267  ;;  %v14913_v4 = vadd.f32 %v14666_v20, %v6503_v36  ;;  %7361 = vmatpush1.bf16.msra.mxu0 %v10307_v41  ;;  %v10315_v41 = vld [vmem:[#allocation11 + $0xe4] ss:$8 sps:$4 sm:$0xff]  }
 0xa51   : > { %10642 = vrsqrt.f32 %v6355_v35  ;;  %v6324_v28 = vmul.f32 0.00390625, %v6268_v3  ;;  %v6630_v52 = vpack.c.bf16 %v14907_v29, %v14904_v57  ;;  %v6506_v9 = vmul.f32 %v14645_v24, %v6430_v39  ;;  %7362 = vmatprep.subr.bf16.mxu0 %v10312_v5  ;;  %v10313_v35 = vld [vmem:[#allocation11 + $0xe0] ss:$8 sps:$4 sm:$0xff]  }
 0xa52   : > { %v10637_v63 = vpop.eup %10636  ;;  %v6629_v1 = vpack.c.bf16 %v14913_v4, %v14910_v16  ;;  %v6505_v44 = vmul.f32 %v14651_v22, %v6429_v40 }
 0xa53   : > { %v6356_v33 = vadd.f32 1e-05, %v6324_v28  ;;  %v6432_v27 = vmul.f32 %v10637_v63, %v14565_v6  ;;  %v6431_v55 = vmul.f32 %v10637_v63, %v14562_v11  ;;  %6945 = vmatprep.mubr.bf16.mxu1 %v6630_v52  ;;  %v14926_v40 = vadd.f32 %v14662_v0, %v6506_v9 }
 0xa54   : > { %7363 = vmatpush2.bf16.msra.mxu0 %v10310_v59  ;;  %v14929_v6 = vadd.f32 %v14666_v20, %v6505_v44 }
 0xa55   : > { %10644 = vrsqrt.f32 %v6356_v33  ;;  %6946 = vmatmul.mubr.bf16.gmra.mxu1 %v6629_v1  ;;  %v6508_v48 = vmul.f32 %v14645_v24, %v6432_v27  ;;  %v6507_v36 = vmul.f32 %v14651_v22, %v6431_v55  ;;  %7364 = vmatprep.subr.bf16.mxu0 %v10315_v41  ;;  %v10318_v33 = vld [vmem:[#allocation11 + $0xd4] ss:$8 sps:$4 sm:$0xff]   ;;  %v10316_v55 = vld [vmem:[#allocation11 + $0xd0] ss:$8 sps:$4 sm:$0xff]  }
 0xa56   : > { %v10639_v39 = vpop.eup %10638 }
 0xa57   : > { %v14932_v11 = vadd.f32 %v14662_v0, %v6508_v48  ;;  %v14935_v3 = vadd.f32 %v14666_v20, %v6507_v36  ;;  %v6434_v28 = vmul.f32 %v10639_v39, %v14575_v45  ;;  %v6433_v63 = vmul.f32 %v10639_v39, %v14572_v13  ;;  %v10321_v13 = vld [vmem:[#allocation11 + $0xc4] ss:$8 sps:$4 sm:$0xff]   ;;  %v10319_v48 = vld [vmem:[#allocation11 + $0xc0] ss:$8 sps:$4 sm:$0xff]  }
 0xa58   : > { %7365 = vmatpush2.bf16.msra.mxu0 %v10313_v35 }
 0xa59   : > { %v6632_v52 = vpack.c.bf16 %v14932_v11, %v14926_v40  ;;  %v6631_v1 = vpack.c.bf16 %v14935_v3, %v14929_v6  ;;  %v6510_v44 = vmul.f32 %v14645_v24, %v6434_v28  ;;  %v6509_v5 = vmul.f32 %v14651_v22, %v6433_v63  ;;  %7366 = vmatprep.subr.bf16.mxu0 %v10318_v33 }
 0xa5a   : > { %v10641_v9 = vpop.eup %10640 }
 0xa5b   : > { %6955 = vmatprep.mubr.bf16.mxu1 %v6632_v52  ;;  %v6436_v27 = vmul.f32 %v10641_v9, %v14585_v2  ;;  %v6435_v45 = vmul.f32 %v10641_v9, %v14582_v12  ;;  %v14950_v35 = vadd.f32 %v14662_v0, %v6510_v44  ;;  %v14953_v39 = vadd.f32 %v14666_v20, %v6509_v5  ;;  %v10324_v44 = vld [vmem:[#allocation11 + $0xb4] ss:$8 sps:$4 sm:$0xff]  }
 0xa5c   : > { %7367 = vmatpush2.bf16.msra.mxu0 %v10316_v55 }
 0xa5d   : > { %6956 = vmatmul.mubr.bf16.gmra.mxu1 %v6631_v1  ;;  %v6512_v59 = vmul.f32 %v14645_v24, %v6436_v27  ;;  %v6511_v41 = vmul.f32 %v14651_v22, %v6435_v45  ;;  %7368 = vmatprep.subr.bf16.mxu0 %v10321_v13  ;;  %v10322_v45 = vld [vmem:[#allocation11 + $0xb0] ss:$8 sps:$4 sm:$0xff]   ;;  %v10327_v13 = vld [vmem:[#allocation11 + $0xa4] ss:$8 sps:$4 sm:$0xff]  }
 0xa5e   : > { %v10643_v36 = vpop.eup %10642 }
 0xa5f   : > { %v14956_v12 = vadd.f32 %v14662_v0, %v6512_v59  ;;  %v14959_v2 = vadd.f32 %v14666_v20, %v6511_v41  ;;  %v6438_v28 = vmul.f32 %v10643_v36, %v14595_v31  ;;  %v6437_v63 = vmul.f32 %v10643_v36, %v14592_v62 }
 0xa60   : > { %7369 = vmatpush2.bf16.msra.mxu0 %v10319_v48  ;;  %v10325_v48 = vld [vmem:[#allocation11 + $0xa0] ss:$8 sps:$4 sm:$0xff]  }
 0xa61   : > { %v6634_v52 = vpack.c.bf16 %v14956_v12, %v14950_v35  ;;  %v6633_v1 = vpack.c.bf16 %v14959_v2, %v14953_v39  ;;  %v6514_v33 = vmul.f32 %v14645_v24, %v6438_v28  ;;  %v6513_v31 = vmul.f32 %v14651_v22, %v6437_v63  ;;  %7370 = vmatprep.subr.bf16.mxu0 %v10324_v44  ;;  %v10330_v63 = vld [vmem:[#allocation11 + $0x94] ss:$8 sps:$4 sm:$0xff]  }
 0xa62   : > { %v10645_v9 = vpop.eup %10644 }
 0xa63   : > { %6965 = vmatprep.mubr.bf16.mxu1 %v6634_v52  ;;  %v6440_v5 = vmul.f32 %v10645_v9, %v14605_v43  ;;  %v6439_v27 = vmul.f32 %v10645_v9, %v14602_v58  ;;  %v14974_v59 = vadd.f32 %v14662_v0, %v6514_v33  ;;  %v14980_v41 = vadd.f32 %v14666_v20, %v6513_v31  ;;  %v10328_v52 = vld [vmem:[#allocation11 + $0x90] ss:$8 sps:$4 sm:$0xff]   ;;  %v10331_v9 = vld [vmem:[#allocation11 + $0x80] ss:$8 sps:$4 sm:$0xff]  }
 0xa64   : > { %7371 = vmatpush2.bf16.msra.mxu0 %v10322_v45 }
 0xa65   : > { %6966 = vmatmul.mubr.bf16.gmra.mxu1 %v6633_v1  ;;  %v6516_v62 = vmul.f32 %v14645_v24, %v6440_v5  ;;  %v6515_v55 = vmul.f32 %v14651_v22, %v6439_v27  ;;  %7372 = vmatprep.subr.bf16.mxu0 %v10327_v13  ;;  %v10333_v1 = vld [vmem:[#allocation11 + $0x84] ss:$8 sps:$4 sm:$0xff]  }
 0xa67   : > { %v14977_v43 = vadd.f32 %v14662_v0, %v6516_v62  ;;  %v14983_v58 = vadd.f32 %v14666_v20, %v6515_v55 }
 0xa68   : > { %7373 = vmatpush2.bf16.msra.mxu0 %v10325_v48 }
 0xa69   : > { %16911 = vst [vmem:[#allocation129_spill] sm:$0xff] %v14977_v43  ;;  %v6636_v36 = vpack.c.bf16 %v14977_v43, %v14974_v59  ;;  %v6635_v28 = vpack.c.bf16 %v14983_v58, %v14980_v41  ;;  %7374 = vmatprep.subr.bf16.mxu0 %v10330_v63 }
 0xa6b   : > { %6975 = vmatprep.mubr.bf16.mxu1 %v6636_v36 }
 0xa6c   : > { %7375 = vmatpush2.bf16.msra.mxu0 %v10328_v52 }
 0xa6d   : > { %6976 = vmatmul.mubr.bf16.gmra.mxu1 %v6635_v28  ;;  %7376 = vmatprep.subr.bf16.mxu0 %v10333_v1 }
 0xa70   : > { %7377 = vmatpush2.bf16.msra.mxu0 %v10331_v9 }
 0xa9a   : > { %v6271_v44 = vpop.xlane.xlu1 %6270 }
 0xa9b   : > { %v6325_v5 = vmul.f32 0.00390625, %v6271_v44 }
 0xa9d   : > { %v6357_v33 = vadd.f32 1e-05, %v6325_v5 }
 0xa9f   : > { %10646 = vrsqrt.f32 %v6357_v33  ;;  %v6274_v27 = vpop.xlane.xlu0 %6273 }
 0xaa0   : > { %v6326_v31 = vmul.f32 0.00390625, %v6274_v27 }
 0xaa2   : > { %v6358_v45 = vadd.f32 1e-05, %v6326_v31  ;;  %v6277_v62 = vpop.xlane.xlu1 %6276 }
 0xaa3   : > { %v6327_v55 = vmul.f32 0.00390625, %v6277_v62 }
 0xaa4   : > { %10648 = vrsqrt.f32 %v6358_v45 }
 0xaa5   : > { %v6359_v13 = vadd.f32 1e-05, %v6327_v55  ;;  %v16912_v55 = vld [vmem:[#allocation151_spill] sm:$0xff] }
 0xaa7   : > { %10650 = vrsqrt.f32 %v6359_v13  ;;  %v6280_v48 = vpop.xlane.xlu0 %6279 }
 0xaa8   : > { %v6328_v36 = vmul.f32 0.00390625, %v6280_v48  ;;  %v16913_v48 = vld [vmem:[#allocation117_spill] sm:$0xff] }
 0xaaa   : > { %v6360_v28 = vadd.f32 1e-05, %v6328_v36  ;;  %v6283_v63 = vpop.xlane.xlu1 %6282 }
 0xaab   : > { %v6329_v52 = vmul.f32 0.00390625, %v6283_v63 }
 0xaac   : > { %v10647_v43 = vpop.eup %10646  ;;  %10652 = vrsqrt.f32 %v6360_v28 }
 0xaad   : > { %v6361_v1 = vadd.f32 1e-05, %v6329_v52  ;;  %v6442_v9 = vmul.f32 %v10647_v43, %v14615_v10  ;;  %v6441_v44 = vmul.f32 %v10647_v43, %v14612_v61 }
 0xaaf   : > { %10654 = vrsqrt.f32 %v6361_v1  ;;  %v6286_v5 = vpop.xlane.xlu0 %6285  ;;  %v6518_v31 = vmul.f32 %v14645_v24, %v6442_v9  ;;  %v6517_v63 = vmul.f32 %v14651_v22, %v6441_v44  ;;  %v16914_v9 = vld [vmem:[#allocation137_spill] sm:$0xff] }
 0xab0   : > { %v6330_v33 = vmul.f32 0.00390625, %v6286_v5 }
 0xab1   : > { %v10649_v27 = vpop.eup %10648  ;;  %v14998_v1 = vadd.f32 %v14662_v0, %v6518_v31 }
 0xab2   : > { %v6362_v45 = vadd.f32 1e-05, %v6330_v33  ;;  %v6289_v62 = vpop.xlane.xlu1 %6288  ;;  %v6444_v13 = vmul.f32 %v10649_v27, %v16912_v55  ;;  %v6443_v36 = vmul.f32 %v10649_v27, %v16913_v48  ;;  %v15005_v27 = vadd.f32 %v14666_v20, %v6517_v63 }
 0xab3   : > { %v6331_v28 = vmul.f32 0.00390625, %v6289_v62 }
 0xab4   : > { %v10651_v52 = vpop.eup %10650  ;;  %10656 = vrsqrt.f32 %v6362_v45  ;;  %v6520_v10 = vmul.f32 %v14645_v24, %v6444_v13  ;;  %v6519_v61 = vmul.f32 %v14651_v22, %v6443_v36  ;;  %v16917_v45 = vld [vmem:[#allocation111_spill] sm:$0xff] }
 0xab5   : > { %v6363_v43 = vadd.f32 1e-05, %v6331_v28  ;;  %v6446_v5 = vmul.f32 %v10651_v52, %v16914_v9  ;;  %v6445_v62 = vmul.f32 %v10651_v52, %v16917_v45 }
 0xab6   : > { %v15002_v33 = vadd.f32 %v14662_v0, %v6520_v10  ;;  %v15008_v44 = vadd.f32 %v14666_v20, %v6519_v61 }
 0xab7   : > { %10658 = vrsqrt.f32 %v6363_v43  ;;  %v6292_v55 = vpop.xlane.xlu0 %6291  ;;  %v6522_v28 = vmul.f32 %v14645_v24, %v6446_v5  ;;  %v6521_v52 = vmul.f32 %v14651_v22, %v6445_v62 }
 0xab8   : > { %16915 = vst [vmem:[#allocation127_spill] sm:$0xff] %v15002_v33  ;;  %16916 = vst [vmem:[#allocation162_spill] sm:$0xff] %v15008_v44  ;;  %v6332_v13 = vmul.f32 0.00390625, %v6292_v55  ;;  %v6638_v31 = vpack.c.bf16 %v15002_v33, %v14998_v1  ;;  %v6637_v48 = vpack.c.bf16 %v15008_v44, %v15005_v27 }
 0xab9   : > { %v10653_v36 = vpop.eup %10652  ;;  %v15022_v5 = vadd.f32 %v14662_v0, %v6522_v28 }
 0xaba   : > { %v6364_v10 = vadd.f32 1e-05, %v6332_v13  ;;  %6985 = vmatprep.mubr.bf16.mxu1 %v6638_v31  ;;  %v6295_v63 = vpop.xlane.xlu1 %6294  ;;  %v6448_v61 = vmul.f32 %v10653_v36, %v14659_v53  ;;  %v6447_v9 = vmul.f32 %v10653_v36, %v14656_v42  ;;  %v15029_v42 = vadd.f32 %v14666_v20, %v6521_v52 }
 0xabb   : > { %v6333_v43 = vmul.f32 0.00390625, %v6295_v63  ;;  %6986 = vmatmul.mubr.bf16.gmra.mxu1 %v6637_v48 }
 0xabc   : > { %v10655_v45 = vpop.eup %10654  ;;  %10660 = vrsqrt.f32 %v6364_v10  ;;  %v6524_v55 = vmul.f32 %v14645_v24, %v6448_v61  ;;  %v6523_v33 = vmul.f32 %v14651_v22, %v6447_v9 }
 0xabd   : > { %v6365_v44 = vadd.f32 1e-05, %v6333_v43  ;;  %v6450_v13 = vmul.f32 %v10655_v45, %v14678_v51  ;;  %v6449_v31 = vmul.f32 %v10655_v45, %v14675_v54 }
 0xabe   : > { %v15026_v53 = vadd.f32 %v14662_v0, %v6524_v55  ;;  %v15032_v62 = vadd.f32 %v14666_v20, %v6523_v33 }
 0xabf   : > { %10662 = vrsqrt.f32 %v6365_v44  ;;  %v6298_v48 = vpop.xlane.xlu0 %6297  ;;  %v6526_v63 = vmul.f32 %v14645_v24, %v6450_v13  ;;  %v6525_v54 = vmul.f32 %v14651_v22, %v6449_v31 }
 0xac0   : > { %v6334_v36 = vmul.f32 0.00390625, %v6298_v48  ;;  %v6640_v28 = vpack.c.bf16 %v15026_v53, %v15022_v5  ;;  %v6639_v51 = vpack.c.bf16 %v15032_v62, %v15029_v42 }
 0xac1   : > { %v10657_v10 = vpop.eup %10656  ;;  %v15046_v13 = vadd.f32 %v14662_v0, %v6526_v63 }
 0xac2   : > { %v6366_v61 = vadd.f32 1e-05, %v6334_v36  ;;  %6995 = vmatprep.mubr.bf16.mxu1 %v6640_v28  ;;  %v6301_v9 = vpop.xlane.xlu1 %6300  ;;  %v6452_v33 = vmul.f32 %v10657_v10, %v14701_v38  ;;  %v6451_v52 = vmul.f32 %v10657_v10, %v14698_v50  ;;  %v15053_v50 = vadd.f32 %v14666_v20, %v6525_v54  ;;  %v16918_v28 = vld [vmem:[#allocation149_spill] sm:$0xff] }
 0xac3   : > { %v6335_v44 = vmul.f32 0.00390625, %v6301_v9  ;;  %6996 = vmatmul.mubr.bf16.gmra.mxu1 %v6639_v51 }
 0xac4   : > { %v10659_v43 = vpop.eup %10658  ;;  %10664 = vrsqrt.f32 %v6366_v61  ;;  %v6528_v45 = vmul.f32 %v14645_v24, %v6452_v33  ;;  %v6527_v55 = vmul.f32 %v14651_v22, %v6451_v52 }
 0xac5   : > { %v6367_v48 = vadd.f32 1e-05, %v6335_v44  ;;  %v6454_v36 = vmul.f32 %v10659_v43, %v14720_v15  ;;  %v6453_v51 = vmul.f32 %v10659_v43, %v16918_v28 }
 0xac6   : > { %v15050_v38 = vadd.f32 %v14662_v0, %v6528_v45  ;;  %v15056_v31 = vadd.f32 %v14666_v20, %v6527_v55 }
 0xac7   : > { %10666 = vrsqrt.f32 %v6367_v48  ;;  %v6304_v10 = vpop.xlane.xlu0 %6303  ;;  %v6530_v33 = vmul.f32 %v14645_v24, %v6454_v36  ;;  %v6529_v43 = vmul.f32 %v14651_v22, %v6453_v51 }
 0xac8   : > { %v6336_v61 = vmul.f32 0.00390625, %v6304_v10  ;;  %v6642_v63 = vpack.c.bf16 %v15050_v38, %v15046_v13  ;;  %v6641_v15 = vpack.c.bf16 %v15056_v31, %v15053_v50 }
 0xac9   : > { %v10661_v9 = vpop.eup %10660  ;;  %v15072_v36 = vadd.f32 %v14662_v0, %v6530_v33 }
 0xaca   : > { %v6368_v52 = vadd.f32 1e-05, %v6336_v61  ;;  %7005 = vmatprep.mubr.bf16.mxu1 %v6642_v63  ;;  %v6456_v54 = vmul.f32 %v10661_v9, %v14740_v56  ;;  %v6455_v44 = vmul.f32 %v10661_v9, %v14737_v60  ;;  %v15078_v60 = vadd.f32 %v14666_v20, %v6529_v43 }
 0xacb   : > { %7006 = vmatmul.mubr.bf16.gmra.mxu1 %v6641_v15  ;;  %16919 = vst [vmem:[#allocation161_spill] sm:$0xff] %v15072_v36 }
 0xacc   : > { %v10663_v45 = vpop.eup %10662  ;;  %10668 = vrsqrt.f32 %v6368_v52  ;;  %v6532_v55 = vmul.f32 %v14645_v24, %v6456_v54  ;;  %v6531_v48 = vmul.f32 %v14651_v22, %v6455_v44  ;;  %16921 = vst [vmem:[#allocation144_spill] sm:$0xff] %v15078_v60 }
 0xacd   : > { %v6458_v28 = vmul.f32 %v10663_v45, %v14762_v23  ;;  %v6457_v10 = vmul.f32 %v10663_v45, %v14759_v34 }
 0xace   : > { %v15075_v56 = vadd.f32 %v14662_v0, %v6532_v55  ;;  %v15081_v51 = vadd.f32 %v14666_v20, %v6531_v48 }
 0xacf   : > { %v6534_v34 = vmul.f32 %v14645_v24, %v6458_v28  ;;  %v6533_v15 = vmul.f32 %v14651_v22, %v6457_v10 }
 0xad0   : > { %16920 = vst [vmem:[#allocation142_spill] sm:$0xff] %v15075_v56  ;;  %16922 = vst [vmem:[#allocation141_spill] sm:$0xff] %v15081_v51  ;;  %v6644_v61 = vpack.c.bf16 %v15075_v56, %v15072_v36  ;;  %v6643_v23 = vpack.c.bf16 %v15081_v51, %v15078_v60  ;;  %v16945_v56 = vld [vmem:[#allocation119_spill] sm:$0xff] }
 0xad1   : > { %v10665_v63 = vpop.eup %10664  ;;  %v15094_v43 = vadd.f32 %v14662_v0, %v6534_v34  ;;  %v15097_v45 = vadd.f32 %v14666_v20, %v6533_v15  ;;  %v16947_v60 = vld [vmem:[#allocation131_spill] sm:$0xff] }
 0xad2   : > { %7015 = vmatprep.mubr.bf16.mxu1 %v6644_v61  ;;  %v6460_v9 = vmul.f32 %v10665_v63, %v14784_v37  ;;  %v6459_v33 = vmul.f32 %v10665_v63, %v14781_v49  ;;  %v16927_v37 = vld [vmem:[#allocation170_spill] sm:$0xff] }
 0xad3   : > { %7016 = vmatmul.mubr.bf16.gmra.mxu1 %v6643_v23  ;;  %16923 = vst [vmem:[#allocation160_spill] sm:$0xff] %v15094_v43  ;;  %16924 = vst [vmem:[#allocation143_spill] sm:$0xff] %v15097_v45 }
 0xad4   : > { %v10667_v52 = vpop.eup %10666  ;;  %v6536_v54 = vmul.f32 %v14645_v24, %v6460_v9  ;;  %v6535_v44 = vmul.f32 %v14651_v22, %v6459_v33 }
 0xad5   : > { %v6462_v49 = vmul.f32 %v10667_v52, %v14806_v7  ;;  %v6461_v28 = vmul.f32 %v10667_v52, %v16927_v37 }
 0xad6   : > { %v15100_v55 = vadd.f32 %v14662_v0, %v6536_v54  ;;  %v15103_v48 = vadd.f32 %v14666_v20, %v6535_v44 }
 0xad7   : > { %v6538_v34 = vmul.f32 %v14645_v24, %v6462_v49  ;;  %v6537_v9 = vmul.f32 %v14651_v22, %v6461_v28  ;;  %v16932_v49 = vld [vmem:[#allocation92_spill] sm:$0xff]  ;;  %v16933_v28 = vld [vmem:[#allocation91_spill] sm:$0xff] }
 0xad8   : > { %16925 = vst [vmem:[#allocation159_spill] sm:$0xff] %v15100_v55  ;;  %16926 = vst [vmem:[#allocation158_spill] sm:$0xff] %v15103_v48  ;;  %v6646_v10 = vpack.c.bf16 %v15100_v55, %v15094_v43  ;;  %v6645_v61 = vpack.c.bf16 %v15103_v48, %v15097_v45 }
 0xad9   : > { %v10669_v23 = vpop.eup %10668  ;;  %v15118_v52 = vadd.f32 %v14662_v0, %v6538_v34  ;;  %v15124_v44 = vadd.f32 %v14666_v20, %v6537_v9 }
 0xada   : > { %7025 = vmatprep.mubr.bf16.mxu1 %v6646_v10  ;;  %v6464_v63 = vmul.f32 %v10669_v23, %v14828_v32  ;;  %v6463_v15 = vmul.f32 %v10669_v23, %v14825_v8 }
 0xadb   : > { %7026 = vmatmul.mubr.bf16.gmra.mxu1 %v6645_v61  ;;  %16928 = vst [vmem:[#allocation146_spill] sm:$0xff] %v15118_v52  ;;  %16930 = vst [vmem:[#allocation145_spill] sm:$0xff] %v15124_v44 }
 0xadc   : > { %v6540_v7 = vmul.f32 %v14645_v24, %v6464_v63  ;;  %v6539_v33 = vmul.f32 %v14651_v22, %v6463_v15  ;;  %v6681_v22 = vld [vmem:[%s16206_s16] sm:$0x3] }
 0xadd   : > { %v15137_v37 = vrot.slane %v6681_v22, %v16932_v49  ;;  %v15140_v10 = vrot.slane %v6681_v22, %v16933_v28 }
 0xade   : > { %v15121_v54 = vadd.f32 %v14662_v0, %v6540_v7  ;;  %v15127_v32 = vadd.f32 %v14666_v20, %v6539_v33 }
 0xae0   : > { %16929 = vst [vmem:[#allocation157_spill] sm:$0xff] %v15121_v54  ;;  %16931 = vst [vmem:[#allocation156_spill] sm:$0xff] %v15127_v32  ;;  %v6648_v8 = vpack.c.bf16 %v15121_v54, %v15118_v52  ;;  %v6647_v24 = vpack.c.bf16 %v15127_v32, %v15124_v44 }
 0xae2   : > { %7035 = vmatprep.mubr.bf16.mxu1 %v6648_v8 }
 0xae3   : > { %7036 = vmatmul.mubr.bf16.gmra.mxu1 %v6647_v24 }
 0xae5   : > { %v6887_v0 = vpop.f32.mrf.mxu1 }
 0xae6   : > { %v6888_v34 = vadd.f32 %v6887_v0, %v15140_v10 }
 0xae7   : > { %v6889_v20 = vpop.f32.mrf.mxu1 }
 0xae8   : > { %v6890_v23 = vadd.f32 %v6889_v20, %v15137_v37  ;;  %v7046_v54 = vmax.f32 %v6888_v34, 0.0 }
 0xae9   : > { %v6891_v61 = vpop.f32.mrf.mxu1 }
 0xaea   : > { %v6892_v63 = vadd.f32 %v6891_v61, %v15140_v10  ;;  %v7047_v8 = vmax.f32 %v6890_v23, 0.0 }
 0xaeb   : > { %v6893_v15 = vpop.f32.mrf.mxu1 }
 0xaec   : > { %v6894_v9 = vadd.f32 %v6893_v15, %v15137_v37  ;;  %v7048_v7 = vmax.f32 %v6892_v63, 0.0 }
 0xaed   : > { %v6897_v33 = vpop.f32.mrf.mxu1 }
 0xaee   : > { %v7049_v24 = vmax.f32 %v6894_v9, 0.0  ;;  %v7110_v22 = vpack.c.bf16 %v7048_v7, %v7046_v54  ;;  %v6898_v61 = vadd.f32 %v6897_v33, %v15140_v10 }
 0xaef   : > { %v6899_v32 = vpop.f32.mrf.mxu1 }
 0xaf0   : > { %v7111_v44 = vpack.c.bf16 %v7049_v24, %v7047_v8  ;;  %v6900_v55 = vadd.f32 %v6899_v32, %v15137_v37  ;;  %v7050_v34 = vmax.f32 %v6898_v61, 0.0 }
 0xaf1   : > { %v6901_v52 = vpop.f32.mrf.mxu1 }
 0xaf2   : > { %v6902_v20 = vadd.f32 %v6901_v52, %v15140_v10  ;;  %7378 = vmatprep.mubr.bf16.mxu0 %v7111_v44  ;;  %v7051_v23 = vmax.f32 %v6900_v55, 0.0 }
 0xaf3   : > { %v6903_v0 = vpop.f32.mrf.mxu1  ;;  %7379 = vmatmul.mubr.bf16.vlgmr.msra.gmra.mxu0 %v7110_v22 }
 0xaf4   : > { %v6904_v15 = vadd.f32 %v6903_v0, %v15137_v37  ;;  %v7052_v63 = vmax.f32 %v6902_v20, 0.0 }
 0xaf5   : > { %v6907_v48 = vpop.f32.mrf.mxu1 }
 0xaf6   : > { %v7053_v9 = vmax.f32 %v6904_v15, 0.0  ;;  %v7112_v54 = vpack.c.bf16 %v7052_v63, %v7050_v34  ;;  %v6908_v44 = vadd.f32 %v6907_v48, %v15140_v10 }
 0xaf7   : > { %v6909_v45 = vpop.f32.mrf.mxu1 }
 0xaf8   : > { %v7113_v8 = vpack.c.bf16 %v7053_v9, %v7051_v23  ;;  %v6910_v32 = vadd.f32 %v6909_v45, %v15137_v37  ;;  %v7054_v61 = vmax.f32 %v6908_v44, 0.0 }
 0xaf9   : > { %v6911_v7 = vpop.f32.mrf.mxu1 }
 0xafa   : > { %v6912_v52 = vadd.f32 %v6911_v7, %v15140_v10  ;;  %7388 = vmatprep.mubr.bf16.mxu0 %v7113_v8  ;;  %v7055_v55 = vmax.f32 %v6910_v32, 0.0 }
 0xafb   : > { %v6913_v33 = vpop.f32.mrf.mxu1  ;;  %7389 = vmatmul.mubr.bf16.gmra.mxu0 %v7112_v54 }
 0xafc   : > { %v6914_v24 = vadd.f32 %v6913_v33, %v15137_v37  ;;  %v7056_v22 = vmax.f32 %v6912_v52, 0.0 }
 0xafd   : > { %v6917_v20 = vpop.f32.mrf.mxu1 }
 0xafe   : > { %v7057_v0 = vmax.f32 %v6914_v24, 0.0  ;;  %v7114_v63 = vpack.c.bf16 %v7056_v22, %v7054_v61  ;;  %v6918_v48 = vadd.f32 %v6917_v20, %v15140_v10 }
 0xaff   : > { %v6919_v15 = vpop.f32.mrf.mxu1 }
 0xb00   : > { %v7115_v23 = vpack.c.bf16 %v7057_v0, %v7055_v55  ;;  %v6920_v45 = vadd.f32 %v6919_v15, %v15137_v37  ;;  %v7058_v44 = vmax.f32 %v6918_v48, 0.0 }
 0xb01   : > { %v6921_v9 = vpop.f32.mrf.mxu1 }
 0xb02   : > { %v6922_v34 = vadd.f32 %v6921_v9, %v15140_v10  ;;  %7398 = vmatprep.mubr.bf16.mxu0 %v7115_v23  ;;  %v7059_v32 = vmax.f32 %v6920_v45, 0.0 }
 0xb03   : > { %v6923_v8 = vpop.f32.mrf.mxu1  ;;  %7399 = vmatmul.mubr.bf16.gmra.mxu0 %v7114_v63 }
 0xb04   : > { %v6924_v54 = vadd.f32 %v6923_v8, %v15137_v37  ;;  %v7060_v7 = vmax.f32 %v6922_v34, 0.0 }
 0xb05   : > { %v6927_v52 = vpop.f32.mrf.mxu1 }
 0xb06   : > { %v7061_v33 = vmax.f32 %v6924_v54, 0.0  ;;  %v7116_v22 = vpack.c.bf16 %v7060_v7, %v7058_v44  ;;  %v6928_v20 = vadd.f32 %v6927_v52, %v15140_v10 }
 0xb07   : > { %v6929_v24 = vpop.f32.mrf.mxu1 }
 0xb08   : > { %v7117_v55 = vpack.c.bf16 %v7061_v33, %v7059_v32  ;;  %v6930_v61 = vadd.f32 %v6929_v24, %v15137_v37  ;;  %v7062_v48 = vmax.f32 %v6928_v20, 0.0 }
 0xb09   : > { %v6931_v0 = vpop.f32.mrf.mxu1 }
 0xb0a   : > { %v6932_v15 = vadd.f32 %v6931_v0, %v15140_v10  ;;  %7408 = vmatprep.mubr.bf16.mxu0 %v7117_v55  ;;  %v7063_v45 = vmax.f32 %v6930_v61, 0.0 }
 0xb0b   : > { %v6933_v23 = vpop.f32.mrf.mxu1  ;;  %7409 = vmatmul.mubr.bf16.gmra.mxu0 %v7116_v22 }
 0xb0c   : > { %v6934_v63 = vadd.f32 %v6933_v23, %v15137_v37  ;;  %v7064_v9 = vmax.f32 %v6932_v15, 0.0 }
 0xb0d   : > { %v6937_v34 = vpop.f32.mrf.mxu1 }
 0xb0e   : > { %v7065_v8 = vmax.f32 %v6934_v63, 0.0  ;;  %v7118_v7 = vpack.c.bf16 %v7064_v9, %v7062_v48  ;;  %v6938_v52 = vadd.f32 %v6937_v34, %v15140_v10 }
 0xb0f   : > { %v6939_v54 = vpop.f32.mrf.mxu1 }
 0xb10   : > { %v7119_v32 = vpack.c.bf16 %v7065_v8, %v7063_v45  ;;  %v6940_v44 = vadd.f32 %v6939_v54, %v15137_v37  ;;  %v7066_v20 = vmax.f32 %v6938_v52, 0.0 }
 0xb11   : > { %v6941_v33 = vpop.f32.mrf.mxu1 }
 0xb12   : > { %v6942_v24 = vadd.f32 %v6941_v33, %v15140_v10  ;;  %7418 = vmatprep.mubr.bf16.mxu0 %v7119_v32  ;;  %v7067_v61 = vmax.f32 %v6940_v44, 0.0 }
 0xb13   : > { %v6943_v55 = vpop.f32.mrf.mxu1  ;;  %7419 = vmatmul.mubr.bf16.gmra.mxu0 %v7118_v7 }
 0xb14   : > { %v6944_v22 = vadd.f32 %v6943_v55, %v15137_v37  ;;  %v7068_v0 = vmax.f32 %v6942_v24, 0.0 }
 0xb15   : > { %v6947_v15 = vpop.f32.mrf.mxu1 }
 0xb16   : > { %v7069_v23 = vmax.f32 %v6944_v22, 0.0  ;;  %v7120_v9 = vpack.c.bf16 %v7068_v0, %v7066_v20  ;;  %v6948_v34 = vadd.f32 %v6947_v15, %v15140_v10 }
 0xb17   : > { %v6949_v63 = vpop.f32.mrf.mxu1 }
 0xb18   : > { %v7121_v45 = vpack.c.bf16 %v7069_v23, %v7067_v61  ;;  %v6950_v48 = vadd.f32 %v6949_v63, %v15137_v37  ;;  %v7070_v52 = vmax.f32 %v6948_v34, 0.0 }
 0xb19   : > { %v6951_v8 = vpop.f32.mrf.mxu1 }
 0xb1a   : > { %v6952_v54 = vadd.f32 %v6951_v8, %v15140_v10  ;;  %7428 = vmatprep.mubr.bf16.mxu0 %v7121_v45  ;;  %v7071_v44 = vmax.f32 %v6950_v48, 0.0 }
 0xb1b   : > { %v6953_v32 = vpop.f32.mrf.mxu1  ;;  %7429 = vmatmul.mubr.bf16.gmra.mxu0 %v7120_v9 }
 0xb1c   : > { %v6954_v7 = vadd.f32 %v6953_v32, %v15137_v37  ;;  %v7072_v33 = vmax.f32 %v6952_v54, 0.0 }
 0xb1d   : > { %v6957_v24 = vpop.f32.mrf.mxu1 }
 0xb1e   : > { %v7073_v55 = vmax.f32 %v6954_v7, 0.0  ;;  %v7122_v0 = vpack.c.bf16 %v7072_v33, %v7070_v52  ;;  %v6958_v15 = vadd.f32 %v6957_v24, %v15140_v10 }
 0xb1f   : > { %v6959_v22 = vpop.f32.mrf.mxu1 }
 0xb20   : > { %v7123_v61 = vpack.c.bf16 %v7073_v55, %v7071_v44  ;;  %v6960_v20 = vadd.f32 %v6959_v22, %v15137_v37  ;;  %v7074_v34 = vmax.f32 %v6958_v15, 0.0 }
 0xb21   : > { %v6961_v23 = vpop.f32.mrf.mxu1 }
 0xb22   : > { %v6962_v63 = vadd.f32 %v6961_v23, %v15140_v10  ;;  %7438 = vmatprep.mubr.bf16.mxu0 %v7123_v61  ;;  %v7075_v48 = vmax.f32 %v6960_v20, 0.0 }
 0xb23   : > { %v6963_v45 = vpop.f32.mrf.mxu1  ;;  %7439 = vmatmul.mubr.bf16.gmra.mxu0 %v7122_v0 }
 0xb24   : > { %v6964_v9 = vadd.f32 %v6963_v45, %v15137_v37  ;;  %v7076_v8 = vmax.f32 %v6962_v63, 0.0 }
 0xb25   : > { %v6967_v54 = vpop.f32.mrf.mxu1 }
 0xb26   : > { %v7077_v32 = vmax.f32 %v6964_v9, 0.0  ;;  %v7124_v33 = vpack.c.bf16 %v7076_v8, %v7074_v34  ;;  %v6968_v24 = vadd.f32 %v6967_v54, %v15140_v10 }
 0xb27   : > { %v6969_v7 = vpop.f32.mrf.mxu1 }
 0xb28   : > { %v7125_v44 = vpack.c.bf16 %v7077_v32, %v7075_v48  ;;  %v6970_v52 = vadd.f32 %v6969_v7, %v15137_v37  ;;  %v7078_v15 = vmax.f32 %v6968_v24, 0.0 }
 0xb29   : > { %v6971_v55 = vpop.f32.mrf.mxu1 }
 0xb2a   : > { %v6972_v22 = vadd.f32 %v6971_v55, %v15140_v10  ;;  %7448 = vmatprep.mubr.bf16.mxu0 %v7125_v44  ;;  %v7079_v20 = vmax.f32 %v6970_v52, 0.0 }
 0xb2b   : > { %v6973_v61 = vpop.f32.mrf.mxu1  ;;  %7449 = vmatmul.mubr.bf16.gmra.mxu0 %v7124_v33 }
 0xb2c   : > { %v6974_v0 = vadd.f32 %v6973_v61, %v15137_v37  ;;  %v7080_v23 = vmax.f32 %v6972_v22, 0.0 }
 0xb2d   : > { %v6977_v63 = vpop.f32.mrf.mxu1 }
 0xb2e   : > { %v7081_v45 = vmax.f32 %v6974_v0, 0.0  ;;  %v7126_v8 = vpack.c.bf16 %v7080_v23, %v7078_v15  ;;  %v6978_v54 = vadd.f32 %v6977_v63, %v15140_v10 }
 0xb2f   : > { %v6979_v9 = vpop.f32.mrf.mxu1 }
 0xb30   : > { %v7127_v48 = vpack.c.bf16 %v7081_v45, %v7079_v20  ;;  %v6980_v34 = vadd.f32 %v6979_v9, %v15137_v37  ;;  %v7082_v61 = vmax.f32 %v6978_v54, 0.0 }
 0xb31   : > { %v6981_v32 = vpop.f32.mrf.mxu1 }
 0xb32   : > { %v6982_v7 = vadd.f32 %v6981_v32, %v15140_v10  ;;  %7458 = vmatprep.mubr.bf16.mxu0 %v7127_v48  ;;  %v7083_v22 = vmax.f32 %v6980_v34, 0.0 }
 0xb33   : > { %v6983_v44 = vpop.f32.mrf.mxu1  ;;  %7459 = vmatmul.mubr.bf16.gmra.mxu0 %v7126_v8 }
 0xb34   : > { %v6984_v33 = vadd.f32 %v6983_v44, %v15137_v37  ;;  %v7084_v55 = vmax.f32 %v6982_v7, 0.0 }
 0xb36   : > { %v7085_v52 = vmax.f32 %v6984_v33, 0.0  ;;  %v7128_v0 = vpack.c.bf16 %v7084_v55, %v7082_v61 }
 0xb38   : > { %v7129_v24 = vpack.c.bf16 %v7085_v52, %v7083_v22 }
 0xb3a   : > { %7468 = vmatprep.mubr.bf16.mxu0 %v7129_v24 }
 0xb3b   : > { %7469 = vmatmul.mubr.bf16.gmra.mxu0 %v7128_v0 }
 0xb7b   : > { %v6987_v23 = vpop.f32.mrf.mxu1 }
 0xb7c   : > { %v6988_v63 = vadd.f32 %v6987_v23, %v15140_v10 }
 0xb7d   : > { %v6989_v20 = vpop.f32.mrf.mxu1 }
 0xb7e   : > { %v6990_v15 = vadd.f32 %v6989_v20, %v15137_v37  ;;  %v7086_v44 = vmax.f32 %v6988_v63, 0.0 }
 0xb7f   : > { %v6991_v45 = vpop.f32.mrf.mxu1 }
 0xb80   : > { %v6992_v9 = vadd.f32 %v6991_v45, %v15140_v10  ;;  %v7087_v7 = vmax.f32 %v6990_v15, 0.0 }
 0xb81   : > { %v6993_v48 = vpop.f32.mrf.mxu1 }
 0xb82   : > { %v6994_v8 = vadd.f32 %v6993_v48, %v15137_v37  ;;  %v7088_v32 = vmax.f32 %v6992_v9, 0.0 }
 0xb83   : > { %v6997_v34 = vpop.f32.mrf.mxu1 }
 0xb84   : > { %v7089_v54 = vmax.f32 %v6994_v8, 0.0  ;;  %v7130_v22 = vpack.c.bf16 %v7088_v32, %v7086_v44  ;;  %v6998_v0 = vadd.f32 %v6997_v34, %v15140_v10 }
 0xb85   : > { %v6999_v33 = vpop.f32.mrf.mxu1 }
 0xb86   : > { %v7131_v55 = vpack.c.bf16 %v7089_v54, %v7087_v7  ;;  %v7000_v61 = vadd.f32 %v6999_v33, %v15137_v37  ;;  %v7090_v63 = vmax.f32 %v6998_v0, 0.0 }
 0xb87   : > { %v7001_v52 = vpop.f32.mrf.mxu1 }
 0xb88   : > { %v7002_v24 = vadd.f32 %v7001_v52, %v15140_v10  ;;  %7478 = vmatprep.mubr.bf16.mxu0 %v7131_v55  ;;  %v7091_v15 = vmax.f32 %v7000_v61, 0.0 }
 0xb89   : > { %v7003_v23 = vpop.f32.mrf.mxu1  ;;  %7479 = vmatmul.mubr.bf16.gmra.mxu0 %v7130_v22 }
 0xb8a   : > { %v7004_v20 = vadd.f32 %v7003_v23, %v15137_v37  ;;  %v7092_v45 = vmax.f32 %v7002_v24, 0.0 }
 0xb8b   : > { %v7007_v9 = vpop.f32.mrf.mxu1 }
 0xb8c   : > { %v7093_v48 = vmax.f32 %v7004_v20, 0.0  ;;  %v7132_v32 = vpack.c.bf16 %v7092_v45, %v7090_v63  ;;  %v7008_v34 = vadd.f32 %v7007_v9, %v15140_v10 }
 0xb8d   : > { %v7009_v8 = vpop.f32.mrf.mxu1 }
 0xb8e   : > { %v7133_v7 = vpack.c.bf16 %v7093_v48, %v7091_v15  ;;  %v7010_v44 = vadd.f32 %v7009_v8, %v15137_v37  ;;  %v7094_v0 = vmax.f32 %v7008_v34, 0.0 }
 0xb8f   : > { %v7011_v54 = vpop.f32.mrf.mxu1 }
 0xb90   : > { %v7012_v33 = vadd.f32 %v7011_v54, %v15140_v10  ;;  %7488 = vmatprep.mubr.bf16.mxu0 %v7133_v7  ;;  %v7095_v61 = vmax.f32 %v7010_v44, 0.0 }
 0xb91   : > { %v7013_v55 = vpop.f32.mrf.mxu1  ;;  %7489 = vmatmul.mubr.bf16.gmra.mxu0 %v7132_v32 }
 0xb92   : > { %v7014_v22 = vadd.f32 %v7013_v55, %v15137_v37  ;;  %v7096_v52 = vmax.f32 %v7012_v33, 0.0 }
 0xb93   : > { %v7017_v24 = vpop.f32.mrf.mxu1 }
 0xb94   : > { %v7097_v23 = vmax.f32 %v7014_v22, 0.0  ;;  %v7134_v45 = vpack.c.bf16 %v7096_v52, %v7094_v0  ;;  %v7018_v9 = vadd.f32 %v7017_v24, %v15140_v10 }
 0xb95   : > { %v7019_v20 = vpop.f32.mrf.mxu1 }
 0xb96   : > { %v7135_v15 = vpack.c.bf16 %v7097_v23, %v7095_v61  ;;  %v7020_v63 = vadd.f32 %v7019_v20, %v15137_v37  ;;  %v7098_v34 = vmax.f32 %v7018_v9, 0.0 }
 0xb97   : > { %v7021_v48 = vpop.f32.mrf.mxu1 }
 0xb98   : > { %v7022_v8 = vadd.f32 %v7021_v48, %v15140_v10  ;;  %7498 = vmatprep.mubr.bf16.mxu0 %v7135_v15  ;;  %v7099_v44 = vmax.f32 %v7020_v63, 0.0 }
 0xb99   : > { %v7023_v7 = vpop.f32.mrf.mxu1  ;;  %7499 = vmatmul.mubr.bf16.gmra.mxu0 %v7134_v45 }
 0xb9a   : > { %v7024_v32 = vadd.f32 %v7023_v7, %v15137_v37  ;;  %v7100_v54 = vmax.f32 %v7022_v8, 0.0 }
 0xb9b   : > { %v7027_v33 = vpop.f32.mrf.mxu1 }
 0xb9c   : > { %v7101_v55 = vmax.f32 %v7024_v32, 0.0  ;;  %v7136_v52 = vpack.c.bf16 %v7100_v54, %v7098_v34  ;;  %v7028_v24 = vadd.f32 %v7027_v33, %v15140_v10 }
 0xb9d   : > { %v7029_v22 = vpop.f32.mrf.mxu1 }
 0xb9e   : > { %v7137_v61 = vpack.c.bf16 %v7101_v55, %v7099_v44  ;;  %v7030_v0 = vadd.f32 %v7029_v22, %v15137_v37  ;;  %v7102_v9 = vmax.f32 %v7028_v24, 0.0  ;;  %v7174_v24 = vld [vmem:[%s16208_s18] sm:$0x3] }
 0xb9f   : > { %v7031_v23 = vpop.f32.mrf.mxu1 }
 0xba0   : > { %v7032_v20 = vadd.f32 %v7031_v23, %v15140_v10  ;;  %7508 = vmatprep.mubr.bf16.mxu0 %v7137_v61  ;;  %v7103_v63 = vmax.f32 %v7030_v0, 0.0 }
 0xba1   : > { %v7033_v15 = vpop.f32.mrf.mxu1  ;;  %7509 = vmatmul.mubr.bf16.gmra.mxu0 %v7136_v52 }
 0xba2   : > { %v7034_v45 = vadd.f32 %v7033_v15, %v15137_v37  ;;  %v7104_v48 = vmax.f32 %v7032_v20, 0.0 }
 0xba3   : > { %v7037_v8 = vpop.f32.mrf.mxu1 }
 0xba4   : > { %v7105_v7 = vmax.f32 %v7034_v45, 0.0  ;;  %v7138_v54 = vpack.c.bf16 %v7104_v48, %v7102_v9  ;;  %v7038_v33 = vadd.f32 %v7037_v8, %v15140_v10 }
 0xba5   : > { %v7039_v32 = vpop.f32.mrf.mxu1 }
 0xba6   : > { %v7139_v44 = vpack.c.bf16 %v7105_v7, %v7103_v63  ;;  %v7040_v34 = vadd.f32 %v7039_v32, %v15137_v37  ;;  %v7106_v15 = vmax.f32 %v7038_v33, 0.0  ;;  %v15210_v63 = vrot.slane %v7174_v24, %v16933_v28  ;;  %v16943_v28 = vld [vmem:[#allocation147_spill] sm:$0xff] }
 0xba7   : > { %v7041_v55 = vpop.f32.mrf.mxu1 }
 0xba8   : > { %v7042_v22 = vadd.f32 %v7041_v55, %v15140_v10  ;;  %7518 = vmatprep.mubr.bf16.mxu0 %v7139_v44  ;;  %v7107_v20 = vmax.f32 %v7040_v34, 0.0  ;;  %v15213_v10 = vrot.slane %v7174_v24, %v16932_v49  ;;  %v16934_v44 = vld [vmem:[#allocation150_spill] sm:$0xff]  ;;  %v16935_v55 = vld [vmem:[#allocation115_spill] sm:$0xff] }
 0xba9   : > { %v7043_v61 = vpop.f32.mrf.mxu1  ;;  %7519 = vmatmul.mubr.bf16.gmra.mxu0 %v7138_v54 }
 0xbaa   : > { %v7044_v52 = vadd.f32 %v7043_v61, %v15137_v37  ;;  %v7108_v23 = vmax.f32 %v7042_v22, 0.0 }
 0xbac   : > { %v7109_v0 = vmax.f32 %v7044_v52, 0.0  ;;  %v7140_v48 = vpack.c.bf16 %v7108_v23, %v7106_v15  ;;  %v16937_v15 = vld [vmem:[#allocation136_spill] sm:$0xff] }
 0xbae   : > { %v7141_v45 = vpack.c.bf16 %v7109_v0, %v7107_v20  ;;  %v16936_v20 = vld [vmem:[#allocation135_spill] sm:$0xff] }
 0xbb0   : > { %7528 = vmatprep.mubr.bf16.mxu0 %v7141_v45 }
 0xbb1   : > { %7529 = vmatmul.mubr.bf16.gmra.mxu0 %v7140_v48 }
 0xbb3   : > { %v7380_v8 = vpop.f32.mrf.mxu0 }
 0xbb4   : > { %v7381_v37 = vadd.f32 %v7380_v8, %v15210_v63 }
 0xbb5   : > { %v7382_v7 = vpop.f32.mrf.mxu0 }
 0xbb6   : > { %v7383_v9 = vadd.f32 %v7382_v7, %v15213_v10  ;;  %v15218_v54 = vadd.f32 %v7381_v37, %v16934_v44  ;;  %v16939_v44 = vld [vmem:[#allocation134_spill] sm:$0xff] }
 0xbb7   : > { %v7384_v32 = vpop.f32.mrf.mxu0 }
 0xbb8   : > { %v15221_v34 = vadd.f32 %v7383_v9, %v16935_v55  ;;  %v7385_v22 = vadd.f32 %v7384_v32, %v15210_v63  ;;  %v16938_v9 = vld [vmem:[#allocation140_spill] sm:$0xff] }
 0xbb9   : > { %v7386_v33 = vpop.f32.mrf.mxu0 }
 0xbba   : > { %v7387_v61 = vadd.f32 %v7386_v33, %v15213_v10  ;;  %v7603_v52 = vadd.f32 %v15221_v34, %v15218_v54  ;;  %v15228_v0 = vadd.f32 %v7385_v22, %v16936_v20  ;;  %v16940_v20 = vld [vmem:[#allocation121_spill] sm:$0xff] }
 0xbbb   : > { %v7390_v23 = vpop.f32.mrf.mxu0 }
 0xbbc   : > { %v15231_v24 = vadd.f32 %v7387_v61, %v16937_v15  ;;  %v7391_v45 = vadd.f32 %v7390_v23, %v15210_v63  ;;  %7604 = vadd.xlane.f32.xlu1 %v7603_v52 }
 0xbbd   : > { %v7392_v48 = vpop.f32.mrf.mxu0 }
 0xbbe   : > { %v7393_v8 = vadd.f32 %v7392_v48, %v15213_v10  ;;  %v7606_v37 = vadd.f32 %v15231_v24, %v15228_v0  ;;  %v15238_v32 = vadd.f32 %v7391_v45, %v16938_v9  ;;  %v16941_v48 = vld [vmem:[#allocation148_spill] sm:$0xff] }
 0xbbf   : > { %v7394_v7 = vpop.f32.mrf.mxu0 }
 0xbc0   : > { %v15241_v55 = vadd.f32 %v7393_v8, %v16939_v44  ;;  %v7395_v22 = vadd.f32 %v7394_v7, %v15210_v63  ;;  %7607 = vadd.xlane.f32.xlu0 %v7606_v37  ;;  %v16942_v44 = vld [vmem:[#allocation138_spill] sm:$0xff] }
 0xbc1   : > { %v7396_v33 = vpop.f32.mrf.mxu0 }
 0xbc2   : > { %v7397_v61 = vadd.f32 %v7396_v33, %v15213_v10  ;;  %v7609_v52 = vadd.f32 %v15241_v55, %v15238_v32  ;;  %v15248_v15 = vadd.f32 %v7395_v22, %v16940_v20 }
 0xbc3   : > { %v7400_v23 = vpop.f32.mrf.mxu0 }
 0xbc4   : > { %v15251_v49 = vadd.f32 %v7397_v61, %v16941_v48  ;;  %v7401_v45 = vadd.f32 %v7400_v23, %v15210_v63  ;;  %7610 = vadd.xlane.f32.xlu1 %v7609_v52  ;;  %v16944_v48 = vld [vmem:[#allocation133_spill] sm:$0xff] }
 0xbc5   : > { %v7402_v8 = vpop.f32.mrf.mxu0 }
 0xbc6   : > { %v7403_v7 = vadd.f32 %v7402_v8, %v15213_v10  ;;  %v7612_v37 = vadd.f32 %v15251_v49, %v15248_v15  ;;  %v15258_v33 = vadd.f32 %v7401_v45, %v16942_v44 }
 0xbc7   : > { %v7404_v9 = vpop.f32.mrf.mxu0 }
 0xbc8   : > { %v15261_v43 = vadd.f32 %v7403_v7, %v16943_v28  ;;  %v7405_v22 = vadd.f32 %v7404_v9, %v15210_v63  ;;  %7613 = vadd.xlane.f32.xlu0 %v7612_v37 }
 0xbc9   : > { %v7406_v61 = vpop.f32.mrf.mxu0 }
 0xbca   : > { %v7407_v23 = vadd.f32 %v7406_v61, %v15213_v10  ;;  %v7615_v52 = vadd.f32 %v15261_v43, %v15258_v33  ;;  %v15268_v8 = vadd.f32 %v7405_v22, %v16944_v48  ;;  %v16946_v48 = vld [vmem:[#allocation169_spill] sm:$0xff] }
 0xbcb   : > { %v7410_v20 = vpop.f32.mrf.mxu0 }
 0xbcc   : > { %v15271_v51 = vadd.f32 %v7407_v23, %v16945_v56  ;;  %v7411_v45 = vadd.f32 %v7410_v20, %v15210_v63  ;;  %7616 = vadd.xlane.f32.xlu1 %v7615_v52 }
 0xbcd   : > { %v7412_v28 = vpop.f32.mrf.mxu0 }
 0xbce   : > { %v7413_v7 = vadd.f32 %v7412_v28, %v15213_v10  ;;  %v7618_v37 = vadd.f32 %v15271_v51, %v15268_v8  ;;  %v15278_v44 = vadd.f32 %v7411_v45, %v14837_v30 }
 0xbcf   : > { %v7414_v9 = vpop.f32.mrf.mxu0 }
 0xbd0   : > { %v15281_v61 = vadd.f32 %v7413_v7, %v14818_v21  ;;  %v7415_v22 = vadd.f32 %v7414_v9, %v15210_v63  ;;  %7619 = vadd.xlane.f32.xlu0 %v7618_v37 }
 0xbd1   : > { %v7416_v56 = vpop.f32.mrf.mxu0 }
 0xbd2   : > { %v7417_v23 = vadd.f32 %v7416_v56, %v15213_v10  ;;  %v7621_v52 = vadd.f32 %v15281_v61, %v15278_v44  ;;  %v15288_v28 = vadd.f32 %v7415_v22, %v16946_v48 }
 0xbd3   : > { %v7420_v20 = vpop.f32.mrf.mxu0 }
 0xbd4   : > { %v15291_v36 = vadd.f32 %v7417_v23, %v16947_v60  ;;  %v7421_v30 = vadd.f32 %v7420_v20, %v15210_v63  ;;  %7622 = vadd.xlane.f32.xlu1 %v7621_v52 }
 0xbd5   : > { %v7422_v21 = vpop.f32.mrf.mxu0 }
 0xbd6   : > { %v7423_v45 = vadd.f32 %v7422_v21, %v15213_v10  ;;  %v7624_v7 = vadd.f32 %v15291_v36, %v15288_v28  ;;  %v15298_v9 = vadd.f32 %v7421_v30, %v14861_v19 }
 0xbd7   : > { %v7424_v37 = vpop.f32.mrf.mxu0 }
 0xbd8   : > { %v15301_v56 = vadd.f32 %v7423_v45, %v14854_v17  ;;  %v7425_v22 = vadd.f32 %v7424_v37, %v15210_v63  ;;  %7625 = vadd.xlane.f32.xlu0 %v7624_v7 }
 0xbd9   : > { %v7426_v60 = vpop.f32.mrf.mxu0 }
 0xbda   : > { %v7427_v23 = vadd.f32 %v7426_v60, %v15213_v10  ;;  %v7627_v52 = vadd.f32 %v15301_v56, %v15298_v9  ;;  %v15308_v48 = vadd.f32 %v7425_v22, %v14864_v14 }
 0xbdb   : > { %v7430_v20 = vpop.f32.mrf.mxu0 }
 0xbdc   : > { %v15311_v21 = vadd.f32 %v7427_v23, %v14858_v18  ;;  %v7431_v19 = vadd.f32 %v7430_v20, %v15210_v63  ;;  %7628 = vadd.xlane.f32.xlu1 %v7627_v52 }
 0xbdd   : > { %v7432_v17 = vpop.f32.mrf.mxu0 }
 0xbde   : > { %v7433_v30 = vadd.f32 %v7432_v17, %v15213_v10  ;;  %v7630_v45 = vadd.f32 %v15311_v21, %v15308_v48  ;;  %v15318_v37 = vadd.f32 %v7431_v19, %v14885_v26 }
 0xbdf   : > { %v7434_v7 = vpop.f32.mrf.mxu0 }
 0xbe0   : > { %v15321_v60 = vadd.f32 %v7433_v30, %v14878_v46  ;;  %v7435_v14 = vadd.f32 %v7434_v7, %v15210_v63  ;;  %7631 = vadd.xlane.f32.xlu0 %v7630_v45 }
 0xbe1   : > { %v7436_v18 = vpop.f32.mrf.mxu0 }
 0xbe2   : > { %v7437_v22 = vadd.f32 %v7436_v18, %v15213_v10  ;;  %v7633_v23 = vadd.f32 %v15321_v60, %v15318_v37  ;;  %v15328_v20 = vadd.f32 %v7435_v14, %v14888_v47 }
 0xbe3   : > { %v7440_v52 = vpop.f32.mrf.mxu0 }
 0xbe4   : > { %v15331_v17 = vadd.f32 %v7437_v22, %v14882_v25  ;;  %v7441_v26 = vadd.f32 %v7440_v52, %v15210_v63  ;;  %7634 = vadd.xlane.f32.xlu1 %v7633_v23 }
 0xbe5   : > { %v7442_v46 = vpop.f32.mrf.mxu0 }
 0xbe6   : > { %v7443_v19 = vadd.f32 %v7442_v46, %v15213_v10  ;;  %v7636_v30 = vadd.f32 %v15331_v17, %v15328_v20  ;;  %v15338_v7 = vadd.f32 %v7441_v26, %v14910_v16 }
 0xbe7   : > { %v7444_v45 = vpop.f32.mrf.mxu0 }
 0xbe8   : > { %v15341_v18 = vadd.f32 %v7443_v19, %v14904_v57  ;;  %v7445_v47 = vadd.f32 %v7444_v45, %v15210_v63  ;;  %7637 = vadd.xlane.f32.xlu0 %v7636_v30 }
 0xbe9   : > { %v7446_v25 = vpop.f32.mrf.mxu0 }
 0xbea   : > { %v7447_v14 = vadd.f32 %v7446_v25, %v15213_v10  ;;  %v7639_v22 = vadd.f32 %v15341_v18, %v15338_v7  ;;  %v15348_v52 = vadd.f32 %v7445_v47, %v14913_v4 }
 0xbeb   : > { %v7450_v23 = vpop.f32.mrf.mxu0 }
 0xbec   : > { %v15351_v46 = vadd.f32 %v7447_v14, %v14907_v29  ;;  %v7451_v16 = vadd.f32 %v7450_v23, %v15210_v63  ;;  %7640 = vadd.xlane.f32.xlu1 %v7639_v22 }
 0xbed   : > { %v7452_v57 = vpop.f32.mrf.mxu0 }
 0xbee   : > { %v7453_v26 = vadd.f32 %v7452_v57, %v15213_v10  ;;  %v7642_v19 = vadd.f32 %v15351_v46, %v15348_v52  ;;  %v15358_v45 = vadd.f32 %v7451_v16, %v14929_v6 }
 0xbef   : > { %v7454_v30 = vpop.f32.mrf.mxu0 }
 0xbf0   : > { %v15361_v25 = vadd.f32 %v7453_v26, %v14926_v40  ;;  %v7455_v4 = vadd.f32 %v7454_v30, %v15210_v63  ;;  %7643 = vadd.xlane.f32.xlu0 %v7642_v19 }
 0xbf1   : > { %v7456_v29 = vpop.f32.mrf.mxu0 }
 0xbf2   : > { %v7457_v47 = vadd.f32 %v7456_v29, %v15213_v10  ;;  %v7645_v14 = vadd.f32 %v15361_v25, %v15358_v45  ;;  %v15368_v23 = vadd.f32 %v7455_v4, %v14935_v3 }
 0xbf3   : > { %v7460_v22 = vpop.f32.mrf.mxu0 }
 0xbf4   : > { %v15371_v57 = vadd.f32 %v7457_v47, %v14932_v11  ;;  %v7461_v6 = vadd.f32 %v7460_v22, %v15210_v63  ;;  %7646 = vadd.xlane.f32.xlu1 %v7645_v14 }
 0xbf5   : > { %v7462_v40 = vpop.f32.mrf.mxu0 }
 0xbf6   : > { %v7463_v16 = vadd.f32 %v7462_v40, %v15213_v10  ;;  %v7648_v26 = vadd.f32 %v15371_v57, %v15368_v23  ;;  %v15378_v30 = vadd.f32 %v7461_v6, %v14953_v39 }
 0xbf7   : > { %v7464_v19 = vpop.f32.mrf.mxu0 }
 0xbf8   : > { %v15381_v29 = vadd.f32 %v7463_v16, %v14950_v35  ;;  %v7465_v3 = vadd.f32 %v7464_v19, %v15210_v63  ;;  %7649 = vadd.xlane.f32.xlu0 %v7648_v26 }
 0xbf9   : > { %v7466_v11 = vpop.f32.mrf.mxu0 }
 0xbfa   : > { %v7467_v4 = vadd.f32 %v7466_v11, %v15213_v10  ;;  %v7651_v47 = vadd.f32 %v15381_v29, %v15378_v30  ;;  %v15388_v22 = vadd.f32 %v7465_v3, %v14959_v2 }
 0xbfb   : > { %v7470_v14 = vpop.f32.mrf.mxu0 }
 0xbfc   : > { %v15391_v40 = vadd.f32 %v7467_v4, %v14956_v12  ;;  %v7471_v39 = vadd.f32 %v7470_v14, %v15210_v63  ;;  %7652 = vadd.xlane.f32.xlu1 %v7651_v47  ;;  %v16948_v14 = vld [vmem:[#allocation129_spill] sm:$0xff] }
 0xbfd   : > { %v7472_v35 = vpop.f32.mrf.mxu0 }
 0xbfe   : > { %v7473_v6 = vadd.f32 %v7472_v35, %v15213_v10  ;;  %v7654_v16 = vadd.f32 %v15391_v40, %v15388_v22  ;;  %v15398_v19 = vadd.f32 %v7471_v39, %v14980_v41  ;;  %v10334_v41 = vld [vmem:[#allocation13 + $0x78] sm:$0xff]  }
 0xbff   : > { %v7474_v26 = vpop.f32.mrf.mxu0  ;;  %9486 = vmatprep.subr.bf16.mxu1 %v10334_v41 }
 0xc00   : > { %v15401_v11 = vadd.f32 %v7473_v6, %v14974_v59  ;;  %v7475_v2 = vadd.f32 %v7474_v26, %v15210_v63  ;;  %7655 = vadd.xlane.f32.xlu0 %v7654_v16 }
 0xc01   : > { %v7476_v12 = vpop.f32.mrf.mxu0 }
 0xc02   : > { %v7477_v3 = vadd.f32 %v7476_v12, %v15213_v10  ;;  %v7657_v4 = vadd.f32 %v15401_v11, %v15398_v19  ;;  %v15408_v47 = vadd.f32 %v7475_v2, %v14983_v58 }
 0xc04   : > { %v15411_v35 = vadd.f32 %v7477_v3, %v16948_v14  ;;  %7658 = vadd.xlane.f32.xlu1 %v7657_v4 }
 0xc06   : > { %16949 = vst [vmem:[#allocation155_spill] sm:$0xff] %v15411_v35  ;;  %v7660_v59 = vadd.f32 %v15411_v35, %v15408_v47 }
 0xc08   : > { %7661 = vadd.xlane.f32.xlu0 %v7660_v59 }
 0xc45   : > { %v7605_v39 = vpop.xlane.xlu1 %7604 }
 0xc46   : > { %v7699_v6 = vmul.f32 0.00390625, %v7605_v39 }
 0xc48   : > { %v15416_v16 = vsub.f32 %v15218_v54, %v7699_v6  ;;  %v15419_v26 = vsub.f32 %v15221_v34, %v7699_v6 }
 0xc49   : > { %v7480_v58 = vpop.f32.mrf.mxu0  ;;  %v7608_v2 = vpop.xlane.xlu0 %7607 }
 0xc4a   : > { %16950 = vst [vmem:[#allocation188_spill] sm:$0xff] %v15416_v16  ;;  %16951 = vst [vmem:[#allocation185_spill] sm:$0xff] %v15419_v26  ;;  %v7795_v12 = vmul.f32 %v15416_v16, %v15416_v16  ;;  %v7796_v3 = vmul.f32 %v15419_v26, %v15419_v26  ;;  %v7481_v4 = vadd.f32 %v7480_v58, %v15210_v63  ;;  %v7700_v14 = vmul.f32 0.00390625, %v7608_v2 }
 0xc4b   : > { %v7482_v59 = vpop.f32.mrf.mxu0 }
 0xc4c   : > { %v15427_v41 = vsub.f32 %v15228_v0, %v7700_v14  ;;  %v15430_v54 = vsub.f32 %v15231_v24, %v7700_v14  ;;  %v7483_v34 = vadd.f32 %v7482_v59, %v15213_v10  ;;  %v15434_v39 = vadd.f32 %v7481_v4, %v15005_v27 }
 0xc4d   : > { %v7611_v6 = vpop.xlane.xlu1 %7610  ;;  %v7484_v16 = vpop.f32.mrf.mxu0  ;;  %v7859_v35 = vadd.f32 %v7796_v3, %v7795_v12 }
 0xc4e   : > { %16952 = vst [vmem:[#allocation178_spill] sm:$0xff] %v15427_v41  ;;  %16953 = vst [vmem:[#allocation176_spill] sm:$0xff] %v15430_v54  ;;  %v7797_v26 = vmul.f32 %v15427_v41, %v15427_v41  ;;  %v7798_v58 = vmul.f32 %v15430_v54, %v15430_v54  ;;  %v15441_v0 = vadd.f32 %v7483_v34, %v14998_v1  ;;  %v7701_v2 = vmul.f32 0.00390625, %v7611_v6  ;;  %v16957_v6 = vld [vmem:[#allocation127_spill] sm:$0xff] }
 0xc4f   : > { %v7485_v24 = vadd.f32 %v7484_v16, %v15210_v63  ;;  %7860 = vadd.xlane.f32.xlu1 %v7859_v35  ;;  %v7486_v14 = vpop.f32.mrf.mxu0  ;;  %v16956_v16 = vld [vmem:[#allocation162_spill] sm:$0xff] }
 0xc50   : > { %v15445_v27 = vsub.f32 %v15238_v32, %v7701_v2  ;;  %v15448_v4 = vsub.f32 %v15241_v55, %v7701_v2  ;;  %v7487_v12 = vadd.f32 %v7486_v14, %v15213_v10  ;;  %v7663_v3 = vadd.f32 %v15441_v0, %v15434_v39 }
 0xc51   : > { %v7490_v59 = vpop.f32.mrf.mxu0  ;;  %v7614_v54 = vpop.xlane.xlu0 %7613  ;;  %v7862_v1 = vadd.f32 %v7798_v58, %v7797_v26  ;;  %v15458_v32 = vadd.f32 %v7485_v24, %v16956_v16 }
 0xc52   : > { %16954 = vst [vmem:[#allocation181_spill] sm:$0xff] %v15445_v27  ;;  %16955 = vst [vmem:[#allocation179_spill] sm:$0xff] %v15448_v4  ;;  %v7799_v34 = vmul.f32 %v15445_v27, %v15445_v27  ;;  %v7800_v35 = vmul.f32 %v15448_v4, %v15448_v4  ;;  %v15461_v55 = vadd.f32 %v7487_v12, %v16957_v6  ;;  %v7702_v14 = vmul.f32 0.00390625, %v7614_v54 }
 0xc53   : > { %v7491_v2 = vadd.f32 %v7490_v59, %v15210_v63  ;;  %7664 = vadd.xlane.f32.xlu1 %v7663_v3  ;;  %7863 = vadd.xlane.f32.xlu0 %v7862_v1  ;;  %v7492_v41 = vpop.f32.mrf.mxu0 }
 0xc54   : > { %v7493_v26 = vadd.f32 %v7492_v41, %v15213_v10  ;;  %v7865_v58 = vadd.f32 %v7800_v35, %v7799_v34  ;;  %v7666_v27 = vadd.f32 %v15461_v55, %v15458_v32  ;;  %v15468_v4 = vsub.f32 %v15248_v15, %v7702_v14  ;;  %v10335_v34 = vld [vmem:[#allocation13 + $0x38] sm:$0xff]  }
 0xc55   : > { %v15471_v24 = vsub.f32 %v15251_v49, %v7702_v14  ;;  %v7617_v12 = vpop.xlane.xlu1 %7616  ;;  %v7494_v16 = vpop.f32.mrf.mxu0  ;;  %v15478_v41 = vadd.f32 %v7491_v2, %v15029_v42  ;;  %9487 = vmatpush3.bf16.msra.mxu1 %v10335_v34 }
 0xc56   : > { %v15474_v59 = vadd.f32 %v7493_v26, %v15022_v5  ;;  %v7703_v54 = vmul.f32 0.00390625, %v7617_v12  ;;  %v7495_v3 = vadd.f32 %v7494_v16, %v15210_v63  ;;  %v7801_v1 = vmul.f32 %v15468_v4, %v15468_v4  ;;  %v10336_v12 = vld [vmem:[#allocation13 + $0x70] sm:$0xff]  }
 0xc57   : > { %v7802_v15 = vmul.f32 %v15471_v24, %v15471_v24  ;;  %7866 = vadd.xlane.f32.xlu1 %v7865_v58  ;;  %7667 = vadd.xlane.f32.xlu0 %v7666_v27  ;;  %v7496_v49 = vpop.f32.mrf.mxu0 }
 0xc58   : > { %v15485_v35 = vsub.f32 %v15258_v33, %v7703_v54  ;;  %v15488_v5 = vsub.f32 %v15261_v43, %v7703_v54  ;;  %v7497_v6 = vadd.f32 %v7496_v49, %v15213_v10  ;;  %v7669_v14 = vadd.f32 %v15474_v59, %v15478_v41  ;;  %9488 = vmatprep.subr.bf16.mxu1 %v10336_v12 }
 0xc59   : > { %v7500_v42 = vpop.f32.mrf.mxu0  ;;  %v7620_v2 = vpop.xlane.xlu0 %7619  ;;  %v7868_v26 = vadd.f32 %v7802_v15, %v7801_v1  ;;  %v15498_v33 = vadd.f32 %v7495_v3, %v15032_v62  ;;  %v10337_v15 = vld [vmem:[#allocation13 + $0x30] sm:$0xff]  }
 0xc5a   : > { %16958 = vst [vmem:[#allocation184_spill] sm:$0xff] %v15485_v35  ;;  %v7803_v27 = vmul.f32 %v15485_v35, %v15485_v35  ;;  %v7804_v58 = vmul.f32 %v15488_v5, %v15488_v5  ;;  %v15501_v43 = vadd.f32 %v7497_v6, %v15026_v53  ;;  %v7501_v16 = vadd.f32 %v7500_v42, %v15210_v63 }
 0xc5b   : > { %v7704_v54 = vmul.f32 0.00390625, %v7620_v2  ;;  %7670 = vadd.xlane.f32.xlu1 %v7669_v14  ;;  %7869 = vadd.xlane.f32.xlu0 %v7868_v26  ;;  %v7502_v1 = vpop.f32.mrf.mxu0  ;;  %v10338_v26 = vld [vmem:[#allocation13 + $0x68] sm:$0xff]  }
 0xc5c   : > { %v7503_v49 = vadd.f32 %v7502_v1, %v15213_v10  ;;  %v7871_v34 = vadd.f32 %v7804_v58, %v7803_v27  ;;  %v7672_v35 = vadd.f32 %v15501_v43, %v15498_v33  ;;  %9489 = vmatpush3.bf16.msra.mxu1 %v10337_v15  ;;  %v15518_v27 = vadd.f32 %v7501_v16, %v15053_v50  ;;  %v10339_v50 = vld [vmem:[#allocation13 + $0x28] sm:$0xff]  }
 0xc5d   : > { %v15508_v62 = vsub.f32 %v15268_v8, %v7704_v54  ;;  %v15511_v53 = vsub.f32 %v15271_v51, %v7704_v54  ;;  %v7623_v3 = vpop.xlane.xlu1 %7622  ;;  %v7504_v6 = vpop.f32.mrf.mxu0  ;;  %9490 = vmatprep.subr.bf16.mxu1 %v10338_v26  ;;  %v10340_v26 = vld [vmem:[#allocation13 + $0x60] sm:$0xff]  }
 0xc5e   : > { %v15514_v42 = vadd.f32 %v7503_v49, %v15046_v13  ;;  %v7705_v2 = vmul.f32 0.00390625, %v7623_v3  ;;  %v7505_v14 = vadd.f32 %v7504_v6, %v15210_v63 }
 0xc5f   : > { %v7805_v8 = vmul.f32 %v15508_v62, %v15508_v62  ;;  %v7806_v51 = vmul.f32 %v15511_v53, %v15511_v53  ;;  %7872 = vadd.xlane.f32.xlu1 %v7871_v34  ;;  %7673 = vadd.xlane.f32.xlu0 %v7672_v35  ;;  %v7506_v58 = vpop.f32.mrf.mxu0 }
 0xc60   : > { %v15525_v12 = vsub.f32 %v15278_v44, %v7705_v2  ;;  %v15528_v13 = vsub.f32 %v15281_v61, %v7705_v2  ;;  %v7507_v54 = vadd.f32 %v7506_v58, %v15213_v10  ;;  %v7675_v15 = vadd.f32 %v15514_v42, %v15518_v27  ;;  %9491 = vmatpush3.bf16.msra.mxu1 %v10339_v50  ;;  %v16962_v50 = vld [vmem:[#allocation161_spill] sm:$0xff] }
 0xc61   : > { %v7510_v16 = vpop.f32.mrf.mxu0  ;;  %v7626_v1 = vpop.xlane.xlu0 %7625  ;;  %v7874_v49 = vadd.f32 %v7806_v51, %v7805_v8  ;;  %v15538_v34 = vadd.f32 %v7505_v14, %v15056_v31  ;;  %9492 = vmatprep.subr.bf16.mxu1 %v10340_v26 }
 0xc62   : > { %16959 = vst [vmem:[#allocation182_spill] sm:$0xff] %v15525_v12  ;;  %v7807_v35 = vmul.f32 %v15525_v12, %v15525_v12  ;;  %v7808_v44 = vmul.f32 %v15528_v13, %v15528_v13  ;;  %v15541_v61 = vadd.f32 %v7507_v54, %v15050_v38  ;;  %v7511_v3 = vadd.f32 %v7510_v16, %v15210_v63  ;;  %v10341_v12 = vld [vmem:[#allocation13 + $0x20] sm:$0xff]  }
 0xc63   : > { %v7706_v6 = vmul.f32 0.00390625, %v7626_v1  ;;  %7676 = vadd.xlane.f32.xlu1 %v7675_v15  ;;  %7875 = vadd.xlane.f32.xlu0 %v7874_v49  ;;  %v7512_v2 = vpop.f32.mrf.mxu0  ;;  %v16963_v49 = vld [vmem:[#allocation144_spill] sm:$0xff] }
 0xc64   : > { %v7513_v8 = vadd.f32 %v7512_v2, %v15213_v10  ;;  %v7877_v51 = vadd.f32 %v7808_v44, %v7807_v35  ;;  %v7678_v58 = vadd.f32 %v15541_v61, %v15538_v34  ;;  %9493 = vmatpush3.bf16.msra.mxu1 %v10341_v12  ;;  %v15558_v35 = vadd.f32 %v7511_v3, %v16963_v49  ;;  %v10343_v3 = vld [vmem:[#allocation13 + $0x18] sm:$0xff]  }
 0xc65   : > { %v15548_v31 = vsub.f32 %v15288_v28, %v7706_v6  ;;  %v15551_v38 = vsub.f32 %v15291_v36, %v7706_v6  ;;  %v7629_v14 = vpop.xlane.xlu1 %7628  ;;  %v7514_v54 = vpop.f32.mrf.mxu0  ;;  %v10342_v6 = vld [vmem:[#allocation13 + $0x58] sm:$0xff]  }
 0xc66   : > { %v15554_v16 = vadd.f32 %v7513_v8, %v16962_v50  ;;  %v7707_v1 = vmul.f32 0.00390625, %v7629_v14  ;;  %v7515_v15 = vadd.f32 %v7514_v54, %v15210_v63  ;;  %9494 = vmatprep.subr.bf16.mxu1 %v10342_v6 }
 0xc67   : > { %16960 = vst [vmem:[#allocation186_spill] sm:$0xff] %v15548_v31  ;;  %16961 = vst [vmem:[#allocation187_spill] sm:$0xff] %v15551_v38  ;;  %v7809_v28 = vmul.f32 %v15548_v31, %v15548_v31  ;;  %v7810_v36 = vmul.f32 %v15551_v38, %v15551_v38  ;;  %7878 = vadd.xlane.f32.xlu1 %v7877_v51  ;;  %7679 = vadd.xlane.f32.xlu0 %v7678_v58  ;;  %v7516_v44 = vpop.f32.mrf.mxu0  ;;  %v16966_v58 = vld [vmem:[#allocation141_spill] sm:$0xff] }
 0xc68   : > { %v15565_v2 = vsub.f32 %v15298_v9, %v7707_v1  ;;  %v15568_v26 = vsub.f32 %v15301_v56, %v7707_v1  ;;  %v7517_v12 = vadd.f32 %v7516_v44, %v15213_v10  ;;  %v7681_v54 = vadd.f32 %v15554_v16, %v15558_v35  ;;  %v16967_v56 = vld [vmem:[#allocation142_spill] sm:$0xff]  ;;  %9495 = vmatpush3.bf16.msra.mxu1 %v10343_v3  ;;  %v10345_v38 = vld [vmem:[#allocation13 + $0x10] sm:$0xff]  }
 0xc69   : > { %v7520_v8 = vpop.f32.mrf.mxu0  ;;  %v7632_v14 = vpop.xlane.xlu0 %7631  ;;  %v7880_v50 = vadd.f32 %v7810_v36, %v7809_v28  ;;  %v15578_v49 = vadd.f32 %v7515_v15, %v16966_v58  ;;  %v10344_v36 = vld [vmem:[#allocation13 + $0x50] sm:$0xff]  }
 0xc6a   : > { %16964 = vst [vmem:[#allocation168_spill] sm:$0xff] %v15565_v2  ;;  %16965 = vst [vmem:[#allocation167_spill] sm:$0xff] %v15568_v26  ;;  %v7811_v51 = vmul.f32 %v15565_v2, %v15565_v2  ;;  %v7812_v9 = vmul.f32 %v15568_v26, %v15568_v26  ;;  %v15581_v1 = vadd.f32 %v7517_v12, %v16967_v56  ;;  %v7708_v31 = vmul.f32 0.00390625, %v7632_v14  ;;  %v16970_v14 = vld [vmem:[#allocation160_spill] sm:$0xff] }
 0xc6b   : > { %v7521_v44 = vadd.f32 %v7520_v8, %v15210_v63  ;;  %7682 = vadd.xlane.f32.xlu1 %v7681_v54  ;;  %7881 = vadd.xlane.f32.xlu0 %v7880_v50  ;;  %v7522_v28 = vpop.f32.mrf.mxu0  ;;  %v10346_v56 = vld [vmem:[#allocation13 + $0x48] sm:$0xff]  }
 0xc6c   : > { %v7523_v6 = vadd.f32 %v7522_v28, %v15213_v10  ;;  %v7883_v2 = vadd.f32 %v7812_v9, %v7811_v51  ;;  %v7684_v26 = vadd.f32 %v15581_v1, %v15578_v49  ;;  %v15588_v15 = vsub.f32 %v15308_v48, %v7708_v31  ;;  %9496 = vmatprep.subr.bf16.mxu1 %v10344_v36  ;;  %v16971_v51 = vld [vmem:[#allocation143_spill] sm:$0xff] }
 0xc6d   : > { %v15591_v12 = vsub.f32 %v15311_v21, %v7708_v31  ;;  %v7635_v3 = vpop.xlane.xlu1 %7634  ;;  %v7524_v8 = vpop.f32.mrf.mxu0  ;;  %9497 = vmatpush3.bf16.msra.mxu1 %v10345_v38  ;;  %v15598_v9 = vadd.f32 %v7521_v44, %v16971_v51  ;;  %v10347_v44 = vld [vmem:[#allocation13 + $0x8] sm:$0xff]  }
 0xc6e   : > { %16968 = vst [vmem:[#allocation166_spill] sm:$0xff] %v15588_v15  ;;  %v15594_v54 = vadd.f32 %v7523_v6, %v16970_v14  ;;  %v7709_v50 = vmul.f32 0.00390625, %v7635_v3  ;;  %v7525_v58 = vadd.f32 %v7524_v8, %v15210_v63  ;;  %v7813_v48 = vmul.f32 %v15588_v15, %v15588_v15  ;;  %9498 = vmatprep.subr.bf16.mxu1 %v10346_v56 }
 0xc6f   : > { %16969 = vst [vmem:[#allocation165_spill] sm:$0xff] %v15591_v12  ;;  %v7814_v21 = vmul.f32 %v15591_v12, %v15591_v12  ;;  %7884 = vadd.xlane.f32.xlu1 %v7883_v2  ;;  %7685 = vadd.xlane.f32.xlu0 %v7684_v26  ;;  %v7526_v31 = vpop.f32.mrf.mxu0  ;;  %v16974_v26 = vld [vmem:[#allocation158_spill] sm:$0xff]  ;;  %v10349_v12 = vld [vmem:[#allocation13] sm:$0xff]  }
 0xc70   : > { %v15605_v28 = vsub.f32 %v15318_v37, %v7709_v50  ;;  %v15608_v36 = vsub.f32 %v15321_v60, %v7709_v50  ;;  %v7527_v38 = vadd.f32 %v7526_v31, %v15213_v10  ;;  %v7687_v8 = vadd.f32 %v15594_v54, %v15598_v9  ;;  %v16975_v60 = vld [vmem:[#allocation159_spill] sm:$0xff] }
 0xc71   : > { %v7530_v6 = vpop.f32.mrf.mxu0  ;;  %v7638_v3 = vpop.xlane.xlu0 %7637  ;;  %v7886_v14 = vadd.f32 %v7814_v21, %v7813_v48  ;;  %v15618_v51 = vadd.f32 %v7525_v58, %v16974_v26  ;;  %9499 = vmatpush3.bf16.msra.mxu1 %v10347_v44  ;;  %v10348_v21 = vld [vmem:[#allocation13 + $0x40] sm:$0xff]  }
 0xc72   : > { %16972 = vst [vmem:[#allocation164_spill] sm:$0xff] %v15605_v28  ;;  %16973 = vst [vmem:[#allocation163_spill] sm:$0xff] %v15608_v36  ;;  %v7815_v2 = vmul.f32 %v15605_v28, %v15605_v28  ;;  %v7816_v37 = vmul.f32 %v15608_v36, %v15608_v36  ;;  %v15621_v50 = vadd.f32 %v7527_v38, %v16975_v60  ;;  %v7710_v15 = vmul.f32 0.00390625, %v7638_v3  ;;  %v16976_v3 = vld [vmem:[#allocation146_spill] sm:$0xff] }
 0xc73   : > { %v7531_v31 = vadd.f32 %v7530_v6, %v15210_v63  ;;  %7688 = vadd.xlane.f32.xlu1 %v7687_v8  ;;  %7887 = vadd.xlane.f32.xlu0 %v7886_v14  ;;  %v7532_v48 = vpop.f32.mrf.mxu0 }
 0xc74   : > { %v7533_v56 = vadd.f32 %v7532_v48, %v15213_v10  ;;  %v7889_v28 = vadd.f32 %v7816_v37, %v7815_v2  ;;  %v7690_v36 = vadd.f32 %v15621_v50, %v15618_v51  ;;  %v15628_v58 = vsub.f32 %v15328_v20, %v7710_v15  ;;  %9500 = vmatprep.subr.bf16.mxu1 %v10348_v21  ;;  %v16977_v2 = vld [vmem:[#allocation145_spill] sm:$0xff] }
 0xc75   : > { %v15631_v38 = vsub.f32 %v15331_v17, %v7710_v15  ;;  %v7641_v44 = vpop.xlane.xlu1 %7640  ;;  %v7534_v6 = vpop.f32.mrf.mxu0  ;;  %9501 = vmatpush3.bf16.msra.mxu1 %v10349_v12  ;;  %v15638_v37 = vadd.f32 %v7531_v31, %v16977_v2  ;;  %v16978_v12 = vld [vmem:[#allocation156_spill] sm:$0xff] }
 0xc76   : > { %v15634_v8 = vadd.f32 %v7533_v56, %v16976_v3  ;;  %v7711_v14 = vmul.f32 0.00390625, %v7641_v44  ;;  %v7535_v26 = vadd.f32 %v7534_v6, %v15210_v63  ;;  %v7817_v20 = vmul.f32 %v15628_v58, %v15628_v58 }
 0xc77   : > { %v7818_v17 = vmul.f32 %v15631_v38, %v15631_v38  ;;  %7890 = vadd.xlane.f32.xlu1 %v7889_v28  ;;  %7691 = vadd.xlane.f32.xlu0 %v7690_v36  ;;  %v7536_v15 = vpop.f32.mrf.mxu0  ;;  %v16979_v36 = vld [vmem:[#allocation157_spill] sm:$0xff] }
 0xc78   : > { %v15645_v60 = vsub.f32 %v15338_v7, %v7711_v14  ;;  %v15648_v48 = vsub.f32 %v15341_v18, %v7711_v14  ;;  %v7537_v63 = vadd.f32 %v7536_v15, %v15213_v10  ;;  %v15652_v31 = vadd.f32 %v7535_v26, %v16978_v12 }
 0xc79   : > { %v7644_v21 = vpop.xlane.xlu0 %7643  ;;  %v7693_v56 = vadd.f32 %v15634_v8, %v15638_v37  ;;  %v7892_v44 = vadd.f32 %v7818_v17, %v7817_v20 }
 0xc7a   : > { %v7819_v28 = vmul.f32 %v15645_v60, %v15645_v60  ;;  %v7820_v7 = vmul.f32 %v15648_v48, %v15648_v48  ;;  %v15661_v6 = vadd.f32 %v7537_v63, %v16979_v36  ;;  %v7712_v18 = vmul.f32 0.00390625, %v7644_v21 }
 0xc7b   : > { %7694 = vadd.xlane.f32.xlu1 %v7693_v56  ;;  %7893 = vadd.xlane.f32.xlu0 %v7892_v44 }
 0xc7c   : > { %v15664_v10 = vsub.f32 %v15348_v52, %v7712_v18  ;;  %v15667_v3 = vsub.f32 %v15351_v46, %v7712_v18  ;;  %v7895_v14 = vadd.f32 %v7820_v7, %v7819_v28  ;;  %v7696_v26 = vadd.f32 %v15661_v6, %v15652_v31 }
 0xc7d   : > { %v7647_v2 = vpop.xlane.xlu1 %7646 }
 0xc7e   : > { %v7821_v20 = vmul.f32 %v15664_v10, %v15664_v10  ;;  %v7822_v17 = vmul.f32 %v15667_v3, %v15667_v3  ;;  %v7713_v15 = vmul.f32 0.00390625, %v7647_v2 }
 0xc7f   : > { %7896 = vadd.xlane.f32.xlu1 %v7895_v14  ;;  %7697 = vadd.xlane.f32.xlu0 %v7696_v26 }
 0xc80   : > { %v15676_v52 = vsub.f32 %v15358_v45, %v7713_v15  ;;  %v15679_v46 = vsub.f32 %v15361_v25, %v7713_v15  ;;  %v7898_v63 = vadd.f32 %v7822_v17, %v7821_v20 }
 0xc81   : > { %v7650_v12 = vpop.xlane.xlu0 %7649 }
 0xc82   : > { %v7823_v21 = vmul.f32 %v15676_v52, %v15676_v52  ;;  %v7824_v56 = vmul.f32 %v15679_v46, %v15679_v46  ;;  %v7714_v44 = vmul.f32 0.00390625, %v7650_v12 }
 0xc83   : > { %7899 = vadd.xlane.f32.xlu0 %v7898_v63 }
 0xc84   : > { %v15686_v28 = vsub.f32 %v15368_v23, %v7714_v44  ;;  %v15689_v7 = vsub.f32 %v15371_v57, %v7714_v44  ;;  %v7901_v45 = vadd.f32 %v7824_v56, %v7823_v21 }
 0xc85   : > { %v7653_v36 = vpop.xlane.xlu1 %7652 }
 0xc86   : > { %v7825_v25 = vmul.f32 %v15686_v28, %v15686_v28  ;;  %v7826_v18 = vmul.f32 %v15689_v7, %v15689_v7  ;;  %v7715_v14 = vmul.f32 0.00390625, %v7653_v36  ;;  %7902 = vadd.xlane.f32.xlu1 %v7901_v45 }
 0xc88   : > { %v15696_v26 = vsub.f32 %v15378_v30, %v7715_v14  ;;  %v15699_v2 = vsub.f32 %v15381_v29, %v7715_v14  ;;  %v7904_v23 = vadd.f32 %v7826_v18, %v7825_v25 }
 0xc89   : > { %v7656_v20 = vpop.xlane.xlu0 %7655 }
 0xc8a   : > { %v7827_v57 = vmul.f32 %v15696_v26, %v15696_v26  ;;  %v7828_v17 = vmul.f32 %v15699_v2, %v15699_v2  ;;  %v7716_v15 = vmul.f32 0.00390625, %v7656_v20  ;;  %7905 = vadd.xlane.f32.xlu0 %v7904_v23  ;;  %v16981_v20 = vld [vmem:[#allocation155_spill] sm:$0xff] }
 0xc8c   : > { %v15706_v63 = vsub.f32 %v15388_v22, %v7716_v15  ;;  %v15709_v12 = vsub.f32 %v15391_v40, %v7716_v15  ;;  %v7907_v30 = vadd.f32 %v7828_v17, %v7827_v57 }
 0xc8d   : > { %v7659_v21 = vpop.xlane.xlu1 %7658 }
 0xc8e   : > { %v7829_v29 = vmul.f32 %v15706_v63, %v15706_v63  ;;  %v7830_v56 = vmul.f32 %v15709_v12, %v15709_v12  ;;  %v7717_v44 = vmul.f32 0.00390625, %v7659_v21  ;;  %7908 = vadd.xlane.f32.xlu1 %v7907_v30 }
 0xc90   : > { %v15716_v45 = vsub.f32 %v15398_v19, %v7717_v44  ;;  %v15719_v36 = vsub.f32 %v15401_v11, %v7717_v44  ;;  %v7910_v22 = vadd.f32 %v7830_v56, %v7829_v29 }
 0xc91   : > { %v7662_v25 = vpop.xlane.xlu0 %7661 }
 0xc92   : > { %v7831_v40 = vmul.f32 %v15716_v45, %v15716_v45  ;;  %v7832_v18 = vmul.f32 %v15719_v36, %v15719_v36  ;;  %v7718_v14 = vmul.f32 0.00390625, %v7662_v25  ;;  %7911 = vadd.xlane.f32.xlu0 %v7910_v22 }
 0xc94   : > { %v15726_v23 = vsub.f32 %v15408_v47, %v7718_v14  ;;  %v15729_v57 = vsub.f32 %v16981_v20, %v7718_v14  ;;  %v7913_v19 = vadd.f32 %v7832_v18, %v7831_v40 }
 0xc96   : > { %16980 = vst [vmem:[#allocation183_spill] sm:$0xff] %v15726_v23  ;;  %16982 = vst [vmem:[#allocation180_spill] sm:$0xff] %v15729_v57  ;;  %v7833_v11 = vmul.f32 %v15726_v23, %v15726_v23  ;;  %v7834_v17 = vmul.f32 %v15729_v57, %v15729_v57  ;;  %7914 = vadd.xlane.f32.xlu1 %v7913_v19 }
 0xc98   : > { %v7916_v15 = vadd.f32 %v7834_v17, %v7833_v11 }
 0xc9a   : > { %7917 = vadd.xlane.f32.xlu0 %v7916_v15 }
 0xcd8   : > { %v7861_v30 = vpop.xlane.xlu1 %7860 }
 0xcd9   : > { %v7955_v21 = vmul.f32 0.00390625, %v7861_v30 }
 0xcdb   : > { %v7987_v29 = vadd.f32 1e-05, %v7955_v21 }
 0xcdc   : > { %v7665_v56 = vpop.xlane.xlu1 %7664  ;;  %v7864_v44 = vpop.xlane.xlu0 %7863 }
 0xcdd   : > { %10670 = vrsqrt.f32 %v7987_v29  ;;  %v7719_v47 = vmul.f32 0.00390625, %v7665_v56  ;;  %v7956_v22 = vmul.f32 0.00390625, %v7864_v44 }
 0xcdf   : > { %v15736_v25 = vsub.f32 %v15434_v39, %v7719_v47  ;;  %v15739_v40 = vsub.f32 %v15441_v0, %v7719_v47  ;;  %v7988_v18 = vadd.f32 1e-05, %v7956_v22 }
 0xce0   : > { %v7867_v14 = vpop.xlane.xlu1 %7866  ;;  %v7668_v20 = vpop.xlane.xlu0 %7667 }
 0xce1   : > { %16983 = vst [vmem:[#allocation177_spill] sm:$0xff] %v15736_v25  ;;  %16984 = vst [vmem:[#allocation175_spill] sm:$0xff] %v15739_v40  ;;  %v7835_v19 = vmul.f32 %v15736_v25, %v15736_v25  ;;  %v7836_v11 = vmul.f32 %v15739_v40, %v15739_v40  ;;  %10672 = vrsqrt.f32 %v7988_v18  ;;  %v7957_v17 = vmul.f32 0.00390625, %v7867_v14 }
 0xce2   : > { %v7720_v15 = vmul.f32 0.00390625, %v7668_v20 }
 0xce3   : > { %v7989_v30 = vadd.f32 1e-05, %v7957_v17  ;;  %v7919_v21 = vadd.f32 %v7836_v11, %v7835_v19 }
 0xce4   : > { %v15746_v39 = vsub.f32 %v15458_v32, %v7720_v15  ;;  %v15749_v0 = vsub.f32 %v15461_v55, %v7720_v15  ;;  %v7671_v29 = vpop.xlane.xlu1 %7670  ;;  %v7870_v56 = vpop.xlane.xlu0 %7869  ;;  %v8115_v32 = vld [vmem:[%s16209_s19] sm:$0x3] }
 0xce5   : > { %10674 = vrsqrt.f32 %v7989_v30  ;;  %v7721_v44 = vmul.f32 0.00390625, %v7671_v29  ;;  %v7958_v47 = vmul.f32 0.00390625, %v7870_v56  ;;  %7920 = vadd.xlane.f32.xlu1 %v7919_v21  ;;  %v16989_v56 = vld [vmem:[#allocation91_spill] sm:$0xff] }
 0xce6   : > { %16985 = vst [vmem:[#allocation172_spill] sm:$0xff] %v15746_v39  ;;  %16986 = vst [vmem:[#allocation171_spill] sm:$0xff] %v15749_v0  ;;  %v7837_v22 = vmul.f32 %v15746_v39, %v15746_v39  ;;  %v7838_v18 = vmul.f32 %v15749_v0, %v15749_v0 }
 0xce7   : > { %v15759_v14 = vsub.f32 %v15478_v41, %v7721_v44  ;;  %v15762_v55 = vsub.f32 %v15474_v59, %v7721_v44  ;;  %v7990_v20 = vadd.f32 1e-05, %v7958_v47  ;;  %v8191_v41 = vld [vmem:[%s16210_s20] sm:$0x3]  ;;  %v15772_v59 = vrot.slane %v8115_v32, %v16989_v56  ;;  %v16990_v47 = vld [vmem:[#allocation92_spill] sm:$0xff] }
 0xce8   : > { %v7873_v19 = vpop.xlane.xlu1 %7872  ;;  %v7674_v11 = vpop.xlane.xlu0 %7673  ;;  %v7922_v17 = vadd.f32 %v7838_v18, %v7837_v22  ;;  %v15775_v22 = vrot.slane %v8115_v32, %v16990_v47  ;;  %v16991_v18 = vld [vmem:[#allocation188_spill] sm:$0xff] }
 0xce9   : > { %16987 = vst [vmem:[#allocation104_spill] sm:$0xff] %v15759_v14  ;;  %16988 = vst [vmem:[#allocation97_spill] sm:$0xff] %v15762_v55  ;;  %v7839_v15 = vmul.f32 %v15759_v14, %v15759_v14  ;;  %v7840_v30 = vmul.f32 %v15762_v55, %v15762_v55  ;;  %10676 = vrsqrt.f32 %v7990_v20  ;;  %v7959_v21 = vmul.f32 0.00390625, %v7873_v19  ;;  %v16992_v55 = vld [vmem:[#allocation185_spill] sm:$0xff] }
 0xcea   : > { %v10671_v29 = vpop.eup %10670  ;;  %v7722_v44 = vmul.f32 0.00390625, %v7674_v11  ;;  %7923 = vadd.xlane.f32.xlu0 %v7922_v17  ;;  %v15786_v11 = vrot.slane %v8191_v41, %v16990_v47 }
 0xceb   : > { %v8051_v14 = vmul.f32 %v10671_v29, %v16991_v18  ;;  %v7991_v39 = vadd.f32 1e-05, %v7959_v21  ;;  %v7925_v0 = vadd.f32 %v7840_v30, %v7839_v15  ;;  %v8052_v20 = vmul.f32 %v10671_v29, %v16992_v55  ;;  %v16995_v29 = vld [vmem:[#allocation178_spill] sm:$0xff] }
 0xcec   : > { %v15780_v19 = vsub.f32 %v15498_v33, %v7722_v44  ;;  %v15783_v25 = vsub.f32 %v15501_v43, %v7722_v44  ;;  %v7677_v40 = vpop.xlane.xlu1 %7676  ;;  %v7876_v23 = vpop.xlane.xlu0 %7875  ;;  %v15789_v21 = vrot.slane %v8191_v41, %v16989_v56  ;;  %v16997_v56 = vld [vmem:[#allocation176_spill] sm:$0xff] }
 0xced   : > { %10678 = vrsqrt.f32 %v7991_v39  ;;  %v7723_v32 = vmul.f32 0.00390625, %v7677_v40  ;;  %v7960_v17 = vmul.f32 0.00390625, %v7876_v23  ;;  %7926 = vadd.xlane.f32.xlu1 %v7925_v0  ;;  %v8127_v55 = vmul.f32 %v15772_v59, %v8051_v14 }
 0xcee   : > { %16993 = vst [vmem:[#allocation120_spill] sm:$0xff] %v15780_v19  ;;  %16994 = vst [vmem:[#allocation173_spill] sm:$0xff] %v15783_v25  ;;  %v10673_v15 = vpop.eup %10672  ;;  %v7841_v33 = vmul.f32 %v15780_v19, %v15780_v19  ;;  %v7842_v43 = vmul.f32 %v15783_v25, %v15783_v25  ;;  %v8128_v30 = vmul.f32 %v15775_v22, %v8052_v20 }
 0xcef   : > { %v8053_v44 = vmul.f32 %v10673_v15, %v16995_v29  ;;  %v15799_v40 = vsub.f32 %v15518_v27, %v7723_v32  ;;  %v15802_v23 = vsub.f32 %v15514_v42, %v7723_v32  ;;  %v7992_v39 = vadd.f32 1e-05, %v7960_v17 }
 0xcf0   : > { %v7879_v0 = vpop.xlane.xlu1 %7878  ;;  %v7680_v41 = vpop.xlane.xlu0 %7679  ;;  %v7928_v14 = vadd.f32 %v7842_v43, %v7841_v33  ;;  %v8054_v47 = vmul.f32 %v10673_v15, %v16997_v56  ;;  %v8204_v18 = vadd.f32 %v15786_v11, %v8128_v30  ;;  %v8203_v33 = vadd.f32 %v15789_v21, %v8127_v55  ;;  %v16998_v30 = vld [vmem:[#allocation179_spill] sm:$0xff]  ;;  %v16999_v56 = vld [vmem:[#allocation181_spill] sm:$0xff] }
 0xcf1   : > { %16996 = vst [vmem:[#allocation95_spill] sm:$0xff] %v15799_v40  ;;  %v8129_v19 = vmul.f32 %v15772_v59, %v8053_v44  ;;  %v7843_v20 = vmul.f32 %v15799_v40, %v15799_v40  ;;  %v7844_v27 = vmul.f32 %v15802_v23, %v15802_v23  ;;  %10680 = vrsqrt.f32 %v7992_v39 }
 0xcf2   : > { %v10675_v29 = vpop.eup %10674  ;;  %v7961_v42 = vmul.f32 0.00390625, %v7879_v0  ;;  %v7724_v32 = vmul.f32 0.00390625, %v7680_v41  ;;  %7929 = vadd.xlane.f32.xlu0 %v7928_v14  ;;  %v8130_v17 = vmul.f32 %v15775_v22, %v8054_v47 }
 0xcf3   : > { %v7931_v15 = vadd.f32 %v7844_v27, %v7843_v20  ;;  %v8205_v43 = vadd.f32 %v15789_v21, %v8129_v19  ;;  %v8056_v44 = vmul.f32 %v10675_v29, %v16998_v30  ;;  %v8055_v25 = vmul.f32 %v10675_v29, %v16999_v56 }
 0xcf4   : > { %v7993_v40 = vadd.f32 1e-05, %v7961_v42  ;;  %v15817_v57 = vsub.f32 %v15538_v34, %v7724_v32  ;;  %v15820_v39 = vsub.f32 %v15541_v61, %v7724_v32  ;;  %v7683_v0 = vpop.xlane.xlu1 %7682  ;;  %v7882_v41 = vpop.xlane.xlu0 %7881  ;;  %v8206_v14 = vadd.f32 %v15786_v11, %v8130_v17 }
 0xcf5   : > { %v7725_v47 = vmul.f32 0.00390625, %v7683_v0  ;;  %v7962_v55 = vmul.f32 0.00390625, %v7882_v41  ;;  %7932 = vadd.xlane.f32.xlu1 %v7931_v15  ;;  %v8267_v20 = vpack.c.bf16 %v8205_v43, %v8203_v33  ;;  %v8132_v19 = vmul.f32 %v15775_v22, %v8056_v44 }
 0xcf6   : > { %v10677_v27 = vpop.eup %10676  ;;  %10682 = vrsqrt.f32 %v7993_v40  ;;  %v7845_v29 = vmul.f32 %v15817_v57, %v15817_v57  ;;  %v7846_v34 = vmul.f32 %v15820_v39, %v15820_v39  ;;  %v8268_v61 = vpack.c.bf16 %v8206_v14, %v8204_v18 }
 0xcf7   : > { %v15829_v42 = vsub.f32 %v15558_v35, %v7725_v47  ;;  %v15832_v32 = vsub.f32 %v15554_v16, %v7725_v47  ;;  %v7994_v17 = vadd.f32 1e-05, %v7962_v55  ;;  %v8058_v33 = vmul.f32 %v10677_v27, %v15471_v24 }
 0xcf8   : > { %8466 = vmatprep.mubr.bf16.mxu1 %v8268_v61  ;;  %v7885_v15 = vpop.xlane.xlu1 %7884  ;;  %v7686_v43 = vpop.xlane.xlu0 %7685  ;;  %v7934_v40 = vadd.f32 %v7846_v34, %v7845_v29  ;;  %v8208_v30 = vadd.f32 %v15786_v11, %v8132_v19  ;;  %v8057_v44 = vmul.f32 %v10677_v27, %v15468_v4  ;;  %v8131_v56 = vmul.f32 %v15772_v59, %v8055_v25  ;;  %v17000_v19 = vld [vmem:[#allocation184_spill] sm:$0xff] }
 0xcf9   : > { %v7847_v35 = vmul.f32 %v15829_v42, %v15829_v42  ;;  %v7848_v16 = vmul.f32 %v15832_v32, %v15832_v32  ;;  %10684 = vrsqrt.f32 %v7994_v17  ;;  %v7963_v18 = vmul.f32 0.00390625, %v7885_v15  ;;  %8467 = vmatmul.mubr.bf16.vlgmr.msra.gmra.mxu1 %v8267_v20 }
 0xcfa   : > { %v10679_v24 = vpop.eup %10678  ;;  %v7726_v0 = vmul.f32 0.00390625, %v7686_v43  ;;  %7935 = vadd.xlane.f32.xlu0 %v7934_v40  ;;  %v8134_v41 = vmul.f32 %v15775_v22, %v8058_v33  ;;  %v8133_v14 = vmul.f32 %v15772_v59, %v8057_v44  ;;  %v8207_v4 = vadd.f32 %v15789_v21, %v8131_v56 }
 0xcfb   : > { %v7995_v47 = vadd.f32 1e-05, %v7963_v18  ;;  %v7937_v25 = vadd.f32 %v7848_v16, %v7847_v35  ;;  %v8060_v55 = vmul.f32 %v10679_v24, %v15488_v5  ;;  %v8059_v27 = vmul.f32 %v10679_v24, %v17000_v19 }
 0xcfc   : > { %v15848_v29 = vsub.f32 %v15578_v49, %v7726_v0  ;;  %v15851_v20 = vsub.f32 %v15581_v1, %v7726_v0  ;;  %v7689_v34 = vpop.xlane.xlu1 %7688  ;;  %v7888_v61 = vpop.xlane.xlu0 %7887  ;;  %v8210_v17 = vadd.f32 %v15786_v11, %v8134_v41  ;;  %v8209_v33 = vadd.f32 %v15789_v21, %v8133_v14 }
 0xcfd   : > { %10686 = vrsqrt.f32 %v7995_v47  ;;  %v7727_v15 = vmul.f32 0.00390625, %v7689_v34  ;;  %v7964_v43 = vmul.f32 0.00390625, %v7888_v61  ;;  %7938 = vadd.xlane.f32.xlu1 %v7937_v25  ;;  %v8136_v5 = vmul.f32 %v15775_v22, %v8060_v55 }
 0xcfe   : > { %v10681_v40 = vpop.eup %10680  ;;  %v7849_v49 = vmul.f32 %v15848_v29, %v15848_v29  ;;  %v7850_v1 = vmul.f32 %v15851_v20, %v15851_v20  ;;  %v8270_v44 = vpack.c.bf16 %v8210_v17, %v8208_v30  ;;  %v8269_v56 = vpack.c.bf16 %v8209_v33, %v8207_v4 }
 0xcff   : > { %v15861_v35 = vsub.f32 %v15598_v9, %v7727_v15  ;;  %v15864_v16 = vsub.f32 %v15594_v54, %v7727_v15  ;;  %v7996_v18 = vadd.f32 1e-05, %v7964_v43  ;;  %v8062_v24 = vmul.f32 %v10681_v40, %v15511_v53 }
 0xd00   : > { %8474 = vmatprep.mubr.bf16.mxu1 %v8270_v44  ;;  %v7891_v0 = vpop.xlane.xlu1 %7890  ;;  %v7692_v41 = vpop.xlane.xlu0 %7691  ;;  %v7940_v14 = vadd.f32 %v7850_v1, %v7849_v49  ;;  %v8061_v47 = vmul.f32 %v10681_v40, %v15508_v62  ;;  %v8135_v25 = vmul.f32 %v15772_v59, %v8059_v27  ;;  %v8212_v27 = vadd.f32 %v15786_v11, %v8136_v5 }
 0xd01   : > { %v7851_v30 = vmul.f32 %v15861_v35, %v15861_v35  ;;  %v7852_v9 = vmul.f32 %v15864_v16, %v15864_v16  ;;  %10688 = vrsqrt.f32 %v7996_v18  ;;  %v7965_v54 = vmul.f32 0.00390625, %v7891_v0  ;;  %8475 = vmatmul.mubr.bf16.gmra.mxu1 %v8269_v56 }
 0xd02   : > { %v7728_v4 = vmul.f32 0.00390625, %v7692_v41  ;;  %7941 = vadd.xlane.f32.xlu0 %v7940_v14  ;;  %v8138_v53 = vmul.f32 %v15775_v22, %v8062_v24  ;;  %v8137_v55 = vmul.f32 %v15772_v59, %v8061_v47  ;;  %v8211_v61 = vadd.f32 %v15789_v21, %v8135_v25  ;;  %v17001_v47 = vld [vmem:[#allocation187_spill] sm:$0xff] }
 0xd03   : > { %v10683_v19 = vpop.eup %10682  ;;  %v7997_v34 = vadd.f32 1e-05, %v7965_v54  ;;  %v7943_v62 = vadd.f32 %v7852_v9, %v7851_v30 }
 0xd04   : > { %v15878_v17 = vsub.f32 %v15618_v51, %v7728_v4  ;;  %v15881_v33 = vsub.f32 %v15621_v50, %v7728_v4  ;;  %v7695_v15 = vpop.xlane.xlu1 %7694  ;;  %v7894_v43 = vpop.xlane.xlu0 %7893  ;;  %v8214_v40 = vadd.f32 %v15786_v11, %v8138_v53  ;;  %v8213_v49 = vadd.f32 %v15789_v21, %v8137_v55  ;;  %v17002_v4 = vld [vmem:[#allocation182_spill] sm:$0xff] }
 0xd05   : > { %10690 = vrsqrt.f32 %v7997_v34  ;;  %v7729_v1 = vmul.f32 0.00390625, %v7695_v15  ;;  %v7966_v44 = vmul.f32 0.00390625, %v7894_v43  ;;  %7944 = vadd.xlane.f32.xlu1 %v7943_v62  ;;  %v8064_v5 = vmul.f32 %v10683_v19, %v15528_v13  ;;  %v17003_v55 = vld [vmem:[#allocation186_spill] sm:$0xff] }
 0xd06   : > { %v10685_v56 = vpop.eup %10684  ;;  %v7853_v51 = vmul.f32 %v15878_v17, %v15878_v17  ;;  %v7854_v50 = vmul.f32 %v15881_v33, %v15881_v33  ;;  %v8272_v18 = vpack.c.bf16 %v8214_v40, %v8212_v27  ;;  %v8271_v24 = vpack.c.bf16 %v8213_v49, %v8211_v61 }
 0xd07   : > { %v15891_v0 = vsub.f32 %v15638_v37, %v7729_v1  ;;  %v15894_v41 = vsub.f32 %v15634_v8, %v7729_v1  ;;  %v7998_v14 = vadd.f32 1e-05, %v7966_v44  ;;  %v8066_v25 = vmul.f32 %v10685_v56, %v17001_v47  ;;  %v17004_v1 = vld [vmem:[#allocation167_spill] sm:$0xff] }
 0xd08   : > { %8482 = vmatprep.mubr.bf16.mxu1 %v8272_v18  ;;  %v7897_v13 = vpop.xlane.xlu1 %7896  ;;  %v7698_v30 = vpop.xlane.xlu0 %7697  ;;  %v7946_v9 = vadd.f32 %v7854_v50, %v7853_v51  ;;  %v8140_v54 = vmul.f32 %v15775_v22, %v8064_v5  ;;  %v8063_v53 = vmul.f32 %v10683_v19, %v17002_v4  ;;  %v8065_v34 = vmul.f32 %v10685_v56, %v17003_v55  ;;  %v17006_v55 = vld [vmem:[#allocation165_spill] sm:$0xff] }
 0xd09   : > { %v7855_v37 = vmul.f32 %v15891_v0, %v15891_v0  ;;  %v7856_v8 = vmul.f32 %v15894_v41, %v15894_v41  ;;  %10692 = vrsqrt.f32 %v7998_v14  ;;  %v7967_v62 = vmul.f32 0.00390625, %v7897_v13  ;;  %8483 = vmatmul.mubr.bf16.gmra.mxu1 %v8271_v24 }
 0xd0a   : > { %v10687_v27 = vpop.eup %10686  ;;  %v7730_v61 = vmul.f32 0.00390625, %v7698_v30  ;;  %7947 = vadd.xlane.f32.xlu0 %v7946_v9  ;;  %v8142_v15 = vmul.f32 %v15775_v22, %v8066_v25  ;;  %v8139_v43 = vmul.f32 %v15772_v59, %v8063_v53  ;;  %v8141_v49 = vmul.f32 %v15772_v59, %v8065_v34  ;;  %v17005_v30 = vld [vmem:[#allocation168_spill] sm:$0xff] }
 0xd0b   : > { %v7999_v40 = vadd.f32 1e-05, %v7967_v62  ;;  %v7949_v19 = vadd.f32 %v7856_v8, %v7855_v37  ;;  %v8068_v44 = vmul.f32 %v10687_v27, %v17004_v1  ;;  %v8216_v50 = vadd.f32 %v15786_v11, %v8140_v54 }
 0xd0c   : > { %v15909_v5 = vsub.f32 %v15652_v31, %v7730_v61  ;;  %v15912_v56 = vsub.f32 %v15661_v6, %v7730_v61  ;;  %v7900_v51 = vpop.xlane.xlu0 %7899  ;;  %v8218_v18 = vadd.f32 %v15786_v11, %v8142_v15  ;;  %v8215_v14 = vadd.f32 %v15789_v21, %v8139_v43  ;;  %v17007_v61 = vld [vmem:[#allocation166_spill] sm:$0xff] }
 0xd0d   : > { %10694 = vrsqrt.f32 %v7999_v40  ;;  %v7968_v24 = vmul.f32 0.00390625, %v7900_v51  ;;  %7950 = vadd.xlane.f32.xlu1 %v7949_v19  ;;  %v8217_v47 = vadd.f32 %v15789_v21, %v8141_v49  ;;  %v8067_v9 = vmul.f32 %v10687_v27, %v17005_v30 }
 0xd0e   : > { %v10689_v25 = vpop.eup %10688  ;;  %v7857_v31 = vmul.f32 %v15909_v5, %v15909_v5  ;;  %v7858_v6 = vmul.f32 %v15912_v56, %v15912_v56  ;;  %v8274_v13 = vpack.c.bf16 %v8218_v18, %v8216_v50  ;;  %v8144_v37 = vmul.f32 %v15775_v22, %v8068_v44  ;;  %v17008_v50 = vld [vmem:[#allocation163_spill] sm:$0xff] }
 0xd0f   : > { %v8000_v54 = vadd.f32 1e-05, %v7968_v24  ;;  %v7903_v4 = vpop.xlane.xlu1 %7902  ;;  %v8273_v53 = vpack.c.bf16 %v8217_v47, %v8215_v14  ;;  %v8070_v34 = vmul.f32 %v10689_v25, %v17006_v55  ;;  %v8069_v15 = vmul.f32 %v10689_v25, %v17007_v61  ;;  %v17009_v24 = vld [vmem:[#allocation164_spill] sm:$0xff] }
 0xd10   : > { %8490 = vmatprep.mubr.bf16.mxu1 %v8274_v13  ;;  %v7969_v8 = vmul.f32 0.00390625, %v7903_v4  ;;  %v7952_v62 = vadd.f32 %v7858_v6, %v7857_v31  ;;  %v8143_v43 = vmul.f32 %v15772_v59, %v8067_v9  ;;  %v8220_v51 = vadd.f32 %v15786_v11, %v8144_v37 }
 0xd11   : > { %10696 = vrsqrt.f32 %v8000_v54  ;;  %8491 = vmatmul.mubr.bf16.gmra.mxu1 %v8273_v53  ;;  %v8146_v40 = vmul.f32 %v15775_v22, %v8070_v34  ;;  %v8145_v49 = vmul.f32 %v15772_v59, %v8069_v15 }
 0xd12   : > { %v10691_v19 = vpop.eup %10690  ;;  %v8001_v27 = vadd.f32 1e-05, %v7969_v8  ;;  %7953 = vadd.xlane.f32.xlu0 %v7952_v62  ;;  %v8219_v25 = vadd.f32 %v15789_v21, %v8143_v43 }
 0xd13   : > { %v7906_v1 = vpop.xlane.xlu0 %7905  ;;  %v8222_v44 = vadd.f32 %v15786_v11, %v8146_v40  ;;  %v8072_v18 = vmul.f32 %v10691_v19, %v17008_v50  ;;  %v8071_v14 = vmul.f32 %v10691_v19, %v17009_v24  ;;  %v8221_v31 = vadd.f32 %v15789_v21, %v8145_v49 }
 0xd14   : > { %10698 = vrsqrt.f32 %v8001_v27  ;;  %v7970_v47 = vmul.f32 0.00390625, %v7906_v1 }
 0xd15   : > { %v8276_v6 = vpack.c.bf16 %v8222_v44, %v8220_v51  ;;  %v8275_v9 = vpack.c.bf16 %v8221_v31, %v8219_v25  ;;  %v8148_v54 = vmul.f32 %v15775_v22, %v8072_v18  ;;  %v8147_v4 = vmul.f32 %v15772_v59, %v8071_v14 }
 0xd16   : > { %v10693_v13 = vpop.eup %10692  ;;  %v8002_v30 = vadd.f32 1e-05, %v7970_v47 }
 0xd17   : > { %8498 = vmatprep.mubr.bf16.mxu1 %v8276_v6  ;;  %v7909_v53 = vpop.xlane.xlu1 %7908  ;;  %v8074_v55 = vmul.f32 %v10693_v13, %v15631_v38  ;;  %v8073_v34 = vmul.f32 %v10693_v13, %v15628_v58  ;;  %v8224_v43 = vadd.f32 %v15786_v11, %v8148_v54  ;;  %v8223_v40 = vadd.f32 %v15789_v21, %v8147_v4 }
 0xd18   : > { %10700 = vrsqrt.f32 %v8002_v30  ;;  %v7971_v37 = vmul.f32 0.00390625, %v7909_v53 }
 0xd19   : > { %8499 = vmatmul.mubr.bf16.gmra.mxu1 %v8275_v9  ;;  %v8150_v8 = vmul.f32 %v15775_v22, %v8074_v55  ;;  %v8149_v62 = vmul.f32 %v15772_v59, %v8073_v34 }
 0xd1a   : > { %v10695_v61 = vpop.eup %10694  ;;  %v8003_v15 = vadd.f32 1e-05, %v7971_v37 }
 0xd1b   : > { %v7912_v19 = vpop.xlane.xlu0 %7911  ;;  %v8226_v27 = vadd.f32 %v15786_v11, %v8150_v8  ;;  %v8225_v38 = vadd.f32 %v15789_v21, %v8149_v62  ;;  %v8076_v58 = vmul.f32 %v10695_v61, %v15648_v48  ;;  %v8075_v49 = vmul.f32 %v10695_v61, %v15645_v60 }
 0xd1c   : > { %10702 = vrsqrt.f32 %v8003_v15  ;;  %v7972_v1 = vmul.f32 0.00390625, %v7912_v19 }
 0xd1d   : > { %v8278_v51 = vpack.c.bf16 %v8226_v27, %v8224_v43  ;;  %v8277_v44 = vpack.c.bf16 %v8225_v38, %v8223_v40  ;;  %v8152_v24 = vmul.f32 %v15775_v22, %v8076_v58  ;;  %v8151_v31 = vmul.f32 %v15772_v59, %v8075_v49 }
 0xd1e   : > { %v10697_v50 = vpop.eup %10696  ;;  %v8004_v18 = vadd.f32 1e-05, %v7972_v1 }
 0xd1f   : > { %8506 = vmatprep.mubr.bf16.mxu1 %v8278_v51  ;;  %v7915_v14 = vpop.xlane.xlu1 %7914  ;;  %v8078_v47 = vmul.f32 %v10697_v50, %v15667_v3  ;;  %v8077_v25 = vmul.f32 %v10697_v50, %v15664_v10  ;;  %v8228_v9 = vadd.f32 %v15786_v11, %v8152_v24  ;;  %v8227_v10 = vadd.f32 %v15789_v21, %v8151_v31 }
 0xd20   : > { %10704 = vrsqrt.f32 %v8004_v18  ;;  %v7973_v48 = vmul.f32 0.00390625, %v7915_v14 }
 0xd21   : > { %v10699_v6 = vpop.eup %10698  ;;  %8507 = vmatmul.mubr.bf16.gmra.mxu1 %v8277_v44  ;;  %v8154_v60 = vmul.f32 %v15775_v22, %v8078_v47  ;;  %v8153_v13 = vmul.f32 %v15772_v59, %v8077_v25 }
 0xd22   : > { %v8005_v30 = vadd.f32 1e-05, %v7973_v48  ;;  %v8080_v54 = vmul.f32 %v10699_v6, %v15679_v46  ;;  %v8079_v55 = vmul.f32 %v10699_v6, %v15676_v52 }
 0xd23   : > { %v7918_v4 = vpop.xlane.xlu0 %7917  ;;  %v8230_v3 = vadd.f32 %v15786_v11, %v8154_v60  ;;  %v8229_v53 = vadd.f32 %v15789_v21, %v8153_v13 }
 0xd24   : > { %10706 = vrsqrt.f32 %v8005_v30  ;;  %v7974_v34 = vmul.f32 0.00390625, %v7918_v4  ;;  %v8156_v43 = vmul.f32 %v15775_v22, %v8080_v54  ;;  %v8155_v40 = vmul.f32 %v15772_v59, %v8079_v55  ;;  %v17010_v54 = vld [vmem:[#allocation180_spill] sm:$0xff] }
 0xd25   : > { %v10701_v37 = vpop.eup %10700  ;;  %v8280_v8 = vpack.c.bf16 %v8230_v3, %v8228_v9  ;;  %v8279_v62 = vpack.c.bf16 %v8229_v53, %v8227_v10  ;;  %v17011_v10 = vld [vmem:[#allocation183_spill] sm:$0xff] }
 0xd26   : > { %v8006_v61 = vadd.f32 1e-05, %v7974_v34  ;;  %v8082_v15 = vmul.f32 %v10701_v37, %v15689_v7  ;;  %v8081_v46 = vmul.f32 %v10701_v37, %v15686_v28  ;;  %v8232_v38 = vadd.f32 %v15786_v11, %v8156_v43 }
 0xd27   : > { %8514 = vmatprep.mubr.bf16.mxu1 %v8280_v8  ;;  %v8231_v28 = vadd.f32 %v15789_v21, %v8155_v40 }
 0xd28   : > { %10708 = vrsqrt.f32 %v8006_v61  ;;  %v8158_v19 = vmul.f32 %v15775_v22, %v8082_v15  ;;  %v8157_v52 = vmul.f32 %v15772_v59, %v8081_v46 }
 0xd29   : > { %v10703_v27 = vpop.eup %10702  ;;  %8515 = vmatmul.mubr.bf16.gmra.mxu1 %v8279_v62 }
 0xd2a   : > { %v8234_v58 = vadd.f32 %v15786_v11, %v8158_v19  ;;  %v8233_v7 = vadd.f32 %v15789_v21, %v8157_v52  ;;  %v8084_v49 = vmul.f32 %v10703_v27, %v15699_v2  ;;  %v8083_v1 = vmul.f32 %v10703_v27, %v15696_v26 }
 0xd2c   : > { %v8282_v51 = vpack.c.bf16 %v8234_v58, %v8232_v38  ;;  %v8281_v50 = vpack.c.bf16 %v8233_v7, %v8231_v28  ;;  %v8160_v24 = vmul.f32 %v15775_v22, %v8084_v49  ;;  %v8159_v47 = vmul.f32 %v15772_v59, %v8083_v1 }
 0xd2d   : > { %v10705_v44 = vpop.eup %10704 }
 0xd2e   : > { %8522 = vmatprep.mubr.bf16.mxu1 %v8282_v51  ;;  %v8086_v18 = vmul.f32 %v10705_v44, %v15709_v12  ;;  %v8085_v14 = vmul.f32 %v10705_v44, %v15706_v63  ;;  %v8236_v26 = vadd.f32 %v15786_v11, %v8160_v24  ;;  %v8235_v60 = vadd.f32 %v15789_v21, %v8159_v47  ;;  %v17012_v24 = vld [vmem:[#allocation175_spill] sm:$0xff]  ;;  %v17013_v47 = vld [vmem:[#allocation177_spill] sm:$0xff] }
 0xd30   : > { %v8162_v25 = vmul.f32 %v15775_v22, %v8086_v18  ;;  %v8161_v2 = vmul.f32 %v15772_v59, %v8085_v14 }
 0xd31   : > { %v10707_v31 = vpop.eup %10706  ;;  %8523 = vmatmul.mubr.bf16.gmra.mxu1 %v8281_v50 }
 0xd32   : > { %v8238_v48 = vadd.f32 %v15786_v11, %v8162_v25  ;;  %v8237_v6 = vadd.f32 %v15789_v21, %v8161_v2  ;;  %v8088_v12 = vmul.f32 %v10707_v31, %v15719_v36  ;;  %v8087_v63 = vmul.f32 %v10707_v31, %v15716_v45 }
 0xd34   : > { %v8284_v13 = vpack.c.bf16 %v8238_v48, %v8236_v26  ;;  %v8283_v9 = vpack.c.bf16 %v8237_v6, %v8235_v60  ;;  %v8164_v3 = vmul.f32 %v15775_v22, %v8088_v12  ;;  %v8163_v55 = vmul.f32 %v15772_v59, %v8087_v63  ;;  %v17014_v60 = vld [vmem:[#allocation171_spill] sm:$0xff] }
 0xd35   : > { %v10709_v30 = vpop.eup %10708 }
 0xd36   : > { %8530 = vmatprep.mubr.bf16.mxu1 %v8284_v13  ;;  %v8090_v4 = vmul.f32 %v10709_v30, %v17010_v54  ;;  %v8089_v53 = vmul.f32 %v10709_v30, %v17011_v10  ;;  %v8240_v37 = vadd.f32 %v15786_v11, %v8164_v3  ;;  %v8239_v62 = vadd.f32 %v15789_v21, %v8163_v55  ;;  %v17015_v13 = vld [vmem:[#allocation172_spill] sm:$0xff] }
 0xd38   : > { %v8166_v34 = vmul.f32 %v15775_v22, %v8090_v4  ;;  %v8165_v36 = vmul.f32 %v15772_v59, %v8089_v53 }
 0xd39   : > { %8531 = vmatmul.mubr.bf16.gmra.mxu1 %v8283_v9 }
 0xd3a   : > { %v8242_v45 = vadd.f32 %v15786_v11, %v8166_v34  ;;  %v8241_v8 = vadd.f32 %v15789_v21, %v8165_v36  ;;  %v17016_v34 = vld [vmem:[#allocation97_spill] sm:$0xff] }
 0xd3c   : > { %v8286_v61 = vpack.c.bf16 %v8242_v45, %v8240_v37  ;;  %v8285_v15 = vpack.c.bf16 %v8241_v8, %v8239_v62  ;;  %v17017_v62 = vld [vmem:[#allocation104_spill] sm:$0xff] }
 0xd3e   : > { %8538 = vmatprep.mubr.bf16.mxu1 %v8286_v61 }
 0xd41   : > { %8539 = vmatmul.mubr.bf16.gmra.mxu1 %v8285_v15 }
 0xd6e   : > { %v7921_v43 = vpop.xlane.xlu1 %7920 }
 0xd6f   : > { %v7975_v46 = vmul.f32 0.00390625, %v7921_v43 }
 0xd71   : > { %v8007_v40 = vadd.f32 1e-05, %v7975_v46 }
 0xd73   : > { %10710 = vrsqrt.f32 %v8007_v40  ;;  %v7924_v19 = vpop.xlane.xlu0 %7923 }
 0xd74   : > { %v7976_v52 = vmul.f32 0.00390625, %v7924_v19 }
 0xd76   : > { %v8008_v27 = vadd.f32 1e-05, %v7976_v52  ;;  %v7927_v38 = vpop.xlane.xlu1 %7926 }
 0xd77   : > { %v7977_v58 = vmul.f32 0.00390625, %v7927_v38 }
 0xd78   : > { %10712 = vrsqrt.f32 %v8008_v27 }
 0xd79   : > { %v8009_v7 = vadd.f32 1e-05, %v7977_v58  ;;  %v17018_v58 = vld [vmem:[#allocation173_spill] sm:$0xff] }
 0xd7b   : > { %10714 = vrsqrt.f32 %v8009_v7  ;;  %v7930_v49 = vpop.xlane.xlu0 %7929 }
 0xd7c   : > { %v7978_v28 = vmul.f32 0.00390625, %v7930_v49  ;;  %v17019_v49 = vld [vmem:[#allocation120_spill] sm:$0xff] }
 0xd7e   : > { %v8010_v1 = vadd.f32 1e-05, %v7978_v28  ;;  %v7933_v51 = vpop.xlane.xlu1 %7932 }
 0xd7f   : > { %v7979_v44 = vmul.f32 0.00390625, %v7933_v51 }
 0xd80   : > { %v10711_v50 = vpop.eup %10710  ;;  %10716 = vrsqrt.f32 %v8010_v1 }
 0xd81   : > { %v8011_v18 = vadd.f32 1e-05, %v7979_v44  ;;  %v8092_v14 = vmul.f32 %v10711_v50, %v17012_v24  ;;  %v8091_v25 = vmul.f32 %v10711_v50, %v17013_v47 }
 0xd83   : > { %10718 = vrsqrt.f32 %v8011_v18  ;;  %v7936_v2 = vpop.xlane.xlu0 %7935  ;;  %v8168_v48 = vmul.f32 %v15775_v22, %v8092_v14  ;;  %v8167_v9 = vmul.f32 %v15772_v59, %v8091_v25 }
 0xd84   : > { %v7980_v31 = vmul.f32 0.00390625, %v7936_v2 }
 0xd85   : > { %v10713_v26 = vpop.eup %10712  ;;  %v8244_v55 = vadd.f32 %v15786_v11, %v8168_v48  ;;  %v8243_v45 = vadd.f32 %v15789_v21, %v8167_v9 }
 0xd86   : > { %v8012_v6 = vadd.f32 1e-05, %v7980_v31  ;;  %v7939_v12 = vpop.xlane.xlu1 %7938  ;;  %v8094_v63 = vmul.f32 %v10713_v26, %v17014_v60  ;;  %v8093_v30 = vmul.f32 %v10713_v26, %v17015_v13  ;;  %v17020_v26 = vld [vmem:[#allocation95_spill] sm:$0xff] }
 0xd87   : > { %v7981_v54 = vmul.f32 0.00390625, %v7939_v12 }
 0xd88   : > { %v10715_v4 = vpop.eup %10714  ;;  %10720 = vrsqrt.f32 %v8012_v6  ;;  %v8170_v3 = vmul.f32 %v15775_v22, %v8094_v63  ;;  %v8169_v10 = vmul.f32 %v15772_v59, %v8093_v30 }
 0xd89   : > { %v8013_v53 = vadd.f32 1e-05, %v7981_v54  ;;  %v8096_v36 = vmul.f32 %v10715_v4, %v17016_v34  ;;  %v8095_v61 = vmul.f32 %v10715_v4, %v17017_v62 }
 0xd8a   : > { %v8246_v37 = vadd.f32 %v15786_v11, %v8170_v3  ;;  %v8245_v8 = vadd.f32 %v15789_v21, %v8169_v10 }
 0xd8b   : > { %10722 = vrsqrt.f32 %v8013_v53  ;;  %v7942_v15 = vpop.xlane.xlu0 %7941  ;;  %v8172_v52 = vmul.f32 %v15775_v22, %v8096_v36  ;;  %v8171_v1 = vmul.f32 %v15772_v59, %v8095_v61 }
 0xd8c   : > { %v7982_v43 = vmul.f32 0.00390625, %v7942_v15  ;;  %v8288_v46 = vpack.c.bf16 %v8246_v37, %v8244_v55  ;;  %v8287_v40 = vpack.c.bf16 %v8245_v8, %v8243_v45 }
 0xd8d   : > { %v10717_v19 = vpop.eup %10716  ;;  %v8248_v14 = vadd.f32 %v15786_v11, %v8172_v52  ;;  %v8247_v2 = vadd.f32 %v15789_v21, %v8171_v1 }
 0xd8e   : > { %v8014_v27 = vadd.f32 1e-05, %v7982_v43  ;;  %8546 = vmatprep.mubr.bf16.mxu1 %v8288_v46  ;;  %v7945_v38 = vpop.xlane.xlu1 %7944  ;;  %v8098_v7 = vmul.f32 %v10717_v19, %v17018_v58  ;;  %v8097_v28 = vmul.f32 %v10717_v19, %v17019_v49 }
 0xd8f   : > { %v7983_v51 = vmul.f32 0.00390625, %v7945_v38  ;;  %8547 = vmatmul.mubr.bf16.gmra.mxu1 %v8287_v40 }
 0xd90   : > { %v10719_v44 = vpop.eup %10718  ;;  %10724 = vrsqrt.f32 %v8014_v27  ;;  %v8174_v50 = vmul.f32 %v15775_v22, %v8098_v7  ;;  %v8173_v18 = vmul.f32 %v15772_v59, %v8097_v28 }
 0xd91   : > { %v8015_v24 = vadd.f32 1e-05, %v7983_v51  ;;  %v8100_v47 = vmul.f32 %v10719_v44, %v15802_v23  ;;  %v8099_v48 = vmul.f32 %v10719_v44, %v17020_v26 }
 0xd92   : > { %v8250_v25 = vadd.f32 %v15786_v11, %v8174_v50  ;;  %v8249_v31 = vadd.f32 %v15789_v21, %v8173_v18 }
 0xd93   : > { %10726 = vrsqrt.f32 %v8015_v24  ;;  %v7948_v6 = vpop.xlane.xlu0 %7947  ;;  %v8176_v30 = vmul.f32 %v15775_v22, %v8100_v47  ;;  %v8175_v3 = vmul.f32 %v15772_v59, %v8099_v48 }
 0xd94   : > { %v7984_v12 = vmul.f32 0.00390625, %v7948_v6  ;;  %v8290_v60 = vpack.c.bf16 %v8250_v25, %v8248_v14  ;;  %v8289_v63 = vpack.c.bf16 %v8249_v31, %v8247_v2 }
 0xd95   : > { %v10721_v13 = vpop.eup %10720  ;;  %v8252_v37 = vadd.f32 %v15786_v11, %v8176_v30 }
 0xd96   : > { %v8016_v9 = vadd.f32 1e-05, %v7984_v12  ;;  %8554 = vmatprep.mubr.bf16.mxu1 %v8290_v60  ;;  %v7951_v54 = vpop.xlane.xlu1 %7950  ;;  %v8102_v23 = vmul.f32 %v10721_v13, %v15820_v39  ;;  %v8101_v4 = vmul.f32 %v10721_v13, %v15817_v57  ;;  %v8251_v39 = vadd.f32 %v15789_v21, %v8175_v3 }
 0xd97   : > { %v7985_v10 = vmul.f32 0.00390625, %v7951_v54  ;;  %8555 = vmatmul.mubr.bf16.gmra.mxu1 %v8289_v63 }
 0xd98   : > { %v10723_v53 = vpop.eup %10722  ;;  %10728 = vrsqrt.f32 %v8016_v9  ;;  %v8178_v55 = vmul.f32 %v15775_v22, %v8102_v23  ;;  %v8177_v34 = vmul.f32 %v15772_v59, %v8101_v4 }
 0xd99   : > { %v8017_v36 = vadd.f32 1e-05, %v7985_v10  ;;  %v8104_v45 = vmul.f32 %v10723_v53, %v15832_v32  ;;  %v8103_v62 = vmul.f32 %v10723_v53, %v15829_v42 }
 0xd9a   : > { %v8254_v8 = vadd.f32 %v15786_v11, %v8178_v55  ;;  %v8253_v57 = vadd.f32 %v15789_v21, %v8177_v34  ;;  %v16068_v55 = vld [vmem:[%s16212_s22] ss:$0 sm:$0xff] }
 0xd9b   : > { %10730 = vrsqrt.f32 %v8017_v36  ;;  %v7954_v61 = vpop.xlane.xlu0 %7953  ;;  %v8180_v19 = vmul.f32 %v15775_v22, %v8104_v45  ;;  %v8179_v38 = vmul.f32 %v15772_v59, %v8103_v62 }
 0xd9c   : > { %v7986_v15 = vmul.f32 0.00390625, %v7954_v61  ;;  %v8292_v43 = vpack.c.bf16 %v8254_v8, %v8252_v37  ;;  %v8291_v46 = vpack.c.bf16 %v8253_v57, %v8251_v39 }
 0xd9d   : > { %v10725_v40 = vpop.eup %10724  ;;  %v8256_v1 = vadd.f32 %v15786_v11, %v8180_v19 }
 0xd9e   : > { %v8018_v52 = vadd.f32 1e-05, %v7986_v15  ;;  %8562 = vmatprep.mubr.bf16.mxu1 %v8292_v43  ;;  %v8106_v32 = vmul.f32 %v10725_v40, %v15851_v20  ;;  %v8105_v27 = vmul.f32 %v10725_v40, %v15848_v29  ;;  %v8255_v20 = vadd.f32 %v15789_v21, %v8179_v38 }
 0xd9f   : > { %8563 = vmatmul.mubr.bf16.gmra.mxu1 %v8291_v46 }
 0xda0   : > { %v10727_v58 = vpop.eup %10726  ;;  %10732 = vrsqrt.f32 %v8018_v52  ;;  %v8182_v42 = vmul.f32 %v15775_v22, %v8106_v32  ;;  %v8181_v7 = vmul.f32 %v15772_v59, %v8105_v27 }
 0xda1   : > { %v8108_v49 = vmul.f32 %v10727_v58, %v15864_v16  ;;  %v8107_v28 = vmul.f32 %v10727_v58, %v15861_v35 }
 0xda2   : > { %v8258_v51 = vadd.f32 %v15786_v11, %v8182_v42  ;;  %v8257_v29 = vadd.f32 %v15789_v21, %v8181_v7 }
 0xda3   : > { %v8184_v24 = vmul.f32 %v15775_v22, %v8108_v49  ;;  %v8183_v14 = vmul.f32 %v15772_v59, %v8107_v28 }
 0xda4   : > { %v8294_v44 = vpack.c.bf16 %v8258_v51, %v8256_v1  ;;  %v8293_v50 = vpack.c.bf16 %v8257_v29, %v8255_v20 }
 0xda5   : > { %v10729_v18 = vpop.eup %10728  ;;  %v8260_v31 = vadd.f32 %v15786_v11, %v8184_v24  ;;  %v8259_v26 = vadd.f32 %v15789_v21, %v8183_v14 }
 0xda6   : > { %8570 = vmatprep.mubr.bf16.mxu1 %v8294_v44  ;;  %v8110_v16 = vmul.f32 %v10729_v18, %v15881_v33  ;;  %v8109_v35 = vmul.f32 %v10729_v18, %v15878_v17 }
 0xda7   : > { %8571 = vmatmul.mubr.bf16.gmra.mxu1 %v8293_v50 }
 0xda8   : > { %v10731_v47 = vpop.eup %10730  ;;  %v8186_v25 = vmul.f32 %v15775_v22, %v8110_v16  ;;  %v8185_v2 = vmul.f32 %v15772_v59, %v8109_v35 }
 0xda9   : > { %v8112_v12 = vmul.f32 %v10731_v47, %v15894_v41  ;;  %v8111_v33 = vmul.f32 %v10731_v47, %v15891_v0 }
 0xdaa   : > { %v8262_v48 = vadd.f32 %v15786_v11, %v8186_v25  ;;  %v8261_v6 = vadd.f32 %v15789_v21, %v8185_v2 }
 0xdab   : > { %v8188_v30 = vmul.f32 %v15775_v22, %v8112_v12  ;;  %v8187_v54 = vmul.f32 %v15772_v59, %v8111_v33 }
 0xdac   : > { %v8296_v60 = vpack.c.bf16 %v8262_v48, %v8260_v31  ;;  %v8295_v17 = vpack.c.bf16 %v8261_v6, %v8259_v26 }
 0xdad   : > { %v10733_v63 = vpop.eup %10732  ;;  %v8264_v41 = vadd.f32 %v15786_v11, %v8188_v30  ;;  %v8263_v3 = vadd.f32 %v15789_v21, %v8187_v54 }
 0xdae   : > { %8578 = vmatprep.mubr.bf16.mxu1 %v8296_v60  ;;  %v8114_v13 = vmul.f32 %v10733_v63, %v15912_v56  ;;  %v8113_v9 = vmul.f32 %v10733_v63, %v15909_v5 }
 0xdaf   : > { %8579 = vmatmul.mubr.bf16.gmra.mxu1 %v8295_v17 }
 0xdb0   : > { %v8190_v23 = vmul.f32 %v15775_v22, %v8114_v13  ;;  %v8189_v4 = vmul.f32 %v15772_v59, %v8113_v9 }
 0xdb2   : > { %v8266_v0 = vadd.f32 %v15786_v11, %v8190_v23  ;;  %v8265_v10 = vadd.f32 %v15789_v21, %v8189_v4 }
 0xdb4   : > { %v8298_v56 = vpack.c.bf16 %v8266_v0, %v8264_v41  ;;  %v8297_v53 = vpack.c.bf16 %v8265_v10, %v8263_v3 }
 0xdb6   : > { %8586 = vmatprep.mubr.bf16.mxu1 %v8298_v56 }
 0xdb7   : > { %8587 = vmatmul.mubr.bf16.gmra.mxu1 %v8297_v53 }
 0xdb9   : > { %v9502_v5 = vpop.f32.mrf.mxu1 }
 0xdbb   : > { %v9503_v22 = vpop.f32.mrf.mxu1 }
 0xdbc   : > { %v9504_v59 = vadd.f32 %v9503_v22, %v9502_v5 }
 0xdbd   : > { %v9505_v34 = vpop.f32.mrf.mxu1 }
 0xdbe   : > { %v8469_v36 = vadd.f32 %v9504_v59, %v16068_v55 }
 0xdbf   : > { %v9506_v11 = vpop.f32.mrf.mxu1 }
 0xdc0   : > { %v8595_v37 = vsub.f32 0.0, %v8469_v36  ;;  %v9507_v45 = vadd.f32 %v9506_v11, %v9505_v34 }
 0xdc1   : > { %v9508_v8 = vpop.f32.mrf.mxu1 }
 0xdc2   : > { %v8627_v21 = vmul.f32 1.442695, %v8595_v37  ;;  %v8472_v39 = vadd.f32 %v9507_v45, %v16068_v55 }
 0xdc3   : > { %v9509_v57 = vpop.f32.mrf.mxu1 }
 0xdc4   : > { %10734 = vpow2.f32 %v8627_v21  ;;  %v8596_v62 = vsub.f32 0.0, %v8472_v39  ;;  %v9510_v61 = vadd.f32 %v9509_v57, %v9508_v8 }
 0xdc5   : > { %v9511_v15 = vpop.f32.mrf.mxu1 }
 0xdc6   : > { %v8629_v43 = vmul.f32 1.442695, %v8596_v62  ;;  %v8477_v46 = vadd.f32 %v9510_v61, %v16068_v55 }
 0xdc7   : > { %v9512_v40 = vpop.f32.mrf.mxu1 }
 0xdc8   : > { %10736 = vpow2.f32 %v8629_v43  ;;  %v8597_v19 = vsub.f32 0.0, %v8477_v46  ;;  %v9513_v52 = vadd.f32 %v9512_v40, %v9511_v15 }
 0xdc9   : > { %v9514_v32 = vpop.f32.mrf.mxu1 }
 0xdca   : > { %v8631_v27 = vmul.f32 1.442695, %v8597_v19  ;;  %v8480_v38 = vadd.f32 %v9513_v52, %v16068_v55 }
 0xdcb   : > { %v9515_v58 = vpop.f32.mrf.mxu1 }
 0xdcc   : > { %10738 = vpow2.f32 %v8631_v27  ;;  %v8598_v42 = vsub.f32 0.0, %v8480_v38  ;;  %v9516_v7 = vadd.f32 %v9515_v58, %v9514_v32 }
 0xdcd   : > { %v9517_v49 = vpop.f32.mrf.mxu1 }
 0xdce   : > { %v8633_v28 = vmul.f32 1.442695, %v8598_v42  ;;  %v8485_v1 = vadd.f32 %v9516_v7, %v16068_v55 }
 0xdcf   : > { %v9518_v51 = vpop.f32.mrf.mxu1 }
 0xdd0   : > { %10740 = vpow2.f32 %v8633_v28  ;;  %v8599_v20 = vsub.f32 0.0, %v8485_v1  ;;  %v9519_v29 = vadd.f32 %v9518_v51, %v9517_v49 }
 0xdd1   : > { %v10735_v44 = vpop.eup %10734  ;;  %v9520_v50 = vpop.f32.mrf.mxu1 }
 0xdd2   : > { %v8691_v18 = vadd.f32 1.0, %v10735_v44  ;;  %v8635_v24 = vmul.f32 1.442695, %v8599_v20  ;;  %v8488_v14 = vadd.f32 %v9519_v29, %v16068_v55 }
 0xdd3   : > { %v9521_v16 = vpop.f32.mrf.mxu1 }
 0xdd4   : > { %10742 = vrcp.f32 %v8691_v18  ;;  %v8600_v35 = vsub.f32 0.0, %v8488_v14  ;;  %v9522_v47 = vadd.f32 %v9521_v16, %v9520_v50 }
 0xdd5   : > { %v10737_v25 = vpop.eup %10736  ;;  %10744 = vpow2.f32 %v8635_v24  ;;  %v9523_v2 = vpop.f32.mrf.mxu1 }
 0xdd6   : > { %v8692_v31 = vadd.f32 1.0, %v10737_v25  ;;  %v8637_v26 = vmul.f32 1.442695, %v8600_v35  ;;  %v8493_v48 = vadd.f32 %v9522_v47, %v16068_v55 }
 0xdd7   : > { %v9524_v6 = vpop.f32.mrf.mxu1 }
 0xdd8   : > { %10746 = vrcp.f32 %v8692_v31  ;;  %v8601_v12 = vsub.f32 0.0, %v8493_v48  ;;  %v9525_v33 = vadd.f32 %v9524_v6, %v9523_v2 }
 0xdd9   : > { %v10739_v60 = vpop.eup %10738  ;;  %10748 = vpow2.f32 %v8637_v26  ;;  %v9526_v17 = vpop.f32.mrf.mxu1 }
 0xdda   : > { %v8693_v63 = vadd.f32 1.0, %v10739_v60  ;;  %v8639_v13 = vmul.f32 1.442695, %v8601_v12  ;;  %v8496_v30 = vadd.f32 %v9525_v33, %v16068_v55 }
 0xddb   : > { %v9527_v9 = vpop.f32.mrf.mxu1 }
 0xddc   : > { %10750 = vrcp.f32 %v8693_v63  ;;  %v8602_v54 = vsub.f32 0.0, %v8496_v30  ;;  %v9528_v23 = vadd.f32 %v9527_v9, %v9526_v17 }
 0xddd   : > { %v10741_v4 = vpop.eup %10740  ;;  %10752 = vpow2.f32 %v8639_v13  ;;  %v9529_v41 = vpop.f32.mrf.mxu1 }
 0xdde   : > { %v8694_v0 = vadd.f32 1.0, %v10741_v4  ;;  %v8641_v3 = vmul.f32 1.442695, %v8602_v54  ;;  %v8501_v10 = vadd.f32 %v9528_v23, %v16068_v55 }
 0xddf   : > { %v9530_v56 = vpop.f32.mrf.mxu1 }
 0xde0   : > { %10754 = vrcp.f32 %v8694_v0  ;;  %v8603_v53 = vsub.f32 0.0, %v8501_v10  ;;  %v9531_v5 = vadd.f32 %v9530_v56, %v9529_v41 }
 0xde1   : > { %v10743_v22 = vpop.eup %10742  ;;  %10756 = vpow2.f32 %v8641_v3  ;;  %v9532_v59 = vpop.f32.mrf.mxu1 }
 0xde2   : > { %v10745_v34 = vpop.eup %10744  ;;  %8755 = vst [vmem:[%s16082_s1] sm:$0xff] %v10743_v22  ;;  %v8643_v36 = vmul.f32 1.442695, %v8603_v53  ;;  %v8504_v11 = vadd.f32 %v9531_v5, %v16068_v55 }
 0xde3   : > { %v8695_v37 = vadd.f32 1.0, %v10745_v34  ;;  %v9533_v45 = vpop.f32.mrf.mxu1 }
 0xde4   : > { %10758 = vpow2.f32 %v8643_v36  ;;  %v8604_v8 = vsub.f32 0.0, %v8504_v11  ;;  %v9534_v21 = vadd.f32 %v9533_v45, %v9532_v59 }
 0xde5   : > { %v10747_v39 = vpop.eup %10746  ;;  %10760 = vrcp.f32 %v8695_v37  ;;  %v9535_v57 = vpop.f32.mrf.mxu1 }
 0xde6   : > { %v10749_v62 = vpop.eup %10748  ;;  %8756 = vst [vmem:[%s16082_s1 + $0x8] sm:$0xff] %v10747_v39  ;;  %v8645_v61 = vmul.f32 1.442695, %v8604_v8  ;;  %v8509_v15 = vadd.f32 %v9534_v21, %v16068_v55 }
 0xde7   : > { %v8696_v43 = vadd.f32 1.0, %v10749_v62  ;;  %v9536_v46 = vpop.f32.mrf.mxu1 }
 0xde8   : > { %10762 = vpow2.f32 %v8645_v61  ;;  %v8605_v40 = vsub.f32 0.0, %v8509_v15  ;;  %v9537_v19 = vadd.f32 %v9536_v46, %v9535_v57 }
 0xde9   : > { %v10751_v52 = vpop.eup %10750  ;;  %10764 = vrcp.f32 %v8696_v43  ;;  %v9538_v32 = vpop.f32.mrf.mxu1 }
 0xdea   : > { %v10753_v27 = vpop.eup %10752  ;;  %8757 = vst [vmem:[%s16082_s1 + $0x10] sm:$0xff] %v10751_v52  ;;  %v8647_v38 = vmul.f32 1.442695, %v8605_v40  ;;  %v8512_v58 = vadd.f32 %v9537_v19, %v16068_v55 }
 0xdeb   : > { %v8697_v42 = vadd.f32 1.0, %v10753_v27  ;;  %v9539_v7 = vpop.f32.mrf.mxu1 }
 0xdec   : > { %10766 = vpow2.f32 %v8647_v38  ;;  %v8606_v49 = vsub.f32 0.0, %v8512_v58  ;;  %v9540_v28 = vadd.f32 %v9539_v7, %v9538_v32 }
 0xded   : > { %v10755_v1 = vpop.eup %10754  ;;  %10768 = vrcp.f32 %v8697_v42  ;;  %v9541_v51 = vpop.f32.mrf.mxu1 }
 0xdee   : > { %v10757_v20 = vpop.eup %10756  ;;  %8758 = vst [vmem:[%s16082_s1 + $0x18] sm:$0xff] %v10755_v1  ;;  %v8649_v29 = vmul.f32 1.442695, %v8606_v49  ;;  %v8517_v44 = vadd.f32 %v9540_v28, %v16068_v55 }
 0xdef   : > { %v8698_v50 = vadd.f32 1.0, %v10757_v20  ;;  %v9542_v18 = vpop.f32.mrf.mxu1 }
 0xdf0   : > { %10770 = vpow2.f32 %v8649_v29  ;;  %v8607_v24 = vsub.f32 0.0, %v8517_v44  ;;  %v9543_v14 = vadd.f32 %v9542_v18, %v9541_v51 }
 0xdf1   : > { %v10759_v16 = vpop.eup %10758  ;;  %10772 = vrcp.f32 %v8698_v50  ;;  %v9544_v35 = vpop.f32.mrf.mxu1 }
 0xdf2   : > { %v10761_v47 = vpop.eup %10760  ;;  %v8699_v25 = vadd.f32 1.0, %v10759_v16  ;;  %v8651_v2 = vmul.f32 1.442695, %v8607_v24  ;;  %v8520_v31 = vadd.f32 %v9543_v14, %v16068_v55 }
 0xdf3   : > { %8759 = vst [vmem:[%s16082_s1 + $0x20] sm:$0xff] %v10761_v47  ;;  %v9545_v26 = vpop.f32.mrf.mxu1 }
 0xdf4   : > { %10774 = vrcp.f32 %v8699_v25  ;;  %v8608_v48 = vsub.f32 0.0, %v8520_v31  ;;  %v9546_v6 = vadd.f32 %v9545_v26, %v9544_v35 }
 0xdf5   : > { %v10763_v12 = vpop.eup %10762  ;;  %10776 = vpow2.f32 %v8651_v2  ;;  %v9547_v33 = vpop.f32.mrf.mxu1 }
 0xdf6   : > { %v10765_v60 = vpop.eup %10764  ;;  %v8700_v17 = vadd.f32 1.0, %v10763_v12  ;;  %v8653_v63 = vmul.f32 1.442695, %v8608_v48  ;;  %v8525_v13 = vadd.f32 %v9546_v6, %v16068_v55 }
 0xdf7   : > { %8760 = vst [vmem:[%s16082_s1 + $0x28] sm:$0xff] %v10765_v60  ;;  %v9548_v30 = vpop.f32.mrf.mxu1 }
 0xdf8   : > { %10778 = vrcp.f32 %v8700_v17  ;;  %v8609_v9 = vsub.f32 0.0, %v8525_v13  ;;  %v9549_v54 = vadd.f32 %v9548_v30, %v9547_v33 }
 0xdf9   : > { %v10767_v23 = vpop.eup %10766  ;;  %10780 = vpow2.f32 %v8653_v63  ;;  %v9550_v4 = vpop.f32.mrf.mxu1 }
 0xdfa   : > { %v10769_v41 = vpop.eup %10768  ;;  %v8701_v0 = vadd.f32 1.0, %v10767_v23  ;;  %v8655_v3 = vmul.f32 1.442695, %v8609_v9  ;;  %v8528_v10 = vadd.f32 %v9549_v54, %v16068_v55 }
 0xdfb   : > { %8761 = vst [vmem:[%s16082_s1 + $0x30] sm:$0xff] %v10769_v41  ;;  %v9551_v56 = vpop.f32.mrf.mxu1 }
 0xdfc   : > { %10782 = vrcp.f32 %v8701_v0  ;;  %v8610_v53 = vsub.f32 0.0, %v8528_v10  ;;  %v9552_v5 = vadd.f32 %v9551_v56, %v9550_v4 }
 0xdfd   : > { %v10771_v22 = vpop.eup %10770  ;;  %10784 = vpow2.f32 %v8655_v3  ;;  %v9553_v59 = vpop.f32.mrf.mxu1 }
 0xdfe   : > { %v10773_v34 = vpop.eup %10772  ;;  %v8702_v36 = vadd.f32 1.0, %v10771_v22  ;;  %v8657_v11 = vmul.f32 1.442695, %v8610_v53  ;;  %v8533_v37 = vadd.f32 %v9552_v5, %v16068_v55 }
 0xdff   : > { %8762 = vst [vmem:[%s16082_s1 + $0x38] sm:$0xff] %v10773_v34  ;;  %v9554_v45 = vpop.f32.mrf.mxu1 }
 0xe00   : > { %10786 = vrcp.f32 %v8702_v36  ;;  %v8611_v8 = vsub.f32 0.0, %v8533_v37  ;;  %v9555_v21 = vadd.f32 %v9554_v45, %v9553_v59 }
 0xe01   : > { %v10775_v39 = vpop.eup %10774  ;;  %10788 = vpow2.f32 %v8657_v11  ;;  %v9556_v57 = vpop.f32.mrf.mxu1 }
 0xe02   : > { %v10777_v62 = vpop.eup %10776  ;;  %8763 = vst [vmem:[%s16082_s1 + $0x40] sm:$0xff] %v10775_v39  ;;  %v8659_v61 = vmul.f32 1.442695, %v8611_v8  ;;  %v8536_v15 = vadd.f32 %v9555_v21, %v16068_v55 }
 0xe03   : > { %v8703_v43 = vadd.f32 1.0, %v10777_v62  ;;  %v9557_v46 = vpop.f32.mrf.mxu1 }
 0xe04   : > { %10790 = vpow2.f32 %v8659_v61  ;;  %v8612_v40 = vsub.f32 0.0, %v8536_v15  ;;  %v9558_v19 = vadd.f32 %v9557_v46, %v9556_v57 }
 0xe05   : > { %v10779_v52 = vpop.eup %10778  ;;  %10792 = vrcp.f32 %v8703_v43  ;;  %v9559_v32 = vpop.f32.mrf.mxu1 }
 0xe06   : > { %v10781_v27 = vpop.eup %10780  ;;  %8764 = vst [vmem:[%s16082_s1 + $0x48] sm:$0xff] %v10779_v52  ;;  %v8661_v38 = vmul.f32 1.442695, %v8612_v40  ;;  %v8541_v58 = vadd.f32 %v9558_v19, %v16068_v55 }
 0xe07   : > { %v8704_v42 = vadd.f32 1.0, %v10781_v27  ;;  %v9560_v7 = vpop.f32.mrf.mxu1 }
 0xe08   : > { %10794 = vpow2.f32 %v8661_v38  ;;  %v8613_v49 = vsub.f32 0.0, %v8541_v58  ;;  %v9561_v28 = vadd.f32 %v9560_v7, %v9559_v32 }
 0xe09   : > { %v10783_v1 = vpop.eup %10782  ;;  %10796 = vrcp.f32 %v8704_v42 }
 0xe0a   : > { %v10785_v51 = vpop.eup %10784  ;;  %8765 = vst [vmem:[%s16082_s1 + $0x50] sm:$0xff] %v10783_v1  ;;  %v8663_v20 = vmul.f32 1.442695, %v8613_v49  ;;  %v8544_v29 = vadd.f32 %v9561_v28, %v16068_v55 }
 0xe0b   : > { %v8705_v44 = vadd.f32 1.0, %v10785_v51 }
 0xe0c   : > { %10798 = vpow2.f32 %v8663_v20  ;;  %v8614_v50 = vsub.f32 0.0, %v8544_v29 }
 0xe0d   : > { %v10787_v18 = vpop.eup %10786  ;;  %10800 = vrcp.f32 %v8705_v44 }
 0xe0e   : > { %v10789_v24 = vpop.eup %10788  ;;  %8766 = vst [vmem:[%s16082_s1 + $0x58] sm:$0xff] %v10787_v18  ;;  %v8665_v14 = vmul.f32 1.442695, %v8614_v50 }
 0xe0f   : > { %v8706_v16 = vadd.f32 1.0, %v10789_v24 }
 0xe10   : > { %10802 = vpow2.f32 %v8665_v14 }
 0xe11   : > { %v10791_v35 = vpop.eup %10790  ;;  %10804 = vrcp.f32 %v8706_v16 }
 0xe12   : > { %v10793_v47 = vpop.eup %10792  ;;  %v8707_v25 = vadd.f32 1.0, %v10791_v35 }
 0xe13   : > { %8767 = vst [vmem:[%s16082_s1 + $0x60] sm:$0xff] %v10793_v47 }
 0xe14   : > { %10806 = vrcp.f32 %v8707_v25 }
 0xe15   : > { %v10795_v2 = vpop.eup %10794 }
 0xe16   : > { %v10797_v31 = vpop.eup %10796  ;;  %v8708_v26 = vadd.f32 1.0, %v10795_v2 }
 0xe17   : > { %8768 = vst [vmem:[%s16082_s1 + $0x68] sm:$0xff] %v10797_v31 }
 0xe18   : > { %10808 = vrcp.f32 %v8708_v26 }
 0xe19   : > { %v10799_v48 = vpop.eup %10798 }
 0xe1a   : > { %v10801_v6 = vpop.eup %10800  ;;  %v8709_v12 = vadd.f32 1.0, %v10799_v48 }
 0xe1b   : > { %8769 = vst [vmem:[%s16082_s1 + $0x70] sm:$0xff] %v10801_v6 }
 0xe1c   : > { %10810 = vrcp.f32 %v8709_v12 }
 0xe1d   : > { %v10803_v33 = vpop.eup %10802 }
 0xe1e   : > { %v10805_v60 = vpop.eup %10804  ;;  %v8710_v17 = vadd.f32 1.0, %v10803_v33 }
 0xe1f   : > { %8770 = vst [vmem:[%s16082_s1 + $0x78] sm:$0xff] %v10805_v60 }
 0xe20   : > { %10812 = vrcp.f32 %v8710_v17 }
 0xe21   : > { %v10807_v63 = vpop.eup %10806 }
 0xe22   : > { %8771 = vst [vmem:[%s16082_s1 + $0x80] sm:$0xff] %v10807_v63 }
 0xe25   : > { %v10809_v13 = vpop.eup %10808 }
 0xe26   : > { %8772 = vst [vmem:[%s16082_s1 + $0x88] sm:$0xff] %v10809_v13 }
 0xe29   : > { %v10811_v30 = vpop.eup %10810 }
 0xe2a   : > { %8773 = vst [vmem:[%s16082_s1 + $0x90] sm:$0xff] %v10811_v30 }
 0xe2d   : > { %v10813_v9 = vpop.eup %10812 }
 0xe2e   : > { %8774 = vst [vmem:[%s16082_s1 + $0x98] sm:$0xff] %v10813_v9 }
 0xe4f   : > { %v9562_v54 = vpop.f32.mrf.mxu1 }
 0xe51   : > { %v9563_v23 = vpop.f32.mrf.mxu1 }
 0xe52   : > { %v9564_v4 = vadd.f32 %v9563_v23, %v9562_v54 }
 0xe53   : > { %v9565_v41 = vpop.f32.mrf.mxu1 }
 0xe54   : > { %v8549_v0 = vadd.f32 %v9564_v4, %v16068_v55 }
 0xe55   : > { %v9566_v3 = vpop.f32.mrf.mxu1 }
 0xe56   : > { %v8615_v10 = vsub.f32 0.0, %v8549_v0  ;;  %v9567_v56 = vadd.f32 %v9566_v3, %v9565_v41 }
 0xe57   : > { %v9568_v53 = vpop.f32.mrf.mxu1 }
 0xe58   : > { %v8667_v5 = vmul.f32 1.442695, %v8615_v10  ;;  %v8552_v22 = vadd.f32 %v9567_v56, %v16068_v55 }
 0xe59   : > { %v9569_v59 = vpop.f32.mrf.mxu1 }
 0xe5a   : > { %10814 = vpow2.f32 %v8667_v5  ;;  %v8616_v34 = vsub.f32 0.0, %v8552_v22  ;;  %v9570_v36 = vadd.f32 %v9569_v59, %v9568_v53 }
 0xe5b   : > { %v9571_v11 = vpop.f32.mrf.mxu1 }
 0xe5c   : > { %v8669_v37 = vmul.f32 1.442695, %v8616_v34  ;;  %v8557_v45 = vadd.f32 %v9570_v36, %v16068_v55 }
 0xe5d   : > { %v9572_v8 = vpop.f32.mrf.mxu1 }
 0xe5e   : > { %10816 = vpow2.f32 %v8669_v37  ;;  %v8617_v21 = vsub.f32 0.0, %v8557_v45  ;;  %v9573_v39 = vadd.f32 %v9572_v8, %v9571_v11 }
 0xe5f   : > { %v9574_v57 = vpop.f32.mrf.mxu1 }
 0xe60   : > { %v8671_v62 = vmul.f32 1.442695, %v8617_v21  ;;  %v8560_v61 = vadd.f32 %v9573_v39, %v16068_v55 }
 0xe61   : > { %v9575_v15 = vpop.f32.mrf.mxu1 }
 0xe62   : > { %10818 = vpow2.f32 %v8671_v62  ;;  %v8618_v43 = vsub.f32 0.0, %v8560_v61  ;;  %v9576_v46 = vadd.f32 %v9575_v15, %v9574_v57 }
 0xe63   : > { %v9577_v40 = vpop.f32.mrf.mxu1 }
 0xe64   : > { %v8673_v19 = vmul.f32 1.442695, %v8618_v43  ;;  %v8565_v52 = vadd.f32 %v9576_v46, %v16068_v55 }
 0xe65   : > { %v9578_v32 = vpop.f32.mrf.mxu1 }
 0xe66   : > { %10820 = vpow2.f32 %v8673_v19  ;;  %v8619_v27 = vsub.f32 0.0, %v8565_v52  ;;  %v9579_v38 = vadd.f32 %v9578_v32, %v9577_v40 }
 0xe67   : > { %v10815_v58 = vpop.eup %10814  ;;  %v9580_v42 = vpop.f32.mrf.mxu1 }
 0xe68   : > { %v8711_v7 = vadd.f32 1.0, %v10815_v58  ;;  %v8675_v49 = vmul.f32 1.442695, %v8619_v27  ;;  %v8568_v28 = vadd.f32 %v9579_v38, %v16068_v55 }
 0xe69   : > { %v9581_v1 = vpop.f32.mrf.mxu1 }
 0xe6a   : > { %10822 = vrcp.f32 %v8711_v7  ;;  %v8620_v51 = vsub.f32 0.0, %v8568_v28  ;;  %v9582_v20 = vadd.f32 %v9581_v1, %v9580_v42 }
 0xe6b   : > { %v10817_v29 = vpop.eup %10816  ;;  %10824 = vpow2.f32 %v8675_v49  ;;  %v9583_v44 = vpop.f32.mrf.mxu1 }
 0xe6c   : > { %v8712_v50 = vadd.f32 1.0, %v10817_v29  ;;  %v8677_v18 = vmul.f32 1.442695, %v8620_v51  ;;  %v8573_v24 = vadd.f32 %v9582_v20, %v16068_v55 }
 0xe6d   : > { %v9584_v14 = vpop.f32.mrf.mxu1 }
 0xe6e   : > { %10826 = vrcp.f32 %v8712_v50  ;;  %v8621_v16 = vsub.f32 0.0, %v8573_v24  ;;  %v9585_v35 = vadd.f32 %v9584_v14, %v9583_v44 }
 0xe6f   : > { %v10819_v47 = vpop.eup %10818  ;;  %10828 = vpow2.f32 %v8677_v18  ;;  %v9586_v25 = vpop.f32.mrf.mxu1 }
 0xe70   : > { %v8713_v2 = vadd.f32 1.0, %v10819_v47  ;;  %v8679_v31 = vmul.f32 1.442695, %v8621_v16  ;;  %v8576_v26 = vadd.f32 %v9585_v35, %v16068_v55 }
 0xe71   : > { %v9587_v48 = vpop.f32.mrf.mxu1 }
 0xe72   : > { %10830 = vrcp.f32 %v8713_v2  ;;  %v8622_v6 = vsub.f32 0.0, %v8576_v26  ;;  %v9588_v12 = vadd.f32 %v9587_v48, %v9586_v25 }
 0xe73   : > { %v10821_v33 = vpop.eup %10820  ;;  %10832 = vpow2.f32 %v8679_v31  ;;  %v9589_v60 = vpop.f32.mrf.mxu1 }
 0xe74   : > { %v8714_v17 = vadd.f32 1.0, %v10821_v33  ;;  %v8681_v63 = vmul.f32 1.442695, %v8622_v6  ;;  %v8581_v13 = vadd.f32 %v9588_v12, %v16068_v55 }
 0xe75   : > { %v9590_v30 = vpop.f32.mrf.mxu1 }
 0xe76   : > { %10834 = vrcp.f32 %v8714_v17  ;;  %v8623_v9 = vsub.f32 0.0, %v8581_v13  ;;  %v9591_v54 = vadd.f32 %v9590_v30, %v9589_v60 }
 0xe77   : > { %v10823_v23 = vpop.eup %10822  ;;  %10836 = vpow2.f32 %v8681_v63  ;;  %v9592_v4 = vpop.f32.mrf.mxu1 }
 0xe78   : > { %v10825_v41 = vpop.eup %10824  ;;  %8775 = vst [vmem:[%s16082_s1 + $0xa0] sm:$0xff] %v10823_v23  ;;  %v8683_v0 = vmul.f32 1.442695, %v8623_v9  ;;  %v8584_v3 = vadd.f32 %v9591_v54, %v16068_v55 }
 0xe79   : > { %v8715_v10 = vadd.f32 1.0, %v10825_v41  ;;  %v9593_v56 = vpop.f32.mrf.mxu1 }
 0xe7a   : > { %10838 = vpow2.f32 %v8683_v0  ;;  %v8624_v53 = vsub.f32 0.0, %v8584_v3  ;;  %v9594_v5 = vadd.f32 %v9593_v56, %v9592_v4 }
 0xe7b   : > { %v10827_v22 = vpop.eup %10826  ;;  %10840 = vrcp.f32 %v8715_v10  ;;  %v9595_v59 = vpop.f32.mrf.mxu1 }
 0xe7c   : > { %v10829_v34 = vpop.eup %10828  ;;  %8776 = vst [vmem:[%s16082_s1 + $0xa8] sm:$0xff] %v10827_v22  ;;  %v8685_v36 = vmul.f32 1.442695, %v8624_v53  ;;  %v8589_v11 = vadd.f32 %v9594_v5, %v16068_v55 }
 0xe7d   : > { %v8716_v37 = vadd.f32 1.0, %v10829_v34  ;;  %v9596_v45 = vpop.f32.mrf.mxu1 }
 0xe7e   : > { %10842 = vpow2.f32 %v8685_v36  ;;  %v8625_v8 = vsub.f32 0.0, %v8589_v11  ;;  %v9597_v21 = vadd.f32 %v9596_v45, %v9595_v59 }
 0xe7f   : > { %v10831_v39 = vpop.eup %10830  ;;  %10844 = vrcp.f32 %v8716_v37 }
 0xe80   : > { %v10833_v57 = vpop.eup %10832  ;;  %8777 = vst [vmem:[%s16082_s1 + $0xb0] sm:$0xff] %v10831_v39  ;;  %v8687_v62 = vmul.f32 1.442695, %v8625_v8  ;;  %v8592_v61 = vadd.f32 %v9597_v21, %v16068_v55 }
 0xe81   : > { %v8717_v15 = vadd.f32 1.0, %v10833_v57 }
 0xe82   : > { %10846 = vpow2.f32 %v8687_v62  ;;  %v8626_v43 = vsub.f32 0.0, %v8592_v61 }
 0xe83   : > { %v10835_v46 = vpop.eup %10834  ;;  %10848 = vrcp.f32 %v8717_v15 }
 0xe84   : > { %v10837_v40 = vpop.eup %10836  ;;  %8778 = vst [vmem:[%s16082_s1 + $0xb8] sm:$0xff] %v10835_v46  ;;  %v8689_v19 = vmul.f32 1.442695, %v8626_v43 }
 0xe85   : > { %v8718_v52 = vadd.f32 1.0, %v10837_v40 }
 0xe86   : > { %10850 = vpow2.f32 %v8689_v19 }
 0xe87   : > { %v10839_v32 = vpop.eup %10838  ;;  %10852 = vrcp.f32 %v8718_v52 }
 0xe88   : > { %v10841_v27 = vpop.eup %10840  ;;  %v8719_v38 = vadd.f32 1.0, %v10839_v32 }
 0xe89   : > { %8779 = vst [vmem:[%s16082_s1 + $0xc0] sm:$0xff] %v10841_v27 }
 0xe8a   : > { %10854 = vrcp.f32 %v8719_v38 }
 0xe8b   : > { %v10843_v55 = vpop.eup %10842 }
 0xe8c   : > { %v10845_v58 = vpop.eup %10844  ;;  %v8720_v42 = vadd.f32 1.0, %v10843_v55 }
 0xe8d   : > { %8780 = vst [vmem:[%s16082_s1 + $0xc8] sm:$0xff] %v10845_v58 }
 0xe8e   : > { %10856 = vrcp.f32 %v8720_v42 }
 0xe8f   : > { %v10847_v7 = vpop.eup %10846 }
 0xe90   : > { %v10849_v49 = vpop.eup %10848  ;;  %v8721_v28 = vadd.f32 1.0, %v10847_v7 }
 0xe91   : > { %8781 = vst [vmem:[%s16082_s1 + $0xd0] sm:$0xff] %v10849_v49 }
 0xe92   : > { %10858 = vrcp.f32 %v8721_v28 }
 0xe93   : > { %v10851_v1 = vpop.eup %10850 }
 0xe94   : > { %v10853_v51 = vpop.eup %10852  ;;  %v8722_v20 = vadd.f32 1.0, %v10851_v1 }
 0xe95   : > { %8782 = vst [vmem:[%s16082_s1 + $0xd8] sm:$0xff] %v10853_v51 }
 0xe96   : > { %10860 = vrcp.f32 %v8722_v20 }
 0xe97   : > { %v10855_v29 = vpop.eup %10854 }
 0xe98   : > { %8783 = vst [vmem:[%s16082_s1 + $0xe0] sm:$0xff] %v10855_v29 }
 0xe9b   : > { %v10857_v44 = vpop.eup %10856 }
 0xe9c   : > { %8784 = vst [vmem:[%s16082_s1 + $0xe8] sm:$0xff] %v10857_v44 }
 0xe9f   : > { %v10859_v50 = vpop.eup %10858 }
 0xea0   : > { %8785 = vst [vmem:[%s16082_s1 + $0xf0] sm:$0xff] %v10859_v50 }
 0xea3   : > { %v10861_v18 = vpop.eup %10860 }
 0xea4   : > { %8786 = vst [vmem:[%s16082_s1 + $0xf8] sm:$0xff] %v10861_v18 }
 0xea5   : > { %11058 = shalt.err (!%p11055_p7)
}
 0xea6   : > { %s11059_s24 = scalar_lea.hbm %s16143_s3, 4096  ;;  %s11063_s29 = scalar_lea.hbm %s17022_s28, 8192 }
 0xea7   : > { %p11060_p11 = scmp.ne.s32.totalorder %s16143_s3, %s11059_s24  ;;  %p11064_p0 = scmp.lt.s32.totalorder %s16143_s3, %s17022_s28 }
 0xea8   : > { %p11065_p3 = scmp.lt.s32.totalorder %s11063_s29, %s11059_s24 }
 0xea9   : > { %p11061_p12 = pnand %p11060_p11, %p11297_p5 }
 0xeaa   : > { %p11066_p2 = por %p11065_p3, %p11064_p0 }
 0xeab   : > { %p11062_p10 = pneg %p11061_p12 }
 0xead   : > { %p11067_p1 = pnand %p11066_p2, %p11062_p10 }
 0xeaf   : > { %11070 = shalt.err (!%p11067_p1)
}
 0xeb0   : > { %s11137_s6 = smov 128   ;;  %s11138_s23 = smov 8  }
 0xeb1   : > { %9882 = dma.vmem_to_hbm [thread:$0]  (%p11297_p5), %s16145_s25, 4096, %s16143_s3, %s16150_s0, %s11137_s6, %s11137_s6, %s11138_s23  }
 0xeb2 PF: > { %s17023_s2 = sld [smem:[#allocation22_spill]] }
 0xeb3   : > { %s17024_s1 = sld [smem:[#allocation20_spill]] }
 0xeb8   : > { %p9924_p4 = scmp.ge.s32.totalorder %s17023_s2, 2 }
 0xeb9   : > { %s8816_s8 = sand.u32 1, %s17024_s1  }
 0xeba   : > { %p9907_p9 = pnand %p9924_p4, %p11301_p6  ;;  %s8817_s7 = scalar_lea.sflag [#allocation4], %s8816_s8 }
 0xebc   : > { %p9908_p13 = pneg %p9907_p9 }
 0xebe   : > { %11104 = dma.done.wait (%p9908_p13), %s8817_s7, 4096  }
 0xebf   : > { %11106 = vsyncadd (%p9908_p13), %s8817_s7, 4294963200  ;;  %s17026_s25 = sld [smem:[#allocation23_spill]]  ;;  %s17029_s4 = smov %s11113_s30 }
 0xec0   : > { %s17027_s24 = sld [smem:[#allocation21_spill]] }
 0xec1   : > { %s17028_s29 = sld [smem:[#allocation24_spill]] }
 0xec5   : > { %p37_p8 = scmp.ge.s32.totalorder %s17026_s25, 4  }
 0xec6   : > { %s17030_s30 = smov %s17027_s24 }
 0xec7   : > { %s17031_s24 = smov %s17028_s29  ;;  %39 = sbr.rel (!%p37_p8) target bundleno = 18 (0x12), region = 179 }
 0xecc   :  { %8822 = vsyncpa [#allocation3], 1 }
 0xecd   :  { %8824 = vsyncpa [#allocation3 + $0x1], 1 }
 0xece   :  { %8825 = vsyncpa [#allocation6], 1 }
 0xecf   :  { %8826 = vsyncpa [#allocation9], 1 }
 0xed0   :  { %8827 = vsyncpa [#allocation12], 1 }
 0xed1   :  { %8828 = vsyncpa [#allocation4], 1 }
 0xed2   :  { %8830 = vsyncpa [#allocation4 + $0x1], 1 }

</bundles_post_ra>
